<compile_context>
chip_gen: v6e
topology: v6e:2x2x1
jax: 0.10.0
libtpu: 0.0.40
codegen_flags: <defaults>
</compile_context>

<pallas_src>
import numpy as np
import jax
import jax.numpy as jnp
from jax.experimental import pallas as pl
from jax.experimental.pallas import tpu as pltpu


def _round_up(x, m):
    return (x + m - 1) // m * m


# ----------------------------------------------------------------------------
# Posterior coefficients (exact port of get_sigma_schedule + PosteriorCoefficients)
# ----------------------------------------------------------------------------
def posterior_coefficients(num_timesteps=4, beta_min=0.1, beta_max=20.0,
                           use_geometric=False):
    eps_small = 0.001
    t = np.arange(0, num_timesteps + 1, dtype=np.float64) / num_timesteps
    t = t * (1.0 - eps_small) + eps_small
    if use_geometric:
        var = beta_min * (beta_max / beta_min) ** t
    else:
        log_mean_coeff = -0.25 * t ** 2 * (beta_max - beta_min) - 0.5 * t * beta_min
        var = 1.0 - np.exp(2.0 * log_mean_coeff)
    alpha_bars = 1.0 - var
    betas = 1.0 - alpha_bars[1:] / alpha_bars[:-1]
    betas = np.concatenate([[1e-8], betas]).astype(np.float32)

    # PosteriorCoefficients: drop the injected first beta
    betas = betas[1:]
    alphas = (1.0 - betas).astype(np.float32)
    acp = np.cumprod(alphas).astype(np.float32)
    acp_prev = np.concatenate([[1.0], acp[:-1]]).astype(np.float32)
    post_var = betas * (1.0 - acp_prev) / (1.0 - acp)
    post_mu1 = betas * np.sqrt(acp_prev) / (1.0 - acp)
    post_mu2 = (1.0 - acp_prev) * np.sqrt(alphas) / (1.0 - acp)
    post_log_var = np.log(np.clip(post_var, 1e-20, None))
    return (post_mu1.astype(np.float32),
            post_mu2.astype(np.float32),
            post_log_var.astype(np.float32))


# ----------------------------------------------------------------------------
# Fused Pallas kernel: generator + posterior update + final clamp, all timesteps
# ----------------------------------------------------------------------------
def _make_reverse_kernel(T, mu1, mu2, std):
    """Build the fused reverse-diffusion kernel.

    The per-timestep posterior coefficients are compile-time constants baked
    into the kernel (no SMEM table, no scalar loads).  The whole T-step loop is
    unrolled inside one grid step; x is carried as a value (vregs/VMEM only).
    """
    mu1 = [float(v) for v in mu1]
    mu2 = [float(v) for v in mu2]
    std = [float(v) for v in std]

    def kernel(xt_ref, pn_ref, bias_ref, wx_ref, o_ref):
        x = xt_ref[...]                       # (TB, Fp) f32
        pn = pn_ref[...]                      # (TB, Fp) f32
        wx = wx_ref[...]                      # (Fp, Fp) bf16, VMEM-resident
        for i in reversed(range(T)):
            # Stand-in generator: x0 = tanh(x @ Wx + (z @ Wz + temb[i]))
            # z-path + temb were precomputed outside the kernel as bias[i].
            h = jnp.dot(x.astype(jnp.bfloat16), wx,
                        preferred_element_type=jnp.float32)
            h = h + bias_ref[i]
            x0 = jnp.tanh(h)
            x = mu1[i] * x0 + mu2[i] * x
            if i > 0:                         # static noise gate: skip on final step
                x = x + std[i] * pn
        o_ref[...] = jnp.clip(x, -1.0, 1.0)

    return kernel


# ----------------------------------------------------------------------------
# DiffusionGAN forward (latent=False path)
# ----------------------------------------------------------------------------
class DiffusionGANPallas:
    def __init__(self, num_timesteps=4, image_size=16, channels=4, nz=100,
                 seed=0):
        self.num_timesteps = num_timesteps
        self.C = channels
        self.H = self.W = image_size
        self.F = channels * image_size * image_size
        self.nz = nz
        self.Fp = _round_up(self.F, 128)       # lane dim multiple of 128

        mu1, mu2, log_var = posterior_coefficients(
            num_timesteps, beta_min=0.1, beta_max=20.0, use_geometric=False)
        self.post_mu1 = mu1
        self.post_mu2 = mu2
        self.post_log_var = log_var
        std = np.exp(0.5 * log_var).astype(np.float32)
        self._kernel = _make_reverse_kernel(num_timesteps, mu1, mu2, std)

        # Deterministic stand-in generator parameters (bf16 weights, f32 temb).
        key = jax.random.PRNGKey(seed)
        k1, k2, k3 = jax.random.split(key, 3)
        self.Wx = (jax.random.normal(k1, (self.F, self.F), jnp.float32) * 0.02
                   ).astype(jnp.bfloat16)
        self.Wz = (jax.random.normal(k2, (nz, self.F), jnp.float32) * 0.02
                   ).astype(jnp.bfloat16)
        self.temb = jax.random.normal(
            k3, (num_timesteps, self.F), jnp.float32) * 0.1

        # Padded, kernel-side copy of Wx (built once, VMEM-resident per tile).
        self.Wx_k = jnp.zeros((self.Fp, self.Fp), jnp.bfloat16
                              ).at[:self.F, :self.F].set(self.Wx)

    def forward(self, x_t, p_n, zs):
        B = x_t.shape[0]
        T, F, Fp = self.num_timesteps, self.F, self.Fp

        # Batch tiling: multiple of 16 (bf16 sublane packing), capped at 256 so
        # the per-tile (TB, Fp) @ (Fp, Fp) matmul fills the MXU without blowing
        # scoped VMEM.  Large batches get NB >= 2 tiles -> both v7x cores busy.
        Bp = _round_up(max(B, 16), 16)
        TB = min(256, Bp)
        Bp = _round_up(Bp, TB)
        NB = Bp // TB

        x_flat = jnp.zeros((Bp, Fp), jnp.float32
                           ).at[:B, :F].set(x_t.reshape(B, F).astype(jnp.float32))
        pn_flat = jnp.zeros((Bp, Fp), jnp.float32
                            ).at[:B, :F].set(p_n.reshape(B, F).astype(jnp.float32))

        # Hoist the z-path out of the kernel: one big, MXU-friendly XLA matmul
        # (T*B, nz) @ (nz, F), then add temb.  Passed to the kernel as a single
        # resident (T, TB, Fp) bias block per batch tile.
        zs_tb = jnp.transpose(zs, (1, 0, 2)).astype(jnp.bfloat16
                                                    ).reshape(T * B, self.nz)
        bias = jnp.dot(zs_tb, self.Wz,
                       preferred_element_type=jnp.float32).reshape(T, B, F)
        bias = bias + self.temb[:, None, :]
        bias_k = jnp.zeros((T, Bp, Fp), jnp.float32).at[:, :B, :F].set(bias)

        out = pl.pallas_call(
            self._kernel,
            out_shape=jax.ShapeDtypeStruct((Bp, Fp), jnp.float32),
            grid_spec=pltpu.PrefetchScalarGridSpec(
                num_scalar_prefetch=0,
                grid=(NB,),
                in_specs=[
                    pl.BlockSpec((TB, Fp), lambda b: (b, 0)),        # x_t
                    pl.BlockSpec((TB, Fp), lambda b: (b, 0)),        # p_n
                    pl.BlockSpec((T, TB, Fp), lambda b: (0, b, 0)),  # bias (all T steps)
                    pl.BlockSpec((Fp, Fp), lambda b: (0, 0)),        # Wx (resident)
                ],
                out_specs=pl.BlockSpec((TB, Fp), lambda b: (b, 0)),
            ),
            compiler_params=pltpu.CompilerParams(
                dimension_semantics=("parallel",)),
        )(x_flat, pn_flat, bias_k, self.Wx_k)

        return out[:B, :F].reshape(B, self.C, self.H, self.W)


# ----------------------------------------------------------------------------
# Pure-JAX reference (same bf16-weight stand-in generator) for sanity checking
# ----------------------------------------------------------------------------
def reference_forward(model, x_t, p_n, zs):
    B = x_t.shape[0]
    x = x_t.reshape(B, model.F).astype(jnp.float32)
    pn = p_n.reshape(B, model.F).astype(jnp.float32)
    for i in reversed(range(model.num_timesteps)):
        h = jnp.dot(x.astype(jnp.bfloat16), model.Wx,
                    preferred_element_type=jnp.float32)
        h = h + jnp.dot(zs[:, i].astype(jnp.bfloat16), model.Wz,
                        preferred_element_type=jnp.float32)
        h = h + model.temb[i][None, :]
        x0 = jnp.tanh(h)
        x = model.post_mu1[i] * x0 + model.post_mu2[i] * x
        if i > 0:
            x = x + np.exp(0.5 * model.post_log_var[i]) * pn
    x = jnp.clip(x, -1.0, 1.0)
    return x.reshape(B, model.C, model.H, model.W)


if __name__ == "__main__":
    B, C, H, W = 2, 4, 16, 16
    nz, T = 100, 4

    key = jax.random.PRNGKey(0)
    kx, kp, kz = jax.random.split(key, 3)
    x_t = jax.random.normal(kx, (B, C, H, W), jnp.float32)
    p_n = jax.random.normal(kp, (B, C, H, W), jnp.float32)
    zs = jax.random.normal(kz, (B, T, nz), jnp.float32)

    model = DiffusionGANPallas(num_timesteps=T, image_size=H, channels=C, nz=nz)

    out = jax.block_until_ready(model.forward(x_t, p_n, zs))
    ref = jax.block_until_ready(reference_forward(model, x_t, p_n, zs))

    np.testing.assert_allclose(np.asarray(out), np.asarray(ref),
                               rtol=5e-3, atol=5e-3)
    print("KERNEL_OK")
</pallas_src>

<mosaic_0001>
module attributes {stable_mosaic.version = 11 : i64} {
  func.func @kernel(%arg0: i32, %arg1: memref<16x1024xf32, #tpu.memory_space<vmem>>, %arg2: memref<16x1024xf32, #tpu.memory_space<vmem>>, %arg3: memref<4x16x1024xf32, #tpu.memory_space<vmem>>, %arg4: memref<1024x1024xbf16, #tpu.memory_space<vmem>>, %arg5: memref<16x1024xf32, #tpu.memory_space<vmem>>) attributes {dimension_semantics = [#tpu.dimension_semantics<parallel>], iteration_bounds = array<i64: 1>, scalar_prefetch = 0 : i64, scratch_operands = 0 : i64, tpu.core_type = #tpu.core_type<tc>, window_params = [{transform_indices = @transform_0, window_bounds = array<i64: 16, 1024>}, {transform_indices = @transform_1, window_bounds = array<i64: 16, 1024>}, {transform_indices = @transform_2, window_bounds = array<i64: 4, 16, 1024>}, {pipeline_mode = #tpu.pipeline_mode<synchronous>, transform_indices = @transform_3, window_bounds = array<i64: 1024, 1024>}, {transform_indices = @transform_4, window_bounds = array<i64: 16, 1024>}]} {
    %c0 = arith.constant 0 : index
    %c0_0 = arith.constant 0 : index
    %0 = vector.load %arg1[%c0, %c0_0] : memref<16x1024xf32, #tpu.memory_space<vmem>>, vector<16x1024xf32>
    %c0_1 = arith.constant 0 : index
    %c0_2 = arith.constant 0 : index
    %1 = vector.load %arg2[%c0_1, %c0_2] : memref<16x1024xf32, #tpu.memory_space<vmem>>, vector<16x1024xf32>
    %c0_3 = arith.constant 0 : index
    %c0_4 = arith.constant 0 : index
    %2 = vector.load %arg4[%c0_3, %c0_4] : memref<1024x1024xbf16, #tpu.memory_space<vmem>>, vector<1024x1024xbf16>
    %3 = arith.truncf %0 : vector<16x1024xf32> to vector<16x1024xbf16>
    %cst = arith.constant dense<0.000000e+00> : vector<16x1024xf32>
    %4 = tpu.matmul %3, %2, %cst {dimension_numbers = #tpu.dot_dimension_numbers<[1], [0], [0], [1], [0, 0, 1, 1], [], []>} : vector<16x1024xbf16>, vector<1024x1024xbf16>, vector<16x1024xf32> -> vector<16x1024xf32>
    %c3 = arith.constant 3 : index
    %c0_5 = arith.constant 0 : index
    %c0_6 = arith.constant 0 : index
    %5 = vector.load %arg3[%c3, %c0_5, %c0_6] : memref<4x16x1024xf32, #tpu.memory_space<vmem>>, vector<1x16x1024xf32>
    %6 = vector.shape_cast %5 : vector<1x16x1024xf32> to vector<16x1024xf32>
    %7 = arith.addf %4, %6 : vector<16x1024xf32>
    %8 = math.tanh %7 : vector<16x1024xf32>
    %cst_7 = arith.constant 0.0578215607 : f32
    %9 = vector.broadcast %cst_7 : f32 to vector<16x1024xf32>
    %10 = arith.mulf %9, %8 : vector<16x1024xf32>
    %cst_8 = arith.constant 0.111852221 : f32
    %11 = vector.broadcast %cst_8 : f32 to vector<16x1024xf32>
    %12 = arith.mulf %11, %0 : vector<16x1024xf32>
    %13 = arith.addf %10, %12 : vector<16x1024xf32>
    %cst_9 = arith.constant 0.991998374 : f32
    %14 = vector.broadcast %cst_9 : f32 to vector<16x1024xf32>
    %15 = arith.mulf %14, %1 : vector<16x1024xf32>
    %16 = arith.addf %13, %15 : vector<16x1024xf32>
    %17 = arith.truncf %16 : vector<16x1024xf32> to vector<16x1024xbf16>
    %cst_10 = arith.constant dense<0.000000e+00> : vector<16x1024xf32>
    %18 = tpu.matmul %17, %2, %cst_10 {dimension_numbers = #tpu.dot_dimension_numbers<[1], [0], [0], [1], [0, 0, 1, 1], [], []>} : vector<16x1024xbf16>, vector<1024x1024xbf16>, vector<16x1024xf32> -> vector<16x1024xf32>
    %c2 = arith.constant 2 : index
    %c0_11 = arith.constant 0 : index
    %c0_12 = arith.constant 0 : index
    %19 = vector.load %arg3[%c2, %c0_11, %c0_12] : memref<4x16x1024xf32, #tpu.memory_space<vmem>>, vector<1x16x1024xf32>
    %20 = vector.shape_cast %19 : vector<1x16x1024xf32> to vector<16x1024xf32>
    %21 = arith.addf %18, %20 : vector<16x1024xf32>
    %22 = math.tanh %21 : vector<16x1024xf32>
    %cst_13 = arith.constant 0.269190848 : f32
    %23 = vector.broadcast %cst_13 : f32 to vector<16x1024xf32>
    %24 = arith.mulf %23, %22 : vector<16x1024xf32>
    %cst_14 = arith.constant 0.193000868 : f32
    %25 = vector.broadcast %cst_14 : f32 to vector<16x1024xf32>
    %26 = arith.mulf %25, %16 : vector<16x1024xf32>
    %27 = arith.addf %24, %26 : vector<16x1024xf32>
    %cst_15 = arith.constant 0.940320312 : f32
    %28 = vector.broadcast %cst_15 : f32 to vector<16x1024xf32>
    %29 = arith.mulf %28, %1 : vector<16x1024xf32>
    %30 = arith.addf %27, %29 : vector<16x1024xf32>
    %31 = arith.truncf %30 : vector<16x1024xf32> to vector<16x1024xbf16>
    %cst_16 = arith.constant dense<0.000000e+00> : vector<16x1024xf32>
    %32 = tpu.matmul %31, %2, %cst_16 {dimension_numbers = #tpu.dot_dimension_numbers<[1], [0], [0], [1], [0, 0, 1, 1], [], []>} : vector<16x1024xbf16>, vector<1024x1024xbf16>, vector<16x1024xf32> -> vector<16x1024xf32>
    %c1 = arith.constant 1 : index
    %c0_17 = arith.constant 0 : index
    %c0_18 = arith.constant 0 : index
    %33 = vector.load %arg3[%c1, %c0_17, %c0_18] : memref<4x16x1024xf32, #tpu.memory_space<vmem>>, vector<1x16x1024xf32>
    %34 = vector.shape_cast %33 : vector<1x16x1024xf32> to vector<16x1024xf32>
    %35 = arith.addf %32, %34 : vector<16x1024xf32>
    %36 = math.tanh %35 : vector<16x1024xf32>
    %cst_19 = arith.constant 0.665778458 : f32
    %37 = vector.broadcast %cst_19 : f32 to vector<16x1024xf32>
    %38 = arith.mulf %37, %36 : vector<16x1024xf32>
    %cst_20 = arith.constant 0.201576263 : f32
    %39 = vector.broadcast %cst_20 : f32 to vector<16x1024xf32>
    %40 = arith.mulf %39, %30 : vector<16x1024xf32>
    %41 = arith.addf %38, %40 : vector<16x1024xf32>
    %cst_21 = arith.constant 0.663942158 : f32
    %42 = vector.broadcast %cst_21 : f32 to vector<16x1024xf32>
    %43 = arith.mulf %42, %1 : vector<16x1024xf32>
    %44 = arith.addf %41, %43 : vector<16x1024xf32>
    %45 = arith.truncf %44 : vector<16x1024xf32> to vector<16x1024xbf16>
    %cst_22 = arith.constant dense<0.000000e+00> : vector<16x1024xf32>
    %46 = tpu.matmul %45, %2, %cst_22 {dimension_numbers = #tpu.dot_dimension_numbers<[1], [0], [0], [1], [0, 0, 1, 1], [], []>} : vector<16x1024xbf16>, vector<1024x1024xbf16>, vector<16x1024xf32> -> vector<16x1024xf32>
    %c0_23 = arith.constant 0 : index
    %c0_24 = arith.constant 0 : index
    %c0_25 = arith.constant 0 : index
    %47 = vector.load %arg3[%c0_23, %c0_24, %c0_25] : memref<4x16x1024xf32, #tpu.memory_space<vmem>>, vector<1x16x1024xf32>
    %48 = vector.shape_cast %47 : vector<1x16x1024xf32> to vector<16x1024xf32>
    %49 = arith.addf %46, %48 : vector<16x1024xf32>
    %50 = math.tanh %49 : vector<16x1024xf32>
    %cst_26 = arith.constant 1.00000012 : f32
    %51 = vector.broadcast %cst_26 : f32 to vector<16x1024xf32>
    %52 = arith.mulf %51, %50 : vector<16x1024xf32>
    %cst_27 = arith.constant 0.000000e+00 : f32
    %53 = vector.broadcast %cst_27 : f32 to vector<16x1024xf32>
    %54 = arith.mulf %53, %44 : vector<16x1024xf32>
    %55 = arith.addf %52, %54 : vector<16x1024xf32>
    %cst_28 = arith.constant -1.000000e+00 : f32
    %cst_29 = arith.constant 1.000000e+00 : f32
    %56 = vector.broadcast %cst_28 : f32 to vector<16x1024xf32>
    %57 = arith.maximumf %56, %55 : vector<16x1024xf32>
    %58 = vector.broadcast %cst_29 : f32 to vector<16x1024xf32>
    %59 = arith.minimumf %58, %57 : vector<16x1024xf32>
    %c0_30 = arith.constant 0 : index
    %c0_31 = arith.constant 0 : index
    %60 = vector.load %arg5[%c0_30, %c0_31] : memref<16x1024xf32, #tpu.memory_space<vmem>>, vector<16x1024xf32>
    tpu.vector_store %arg5[%c0_30, %c0_31], %59 {strides = array<i32>} : memref<16x1024xf32, #tpu.memory_space<vmem>>, vector<16x1024xf32>,
    return
  }
  func.func @transform_0(%arg0: i32) -> (i32, i32) {
    %c0_i32 = arith.constant 0 : i32
    %c0_i32_0 = arith.constant 0 : i32
    return %arg0, %c0_i32 : i32, i32
  }
  func.func @transform_1(%arg0: i32) -> (i32, i32) {
    %c0_i32 = arith.constant 0 : i32
    %c0_i32_0 = arith.constant 0 : i32
    return %arg0, %c0_i32 : i32, i32
  }
  func.func @transform_2(%arg0: i32) -> (i32, i32, i32) {
    %c0_i32 = arith.constant 0 : i32
    %c0_i32_0 = arith.constant 0 : i32
    %c0_i32_1 = arith.constant 0 : i32
    return %c0_i32, %arg0, %c0_i32_0 : i32, i32, i32
  }
  func.func @transform_3(%arg0: i32) -> (i32, i32) {
    %c0_i32 = arith.constant 0 : i32
    %c0_i32_0 = arith.constant 0 : i32
    %c0_i32_1 = arith.constant 0 : i32
    return %c0_i32, %c0_i32_0 : i32, i32
  }
  func.func @transform_4(%arg0: i32) -> (i32, i32) {
    %c0_i32 = arith.constant 0 : i32
    %c0_i32_0 = arith.constant 0 : i32
    return %arg0, %c0_i32 : i32, i32
  }
}

</mosaic_0001>

<bundles_post_ra>
// kernel: tpu_custom_call.1
= control target key start
LH: loop header
LB: loop body
LE: loop exit
PB: predicated region body
PF: predicated region fallthrough
CT: control target
= control target key end

     0   :  { %9 = vsyncpa [#allocation3], 0  ;;  %s10935_s0 = inlined_call_operand.hbm [shape: f32[16,1024], index: 0, kind: input, shape index: {}]   ;;  %s10936_s1 = inlined_call_operand.hbm [shape: f32[16,1024], index: 1, kind: input, shape index: {}]   ;;  %s10937_s2 = inlined_call_operand.hbm [shape: f32[4,16,1024], index: 2, kind: input, shape index: {}]   ;;  %s10938_s3 = inlined_call_operand.hbm [shape: bf16[1024,1024], index: 3, kind: input, shape index: {}]   ;;  %s10939_s4 = inlined_call_operand.hbm [shape: f32[16,1024], index: 4, kind: output, shape index: {}]  }
   0x1   :  { %10 = vsyncpa [#allocation6], 0 }
   0x2   :  { %11 = vsyncpa [#allocation9], 0 }
   0x3   :  { %12 = vsyncpa [#allocation4], 0  ;;  %s7268_s15 = smov [#allocation5]   ;;  %s7269_s17 = smov [#allocation2]  }
   0x4   :  { %s30_s16 = sshll.u32 %s7268_s15, 4  ;;  %s18_s18 = sshll.u32 %s7269_s17, 4  ;;  %s31_s16 = int_to_ptr.vmem [resolvable:$true] %s30_s16  ;;  %s19_s18 = int_to_ptr.vmem [resolvable:$true] %s18_s18 }
   0x5   :  { %s7168_s19 = scalar_lea.vmem %s31_s16, 2048  ;;  %p7173_p1 = scmp.lt.s32.totalorder %s31_s16, %s31_s16 }
   0x6   :  { %p7169_p0 = scmp.ne.s32.totalorder %s31_s16, %s7168_s19  ;;  %p7174_p2 = scmp.lt.s32.totalorder %s7168_s19, %s7168_s19 }
   0x8   :  { %p7175_p3 = por %p7174_p2, %p7173_p1 }
   0xa   :  { %p7176_p4 = pnand %p7175_p3, %p7169_p0 }
   0xc   :  { %7179 = shalt.err (!%p7176_p4)
}
   0xd   :  { %s7270_s20 = smov 1024   ;;  %s7271_s21 = smov 64  }
   0xe   :  { %36 = dma.hbm_to_vmem [thread:$0]  %s10936_s1, 2048, %s31_s16, [#allocation6], %s7270_s20, %s7270_s20, %s7271_s21  }
   0xf   :  { %s7188_s24 = scalar_lea.vmem %s19_s18, 2048  ;;  %p7193_p6 = scmp.lt.s32.totalorder %s19_s18, %s19_s18 }
  0x10   :  { %p7189_p5 = scmp.ne.s32.totalorder %s19_s18, %s7188_s24  ;;  %p7194_p7 = scmp.lt.s32.totalorder %s7188_s24, %s7188_s24 }
  0x12   :  { %p7195_p8 = por %p7194_p7, %p7193_p6 }
  0x14   :  { %p7196_p9 = pnand %p7195_p8, %p7189_p5 }
  0x16   :  { %7199 = shalt.err (!%p7196_p9)
}
  0x17   :  { %24 = dma.hbm_to_vmem [thread:$0]  %s10935_s0, 2048, %s19_s18, [#allocation3], %s7270_s20, %s7270_s20, %s7271_s21  }
  0x18   :  { %s7272_s27 = smov [#allocation7]   ;;  %s7273_s29 = smov [#allocation8]  }
  0x19   :  { %s42_s28 = sshll.u32 %s7272_s27, 4  ;;  %s54_s30 = sshll.u32 %s7273_s29, 4  ;;  %s43_s28 = int_to_ptr.vmem [resolvable:$true] %s42_s28  ;;  %s55_s30 = int_to_ptr.vmem [resolvable:$true] %s54_s30 }
  0x1a   :  { %s7208_s1 = scalar_lea.vmem %s43_s28, 8192  ;;  %p7213_p11 = scmp.lt.s32.totalorder %s43_s28, %s43_s28 }
  0x1b   :  { %p7209_p10 = scmp.ne.s32.totalorder %s43_s28, %s7208_s1  ;;  %p7214_p12 = scmp.lt.s32.totalorder %s7208_s1, %s7208_s1 }
  0x1d   :  { %p7215_p13 = por %p7214_p12, %p7213_p11 }
  0x1f   :  { %p7216_p0 = pnand %p7215_p13, %p7209_p10 }
  0x21   :  { %7219 = shalt.err (!%p7216_p0)
}
  0x22   :  { %48 = dma.hbm_to_vmem [thread:$0]  %s10937_s2, 8192, %s43_s28, [#allocation6], %s7270_s20, %s7270_s20, %s7271_s21  }
  0x23   :  { %s7228_s0 = scalar_lea.vmem %s55_s30, 65536  ;;  %p7233_p2 = scmp.lt.s32.totalorder %s55_s30, %s55_s30 }
  0x24   :  { %p7229_p1 = scmp.ne.s32.totalorder %s55_s30, %s7228_s0  ;;  %p7234_p3 = scmp.lt.s32.totalorder %s7228_s0, %s7228_s0 }
  0x26   :  { %p7235_p4 = por %p7234_p3, %p7233_p2 }
  0x28   :  { %p7236_p5 = pnand %p7235_p4, %p7229_p1 }
  0x2a   :  { %7239 = shalt.err (!%p7236_p5)
}
  0x2b   :  { %s7274_s7 = smov 512   ;;  %s7275_s8 = smov 32  }
  0x2c   :  { %60 = dma.hbm_to_vmem [thread:$0]  %s10938_s3, 65536, %s55_s30, [#allocation9], %s7274_s7, %s7274_s7, %s7275_s8  }
  0x2d   :  { %7260 = dma.done.wait [#allocation3], 2048  }
  0x2e   :  { %7261 = vsyncadd [#allocation3], 4294965248 }
  0x2f   :  { %7262 = dma.done.wait [#allocation6], 10240  }
  0x30   :  { %7263 = vsyncadd [#allocation6], 4294957056 }
  0x31   :  { %7264 = dma.done.wait [#allocation9], 65536  }
  0x32   :  { %7265 = vsyncadd [#allocation9], 4294901760  ;;  %v161_v0 = vld [vmem:[#allocation8 + $0x1c0] sm:$0xff]  ;;  %v74_v54 = vld [vmem:[#allocation2 + $0x8] sm:$0xff]  ;;  %s7276_s2 = smov [#allocation10]  }
  0x33   :  { %v165_v1 = vld [vmem:[#allocation8 + $0x1e0] sm:$0xff]  ;;  %v82_v55 = vld [vmem:[#allocation2 + $0x48] sm:$0xff]  ;;  %v76_v59 = vld [vmem:[#allocation2 + $0x18] sm:$0xff]  ;;  %s6433_s3 = sshll.u32 %s7276_s2, 4  ;;  %s6434_s3 = int_to_ptr.vmem [resolvable:$true] %s6433_s3 }
  0x34   :  { %v289_v2 = vld [vmem:[#allocation8 + $0x5c0] sm:$0xff]  ;;  %v7323_v3 = vcombine.high %v161_v0, %v165_v1  ;;  %v7325_v5 = vcombine.low %v161_v0, %v165_v1  ;;  %v7397_v58 = vpack.c.bf16 %v82_v55, %v74_v54  ;;  %v84_v60 = vld [vmem:[#allocation2 + $0x58] sm:$0xff]  ;;  %s7240_s11 = scalar_lea.vmem %s6434_s3, 2048  ;;  %p7245_p7 = scmp.lt.s32.totalorder %s6434_s3, %s6434_s3 }
  0x35   :  { %v293_v4 = vld [vmem:[#allocation8 + $0x5e0] sm:$0xff]  ;;  %v7399_v63 = vpack.c.bf16 %v84_v60, %v76_v59  ;;  %p7241_p6 = scmp.ne.s32.totalorder %s6434_s3, %s7240_s11  ;;  %p7246_p8 = scmp.lt.s32.totalorder %s7240_s11, %s7240_s11 }
  0x36   :  { %v153_v6 = vld [vmem:[#allocation8 + $0x180] sm:$0xff]  ;;  %v7327_v8 = vcombine.high %v289_v2, %v293_v4  ;;  %v7329_v9 = vcombine.low %v289_v2, %v293_v4  ;;  %3202 = vmatprep.subr.bf16.mxu0 %v7323_v3  ;;  %3234 = vmatprep.mubr.bf16.mxu0 %v7397_v58 }
  0x37   :  { %v157_v7 = vld [vmem:[#allocation8 + $0x1a0] sm:$0xff]  ;;  %3203 = vmatpush1.bf16.msra.mxu0 %v7325_v5  ;;  %3277 = vmatprep.mubr.bf16.mxu1 %v7399_v63  ;;  %p7247_p9 = por %p7246_p8, %p7245_p7 }
  0x38   :  { %11996 = vst [vmem:[#allocation15_spill] sm:$0xff] %v7327_v8  ;;  %11997 = vst [vmem:[#allocation16_spill] sm:$0xff] %v7329_v9  ;;  %v7331_v10 = vcombine.high %v153_v6, %v157_v7  ;;  %v281_v11 = vld [vmem:[#allocation8 + $0x580] sm:$0xff]  ;;  %3245 = vmatprep.subr.bf16.mxu1 %v7327_v8  ;;  %v7338_v18 = vcombine.low %v153_v6, %v157_v7 }
  0x39   :  { %v285_v12 = vld [vmem:[#allocation8 + $0x5a0] sm:$0xff]  ;;  %3246 = vmatpush1.bf16.msra.mxu1 %v7329_v9  ;;  %p7248_p10 = pnand %p7247_p9, %p7241_p6 }
  0x3a   :  { %11998 = vst [vmem:[#allocation17_spill] sm:$0xff] %v7331_v10  ;;  %v145_v13 = vld [vmem:[#allocation8 + $0x140] sm:$0xff]  ;;  %v7334_v14 = vcombine.high %v281_v11, %v285_v12  ;;  %12000 = vst [vmem:[#allocation19_spill] sm:$0xff] %v7338_v18  ;;  %3204 = vmatprep.subr.bf16.mxu0 %v7331_v10  ;;  %v7342_v19 = vcombine.low %v281_v11, %v285_v12 }
  0x3b   :  { %v149_v15 = vld [vmem:[#allocation8 + $0x160] sm:$0xff]  ;;  %3205 = vmatpush1.bf16.msra.mxu0 %v7338_v18 }
  0x3c   :  { %11999 = vst [vmem:[#allocation18_spill] sm:$0xff] %v7334_v14  ;;  %v273_v16 = vld [vmem:[#allocation8 + $0x540] sm:$0xff]  ;;  %12001 = vst [vmem:[#allocation20_spill] sm:$0xff] %v7342_v19  ;;  %v7344_v20 = vcombine.high %v145_v13, %v149_v15  ;;  %3247 = vmatprep.subr.bf16.mxu1 %v7334_v14  ;;  %v7350_v26 = vcombine.low %v145_v13, %v149_v15 }
  0x3d   :  { %v277_v17 = vld [vmem:[#allocation8 + $0x560] sm:$0xff]  ;;  %3248 = vmatpush1.bf16.msra.mxu1 %v7342_v19 }
  0x3e   :  { %12002 = vst [vmem:[#allocation21_spill] sm:$0xff] %v7344_v20  ;;  %v7347_v21 = vcombine.high %v273_v16, %v277_v17  ;;  %v137_v22 = vld [vmem:[#allocation8 + $0x100] sm:$0xff]  ;;  %12004 = vst [vmem:[#allocation23_spill] sm:$0xff] %v7350_v26  ;;  %3206 = vmatprep.subr.bf16.mxu0 %v7344_v20  ;;  %v7354_v27 = vcombine.low %v273_v16, %v277_v17 }
  0x3f   :  { %v141_v23 = vld [vmem:[#allocation8 + $0x120] sm:$0xff]  ;;  %3207 = vmatpush1.bf16.msra.mxu0 %v7350_v26 }
  0x40   :  { %12003 = vst [vmem:[#allocation22_spill] sm:$0xff] %v7347_v21  ;;  %v265_v24 = vld [vmem:[#allocation8 + $0x500] sm:$0xff]  ;;  %12005 = vst [vmem:[#allocation24_spill] sm:$0xff] %v7354_v27  ;;  %v7356_v28 = vcombine.high %v137_v22, %v141_v23  ;;  %3249 = vmatprep.subr.bf16.mxu1 %v7347_v21  ;;  %v7362_v34 = vcombine.low %v137_v22, %v141_v23 }
  0x41   :  { %v269_v25 = vld [vmem:[#allocation8 + $0x520] sm:$0xff]  ;;  %3250 = vmatpush1.bf16.msra.mxu1 %v7354_v27 }
  0x42   :  { %12006 = vst [vmem:[#allocation25_spill] sm:$0xff] %v7356_v28  ;;  %v7359_v29 = vcombine.high %v265_v24, %v269_v25  ;;  %v129_v30 = vld [vmem:[#allocation8 + $0xc0] sm:$0xff]  ;;  %12008 = vst [vmem:[#allocation27_spill] sm:$0xff] %v7362_v34  ;;  %3208 = vmatprep.subr.bf16.mxu0 %v7356_v28  ;;  %v7366_v35 = vcombine.low %v265_v24, %v269_v25 }
  0x43   :  { %v133_v31 = vld [vmem:[#allocation8 + $0xe0] sm:$0xff]  ;;  %3209 = vmatpush1.bf16.msra.mxu0 %v7362_v34 }
  0x44   :  { %12007 = vst [vmem:[#allocation26_spill] sm:$0xff] %v7359_v29  ;;  %v257_v32 = vld [vmem:[#allocation8 + $0x4c0] sm:$0xff]  ;;  %12009 = vst [vmem:[#allocation28_spill] sm:$0xff] %v7366_v35  ;;  %v7368_v36 = vcombine.high %v129_v30, %v133_v31  ;;  %3251 = vmatprep.subr.bf16.mxu1 %v7359_v29  ;;  %v7374_v42 = vcombine.low %v129_v30, %v133_v31 }
  0x45   :  { %v261_v33 = vld [vmem:[#allocation8 + $0x4e0] sm:$0xff]  ;;  %3252 = vmatpush1.bf16.msra.mxu1 %v7366_v35 }
  0x46   :  { %12010 = vst [vmem:[#allocation29_spill] sm:$0xff] %v7368_v36  ;;  %v7371_v37 = vcombine.high %v257_v32, %v261_v33  ;;  %v121_v38 = vld [vmem:[#allocation8 + $0x80] sm:$0xff]  ;;  %12012 = vst [vmem:[#allocation31_spill] sm:$0xff] %v7374_v42  ;;  %3210 = vmatprep.subr.bf16.mxu0 %v7368_v36  ;;  %v7378_v43 = vcombine.low %v257_v32, %v261_v33 }
  0x47   :  { %v125_v39 = vld [vmem:[#allocation8 + $0xa0] sm:$0xff]  ;;  %3211 = vmatpush1.bf16.msra.mxu0 %v7374_v42 }
  0x48   :  { %12011 = vst [vmem:[#allocation30_spill] sm:$0xff] %v7371_v37  ;;  %v249_v40 = vld [vmem:[#allocation8 + $0x480] sm:$0xff]  ;;  %12013 = vst [vmem:[#allocation32_spill] sm:$0xff] %v7378_v43  ;;  %v7380_v44 = vcombine.high %v121_v38, %v125_v39  ;;  %3253 = vmatprep.subr.bf16.mxu1 %v7371_v37  ;;  %v7386_v50 = vcombine.low %v121_v38, %v125_v39 }
  0x49   :  { %v253_v41 = vld [vmem:[#allocation8 + $0x4a0] sm:$0xff]  ;;  %3254 = vmatpush1.bf16.msra.mxu1 %v7378_v43 }
  0x4a   :  { %12014 = vst [vmem:[#allocation33_spill] sm:$0xff] %v7380_v44  ;;  %v7383_v45 = vcombine.high %v249_v40, %v253_v41  ;;  %v113_v46 = vld [vmem:[#allocation8 + $0x40] sm:$0xff]  ;;  %12016 = vst [vmem:[#allocation35_spill] sm:$0xff] %v7386_v50  ;;  %3212 = vmatprep.subr.bf16.mxu0 %v7380_v44  ;;  %v7390_v51 = vcombine.low %v249_v40, %v253_v41 }
  0x4b   :  { %v117_v47 = vld [vmem:[#allocation8 + $0x60] sm:$0xff]  ;;  %3213 = vmatpush1.bf16.msra.mxu0 %v7386_v50  ;;  %v7115_v50 = vld [vmem:[#allocation2 + $0x50] sm:$0xff] }
  0x4c   :  { %12015 = vst [vmem:[#allocation34_spill] sm:$0xff] %v7383_v45  ;;  %v241_v48 = vld [vmem:[#allocation8 + $0x440] sm:$0xff]  ;;  %12017 = vst [vmem:[#allocation36_spill] sm:$0xff] %v7390_v51  ;;  %v7392_v52 = vcombine.high %v113_v46, %v117_v47  ;;  %3255 = vmatprep.subr.bf16.mxu1 %v7383_v45  ;;  %v7402_v0 = vcombine.low %v113_v46, %v117_v47 }
  0x4d   :  { %v245_v49 = vld [vmem:[#allocation8 + $0x460] sm:$0xff]  ;;  %3256 = vmatpush1.bf16.msra.mxu1 %v7390_v51  ;;  %v615_v51 = vld [vmem:[#allocation8 + $0xff0] sm:$0xff] }
  0x4e   :  { %12018 = vst [vmem:[#allocation37_spill] sm:$0xff] %v7392_v52  ;;  %v105_v53 = vld [vmem:[#allocation8] sm:$0xff]  ;;  %v7395_v56 = vcombine.high %v241_v48, %v245_v49  ;;  %12020 = vst [vmem:[#allocation39_spill] sm:$0xff] %v7402_v0  ;;  %3214 = vmatprep.subr.bf16.mxu0 %v7392_v52  ;;  %v7407_v1 = vcombine.low %v241_v48, %v245_v49 }
  0x4f   :  { %v109_v57 = vld [vmem:[#allocation8 + $0x20] sm:$0xff]  ;;  %3215 = vmatpush1.bf16.msra.mxu0 %v7402_v0 }
  0x50   :  { %12019 = vst [vmem:[#allocation38_spill] sm:$0xff] %v7395_v56  ;;  %v233_v61 = vld [vmem:[#allocation8 + $0x400] sm:$0xff]  ;;  %12021 = vst [vmem:[#allocation40_spill] sm:$0xff] %v7407_v1  ;;  %v7409_v2 = vcombine.high %v105_v53, %v109_v57  ;;  %3257 = vmatprep.subr.bf16.mxu1 %v7395_v56  ;;  %v7416_v13 = vcombine.low %v105_v53, %v109_v57 }
  0x51   :  { %v237_v62 = vld [vmem:[#allocation8 + $0x420] sm:$0xff]  ;;  %3258 = vmatpush1.bf16.msra.mxu1 %v7407_v1  ;;  %v495_v1 = vld [vmem:[#allocation8 + $0xc30] sm:$0xff] }
  0x52   :  { %12022 = vst [vmem:[#allocation41_spill] sm:$0xff] %v7409_v2  ;;  %v7412_v4 = vcombine.high %v233_v61, %v237_v62  ;;  %v225_v6 = vld [vmem:[#allocation8 + $0x3c0] sm:$0xff]  ;;  %12024 = vst [vmem:[#allocation43_spill] sm:$0xff] %v7416_v13  ;;  %3216 = vmatprep.subr.bf16.mxu0 %v7409_v2  ;;  %v7420_v15 = vcombine.low %v233_v61, %v237_v62 }
  0x53   :  { %v229_v7 = vld [vmem:[#allocation8 + $0x3e0] sm:$0xff]  ;;  %3217 = vmatpush1.bf16.msra.mxu0 %v7416_v13 }
  0x54   :  { %12023 = vst [vmem:[#allocation42_spill] sm:$0xff] %v7412_v4  ;;  %v353_v11 = vld [vmem:[#allocation8 + $0x7c0] sm:$0xff]  ;;  %12025 = vst [vmem:[#allocation44_spill] sm:$0xff] %v7420_v15  ;;  %v7422_v16 = vcombine.high %v225_v6, %v229_v7  ;;  %3259 = vmatprep.subr.bf16.mxu1 %v7412_v4  ;;  %v7428_v30 = vcombine.low %v225_v6, %v229_v7 }
  0x55   :  { %v357_v12 = vld [vmem:[#allocation8 + $0x7e0] sm:$0xff]  ;;  %3260 = vmatpush1.bf16.msra.mxu1 %v7420_v15 }
  0x56   :  { %12026 = vst [vmem:[#allocation45_spill] sm:$0xff] %v7422_v16  ;;  %v7425_v17 = vcombine.high %v353_v11, %v357_v12  ;;  %v217_v22 = vld [vmem:[#allocation8 + $0x380] sm:$0xff]  ;;  %12028 = vst [vmem:[#allocation47_spill] sm:$0xff] %v7428_v30  ;;  %3218 = vmatprep.subr.bf16.mxu0 %v7422_v16  ;;  %v7432_v31 = vcombine.low %v353_v11, %v357_v12 }
  0x57   :  { %v221_v23 = vld [vmem:[#allocation8 + $0x3a0] sm:$0xff]  ;;  %3219 = vmatpush2.bf16.msra.mxu0 %v7428_v30 }
  0x58   :  { %12027 = vst [vmem:[#allocation46_spill] sm:$0xff] %v7425_v17  ;;  %v345_v24 = vld [vmem:[#allocation8 + $0x780] sm:$0xff]  ;;  %12029 = vst [vmem:[#allocation48_spill] sm:$0xff] %v7432_v31  ;;  %v7434_v32 = vcombine.high %v217_v22, %v221_v23  ;;  %3261 = vmatprep.subr.bf16.mxu1 %v7425_v17  ;;  %v7440_v46 = vcombine.low %v217_v22, %v221_v23  ;;  %v271_v17 = vld [vmem:[#allocation8 + $0x530] sm:$0xff] }
  0x59   :  { %v349_v25 = vld [vmem:[#allocation8 + $0x7a0] sm:$0xff]  ;;  %3262 = vmatpush2.bf16.msra.mxu1 %v7432_v31 }
  0x5a   :  { %12030 = vst [vmem:[#allocation49_spill] sm:$0xff] %v7434_v32  ;;  %v7437_v33 = vcombine.high %v345_v24, %v349_v25  ;;  %v209_v38 = vld [vmem:[#allocation8 + $0x340] sm:$0xff]  ;;  %12032 = vst [vmem:[#allocation51_spill] sm:$0xff] %v7440_v46  ;;  %3220 = vmatprep.subr.bf16.mxu0 %v7434_v32  ;;  %v7444_v47 = vcombine.low %v345_v24, %v349_v25  ;;  %v286_v32 = vld [vmem:[#allocation8 + $0x5a8] sm:$0xff] }
  0x5b   :  { %v213_v39 = vld [vmem:[#allocation8 + $0x360] sm:$0xff]  ;;  %3221 = vmatpush2.bf16.msra.mxu0 %v7440_v46  ;;  %v88_v46 = vld [vmem:[#allocation2 + $0x78] sm:$0xff] }
  0x5c   :  { %12031 = vst [vmem:[#allocation50_spill] sm:$0xff] %v7437_v33  ;;  %v337_v40 = vld [vmem:[#allocation8 + $0x740] sm:$0xff]  ;;  %12033 = vst [vmem:[#allocation52_spill] sm:$0xff] %v7444_v47  ;;  %v7446_v48 = vcombine.high %v209_v38, %v213_v39  ;;  %3263 = vmatprep.subr.bf16.mxu1 %v7437_v33  ;;  %v7452_v59 = vcombine.low %v209_v38, %v213_v39 }
  0x5d   :  { %v341_v41 = vld [vmem:[#allocation8 + $0x760] sm:$0xff]  ;;  %3264 = vmatpush2.bf16.msra.mxu1 %v7444_v47  ;;  %v78_v47 = vld [vmem:[#allocation2 + $0x28] sm:$0xff] }
  0x5e   :  { %12034 = vst [vmem:[#allocation53_spill] sm:$0xff] %v7446_v48  ;;  %v7449_v49 = vcombine.high %v337_v40, %v341_v41  ;;  %v201_v53 = vld [vmem:[#allocation8 + $0x300] sm:$0xff]  ;;  %12036 = vst [vmem:[#allocation55_spill] sm:$0xff] %v7452_v59  ;;  %3222 = vmatprep.subr.bf16.mxu0 %v7446_v48  ;;  %v7456_v60 = vcombine.low %v337_v40, %v341_v41 }
  0x5f   :  { %v205_v54 = vld [vmem:[#allocation8 + $0x320] sm:$0xff]  ;;  %3223 = vmatpush2.bf16.msra.mxu0 %v7452_v59 }
  0x60   :  { %12035 = vst [vmem:[#allocation54_spill] sm:$0xff] %v7449_v49  ;;  %v329_v55 = vld [vmem:[#allocation8 + $0x700] sm:$0xff]  ;;  %12037 = vst [vmem:[#allocation56_spill] sm:$0xff] %v7456_v60  ;;  %v7458_v61 = vcombine.high %v201_v53, %v205_v54  ;;  %3265 = vmatprep.subr.bf16.mxu1 %v7449_v49  ;;  %v7464_v22 = vcombine.low %v201_v53, %v205_v54 }
  0x61   :  { %v333_v57 = vld [vmem:[#allocation8 + $0x720] sm:$0xff]  ;;  %3266 = vmatpush2.bf16.msra.mxu1 %v7456_v60 }
  0x62   :  { %12038 = vst [vmem:[#allocation57_spill] sm:$0xff] %v7458_v61  ;;  %v7461_v62 = vcombine.high %v329_v55, %v333_v57  ;;  %v193_v6 = vld [vmem:[#allocation8 + $0x2c0] sm:$0xff]  ;;  %12040 = vst [vmem:[#allocation59_spill] sm:$0xff] %v7464_v22  ;;  %3224 = vmatprep.subr.bf16.mxu0 %v7458_v61  ;;  %v7468_v23 = vcombine.low %v329_v55, %v333_v57 }
  0x63   :  { %v197_v7 = vld [vmem:[#allocation8 + $0x2e0] sm:$0xff]  ;;  %3225 = vmatpush2.bf16.msra.mxu0 %v7464_v22 }
  0x64   :  { %12039 = vst [vmem:[#allocation58_spill] sm:$0xff] %v7461_v62  ;;  %v321_v11 = vld [vmem:[#allocation8 + $0x6c0] sm:$0xff]  ;;  %12041 = vst [vmem:[#allocation60_spill] sm:$0xff] %v7468_v23  ;;  %v7470_v24 = vcombine.high %v193_v6, %v197_v7  ;;  %3267 = vmatprep.subr.bf16.mxu1 %v7461_v62  ;;  %v7476_v53 = vcombine.low %v193_v6, %v197_v7 }
  0x65   :  { %v325_v12 = vld [vmem:[#allocation8 + $0x6e0] sm:$0xff]  ;;  %3268 = vmatpush2.bf16.msra.mxu1 %v7468_v23 }
  0x66   :  { %12042 = vst [vmem:[#allocation61_spill] sm:$0xff] %v7470_v24  ;;  %v7473_v25 = vcombine.high %v321_v11, %v325_v12  ;;  %v185_v38 = vld [vmem:[#allocation8 + $0x280] sm:$0xff]  ;;  %12044 = vst [vmem:[#allocation63_spill] sm:$0xff] %v7476_v53  ;;  %3226 = vmatprep.subr.bf16.mxu0 %v7470_v24  ;;  %v7480_v54 = vcombine.low %v321_v11, %v325_v12 }
  0x67   :  { %v189_v39 = vld [vmem:[#allocation8 + $0x2a0] sm:$0xff]  ;;  %3227 = vmatpush2.bf16.msra.mxu0 %v7476_v53 }
  0x68   :  { %12043 = vst [vmem:[#allocation62_spill] sm:$0xff] %v7473_v25  ;;  %v313_v40 = vld [vmem:[#allocation8 + $0x680] sm:$0xff]  ;;  %12045 = vst [vmem:[#allocation64_spill] sm:$0xff] %v7480_v54  ;;  %v7482_v55 = vcombine.high %v185_v38, %v189_v39  ;;  %3269 = vmatprep.subr.bf16.mxu1 %v7473_v25  ;;  %v7488_v6 = vcombine.low %v185_v38, %v189_v39 }
  0x69   :  { %v317_v41 = vld [vmem:[#allocation8 + $0x6a0] sm:$0xff]  ;;  %3270 = vmatpush2.bf16.msra.mxu1 %v7480_v54 }
  0x6a   :  { %12046 = vst [vmem:[#allocation65_spill] sm:$0xff] %v7482_v55  ;;  %v7485_v57 = vcombine.high %v313_v40, %v317_v41  ;;  %v177_v62 = vld [vmem:[#allocation8 + $0x240] sm:$0xff]  ;;  %12048 = vst [vmem:[#allocation67_spill] sm:$0xff] %v7488_v6  ;;  %3228 = vmatprep.subr.bf16.mxu0 %v7482_v55  ;;  %v7492_v7 = vcombine.low %v313_v40, %v317_v41 }
  0x6b   :  { %v181_v61 = vld [vmem:[#allocation8 + $0x260] sm:$0xff]  ;;  %3229 = vmatpush2.bf16.msra.mxu0 %v7488_v6 }
  0x6c   :  { %12047 = vst [vmem:[#allocation66_spill] sm:$0xff] %v7485_v57  ;;  %v305_v60 = vld [vmem:[#allocation8 + $0x640] sm:$0xff]  ;;  %12049 = vst [vmem:[#allocation68_spill] sm:$0xff] %v7492_v7  ;;  %v7494_v11 = vcombine.high %v177_v62, %v181_v61  ;;  %3271 = vmatprep.subr.bf16.mxu1 %v7485_v57  ;;  %v7500_v38 = vcombine.low %v177_v62, %v181_v61 }
  0x6d   :  { %v309_v59 = vld [vmem:[#allocation8 + $0x660] sm:$0xff]  ;;  %3272 = vmatpush2.bf16.msra.mxu1 %v7492_v7 }
  0x6e   :  { %12050 = vst [vmem:[#allocation69_spill] sm:$0xff] %v7494_v11  ;;  %v7497_v12 = vcombine.high %v305_v60, %v309_v59  ;;  %v169_v25 = vld [vmem:[#allocation8 + $0x200] sm:$0xff]  ;;  %12052 = vst [vmem:[#allocation71_spill] sm:$0xff] %v7500_v38  ;;  %3230 = vmatprep.subr.bf16.mxu0 %v7494_v11  ;;  %v7504_v39 = vcombine.low %v305_v60, %v309_v59  ;;  %v75_v60 = vld [vmem:[#allocation2 + $0x10] sm:$0xff] }
  0x6f   :  { %v173_v24 = vld [vmem:[#allocation8 + $0x220] sm:$0xff]  ;;  %3231 = vmatpush2.bf16.msra.mxu0 %v7500_v38 }
  0x70   :  { %12051 = vst [vmem:[#allocation70_spill] sm:$0xff] %v7497_v12  ;;  %v297_v23 = vld [vmem:[#allocation8 + $0x600] sm:$0xff]  ;;  %12053 = vst [vmem:[#allocation72_spill] sm:$0xff] %v7504_v39  ;;  %v7506_v40 = vcombine.high %v169_v25, %v173_v24  ;;  %3273 = vmatprep.subr.bf16.mxu1 %v7497_v12  ;;  %v7512_v61 = vcombine.low %v169_v25, %v173_v24  ;;  %v83_v12 = vld [vmem:[#allocation2 + $0x50] sm:$0xff] }
  0x71   :  { %v301_v22 = vld [vmem:[#allocation8 + $0x620] sm:$0xff]  ;;  %3274 = vmatpush2.bf16.msra.mxu1 %v7504_v39  ;;  %v86_v39 = vld [vmem:[#allocation2 + $0x68] sm:$0xff] }
  0x72   :  { %12054 = vst [vmem:[#allocation73_spill] sm:$0xff] %v7506_v40  ;;  %v7509_v41 = vcombine.high %v297_v23, %v301_v22  ;;  %v417_v57 = vld [vmem:[#allocation8 + $0x9c0] sm:$0xff]  ;;  %12056 = vst [vmem:[#allocation75_spill] sm:$0xff] %v7512_v61  ;;  %3232 = vmatprep.subr.bf16.mxu0 %v7506_v40  ;;  %v7516_v59 = vcombine.low %v297_v23, %v301_v22  ;;  %v7526_v22 = vpack.c.bf16 %v83_v12, %v75_v60  ;;  %v80_v40 = vld [vmem:[#allocation2 + $0x38] sm:$0xff] }
  0x73   :  { %v421_v55 = vld [vmem:[#allocation8 + $0x9e0] sm:$0xff]  ;;  %3233 = vmatpush2.bf16.msra.mxu0 %v7512_v61  ;;  %v7539_v12 = vpack.c.bf16 %v86_v39, %v78_v47  ;;  %v7542_v60 = vpack.c.bf16 %v88_v46, %v80_v40 }
  0x74   :  { %12055 = vst [vmem:[#allocation74_spill] sm:$0xff] %v7509_v41  ;;  %v545_v54 = vld [vmem:[#allocation8 + $0xdc0] sm:$0xff]  ;;  %12057 = vst [vmem:[#allocation76_spill] sm:$0xff] %v7516_v59  ;;  %v7518_v11 = vcombine.high %v417_v57, %v421_v55  ;;  %3275 = vmatprep.subr.bf16.mxu1 %v7509_v41  ;;  %v7528_v23 = vcombine.low %v417_v57, %v421_v55 }
  0x75   :  { %v549_v53 = vld [vmem:[#allocation8 + $0xde0] sm:$0xff]  ;;  %3276 = vmatpush2.bf16.msra.mxu1 %v7516_v59  ;;  %v154_v59 = vld [vmem:[#allocation8 + $0x188] sm:$0xff] }
  0x76   :  { %v73_v62 = vld [vmem:[#allocation2] sm:$0xff]  ;;  %12058 = vst [vmem:[#allocation77_spill] sm:$0xff] %v7518_v11  ;;  %v7521_v6 = vcombine.high %v545_v54, %v549_v53  ;;  %12060 = vst [vmem:[#allocation79_spill] sm:$0xff] %v7528_v23  ;;  %3288 = vmatprep.subr.bf16.mxu0 %v7518_v11  ;;  %v7532_v41 = vcombine.low %v545_v54, %v549_v53 }
  0x77   :  { %v81_v7 = vld [vmem:[#allocation2 + $0x40] sm:$0xff] }
  0x78   :  { %12059 = vst [vmem:[#allocation78_spill] sm:$0xff] %v7521_v6  ;;  %v409_v49 = vld [vmem:[#allocation8 + $0x980] sm:$0xff]  ;;  %v7523_v25 = vpack.c.bf16 %v81_v7, %v73_v62  ;;  %12061 = vst [vmem:[#allocation80_spill] sm:$0xff] %v7532_v41  ;;  %3331 = vmatprep.subr.bf16.mxu1 %v7521_v6  ;;  %3278 = vmatmul.mubr.bf16.vlgmr.msra.gmra.mxu1 %v7526_v22 }
  0x79   :  { %v413_v38 = vld [vmem:[#allocation8 + $0x9a0] sm:$0xff]  ;;  %3332 = vmatpush1.bf16.msra.mxu1 %v7532_v41  ;;  %3363 = vmatprep.mubr.bf16.mxu1 %v7542_v60 }
  0x7a   :  { %v537_v24 = vld [vmem:[#allocation8 + $0xd80] sm:$0xff]  ;;  %v7534_v33 = vcombine.high %v409_v49, %v413_v38  ;;  %3235 = vmatmul.mubr.bf16.vlgmr.msra.gmra.mxu0 %v7523_v25  ;;  %v7546_v53 = vcombine.low %v409_v49, %v413_v38 }
  0x7b   :  { %v541_v48 = vld [vmem:[#allocation8 + $0xda0] sm:$0xff]  ;;  %3289 = vmatpush1.bf16.msra.mxu0 %v7528_v23  ;;  %3320 = vmatprep.mubr.bf16.mxu0 %v7539_v12 }
  0x7c   :  { %12062 = vst [vmem:[#allocation81_spill] sm:$0xff] %v7534_v33  ;;  %v7537_v7 = vcombine.high %v537_v24, %v541_v48  ;;  %v401_v62 = vld [vmem:[#allocation8 + $0x940] sm:$0xff]  ;;  %12064 = vst [vmem:[#allocation83_spill] sm:$0xff] %v7546_v53  ;;  %3290 = vmatprep.subr.bf16.mxu0 %v7534_v33  ;;  %v7550_v54 = vcombine.low %v537_v24, %v541_v48 }
  0x7d   :  { %v405_v61 = vld [vmem:[#allocation8 + $0x960] sm:$0xff] }
  0x7e   :  { %12063 = vst [vmem:[#allocation82_spill] sm:$0xff] %v7537_v7  ;;  %v529_v55 = vld [vmem:[#allocation8 + $0xd40] sm:$0xff]  ;;  %12065 = vst [vmem:[#allocation84_spill] sm:$0xff] %v7550_v54  ;;  %v7552_v47 = vcombine.high %v401_v62, %v405_v61  ;;  %3333 = vmatprep.subr.bf16.mxu1 %v7537_v7  ;;  %v7560_v49 = vcombine.low %v401_v62, %v405_v61 }
  0x7f   :  { %v533_v57 = vld [vmem:[#allocation8 + $0xd60] sm:$0xff]  ;;  %3291 = vmatpush1.bf16.msra.mxu0 %v7546_v53  ;;  %3334 = vmatpush1.bf16.msra.mxu1 %v7550_v54 }
  0x80   :  { %12066 = vst [vmem:[#allocation85_spill] sm:$0xff] %v7552_v47  ;;  %v7555_v39 = vcombine.high %v529_v55, %v533_v57  ;;  %v393_v46 = vld [vmem:[#allocation8 + $0x900] sm:$0xff]  ;;  %12068 = vst [vmem:[#allocation87_spill] sm:$0xff] %v7560_v49  ;;  %3292 = vmatprep.subr.bf16.mxu0 %v7552_v47  ;;  %v7564_v48 = vcombine.low %v529_v55, %v533_v57 }
  0x81   :  { %v397_v40 = vld [vmem:[#allocation8 + $0x920] sm:$0xff] }
  0x82   :  { %12067 = vst [vmem:[#allocation86_spill] sm:$0xff] %v7555_v39  ;;  %v521_v6 = vld [vmem:[#allocation8 + $0xd00] sm:$0xff]  ;;  %12069 = vst [vmem:[#allocation88_spill] sm:$0xff] %v7564_v48  ;;  %v7566_v38 = vcombine.high %v393_v46, %v397_v40  ;;  %3335 = vmatprep.subr.bf16.mxu1 %v7555_v39  ;;  %v7572_v61 = vcombine.low %v393_v46, %v397_v40 }
  0x83   :  { %v525_v23 = vld [vmem:[#allocation8 + $0xd20] sm:$0xff]  ;;  %3293 = vmatpush1.bf16.msra.mxu0 %v7560_v49  ;;  %3336 = vmatpush1.bf16.msra.mxu1 %v7564_v48 }
  0x84   :  { %12070 = vst [vmem:[#allocation89_spill] sm:$0xff] %v7566_v38  ;;  %v7569_v24 = vcombine.high %v521_v6, %v525_v23  ;;  %v385_v7 = vld [vmem:[#allocation8 + $0x8c0] sm:$0xff]  ;;  %12072 = vst [vmem:[#allocation91_spill] sm:$0xff] %v7572_v61  ;;  %3294 = vmatprep.subr.bf16.mxu0 %v7566_v38  ;;  %v7576_v62 = vcombine.low %v521_v6, %v525_v23 }
  0x85   :  { %v389_v41 = vld [vmem:[#allocation8 + $0x8e0] sm:$0xff] }
  0x86   :  { %12071 = vst [vmem:[#allocation90_spill] sm:$0xff] %v7569_v24  ;;  %v513_v33 = vld [vmem:[#allocation8 + $0xcc0] sm:$0xff]  ;;  %12073 = vst [vmem:[#allocation92_spill] sm:$0xff] %v7576_v62  ;;  %v7578_v55 = vcombine.high %v385_v7, %v389_v41  ;;  %3337 = vmatprep.subr.bf16.mxu1 %v7569_v24  ;;  %v7584_v46 = vcombine.low %v385_v7, %v389_v41 }
  0x87   :  { %v517_v11 = vld [vmem:[#allocation8 + $0xce0] sm:$0xff]  ;;  %3295 = vmatpush1.bf16.msra.mxu0 %v7572_v61  ;;  %3338 = vmatpush1.bf16.msra.mxu1 %v7576_v62 }
  0x88   :  { %12074 = vst [vmem:[#allocation93_spill] sm:$0xff] %v7578_v55  ;;  %v7581_v57 = vcombine.high %v513_v33, %v517_v11  ;;  %v377_v39 = vld [vmem:[#allocation8 + $0x880] sm:$0xff]  ;;  %12076 = vst [vmem:[#allocation95_spill] sm:$0xff] %v7584_v46  ;;  %3296 = vmatprep.subr.bf16.mxu0 %v7578_v55  ;;  %v7588_v6 = vcombine.low %v513_v33, %v517_v11 }
  0x89   :  { %v381_v54 = vld [vmem:[#allocation8 + $0x8a0] sm:$0xff] }
  0x8a   :  { %12075 = vst [vmem:[#allocation94_spill] sm:$0xff] %v7581_v57  ;;  %v505_v47 = vld [vmem:[#allocation8 + $0xc80] sm:$0xff]  ;;  %12077 = vst [vmem:[#allocation96_spill] sm:$0xff] %v7588_v6  ;;  %v7590_v23 = vcombine.high %v377_v39, %v381_v54  ;;  %3339 = vmatprep.subr.bf16.mxu1 %v7581_v57  ;;  %v7596_v41 = vcombine.low %v377_v39, %v381_v54 }
  0x8b   :  { %v509_v53 = vld [vmem:[#allocation8 + $0xca0] sm:$0xff]  ;;  %3297 = vmatpush1.bf16.msra.mxu0 %v7584_v46  ;;  %3340 = vmatpush1.bf16.msra.mxu1 %v7588_v6 }
  0x8c   :  { %12078 = vst [vmem:[#allocation97_spill] sm:$0xff] %v7590_v23  ;;  %v7593_v40 = vcombine.high %v505_v47, %v509_v53  ;;  %v369_v24 = vld [vmem:[#allocation8 + $0x840] sm:$0xff]  ;;  %12080 = vst [vmem:[#allocation99_spill] sm:$0xff] %v7596_v41  ;;  %3298 = vmatprep.subr.bf16.mxu0 %v7590_v23  ;;  %v7600_v33 = vcombine.low %v505_v47, %v509_v53 }
  0x8d   :  { %v373_v48 = vld [vmem:[#allocation8 + $0x860] sm:$0xff] }
  0x8e   :  { %12079 = vst [vmem:[#allocation98_spill] sm:$0xff] %v7593_v40  ;;  %v497_v38 = vld [vmem:[#allocation8 + $0xc40] sm:$0xff]  ;;  %12081 = vst [vmem:[#allocation100_spill] sm:$0xff] %v7600_v33  ;;  %v7602_v11 = vcombine.high %v369_v24, %v373_v48  ;;  %3341 = vmatprep.subr.bf16.mxu1 %v7593_v40  ;;  %v7608_v54 = vcombine.low %v369_v24, %v373_v48 }
  0x8f   :  { %v501_v49 = vld [vmem:[#allocation8 + $0xc60] sm:$0xff]  ;;  %3299 = vmatpush1.bf16.msra.mxu0 %v7596_v41  ;;  %3342 = vmatpush1.bf16.msra.mxu1 %v7600_v33 }
  0x90   :  { %12082 = vst [vmem:[#allocation101_spill] sm:$0xff] %v7602_v11  ;;  %v7605_v7 = vcombine.high %v497_v38, %v501_v49  ;;  %v361_v57 = vld [vmem:[#allocation8 + $0x800] sm:$0xff]  ;;  %12084 = vst [vmem:[#allocation103_spill] sm:$0xff] %v7608_v54  ;;  %3300 = vmatprep.subr.bf16.mxu0 %v7602_v11  ;;  %v7612_v53 = vcombine.low %v497_v38, %v501_v49 }
  0x91   :  { %v365_v62 = vld [vmem:[#allocation8 + $0x820] sm:$0xff] }
  0x92   :  { %12083 = vst [vmem:[#allocation102_spill] sm:$0xff] %v7605_v7  ;;  %v489_v55 = vld [vmem:[#allocation8 + $0xc00] sm:$0xff]  ;;  %12085 = vst [vmem:[#allocation104_spill] sm:$0xff] %v7612_v53  ;;  %v7614_v47 = vcombine.high %v361_v57, %v365_v62  ;;  %3343 = vmatprep.subr.bf16.mxu1 %v7605_v7  ;;  %v7620_v48 = vcombine.low %v361_v57, %v365_v62 }
  0x93   :  { %v493_v61 = vld [vmem:[#allocation8 + $0xc20] sm:$0xff]  ;;  %3301 = vmatpush1.bf16.msra.mxu0 %v7608_v54  ;;  %3344 = vmatpush1.bf16.msra.mxu1 %v7612_v53 }
  0x94   :  { %12086 = vst [vmem:[#allocation105_spill] sm:$0xff] %v7614_v47  ;;  %v7617_v39 = vcombine.high %v489_v55, %v493_v61  ;;  %v481_v40 = vld [vmem:[#allocation8 + $0xbc0] sm:$0xff]  ;;  %12088 = vst [vmem:[#allocation107_spill] sm:$0xff] %v7620_v48  ;;  %3302 = vmatprep.subr.bf16.mxu0 %v7614_v47  ;;  %v7624_v49 = vcombine.low %v489_v55, %v493_v61 }
  0x95   :  { %v485_v6 = vld [vmem:[#allocation8 + $0xbe0] sm:$0xff] }
  0x96   :  { %12087 = vst [vmem:[#allocation106_spill] sm:$0xff] %v7617_v39  ;;  %v609_v23 = vld [vmem:[#allocation8 + $0xfc0] sm:$0xff]  ;;  %12089 = vst [vmem:[#allocation108_spill] sm:$0xff] %v7624_v49  ;;  %v7626_v38 = vcombine.high %v481_v40, %v485_v6  ;;  %3345 = vmatprep.subr.bf16.mxu1 %v7617_v39  ;;  %v7632_v62 = vcombine.low %v481_v40, %v485_v6 }
  0x97   :  { %v613_v46 = vld [vmem:[#allocation8 + $0xfe0] sm:$0xff]  ;;  %3303 = vmatpush1.bf16.msra.mxu0 %v7620_v48  ;;  %3346 = vmatpush1.bf16.msra.mxu1 %v7624_v49 }
  0x98   :  { %12090 = vst [vmem:[#allocation109_spill] sm:$0xff] %v7626_v38  ;;  %v7629_v24 = vcombine.high %v609_v23, %v613_v46  ;;  %v473_v7 = vld [vmem:[#allocation8 + $0xb80] sm:$0xff]  ;;  %12092 = vst [vmem:[#allocation111_spill] sm:$0xff] %v7632_v62  ;;  %3304 = vmatprep.subr.bf16.mxu0 %v7626_v38  ;;  %v7636_v61 = vcombine.low %v609_v23, %v613_v46 }
  0x99   :  { %v477_v33 = vld [vmem:[#allocation8 + $0xba0] sm:$0xff] }
  0x9a   :  { %12091 = vst [vmem:[#allocation110_spill] sm:$0xff] %v7629_v24  ;;  %v601_v11 = vld [vmem:[#allocation8 + $0xf80] sm:$0xff]  ;;  %12093 = vst [vmem:[#allocation112_spill] sm:$0xff] %v7636_v61  ;;  %v7638_v55 = vcombine.high %v473_v7, %v477_v33  ;;  %3347 = vmatprep.subr.bf16.mxu1 %v7629_v24  ;;  %v7644_v6 = vcombine.low %v473_v7, %v477_v33 }
  0x9b   :  { %v605_v41 = vld [vmem:[#allocation8 + $0xfa0] sm:$0xff]  ;;  %3305 = vmatpush2.bf16.msra.mxu0 %v7632_v62  ;;  %3348 = vmatpush2.bf16.msra.mxu1 %v7636_v61 }
  0x9c   :  { %12094 = vst [vmem:[#allocation113_spill] sm:$0xff] %v7638_v55  ;;  %v7641_v57 = vcombine.high %v601_v11, %v605_v41  ;;  %v465_v39 = vld [vmem:[#allocation8 + $0xb40] sm:$0xff]  ;;  %12096 = vst [vmem:[#allocation115_spill] sm:$0xff] %v7644_v6  ;;  %3306 = vmatprep.subr.bf16.mxu0 %v7638_v55  ;;  %v7648_v46 = vcombine.low %v601_v11, %v605_v41 }
  0x9d   :  { %v469_v53 = vld [vmem:[#allocation8 + $0xb60] sm:$0xff] }
  0x9e   :  { %12095 = vst [vmem:[#allocation114_spill] sm:$0xff] %v7641_v57  ;;  %v593_v47 = vld [vmem:[#allocation8 + $0xf40] sm:$0xff]  ;;  %12097 = vst [vmem:[#allocation116_spill] sm:$0xff] %v7648_v46  ;;  %v7650_v23 = vcombine.high %v465_v39, %v469_v53  ;;  %3349 = vmatprep.subr.bf16.mxu1 %v7641_v57  ;;  %v7656_v33 = vcombine.low %v465_v39, %v469_v53 }
  0x9f   :  { %v597_v54 = vld [vmem:[#allocation8 + $0xf60] sm:$0xff]  ;;  %3307 = vmatpush2.bf16.msra.mxu0 %v7644_v6  ;;  %3350 = vmatpush2.bf16.msra.mxu1 %v7648_v46 }
  0xa0   :  { %12098 = vst [vmem:[#allocation117_spill] sm:$0xff] %v7650_v23  ;;  %v7653_v40 = vcombine.high %v593_v47, %v597_v54  ;;  %v457_v24 = vld [vmem:[#allocation8 + $0xb00] sm:$0xff]  ;;  %12100 = vst [vmem:[#allocation119_spill] sm:$0xff] %v7656_v33  ;;  %3308 = vmatprep.subr.bf16.mxu0 %v7650_v23  ;;  %v7660_v41 = vcombine.low %v593_v47, %v597_v54 }
  0xa1   :  { %v461_v49 = vld [vmem:[#allocation8 + $0xb20] sm:$0xff] }
  0xa2   :  { %12099 = vst [vmem:[#allocation118_spill] sm:$0xff] %v7653_v40  ;;  %v585_v38 = vld [vmem:[#allocation8 + $0xf00] sm:$0xff]  ;;  %12101 = vst [vmem:[#allocation120_spill] sm:$0xff] %v7660_v41  ;;  %v7662_v11 = vcombine.high %v457_v24, %v461_v49  ;;  %3351 = vmatprep.subr.bf16.mxu1 %v7653_v40  ;;  %v7668_v53 = vcombine.low %v457_v24, %v461_v49 }
  0xa3   :  { %v589_v48 = vld [vmem:[#allocation8 + $0xf20] sm:$0xff]  ;;  %3309 = vmatpush2.bf16.msra.mxu0 %v7656_v33  ;;  %3352 = vmatpush2.bf16.msra.mxu1 %v7660_v41 }
  0xa4   :  { %12102 = vst [vmem:[#allocation121_spill] sm:$0xff] %v7662_v11  ;;  %v7665_v7 = vcombine.high %v585_v38, %v589_v48  ;;  %v449_v57 = vld [vmem:[#allocation8 + $0xac0] sm:$0xff]  ;;  %12104 = vst [vmem:[#allocation123_spill] sm:$0xff] %v7668_v53  ;;  %3310 = vmatprep.subr.bf16.mxu0 %v7662_v11  ;;  %v7672_v54 = vcombine.low %v585_v38, %v589_v48 }
  0xa5   :  { %v453_v61 = vld [vmem:[#allocation8 + $0xae0] sm:$0xff] }
  0xa6   :  { %12103 = vst [vmem:[#allocation122_spill] sm:$0xff] %v7665_v7  ;;  %v577_v55 = vld [vmem:[#allocation8 + $0xec0] sm:$0xff]  ;;  %12105 = vst [vmem:[#allocation124_spill] sm:$0xff] %v7672_v54  ;;  %v7674_v47 = vcombine.high %v449_v57, %v453_v61  ;;  %3353 = vmatprep.subr.bf16.mxu1 %v7665_v7  ;;  %v7680_v49 = vcombine.low %v449_v57, %v453_v61 }
  0xa7   :  { %v581_v62 = vld [vmem:[#allocation8 + $0xee0] sm:$0xff]  ;;  %3311 = vmatpush2.bf16.msra.mxu0 %v7668_v53  ;;  %3354 = vmatpush2.bf16.msra.mxu1 %v7672_v54 }
  0xa8   :  { %12106 = vst [vmem:[#allocation125_spill] sm:$0xff] %v7674_v47  ;;  %v7677_v39 = vcombine.high %v577_v55, %v581_v62  ;;  %v441_v40 = vld [vmem:[#allocation8 + $0xa80] sm:$0xff]  ;;  %12108 = vst [vmem:[#allocation127_spill] sm:$0xff] %v7680_v49  ;;  %3312 = vmatprep.subr.bf16.mxu0 %v7674_v47  ;;  %v7684_v48 = vcombine.low %v577_v55, %v581_v62 }
  0xa9   :  { %v445_v46 = vld [vmem:[#allocation8 + $0xaa0] sm:$0xff] }
  0xaa   :  { %12107 = vst [vmem:[#allocation126_spill] sm:$0xff] %v7677_v39  ;;  %v569_v23 = vld [vmem:[#allocation8 + $0xe80] sm:$0xff]  ;;  %12109 = vst [vmem:[#allocation128_spill] sm:$0xff] %v7684_v48  ;;  %v7686_v38 = vcombine.high %v441_v40, %v445_v46  ;;  %3355 = vmatprep.subr.bf16.mxu1 %v7677_v39  ;;  %v7692_v61 = vcombine.low %v441_v40, %v445_v46 }
  0xab   :  { %v573_v6 = vld [vmem:[#allocation8 + $0xea0] sm:$0xff]  ;;  %3313 = vmatpush2.bf16.msra.mxu0 %v7680_v49  ;;  %3356 = vmatpush2.bf16.msra.mxu1 %v7684_v48  ;;  %v166_v48 = vld [vmem:[#allocation8 + $0x1e8] sm:$0xff] }
  0xac   :  { %12110 = vst [vmem:[#allocation129_spill] sm:$0xff] %v7686_v38  ;;  %v7689_v24 = vcombine.high %v569_v23, %v573_v6  ;;  %v433_v7 = vld [vmem:[#allocation8 + $0xa40] sm:$0xff]  ;;  %12112 = vst [vmem:[#allocation131_spill] sm:$0xff] %v7692_v61  ;;  %3314 = vmatprep.subr.bf16.mxu0 %v7686_v38  ;;  %v7696_v62 = vcombine.low %v569_v23, %v573_v6  ;;  %v290_v38 = vld [vmem:[#allocation8 + $0x5c8] sm:$0xff] }
  0xad   :  { %v437_v41 = vld [vmem:[#allocation8 + $0xa60] sm:$0xff]  ;;  %v294_v49 = vld [vmem:[#allocation8 + $0x5e8] sm:$0xff] }
  0xae   :  { %12111 = vst [vmem:[#allocation130_spill] sm:$0xff] %v7689_v24  ;;  %v561_v11 = vld [vmem:[#allocation8 + $0xe40] sm:$0xff]  ;;  %12113 = vst [vmem:[#allocation132_spill] sm:$0xff] %v7696_v62  ;;  %v7698_v55 = vcombine.high %v433_v7, %v437_v41  ;;  %3357 = vmatprep.subr.bf16.mxu1 %v7689_v24  ;;  %v7704_v46 = vcombine.low %v433_v7, %v437_v41  ;;  %v162_v24 = vld [vmem:[#allocation8 + $0x1c8] sm:$0xff] }
  0xaf   :  { %v565_v33 = vld [vmem:[#allocation8 + $0xe60] sm:$0xff]  ;;  %3315 = vmatpush2.bf16.msra.mxu0 %v7692_v61  ;;  %3358 = vmatpush2.bf16.msra.mxu1 %v7696_v62  ;;  %v7725_v61 = vcombine.high %v290_v38, %v294_v49 }
  0xb0   :  { %12114 = vst [vmem:[#allocation133_spill] sm:$0xff] %v7698_v55  ;;  %v7701_v57 = vcombine.high %v561_v11, %v565_v33  ;;  %v425_v39 = vld [vmem:[#allocation8 + $0xa00] sm:$0xff]  ;;  %12116 = vst [vmem:[#allocation135_spill] sm:$0xff] %v7704_v46  ;;  %3316 = vmatprep.subr.bf16.mxu0 %v7698_v55  ;;  %v7708_v6 = vcombine.low %v561_v11, %v565_v33  ;;  %v79_v11 = vld [vmem:[#allocation2 + $0x30] sm:$0xff]  ;;  %v7722_v55 = vcombine.high %v162_v24, %v166_v48 }
  0xb1   :  { %v429_v54 = vld [vmem:[#allocation8 + $0xa20] sm:$0xff]  ;;  %12123 = vst [vmem:[#allocation142_spill] sm:$0xff] %v7725_v61 }
  0xb2   :  { %12115 = vst [vmem:[#allocation134_spill] sm:$0xff] %v7701_v57  ;;  %v553_v47 = vld [vmem:[#allocation8 + $0xe00] sm:$0xff]  ;;  %12117 = vst [vmem:[#allocation136_spill] sm:$0xff] %v7708_v6  ;;  %v7710_v23 = vcombine.high %v425_v39, %v429_v54  ;;  %3359 = vmatprep.subr.bf16.mxu1 %v7701_v57  ;;  %v7716_v41 = vcombine.low %v425_v39, %v429_v54  ;;  %v87_v57 = vld [vmem:[#allocation2 + $0x70] sm:$0xff] }
  0xb3   :  { %v557_v53 = vld [vmem:[#allocation8 + $0xe20] sm:$0xff]  ;;  %3317 = vmatpush2.bf16.msra.mxu0 %v7704_v46  ;;  %3360 = vmatpush2.bf16.msra.mxu1 %v7708_v6  ;;  %12122 = vst [vmem:[#allocation141_spill] sm:$0xff] %v7722_v55  ;;  %v158_v46 = vld [vmem:[#allocation8 + $0x1a8] sm:$0xff]  ;;  %v7730_v6 = vpack.c.bf16 %v87_v57, %v79_v11 }
  0xb4   :  { %12118 = vst [vmem:[#allocation137_spill] sm:$0xff] %v7710_v23  ;;  %v7713_v40 = vcombine.high %v553_v47, %v557_v53  ;;  %12120 = vst [vmem:[#allocation139_spill] sm:$0xff] %v7716_v41  ;;  %v77_v7 = vld [vmem:[#allocation2 + $0x20] sm:$0xff]  ;;  %3318 = vmatprep.subr.bf16.mxu0 %v7710_v23  ;;  %v7720_v33 = vcombine.low %v553_v47, %v557_v53  ;;  %v282_v39 = vld [vmem:[#allocation8 + $0x588] sm:$0xff]  ;;  %v7732_v53 = vcombine.low %v162_v24, %v166_v48 }
  0xb5   :  { %v85_v62 = vld [vmem:[#allocation2 + $0x60] sm:$0xff]  ;;  %v7736_v47 = vcombine.low %v290_v38, %v294_v49  ;;  %v150_v23 = vld [vmem:[#allocation8 + $0x168] sm:$0xff]  ;;  %v7746_v48 = vcombine.low %v154_v59, %v158_v46  ;;  %v7750_v49 = vcombine.low %v282_v39, %v286_v32 }
  0xb6   :  { %12119 = vst [vmem:[#allocation138_spill] sm:$0xff] %v7713_v40  ;;  %12121 = vst [vmem:[#allocation140_spill] sm:$0xff] %v7720_v33  ;;  %3361 = vmatprep.subr.bf16.mxu1 %v7713_v40  ;;  %v7727_v54 = vpack.c.bf16 %v85_v62, %v77_v7  ;;  %v7738_v40 = vcombine.high %v154_v59, %v158_v46  ;;  %v7741_v62 = vcombine.high %v282_v39, %v286_v32  ;;  %v146_v7 = vld [vmem:[#allocation8 + $0x148] sm:$0xff]  ;;  %v7113_v0 = vld [vmem:[#allocation2 + $0x40] sm:$0xff] }
  0xb7   :  { %3319 = vmatpush2.bf16.msra.mxu0 %v7716_v41  ;;  %12124 = vst [vmem:[#allocation143_spill] sm:$0xff] %v7732_v53  ;;  %3362 = vmatpush2.bf16.msra.mxu1 %v7720_v33  ;;  %12125 = vst [vmem:[#allocation144_spill] sm:$0xff] %v7736_v47  ;;  %v274_v57 = vld [vmem:[#allocation8 + $0x548] sm:$0xff]  ;;  %v7752_v38 = vcombine.high %v146_v7, %v150_v23  ;;  %v7760_v59 = vcombine.low %v146_v7, %v150_v23 }
  0xb8   :  { %3374 = vmatprep.subr.bf16.mxu0 %v7722_v55  ;;  %12126 = vst [vmem:[#allocation145_spill] sm:$0xff] %v7738_v40  ;;  %3417 = vmatprep.subr.bf16.mxu1 %v7725_v61  ;;  %12127 = vst [vmem:[#allocation146_spill] sm:$0xff] %v7741_v62  ;;  %v278_v11 = vld [vmem:[#allocation8 + $0x568] sm:$0xff] }
  0xb9   :  { %12128 = vst [vmem:[#allocation147_spill] sm:$0xff] %v7746_v48  ;;  %12129 = vst [vmem:[#allocation148_spill] sm:$0xff] %v7750_v49  ;;  %v7755_v24 = vcombine.high %v274_v57, %v278_v11  ;;  %v138_v61 = vld [vmem:[#allocation8 + $0x108] sm:$0xff]  ;;  %v7764_v32 = vcombine.low %v274_v57, %v278_v11 }
  0xba   :  { %3321 = vmatmul.mubr.bf16.vlgmr.msra.gmra.mxu0 %v7727_v54  ;;  %3364 = vmatmul.mubr.bf16.vlgmr.msra.gmra.mxu1 %v7730_v6  ;;  %12130 = vst [vmem:[#allocation149_spill] sm:$0xff] %v7752_v38  ;;  %v142_v33 = vld [vmem:[#allocation8 + $0x128] sm:$0xff]  ;;  %12132 = vst [vmem:[#allocation151_spill] sm:$0xff] %v7760_v59 }
  0xbb   :  { %3375 = vmatpush1.bf16.msra.mxu0 %v7732_v53  ;;  %3418 = vmatpush1.bf16.msra.mxu1 %v7736_v47  ;;  %12131 = vst [vmem:[#allocation150_spill] sm:$0xff] %v7755_v24  ;;  %v266_v55 = vld [vmem:[#allocation8 + $0x508] sm:$0xff]  ;;  %12133 = vst [vmem:[#allocation152_spill] sm:$0xff] %v7764_v32  ;;  %v7766_v46 = vcombine.high %v138_v61, %v142_v33  ;;  %v7772_v23 = vcombine.low %v138_v61, %v142_v33 }
  0xbc   :  { %3376 = vmatprep.subr.bf16.mxu0 %v7738_v40  ;;  %3419 = vmatprep.subr.bf16.mxu1 %v7741_v62  ;;  %v270_v53 = vld [vmem:[#allocation8 + $0x528] sm:$0xff] }
  0xbd   :  { %3406 = vmatprep.mubr.bf16.mxu0 %v7397_v58  ;;  %3449 = vmatprep.mubr.bf16.mxu1 %v7399_v63  ;;  %12134 = vst [vmem:[#allocation153_spill] sm:$0xff] %v7766_v46  ;;  %v7769_v39 = vcombine.high %v266_v55, %v270_v53  ;;  %v130_v62 = vld [vmem:[#allocation8 + $0xc8] sm:$0xff]  ;;  %12136 = vst [vmem:[#allocation155_spill] sm:$0xff] %v7772_v23  ;;  %v7776_v7 = vcombine.low %v266_v55, %v270_v53 }
  0xbe   :  { %v134_v47 = vld [vmem:[#allocation8 + $0xe8] sm:$0xff] }
  0xbf   :  { %3377 = vmatpush1.bf16.msra.mxu0 %v7746_v48  ;;  %3420 = vmatpush1.bf16.msra.mxu1 %v7750_v49  ;;  %12135 = vst [vmem:[#allocation154_spill] sm:$0xff] %v7769_v39  ;;  %v258_v40 = vld [vmem:[#allocation8 + $0x4c8] sm:$0xff]  ;;  %12137 = vst [vmem:[#allocation156_spill] sm:$0xff] %v7776_v7  ;;  %v7778_v57 = vcombine.high %v130_v62, %v134_v47  ;;  %v7784_v61 = vcombine.low %v130_v62, %v134_v47 }
  0xc0   :  { %3378 = vmatprep.subr.bf16.mxu0 %v7752_v38  ;;  %3421 = vmatprep.subr.bf16.mxu1 %v7755_v24  ;;  %v262_v41 = vld [vmem:[#allocation8 + $0x4e8] sm:$0xff] }
  0xc1   :  { %12138 = vst [vmem:[#allocation157_spill] sm:$0xff] %v7778_v57  ;;  %v7781_v11 = vcombine.high %v258_v40, %v262_v41  ;;  %v122_v24 = vld [vmem:[#allocation8 + $0x88] sm:$0xff]  ;;  %12140 = vst [vmem:[#allocation159_spill] sm:$0xff] %v7784_v61  ;;  %v7788_v55 = vcombine.low %v258_v40, %v262_v41 }
  0xc2   :  { %v126_v49 = vld [vmem:[#allocation8 + $0xa8] sm:$0xff] }
  0xc3   :  { %3379 = vmatpush1.bf16.msra.mxu0 %v7760_v59  ;;  %3422 = vmatpush1.bf16.msra.mxu1 %v7764_v32  ;;  %12139 = vst [vmem:[#allocation158_spill] sm:$0xff] %v7781_v11  ;;  %v250_v38 = vld [vmem:[#allocation8 + $0x488] sm:$0xff]  ;;  %12141 = vst [vmem:[#allocation160_spill] sm:$0xff] %v7788_v55  ;;  %v7790_v33 = vcombine.high %v122_v24, %v126_v49  ;;  %v7796_v47 = vcombine.low %v122_v24, %v126_v49 }
  0xc4   :  { %3380 = vmatprep.subr.bf16.mxu0 %v7766_v46  ;;  %3423 = vmatprep.subr.bf16.mxu1 %v7769_v39  ;;  %v254_v48 = vld [vmem:[#allocation8 + $0x4a8] sm:$0xff] }
  0xc5   :  { %12142 = vst [vmem:[#allocation161_spill] sm:$0xff] %v7790_v33  ;;  %v7793_v53 = vcombine.high %v250_v38, %v254_v48  ;;  %v114_v39 = vld [vmem:[#allocation8 + $0x48] sm:$0xff]  ;;  %12144 = vst [vmem:[#allocation163_spill] sm:$0xff] %v7796_v47  ;;  %v7800_v40 = vcombine.low %v250_v38, %v254_v48 }
  0xc6   :  { %v118_v32 = vld [vmem:[#allocation8 + $0x68] sm:$0xff] }
  0xc7   :  { %3381 = vmatpush1.bf16.msra.mxu0 %v7772_v23  ;;  %3424 = vmatpush1.bf16.msra.mxu1 %v7776_v7  ;;  %12143 = vst [vmem:[#allocation162_spill] sm:$0xff] %v7793_v53  ;;  %v242_v46 = vld [vmem:[#allocation8 + $0x448] sm:$0xff]  ;;  %12145 = vst [vmem:[#allocation164_spill] sm:$0xff] %v7800_v40  ;;  %v7802_v41 = vcombine.high %v114_v39, %v118_v32  ;;  %v7808_v49 = vcombine.low %v114_v39, %v118_v32 }
  0xc8   :  { %3382 = vmatprep.subr.bf16.mxu0 %v7778_v57  ;;  %3425 = vmatprep.subr.bf16.mxu1 %v7781_v11  ;;  %v246_v59 = vld [vmem:[#allocation8 + $0x468] sm:$0xff] }
  0xc9   :  { %12146 = vst [vmem:[#allocation165_spill] sm:$0xff] %v7802_v41  ;;  %v7805_v62 = vcombine.high %v242_v46, %v246_v59  ;;  %v106_v11 = vld [vmem:[#allocation8 + $0x8] sm:$0xff]  ;;  %12148 = vst [vmem:[#allocation167_spill] sm:$0xff] %v7808_v49  ;;  %v7812_v48 = vcombine.low %v242_v46, %v246_v59 }
  0xca   :  { %v110_v7 = vld [vmem:[#allocation8 + $0x28] sm:$0xff] }
  0xcb   :  { %3383 = vmatpush1.bf16.msra.mxu0 %v7784_v61  ;;  %3426 = vmatpush1.bf16.msra.mxu1 %v7788_v55  ;;  %12147 = vst [vmem:[#allocation166_spill] sm:$0xff] %v7805_v62  ;;  %v234_v57 = vld [vmem:[#allocation8 + $0x408] sm:$0xff]  ;;  %12149 = vst [vmem:[#allocation168_spill] sm:$0xff] %v7812_v48  ;;  %v7814_v38 = vcombine.high %v106_v11, %v110_v7  ;;  %v7820_v32 = vcombine.low %v106_v11, %v110_v7 }
  0xcc   :  { %3384 = vmatprep.subr.bf16.mxu0 %v7790_v33  ;;  %3427 = vmatprep.subr.bf16.mxu1 %v7793_v53  ;;  %v238_v23 = vld [vmem:[#allocation8 + $0x428] sm:$0xff] }
  0xcd   :  { %12150 = vst [vmem:[#allocation169_spill] sm:$0xff] %v7814_v38  ;;  %v7817_v24 = vcombine.high %v234_v57, %v238_v23  ;;  %v226_v53 = vld [vmem:[#allocation8 + $0x3c8] sm:$0xff]  ;;  %12152 = vst [vmem:[#allocation171_spill] sm:$0xff] %v7820_v32  ;;  %v7824_v59 = vcombine.low %v234_v57, %v238_v23 }
  0xce   :  { %v230_v55 = vld [vmem:[#allocation8 + $0x3e8] sm:$0xff] }
  0xcf   :  { %3385 = vmatpush1.bf16.msra.mxu0 %v7796_v47  ;;  %3428 = vmatpush1.bf16.msra.mxu1 %v7800_v40  ;;  %12151 = vst [vmem:[#allocation170_spill] sm:$0xff] %v7817_v24  ;;  %v354_v33 = vld [vmem:[#allocation8 + $0x7c8] sm:$0xff]  ;;  %12153 = vst [vmem:[#allocation172_spill] sm:$0xff] %v7824_v59  ;;  %v7826_v46 = vcombine.high %v226_v53, %v230_v55  ;;  %v7832_v7 = vcombine.low %v226_v53, %v230_v55 }
  0xd0   :  { %3386 = vmatprep.subr.bf16.mxu0 %v7802_v41  ;;  %3429 = vmatprep.subr.bf16.mxu1 %v7805_v62  ;;  %v358_v61 = vld [vmem:[#allocation8 + $0x7e8] sm:$0xff] }
  0xd1   :  { %12154 = vst [vmem:[#allocation173_spill] sm:$0xff] %v7826_v46  ;;  %v7829_v39 = vcombine.high %v354_v33, %v358_v61  ;;  %v218_v62 = vld [vmem:[#allocation8 + $0x388] sm:$0xff]  ;;  %12156 = vst [vmem:[#allocation175_spill] sm:$0xff] %v7832_v7  ;;  %v7836_v23 = vcombine.low %v354_v33, %v358_v61 }
  0xd2   :  { %v222_v40 = vld [vmem:[#allocation8 + $0x3a8] sm:$0xff] }
  0xd3   :  { %3387 = vmatpush1.bf16.msra.mxu0 %v7808_v49  ;;  %3430 = vmatpush1.bf16.msra.mxu1 %v7812_v48  ;;  %12155 = vst [vmem:[#allocation174_spill] sm:$0xff] %v7829_v39  ;;  %v346_v41 = vld [vmem:[#allocation8 + $0x788] sm:$0xff]  ;;  %12157 = vst [vmem:[#allocation176_spill] sm:$0xff] %v7836_v23  ;;  %v7838_v57 = vcombine.high %v218_v62, %v222_v40  ;;  %v7844_v55 = vcombine.low %v218_v62, %v222_v40 }
  0xd4   :  { %3388 = vmatprep.subr.bf16.mxu0 %v7814_v38  ;;  %3431 = vmatprep.subr.bf16.mxu1 %v7817_v24  ;;  %v350_v47 = vld [vmem:[#allocation8 + $0x7a8] sm:$0xff] }
  0xd5   :  { %12158 = vst [vmem:[#allocation177_spill] sm:$0xff] %v7838_v57  ;;  %v7841_v11 = vcombine.high %v346_v41, %v350_v47  ;;  %v210_v24 = vld [vmem:[#allocation8 + $0x348] sm:$0xff]  ;;  %12160 = vst [vmem:[#allocation179_spill] sm:$0xff] %v7844_v55  ;;  %v7848_v61 = vcombine.low %v346_v41, %v350_v47 }
  0xd6   :  { %v214_v48 = vld [vmem:[#allocation8 + $0x368] sm:$0xff] }
  0xd7   :  { %3389 = vmatpush1.bf16.msra.mxu0 %v7820_v32  ;;  %3432 = vmatpush1.bf16.msra.mxu1 %v7824_v59  ;;  %12159 = vst [vmem:[#allocation178_spill] sm:$0xff] %v7841_v11  ;;  %v338_v38 = vld [vmem:[#allocation8 + $0x748] sm:$0xff]  ;;  %12161 = vst [vmem:[#allocation180_spill] sm:$0xff] %v7848_v61  ;;  %v7850_v33 = vcombine.high %v210_v24, %v214_v48  ;;  %v7856_v40 = vcombine.low %v210_v24, %v214_v48 }
  0xd8   :  { %3390 = vmatprep.subr.bf16.mxu0 %v7826_v46  ;;  %3433 = vmatprep.subr.bf16.mxu1 %v7829_v39  ;;  %v342_v49 = vld [vmem:[#allocation8 + $0x768] sm:$0xff] }
  0xd9   :  { %12162 = vst [vmem:[#allocation181_spill] sm:$0xff] %v7850_v33  ;;  %v7853_v53 = vcombine.high %v338_v38, %v342_v49  ;;  %v202_v39 = vld [vmem:[#allocation8 + $0x308] sm:$0xff]  ;;  %12164 = vst [vmem:[#allocation183_spill] sm:$0xff] %v7856_v40  ;;  %v7860_v47 = vcombine.low %v338_v38, %v342_v49 }
  0xda   :  { %v206_v59 = vld [vmem:[#allocation8 + $0x328] sm:$0xff] }
  0xdb   :  { %3391 = vmatpush2.bf16.msra.mxu0 %v7832_v7  ;;  %3434 = vmatpush2.bf16.msra.mxu1 %v7836_v23  ;;  %12163 = vst [vmem:[#allocation182_spill] sm:$0xff] %v7853_v53  ;;  %v330_v46 = vld [vmem:[#allocation8 + $0x708] sm:$0xff]  ;;  %12165 = vst [vmem:[#allocation184_spill] sm:$0xff] %v7860_v47  ;;  %v7862_v41 = vcombine.high %v202_v39, %v206_v59  ;;  %v7868_v48 = vcombine.low %v202_v39, %v206_v59 }
  0xdc   :  { %3392 = vmatprep.subr.bf16.mxu0 %v7838_v57  ;;  %3435 = vmatprep.subr.bf16.mxu1 %v7841_v11  ;;  %v334_v32 = vld [vmem:[#allocation8 + $0x728] sm:$0xff] }
  0xdd   :  { %12166 = vst [vmem:[#allocation185_spill] sm:$0xff] %v7862_v41  ;;  %v7865_v62 = vcombine.high %v330_v46, %v334_v32  ;;  %v194_v11 = vld [vmem:[#allocation8 + $0x2c8] sm:$0xff]  ;;  %12168 = vst [vmem:[#allocation187_spill] sm:$0xff] %v7868_v48  ;;  %v7872_v49 = vcombine.low %v330_v46, %v334_v32 }
  0xde   :  { %v198_v23 = vld [vmem:[#allocation8 + $0x2e8] sm:$0xff] }
  0xdf   :  { %3393 = vmatpush2.bf16.msra.mxu0 %v7844_v55  ;;  %3436 = vmatpush2.bf16.msra.mxu1 %v7848_v61  ;;  %12167 = vst [vmem:[#allocation186_spill] sm:$0xff] %v7865_v62  ;;  %v322_v57 = vld [vmem:[#allocation8 + $0x6c8] sm:$0xff]  ;;  %12169 = vst [vmem:[#allocation188_spill] sm:$0xff] %v7872_v49  ;;  %v7874_v38 = vcombine.high %v194_v11, %v198_v23  ;;  %v7880_v59 = vcombine.low %v194_v11, %v198_v23 }
  0xe0   :  { %3394 = vmatprep.subr.bf16.mxu0 %v7850_v33  ;;  %3437 = vmatprep.subr.bf16.mxu1 %v7853_v53  ;;  %v326_v7 = vld [vmem:[#allocation8 + $0x6e8] sm:$0xff] }
  0xe1   :  { %12170 = vst [vmem:[#allocation189_spill] sm:$0xff] %v7874_v38  ;;  %v7877_v24 = vcombine.high %v322_v57, %v326_v7  ;;  %v186_v53 = vld [vmem:[#allocation8 + $0x288] sm:$0xff]  ;;  %12172 = vst [vmem:[#allocation191_spill] sm:$0xff] %v7880_v59  ;;  %v7884_v32 = vcombine.low %v322_v57, %v326_v7 }
  0xe2   :  { %v190_v61 = vld [vmem:[#allocation8 + $0x2a8] sm:$0xff] }
  0xe3   :  { %3395 = vmatpush2.bf16.msra.mxu0 %v7856_v40  ;;  %3438 = vmatpush2.bf16.msra.mxu1 %v7860_v47  ;;  %12171 = vst [vmem:[#allocation190_spill] sm:$0xff] %v7877_v24  ;;  %v314_v33 = vld [vmem:[#allocation8 + $0x688] sm:$0xff]  ;;  %12173 = vst [vmem:[#allocation192_spill] sm:$0xff] %v7884_v32  ;;  %v7886_v46 = vcombine.high %v186_v53, %v190_v61  ;;  %v7892_v23 = vcombine.low %v186_v53, %v190_v61 }
  0xe4   :  { %3396 = vmatprep.subr.bf16.mxu0 %v7862_v41  ;;  %3439 = vmatprep.subr.bf16.mxu1 %v7865_v62  ;;  %v318_v55 = vld [vmem:[#allocation8 + $0x6a8] sm:$0xff] }
  0xe5   :  { %12174 = vst [vmem:[#allocation193_spill] sm:$0xff] %v7886_v46  ;;  %v7889_v39 = vcombine.high %v314_v33, %v318_v55  ;;  %v178_v62 = vld [vmem:[#allocation8 + $0x248] sm:$0xff]  ;;  %12176 = vst [vmem:[#allocation195_spill] sm:$0xff] %v7892_v23  ;;  %v7896_v7 = vcombine.low %v314_v33, %v318_v55 }
  0xe6   :  { %v182_v47 = vld [vmem:[#allocation8 + $0x268] sm:$0xff] }
  0xe7   :  { %3397 = vmatpush2.bf16.msra.mxu0 %v7868_v48  ;;  %3440 = vmatpush2.bf16.msra.mxu1 %v7872_v49  ;;  %12175 = vst [vmem:[#allocation194_spill] sm:$0xff] %v7889_v39  ;;  %v306_v41 = vld [vmem:[#allocation8 + $0x648] sm:$0xff]  ;;  %12177 = vst [vmem:[#allocation196_spill] sm:$0xff] %v7896_v7  ;;  %v7898_v57 = vcombine.high %v178_v62, %v182_v47  ;;  %v7904_v61 = vcombine.low %v178_v62, %v182_v47 }
  0xe8   :  { %3398 = vmatprep.subr.bf16.mxu0 %v7874_v38  ;;  %3441 = vmatprep.subr.bf16.mxu1 %v7877_v24  ;;  %v310_v40 = vld [vmem:[#allocation8 + $0x668] sm:$0xff] }
  0xe9   :  { %12178 = vst [vmem:[#allocation197_spill] sm:$0xff] %v7898_v57  ;;  %v7901_v11 = vcombine.high %v306_v41, %v310_v40  ;;  %v170_v24 = vld [vmem:[#allocation8 + $0x208] sm:$0xff]  ;;  %12180 = vst [vmem:[#allocation199_spill] sm:$0xff] %v7904_v61  ;;  %v7908_v55 = vcombine.low %v306_v41, %v310_v40 }
  0xea   :  { %v174_v49 = vld [vmem:[#allocation8 + $0x228] sm:$0xff] }
  0xeb   :  { %3399 = vmatpush2.bf16.msra.mxu0 %v7880_v59  ;;  %3442 = vmatpush2.bf16.msra.mxu1 %v7884_v32  ;;  %12179 = vst [vmem:[#allocation198_spill] sm:$0xff] %v7901_v11  ;;  %v298_v38 = vld [vmem:[#allocation8 + $0x608] sm:$0xff]  ;;  %12181 = vst [vmem:[#allocation200_spill] sm:$0xff] %v7908_v55  ;;  %v7910_v33 = vcombine.high %v170_v24, %v174_v49  ;;  %v7916_v47 = vcombine.low %v170_v24, %v174_v49 }
  0xec   :  { %3400 = vmatprep.subr.bf16.mxu0 %v7886_v46  ;;  %3443 = vmatprep.subr.bf16.mxu1 %v7889_v39  ;;  %v302_v48 = vld [vmem:[#allocation8 + $0x628] sm:$0xff] }
  0xed   :  { %12182 = vst [vmem:[#allocation201_spill] sm:$0xff] %v7910_v33  ;;  %v7913_v53 = vcombine.high %v298_v38, %v302_v48  ;;  %v418_v39 = vld [vmem:[#allocation8 + $0x9c8] sm:$0xff]  ;;  %12184 = vst [vmem:[#allocation203_spill] sm:$0xff] %v7916_v47  ;;  %v7920_v40 = vcombine.low %v298_v38, %v302_v48 }
  0xee   :  { %v422_v32 = vld [vmem:[#allocation8 + $0x9e8] sm:$0xff] }
  0xef   :  { %3401 = vmatpush2.bf16.msra.mxu0 %v7892_v23  ;;  %3444 = vmatpush2.bf16.msra.mxu1 %v7896_v7  ;;  %12183 = vst [vmem:[#allocation202_spill] sm:$0xff] %v7913_v53  ;;  %v546_v46 = vld [vmem:[#allocation8 + $0xdc8] sm:$0xff]  ;;  %12185 = vst [vmem:[#allocation204_spill] sm:$0xff] %v7920_v40  ;;  %v7922_v41 = vcombine.high %v418_v39, %v422_v32  ;;  %v7928_v49 = vcombine.low %v418_v39, %v422_v32 }
  0xf0   :  { %3402 = vmatprep.subr.bf16.mxu0 %v7898_v57  ;;  %3445 = vmatprep.subr.bf16.mxu1 %v7901_v11  ;;  %v550_v59 = vld [vmem:[#allocation8 + $0xde8] sm:$0xff] }
  0xf1   :  { %12186 = vst [vmem:[#allocation205_spill] sm:$0xff] %v7922_v41  ;;  %v7925_v62 = vcombine.high %v546_v46, %v550_v59  ;;  %v410_v11 = vld [vmem:[#allocation8 + $0x988] sm:$0xff]  ;;  %12188 = vst [vmem:[#allocation207_spill] sm:$0xff] %v7928_v49  ;;  %v7932_v48 = vcombine.low %v546_v46, %v550_v59 }
  0xf2   :  { %v414_v7 = vld [vmem:[#allocation8 + $0x9a8] sm:$0xff] }
  0xf3   :  { %3403 = vmatpush2.bf16.msra.mxu0 %v7904_v61  ;;  %3446 = vmatpush2.bf16.msra.mxu1 %v7908_v55  ;;  %12187 = vst [vmem:[#allocation206_spill] sm:$0xff] %v7925_v62  ;;  %v538_v57 = vld [vmem:[#allocation8 + $0xd88] sm:$0xff]  ;;  %12189 = vst [vmem:[#allocation208_spill] sm:$0xff] %v7932_v48  ;;  %v7934_v38 = vcombine.high %v410_v11, %v414_v7  ;;  %v7942_v32 = vcombine.low %v410_v11, %v414_v7 }
  0xf4   :  { %3404 = vmatprep.subr.bf16.mxu0 %v7910_v33  ;;  %3447 = vmatprep.subr.bf16.mxu1 %v7913_v53  ;;  %v542_v23 = vld [vmem:[#allocation8 + $0xda8] sm:$0xff] }
  0xf5   :  { %12190 = vst [vmem:[#allocation209_spill] sm:$0xff] %v7934_v38  ;;  %v7937_v24 = vcombine.high %v538_v57, %v542_v23  ;;  %v402_v53 = vld [vmem:[#allocation8 + $0x948] sm:$0xff]  ;;  %12192 = vst [vmem:[#allocation211_spill] sm:$0xff] %v7942_v32  ;;  %v7946_v59 = vcombine.low %v538_v57, %v542_v23 }
  0xf6   :  { %v406_v55 = vld [vmem:[#allocation8 + $0x968] sm:$0xff] }
  0xf7   :  { %3405 = vmatpush2.bf16.msra.mxu0 %v7916_v47  ;;  %3448 = vmatpush2.bf16.msra.mxu1 %v7920_v40  ;;  %12191 = vst [vmem:[#allocation210_spill] sm:$0xff] %v7937_v24  ;;  %v530_v33 = vld [vmem:[#allocation8 + $0xd48] sm:$0xff]  ;;  %12193 = vst [vmem:[#allocation212_spill] sm:$0xff] %v7946_v59  ;;  %v7948_v46 = vcombine.high %v402_v53, %v406_v55  ;;  %v7956_v7 = vcombine.low %v402_v53, %v406_v55 }
  0xf8   :  { %3460 = vmatprep.subr.bf16.mxu0 %v7922_v41  ;;  %3503 = vmatprep.subr.bf16.mxu1 %v7925_v62  ;;  %v534_v47 = vld [vmem:[#allocation8 + $0xd68] sm:$0xff] }
  0xf9   :  { %12194 = vst [vmem:[#allocation213_spill] sm:$0xff] %v7948_v46  ;;  %v7951_v39 = vcombine.high %v530_v33, %v534_v47  ;;  %v394_v62 = vld [vmem:[#allocation8 + $0x908] sm:$0xff]  ;;  %12196 = vst [vmem:[#allocation215_spill] sm:$0xff] %v7956_v7  ;;  %v7960_v23 = vcombine.low %v530_v33, %v534_v47 }
  0xfa   :  { %3407 = vmatmul.mubr.bf16.vlgmr.msra.gmra.mxu0 %v7523_v25  ;;  %3450 = vmatmul.mubr.bf16.vlgmr.msra.gmra.mxu1 %v7526_v22  ;;  %v398_v40 = vld [vmem:[#allocation8 + $0x928] sm:$0xff] }
  0xfb   :  { %3461 = vmatpush1.bf16.msra.mxu0 %v7928_v49  ;;  %3504 = vmatpush1.bf16.msra.mxu1 %v7932_v48  ;;  %12195 = vst [vmem:[#allocation214_spill] sm:$0xff] %v7951_v39  ;;  %v522_v41 = vld [vmem:[#allocation8 + $0xd08] sm:$0xff]  ;;  %12197 = vst [vmem:[#allocation216_spill] sm:$0xff] %v7960_v23  ;;  %v7962_v57 = vcombine.high %v394_v62, %v398_v40  ;;  %v7968_v55 = vcombine.low %v394_v62, %v398_v40 }
  0xfc   :  { %3462 = vmatprep.subr.bf16.mxu0 %v7934_v38  ;;  %3505 = vmatprep.subr.bf16.mxu1 %v7937_v24  ;;  %v526_v49 = vld [vmem:[#allocation8 + $0xd28] sm:$0xff] }
  0xfd   :  { %3492 = vmatprep.mubr.bf16.mxu0 %v7539_v12  ;;  %3535 = vmatprep.mubr.bf16.mxu1 %v7542_v60  ;;  %12198 = vst [vmem:[#allocation217_spill] sm:$0xff] %v7962_v57  ;;  %v7965_v11 = vcombine.high %v522_v41, %v526_v49  ;;  %v386_v24 = vld [vmem:[#allocation8 + $0x8c8] sm:$0xff]  ;;  %12200 = vst [vmem:[#allocation219_spill] sm:$0xff] %v7968_v55  ;;  %v7972_v33 = vcombine.low %v522_v41, %v526_v49 }
  0xfe   :  { %v390_v48 = vld [vmem:[#allocation8 + $0x8e8] sm:$0xff] }
  0xff   :  { %3463 = vmatpush1.bf16.msra.mxu0 %v7942_v32  ;;  %3506 = vmatpush1.bf16.msra.mxu1 %v7946_v59  ;;  %12199 = vst [vmem:[#allocation218_spill] sm:$0xff] %v7965_v11  ;;  %v514_v38 = vld [vmem:[#allocation8 + $0xcc8] sm:$0xff]  ;;  %12201 = vst [vmem:[#allocation220_spill] sm:$0xff] %v7972_v33  ;;  %v7974_v53 = vcombine.high %v386_v24, %v390_v48  ;;  %v7980_v40 = vcombine.low %v386_v24, %v390_v48 }
 0x100   :  { %3464 = vmatprep.subr.bf16.mxu0 %v7948_v46  ;;  %3507 = vmatprep.subr.bf16.mxu1 %v7951_v39  ;;  %v518_v61 = vld [vmem:[#allocation8 + $0xce8] sm:$0xff] }
 0x101   :  { %12202 = vst [vmem:[#allocation221_spill] sm:$0xff] %v7974_v53  ;;  %v7977_v47 = vcombine.high %v514_v38, %v518_v61  ;;  %v378_v39 = vld [vmem:[#allocation8 + $0x888] sm:$0xff]  ;;  %12204 = vst [vmem:[#allocation223_spill] sm:$0xff] %v7980_v40  ;;  %v7984_v41 = vcombine.low %v514_v38, %v518_v61 }
 0x102   :  { %v382_v59 = vld [vmem:[#allocation8 + $0x8a8] sm:$0xff] }
 0x103   :  { %3465 = vmatpush1.bf16.msra.mxu0 %v7956_v7  ;;  %3508 = vmatpush1.bf16.msra.mxu1 %v7960_v23  ;;  %12203 = vst [vmem:[#allocation222_spill] sm:$0xff] %v7977_v47  ;;  %v506_v46 = vld [vmem:[#allocation8 + $0xc88] sm:$0xff]  ;;  %12205 = vst [vmem:[#allocation224_spill] sm:$0xff] %v7984_v41  ;;  %v7986_v62 = vcombine.high %v378_v39, %v382_v59  ;;  %v7992_v48 = vcombine.low %v378_v39, %v382_v59 }
 0x104   :  { %3466 = vmatprep.subr.bf16.mxu0 %v7962_v57  ;;  %3509 = vmatprep.subr.bf16.mxu1 %v7965_v11  ;;  %v510_v32 = vld [vmem:[#allocation8 + $0xca8] sm:$0xff] }
 0x105   :  { %12206 = vst [vmem:[#allocation225_spill] sm:$0xff] %v7986_v62  ;;  %v7989_v49 = vcombine.high %v506_v46, %v510_v32  ;;  %v370_v11 = vld [vmem:[#allocation8 + $0x848] sm:$0xff]  ;;  %12208 = vst [vmem:[#allocation227_spill] sm:$0xff] %v7992_v48  ;;  %v7996_v61 = vcombine.low %v506_v46, %v510_v32 }
 0x106   :  { %v374_v23 = vld [vmem:[#allocation8 + $0x868] sm:$0xff] }
 0x107   :  { %3467 = vmatpush1.bf16.msra.mxu0 %v7968_v55  ;;  %3510 = vmatpush1.bf16.msra.mxu1 %v7972_v33  ;;  %12207 = vst [vmem:[#allocation226_spill] sm:$0xff] %v7989_v49  ;;  %v498_v57 = vld [vmem:[#allocation8 + $0xc48] sm:$0xff]  ;;  %12209 = vst [vmem:[#allocation228_spill] sm:$0xff] %v7996_v61  ;;  %v7998_v38 = vcombine.high %v370_v11, %v374_v23  ;;  %v8004_v59 = vcombine.low %v370_v11, %v374_v23 }
 0x108   :  { %3468 = vmatprep.subr.bf16.mxu0 %v7974_v53  ;;  %3511 = vmatprep.subr.bf16.mxu1 %v7977_v47  ;;  %v502_v7 = vld [vmem:[#allocation8 + $0xc68] sm:$0xff] }
 0x109   :  { %12210 = vst [vmem:[#allocation229_spill] sm:$0xff] %v7998_v38  ;;  %v8001_v24 = vcombine.high %v498_v57, %v502_v7  ;;  %v362_v47 = vld [vmem:[#allocation8 + $0x808] sm:$0xff]  ;;  %12212 = vst [vmem:[#allocation231_spill] sm:$0xff] %v8004_v59  ;;  %v8008_v32 = vcombine.low %v498_v57, %v502_v7 }
 0x10a   :  { %v366_v33 = vld [vmem:[#allocation8 + $0x828] sm:$0xff] }
 0x10b   :  { %3469 = vmatpush1.bf16.msra.mxu0 %v7980_v40  ;;  %3512 = vmatpush1.bf16.msra.mxu1 %v7984_v41  ;;  %12211 = vst [vmem:[#allocation230_spill] sm:$0xff] %v8001_v24  ;;  %v490_v53 = vld [vmem:[#allocation8 + $0xc08] sm:$0xff]  ;;  %12213 = vst [vmem:[#allocation232_spill] sm:$0xff] %v8008_v32  ;;  %v8010_v46 = vcombine.high %v362_v47, %v366_v33  ;;  %v8016_v23 = vcombine.low %v362_v47, %v366_v33 }
 0x10c   :  { %3470 = vmatprep.subr.bf16.mxu0 %v7986_v62  ;;  %3513 = vmatprep.subr.bf16.mxu1 %v7989_v49  ;;  %v494_v55 = vld [vmem:[#allocation8 + $0xc28] sm:$0xff] }
 0x10d   :  { %12214 = vst [vmem:[#allocation233_spill] sm:$0xff] %v8010_v46  ;;  %v8013_v39 = vcombine.high %v490_v53, %v494_v55  ;;  %v482_v49 = vld [vmem:[#allocation8 + $0xbc8] sm:$0xff]  ;;  %12216 = vst [vmem:[#allocation235_spill] sm:$0xff] %v8016_v23  ;;  %v8020_v7 = vcombine.low %v490_v53, %v494_v55 }
 0x10e   :  { %v486_v41 = vld [vmem:[#allocation8 + $0xbe8] sm:$0xff] }
 0x10f   :  { %3471 = vmatpush1.bf16.msra.mxu0 %v7992_v48  ;;  %3514 = vmatpush1.bf16.msra.mxu1 %v7996_v61  ;;  %12215 = vst [vmem:[#allocation234_spill] sm:$0xff] %v8013_v39  ;;  %v610_v62 = vld [vmem:[#allocation8 + $0xfc8] sm:$0xff]  ;;  %12217 = vst [vmem:[#allocation236_spill] sm:$0xff] %v8020_v7  ;;  %v8022_v57 = vcombine.high %v482_v49, %v486_v41  ;;  %v8028_v33 = vcombine.low %v482_v49, %v486_v41 }
 0x110   :  { %3472 = vmatprep.subr.bf16.mxu0 %v7998_v38  ;;  %3515 = vmatprep.subr.bf16.mxu1 %v8001_v24  ;;  %v614_v40 = vld [vmem:[#allocation8 + $0xfe8] sm:$0xff] }
 0x111   :  { %12218 = vst [vmem:[#allocation237_spill] sm:$0xff] %v8022_v57  ;;  %v8025_v11 = vcombine.high %v610_v62, %v614_v40  ;;  %v474_v24 = vld [vmem:[#allocation8 + $0xb88] sm:$0xff]  ;;  %12220 = vst [vmem:[#allocation239_spill] sm:$0xff] %v8028_v33  ;;  %v8032_v55 = vcombine.low %v610_v62, %v614_v40 }
 0x112   :  { %v478_v61 = vld [vmem:[#allocation8 + $0xba8] sm:$0xff] }
 0x113   :  { %3473 = vmatpush1.bf16.msra.mxu0 %v8004_v59  ;;  %3516 = vmatpush1.bf16.msra.mxu1 %v8008_v32  ;;  %12219 = vst [vmem:[#allocation238_spill] sm:$0xff] %v8025_v11  ;;  %v602_v38 = vld [vmem:[#allocation8 + $0xf88] sm:$0xff]  ;;  %12221 = vst [vmem:[#allocation240_spill] sm:$0xff] %v8032_v55  ;;  %v8034_v53 = vcombine.high %v474_v24, %v478_v61  ;;  %v8040_v41 = vcombine.low %v474_v24, %v478_v61 }
 0x114   :  { %3474 = vmatprep.subr.bf16.mxu0 %v8010_v46  ;;  %3517 = vmatprep.subr.bf16.mxu1 %v8013_v39  ;;  %v606_v48 = vld [vmem:[#allocation8 + $0xfa8] sm:$0xff] }
 0x115   :  { %12222 = vst [vmem:[#allocation241_spill] sm:$0xff] %v8034_v53  ;;  %v8037_v47 = vcombine.high %v602_v38, %v606_v48  ;;  %v466_v39 = vld [vmem:[#allocation8 + $0xb48] sm:$0xff]  ;;  %12224 = vst [vmem:[#allocation243_spill] sm:$0xff] %v8040_v41  ;;  %v8044_v40 = vcombine.low %v602_v38, %v606_v48 }
 0x116   :  { %v470_v32 = vld [vmem:[#allocation8 + $0xb68] sm:$0xff] }
 0x117   :  { %3475 = vmatpush1.bf16.msra.mxu0 %v8016_v23  ;;  %3518 = vmatpush1.bf16.msra.mxu1 %v8020_v7  ;;  %12223 = vst [vmem:[#allocation242_spill] sm:$0xff] %v8037_v47  ;;  %v594_v46 = vld [vmem:[#allocation8 + $0xf48] sm:$0xff]  ;;  %12225 = vst [vmem:[#allocation244_spill] sm:$0xff] %v8044_v40  ;;  %v8046_v62 = vcombine.high %v466_v39, %v470_v32  ;;  %v8052_v61 = vcombine.low %v466_v39, %v470_v32 }
 0x118   :  { %3476 = vmatprep.subr.bf16.mxu0 %v8022_v57  ;;  %3519 = vmatprep.subr.bf16.mxu1 %v8025_v11  ;;  %v598_v59 = vld [vmem:[#allocation8 + $0xf68] sm:$0xff] }
 0x119   :  { %12226 = vst [vmem:[#allocation245_spill] sm:$0xff] %v8046_v62  ;;  %v8049_v49 = vcombine.high %v594_v46, %v598_v59  ;;  %v458_v11 = vld [vmem:[#allocation8 + $0xb08] sm:$0xff]  ;;  %12228 = vst [vmem:[#allocation247_spill] sm:$0xff] %v8052_v61  ;;  %v8056_v48 = vcombine.low %v594_v46, %v598_v59 }
 0x11a   :  { %v462_v7 = vld [vmem:[#allocation8 + $0xb28] sm:$0xff] }
 0x11b   :  { %3477 = vmatpush2.bf16.msra.mxu0 %v8028_v33  ;;  %3520 = vmatpush2.bf16.msra.mxu1 %v8032_v55  ;;  %12227 = vst [vmem:[#allocation246_spill] sm:$0xff] %v8049_v49  ;;  %v586_v57 = vld [vmem:[#allocation8 + $0xf08] sm:$0xff]  ;;  %12229 = vst [vmem:[#allocation248_spill] sm:$0xff] %v8056_v48  ;;  %v8058_v38 = vcombine.high %v458_v11, %v462_v7  ;;  %v8064_v32 = vcombine.low %v458_v11, %v462_v7 }
 0x11c   :  { %3478 = vmatprep.subr.bf16.mxu0 %v8034_v53  ;;  %3521 = vmatprep.subr.bf16.mxu1 %v8037_v47  ;;  %v590_v23 = vld [vmem:[#allocation8 + $0xf28] sm:$0xff] }
 0x11d   :  { %12230 = vst [vmem:[#allocation249_spill] sm:$0xff] %v8058_v38  ;;  %v8061_v24 = vcombine.high %v586_v57, %v590_v23  ;;  %v450_v47 = vld [vmem:[#allocation8 + $0xac8] sm:$0xff]  ;;  %12232 = vst [vmem:[#allocation251_spill] sm:$0xff] %v8064_v32  ;;  %v8068_v59 = vcombine.low %v586_v57, %v590_v23 }
 0x11e   :  { %v454_v55 = vld [vmem:[#allocation8 + $0xae8] sm:$0xff] }
 0x11f   :  { %3479 = vmatpush2.bf16.msra.mxu0 %v8040_v41  ;;  %3522 = vmatpush2.bf16.msra.mxu1 %v8044_v40  ;;  %12231 = vst [vmem:[#allocation250_spill] sm:$0xff] %v8061_v24  ;;  %v578_v53 = vld [vmem:[#allocation8 + $0xec8] sm:$0xff]  ;;  %12233 = vst [vmem:[#allocation252_spill] sm:$0xff] %v8068_v59  ;;  %v8070_v46 = vcombine.high %v450_v47, %v454_v55  ;;  %v8076_v7 = vcombine.low %v450_v47, %v454_v55 }
 0x120   :  { %3480 = vmatprep.subr.bf16.mxu0 %v8046_v62  ;;  %3523 = vmatprep.subr.bf16.mxu1 %v8049_v49  ;;  %v582_v33 = vld [vmem:[#allocation8 + $0xee8] sm:$0xff] }
 0x121   :  { %12234 = vst [vmem:[#allocation253_spill] sm:$0xff] %v8070_v46  ;;  %v8073_v39 = vcombine.high %v578_v53, %v582_v33  ;;  %v442_v49 = vld [vmem:[#allocation8 + $0xa88] sm:$0xff]  ;;  %12236 = vst [vmem:[#allocation255_spill] sm:$0xff] %v8076_v7  ;;  %v8080_v23 = vcombine.low %v578_v53, %v582_v33 }
 0x122   :  { %v446_v40 = vld [vmem:[#allocation8 + $0xaa8] sm:$0xff] }
 0x123   :  { %3481 = vmatpush2.bf16.msra.mxu0 %v8052_v61  ;;  %3524 = vmatpush2.bf16.msra.mxu1 %v8056_v48  ;;  %12235 = vst [vmem:[#allocation254_spill] sm:$0xff] %v8073_v39  ;;  %v570_v62 = vld [vmem:[#allocation8 + $0xe88] sm:$0xff]  ;;  %12237 = vst [vmem:[#allocation256_spill] sm:$0xff] %v8080_v23  ;;  %v8082_v57 = vcombine.high %v442_v49, %v446_v40  ;;  %v8088_v55 = vcombine.low %v442_v49, %v446_v40 }
 0x124   :  { %3482 = vmatprep.subr.bf16.mxu0 %v8058_v38  ;;  %3525 = vmatprep.subr.bf16.mxu1 %v8061_v24  ;;  %v574_v41 = vld [vmem:[#allocation8 + $0xea8] sm:$0xff] }
 0x125   :  { %12238 = vst [vmem:[#allocation257_spill] sm:$0xff] %v8082_v57  ;;  %v8085_v11 = vcombine.high %v570_v62, %v574_v41  ;;  %v434_v24 = vld [vmem:[#allocation8 + $0xa48] sm:$0xff]  ;;  %12240 = vst [vmem:[#allocation259_spill] sm:$0xff] %v8088_v55  ;;  %v8092_v33 = vcombine.low %v570_v62, %v574_v41 }
 0x126   :  { %v438_v48 = vld [vmem:[#allocation8 + $0xa68] sm:$0xff] }
 0x127   :  { %3483 = vmatpush2.bf16.msra.mxu0 %v8064_v32  ;;  %3526 = vmatpush2.bf16.msra.mxu1 %v8068_v59  ;;  %12239 = vst [vmem:[#allocation258_spill] sm:$0xff] %v8085_v11  ;;  %v562_v38 = vld [vmem:[#allocation8 + $0xe48] sm:$0xff]  ;;  %12241 = vst [vmem:[#allocation260_spill] sm:$0xff] %v8092_v33  ;;  %v8094_v53 = vcombine.high %v434_v24, %v438_v48  ;;  %v8100_v40 = vcombine.low %v434_v24, %v438_v48 }
 0x128   :  { %3484 = vmatprep.subr.bf16.mxu0 %v8070_v46  ;;  %3527 = vmatprep.subr.bf16.mxu1 %v8073_v39  ;;  %v566_v61 = vld [vmem:[#allocation8 + $0xe68] sm:$0xff] }
 0x129   :  { %12242 = vst [vmem:[#allocation261_spill] sm:$0xff] %v8094_v53  ;;  %v8097_v47 = vcombine.high %v562_v38, %v566_v61  ;;  %v426_v39 = vld [vmem:[#allocation8 + $0xa08] sm:$0xff]  ;;  %12244 = vst [vmem:[#allocation263_spill] sm:$0xff] %v8100_v40  ;;  %v8104_v41 = vcombine.low %v562_v38, %v566_v61 }
 0x12a   :  { %v430_v59 = vld [vmem:[#allocation8 + $0xa28] sm:$0xff] }
 0x12b   :  { %3485 = vmatpush2.bf16.msra.mxu0 %v8076_v7  ;;  %3528 = vmatpush2.bf16.msra.mxu1 %v8080_v23  ;;  %12243 = vst [vmem:[#allocation262_spill] sm:$0xff] %v8097_v47  ;;  %v554_v46 = vld [vmem:[#allocation8 + $0xe08] sm:$0xff]  ;;  %12245 = vst [vmem:[#allocation264_spill] sm:$0xff] %v8104_v41  ;;  %v8106_v62 = vcombine.high %v426_v39, %v430_v59  ;;  %v167_v23 = vld [vmem:[#allocation8 + $0x1f0] sm:$0xff]  ;;  %v8112_v48 = vcombine.low %v426_v39, %v430_v59 }
 0x12c   :  { %3486 = vmatprep.subr.bf16.mxu0 %v8082_v57  ;;  %3529 = vmatprep.subr.bf16.mxu1 %v8085_v11  ;;  %v558_v32 = vld [vmem:[#allocation8 + $0xe28] sm:$0xff]  ;;  %v163_v11 = vld [vmem:[#allocation8 + $0x1d0] sm:$0xff]  ;;  %v626_v39 = vld [vmem:[#allocation7 + $0x180] sm:$0xff] }
 0x12d   :  { %12246 = vst [vmem:[#allocation265_spill] sm:$0xff] %v8106_v62  ;;  %v8109_v49 = vcombine.high %v554_v46, %v558_v32  ;;  %v291_v57 = vld [vmem:[#allocation8 + $0x5d0] sm:$0xff]  ;;  %12248 = vst [vmem:[#allocation267_spill] sm:$0xff] %v8112_v48  ;;  %v8116_v61 = vcombine.low %v554_v46, %v558_v32  ;;  %v8118_v38 = vcombine.high %v163_v11, %v167_v23 }
 0x12e   :  { %v295_v7 = vld [vmem:[#allocation8 + $0x5f0] sm:$0xff]  ;;  %v8124_v59 = vcombine.low %v163_v11, %v167_v23 }
 0x12f   :  { %3487 = vmatpush2.bf16.msra.mxu0 %v8088_v55  ;;  %3530 = vmatpush2.bf16.msra.mxu1 %v8092_v33  ;;  %12247 = vst [vmem:[#allocation266_spill] sm:$0xff] %v8109_v49  ;;  %12249 = vst [vmem:[#allocation268_spill] sm:$0xff] %v8116_v61  ;;  %v8121_v24 = vcombine.high %v291_v57, %v295_v7  ;;  %v159_v33 = vld [vmem:[#allocation8 + $0x1b0] sm:$0xff]  ;;  %v8128_v32 = vcombine.low %v291_v57, %v295_v7 }
 0x130   :  { %3488 = vmatprep.subr.bf16.mxu0 %v8094_v53  ;;  %3531 = vmatprep.subr.bf16.mxu1 %v8097_v47  ;;  %12250 = vst [vmem:[#allocation269_spill] sm:$0xff] %v8118_v38  ;;  %v155_v47 = vld [vmem:[#allocation8 + $0x190] sm:$0xff]  ;;  %12252 = vst [vmem:[#allocation271_spill] sm:$0xff] %v8124_v59 }
 0x131   :  { %12251 = vst [vmem:[#allocation270_spill] sm:$0xff] %v8121_v24  ;;  %v283_v53 = vld [vmem:[#allocation8 + $0x590] sm:$0xff]  ;;  %12253 = vst [vmem:[#allocation272_spill] sm:$0xff] %v8128_v32  ;;  %v8130_v46 = vcombine.high %v155_v47, %v159_v33  ;;  %v8138_v7 = vcombine.low %v155_v47, %v159_v33 }
 0x132   :  { %v287_v55 = vld [vmem:[#allocation8 + $0x5b0] sm:$0xff] }
 0x133   :  { %3489 = vmatpush2.bf16.msra.mxu0 %v8100_v40  ;;  %3532 = vmatpush2.bf16.msra.mxu1 %v8104_v41  ;;  %12254 = vst [vmem:[#allocation273_spill] sm:$0xff] %v8130_v46  ;;  %v147_v41 = vld [vmem:[#allocation8 + $0x150] sm:$0xff]  ;;  %12256 = vst [vmem:[#allocation275_spill] sm:$0xff] %v8138_v7 }
 0x134   :  { %3490 = vmatprep.subr.bf16.mxu0 %v8106_v62  ;;  %3533 = vmatprep.subr.bf16.mxu1 %v8109_v49  ;;  %v8133_v49 = vcombine.high %v283_v53, %v287_v55  ;;  %v151_v62 = vld [vmem:[#allocation8 + $0x170] sm:$0xff] }
 0x135   :  { %v275_v23 = vld [vmem:[#allocation8 + $0x550] sm:$0xff]  ;;  %v8146_v31 = vcombine.high %v147_v41, %v151_v62 }
 0x136   :  { %12255 = vst [vmem:[#allocation274_spill] sm:$0xff] %v8133_v49  ;;  %v279_v11 = vld [vmem:[#allocation8 + $0x570] sm:$0xff] }
 0x137   :  { %3491 = vmatpush2.bf16.msra.mxu0 %v8112_v48  ;;  %3534 = vmatpush2.bf16.msra.mxu1 %v8116_v61  ;;  %12258 = vst [vmem:[#allocation277_spill] sm:$0xff] %v8146_v31  ;;  %v139_v33 = vld [vmem:[#allocation8 + $0x110] sm:$0xff] }
 0x138   :  { %3546 = vmatprep.subr.bf16.mxu0 %v8118_v38  ;;  %3589 = vmatprep.subr.bf16.mxu1 %v8121_v24  ;;  %v3279_v61 = vpop.f32.mrf.mxu1  ;;  %v634_v24 = vld [vmem:[#allocation7 + $0x1c0] sm:$0xff]  ;;  %v8144_v38 = vcombine.low %v283_v53, %v287_v55  ;;  %v143_v47 = vld [vmem:[#allocation8 + $0x130] sm:$0xff]  ;;  %v8158_v53 = vcombine.low %v147_v41, %v151_v62 }
 0x139   :  { %v263_v41 = vld [vmem:[#allocation8 + $0x4f0] sm:$0xff]  ;;  %v8172_v62 = vcombine.low %v139_v33, %v143_v47 }
 0x13a   :  { %v3236_v40 = vpop.f32.mrf.mxu0  ;;  %3493 = vmatmul.mubr.bf16.vlgmr.msra.gmra.mxu0 %v7727_v54  ;;  %3536 = vmatmul.mubr.bf16.vlgmr.msra.gmra.mxu1 %v7730_v6  ;;  %12257 = vst [vmem:[#allocation276_spill] sm:$0xff] %v8144_v38  ;;  %12260 = vst [vmem:[#allocation279_spill] sm:$0xff] %v8158_v53 }
 0x13b   :  { %v3237_v48 = vadd.f32 %v3236_v40, %v626_v39  ;;  %3547 = vmatpush1.bf16.msra.mxu0 %v8124_v59  ;;  %3590 = vmatpush1.bf16.msra.mxu1 %v8128_v32  ;;  %v8150_v40 = vpop.f32.mrf.mxu1  ;;  %v8153_v39 = vcombine.high %v275_v23, %v279_v11  ;;  %v267_v59 = vld [vmem:[#allocation8 + $0x510] sm:$0xff]  ;;  %12264 = vst [vmem:[#allocation283_spill] sm:$0xff] %v8172_v62 }
 0x13c   :  { %v8141_v57 = vpop.f32.mrf.mxu0  ;;  %3548 = vmatprep.subr.bf16.mxu0 %v8130_v46  ;;  %3591 = vmatprep.subr.bf16.mxu1 %v8133_v49  ;;  %v8164_v49 = vcombine.high %v139_v33, %v143_v47  ;;  %v8169_v16 = vcombine.high %v267_v59, %v271_v17 }
 0x13d   :  { %v8148_v30 = vadd.f32 %v3279_v61, %v3237_v48  ;;  %12259 = vst [vmem:[#allocation278_spill] sm:$0xff] %v8153_v39  ;;  %3578 = vmatprep.mubr.bf16.mxu0 %v7397_v58  ;;  %3621 = vmatprep.mubr.bf16.mxu1 %v7399_v63  ;;  %v3283_v48 = vpop.f32.mrf.mxu1  ;;  %v8162_v61 = vcombine.low %v275_v23, %v279_v11 }
 0x13e   :  { %v3240_v32 = vpop.f32.mrf.mxu0  ;;  %12262 = vst [vmem:[#allocation281_spill] sm:$0xff] %v8164_v49  ;;  %12263 = vst [vmem:[#allocation282_spill] sm:$0xff] %v8169_v16  ;;  %v8176_v23 = vcombine.low %v267_v59, %v271_v17 }
 0x13f   :  { %v3241_v55 = vadd.f32 %v3240_v32, %v634_v24  ;;  %3549 = vmatpush1.bf16.msra.mxu0 %v8138_v7  ;;  %3592 = vmatpush1.bf16.msra.mxu1 %v8144_v38  ;;  %12261 = vst [vmem:[#allocation280_spill] sm:$0xff] %v8162_v61  ;;  %v131_v24 = vld [vmem:[#allocation8 + $0xd0] sm:$0xff] }
 0x140   :  { %3550 = vmatprep.subr.bf16.mxu0 %v8146_v31  ;;  %3593 = vmatprep.subr.bf16.mxu1 %v8153_v39  ;;  %v135_v32 = vld [vmem:[#allocation8 + $0xf0] sm:$0xff]  ;;  %12265 = vst [vmem:[#allocation284_spill] sm:$0xff] %v8176_v23 }
 0x141   :  { %v8166_v46 = vadd.f32 %v3283_v48, %v3241_v55  ;;  %v259_v7 = vld [vmem:[#allocation8 + $0x4d0] sm:$0xff]  ;;  %v8178_v11 = vcombine.high %v131_v24, %v135_v32  ;;  %v8184_v33 = vcombine.low %v131_v24, %v135_v32 }
 0x142   :  { %v8181_v55 = vcombine.high %v259_v7, %v263_v41  ;;  %v123_v48 = vld [vmem:[#allocation8 + $0x90] sm:$0xff]  ;;  %v8188_v17 = vcombine.low %v259_v7, %v263_v41 }
 0x143   :  { %3551 = vmatpush1.bf16.msra.mxu0 %v8158_v53  ;;  %3594 = vmatpush1.bf16.msra.mxu1 %v8162_v61  ;;  %12266 = vst [vmem:[#allocation285_spill] sm:$0xff] %v8178_v11  ;;  %v127_v39 = vld [vmem:[#allocation8 + $0xb0] sm:$0xff]  ;;  %12268 = vst [vmem:[#allocation287_spill] sm:$0xff] %v8184_v33 }
 0x144   :  { %3552 = vmatprep.subr.bf16.mxu0 %v8164_v49  ;;  %3595 = vmatprep.subr.bf16.mxu1 %v8169_v16  ;;  %12267 = vst [vmem:[#allocation286_spill] sm:$0xff] %v8181_v55  ;;  %v251_v38 = vld [vmem:[#allocation8 + $0x490] sm:$0xff]  ;;  %12269 = vst [vmem:[#allocation288_spill] sm:$0xff] %v8188_v17  ;;  %v8190_v59 = vcombine.high %v123_v48, %v127_v39  ;;  %v8196_v24 = vcombine.low %v123_v48, %v127_v39 }
 0x145   :  { %v255_v31 = vld [vmem:[#allocation8 + $0x4b0] sm:$0xff] }
 0x146   :  { %12270 = vst [vmem:[#allocation289_spill] sm:$0xff] %v8190_v59  ;;  %v8193_v47 = vcombine.high %v251_v38, %v255_v31  ;;  %v115_v16 = vld [vmem:[#allocation8 + $0x50] sm:$0xff]  ;;  %12272 = vst [vmem:[#allocation291_spill] sm:$0xff] %v8196_v24  ;;  %v8200_v7 = vcombine.low %v251_v38, %v255_v31 }
 0x147   :  { %3553 = vmatpush1.bf16.msra.mxu0 %v8172_v62  ;;  %3596 = vmatpush1.bf16.msra.mxu1 %v8176_v23  ;;  %v119_v61 = vld [vmem:[#allocation8 + $0x70] sm:$0xff] }
 0x148   :  { %3554 = vmatprep.subr.bf16.mxu0 %v8178_v11  ;;  %3597 = vmatprep.subr.bf16.mxu1 %v8181_v55  ;;  %12271 = vst [vmem:[#allocation290_spill] sm:$0xff] %v8193_v47  ;;  %v243_v49 = vld [vmem:[#allocation8 + $0x450] sm:$0xff]  ;;  %12273 = vst [vmem:[#allocation292_spill] sm:$0xff] %v8200_v7  ;;  %v8202_v32 = vcombine.high %v115_v16, %v119_v61  ;;  %v8208_v39 = vcombine.low %v115_v16, %v119_v61 }
 0x149   :  { %v247_v53 = vld [vmem:[#allocation8 + $0x470] sm:$0xff] }
 0x14a   :  { %12274 = vst [vmem:[#allocation293_spill] sm:$0xff] %v8202_v32  ;;  %v8205_v41 = vcombine.high %v243_v49, %v247_v53  ;;  %v107_v55 = vld [vmem:[#allocation8 + $0x10] sm:$0xff]  ;;  %12276 = vst [vmem:[#allocation295_spill] sm:$0xff] %v8208_v39  ;;  %v8212_v31 = vcombine.low %v243_v49, %v247_v53 }
 0x14b   :  { %3555 = vmatpush1.bf16.msra.mxu0 %v8184_v33  ;;  %3598 = vmatpush1.bf16.msra.mxu1 %v8188_v17  ;;  %v111_v23 = vld [vmem:[#allocation8 + $0x30] sm:$0xff] }
 0x14c   :  { %3556 = vmatprep.subr.bf16.mxu0 %v8190_v59  ;;  %3599 = vmatprep.subr.bf16.mxu1 %v8193_v47  ;;  %12275 = vst [vmem:[#allocation294_spill] sm:$0xff] %v8205_v41  ;;  %v235_v11 = vld [vmem:[#allocation8 + $0x410] sm:$0xff]  ;;  %12277 = vst [vmem:[#allocation296_spill] sm:$0xff] %v8212_v31  ;;  %v8214_v38 = vcombine.high %v107_v55, %v111_v23  ;;  %v8220_v16 = vcombine.low %v107_v55, %v111_v23 }
 0x14d   :  { %v239_v62 = vld [vmem:[#allocation8 + $0x430] sm:$0xff] }
 0x14e   :  { %12278 = vst [vmem:[#allocation297_spill] sm:$0xff] %v8214_v38  ;;  %v8217_v48 = vcombine.high %v235_v11, %v239_v62  ;;  %v227_v47 = vld [vmem:[#allocation8 + $0x3d0] sm:$0xff]  ;;  %12280 = vst [vmem:[#allocation299_spill] sm:$0xff] %v8220_v16  ;;  %v8224_v49 = vcombine.low %v235_v11, %v239_v62 }
 0x14f   :  { %3557 = vmatpush1.bf16.msra.mxu0 %v8196_v24  ;;  %3600 = vmatpush1.bf16.msra.mxu1 %v8200_v7  ;;  %v231_v17 = vld [vmem:[#allocation8 + $0x3f0] sm:$0xff] }
 0x150   :  { %3558 = vmatprep.subr.bf16.mxu0 %v8202_v32  ;;  %3601 = vmatprep.subr.bf16.mxu1 %v8205_v41  ;;  %12279 = vst [vmem:[#allocation298_spill] sm:$0xff] %v8217_v48  ;;  %v355_v59 = vld [vmem:[#allocation8 + $0x7d0] sm:$0xff]  ;;  %12281 = vst [vmem:[#allocation300_spill] sm:$0xff] %v8224_v49  ;;  %v8226_v53 = vcombine.high %v227_v47, %v231_v17  ;;  %v8232_v23 = vcombine.low %v227_v47, %v231_v17 }
 0x151   :  { %v359_v33 = vld [vmem:[#allocation8 + $0x7f0] sm:$0xff] }
 0x152   :  { %12282 = vst [vmem:[#allocation301_spill] sm:$0xff] %v8226_v53  ;;  %v8229_v61 = vcombine.high %v355_v59, %v359_v33  ;;  %v219_v41 = vld [vmem:[#allocation8 + $0x390] sm:$0xff]  ;;  %12284 = vst [vmem:[#allocation303_spill] sm:$0xff] %v8232_v23  ;;  %v8236_v62 = vcombine.low %v355_v59, %v359_v33 }
 0x153   :  { %3559 = vmatpush1.bf16.msra.mxu0 %v8208_v39  ;;  %3602 = vmatpush1.bf16.msra.mxu1 %v8212_v31  ;;  %v223_v7 = vld [vmem:[#allocation8 + $0x3b0] sm:$0xff] }
 0x154   :  { %3560 = vmatprep.subr.bf16.mxu0 %v8214_v38  ;;  %3603 = vmatprep.subr.bf16.mxu1 %v8217_v48  ;;  %12283 = vst [vmem:[#allocation302_spill] sm:$0xff] %v8229_v61  ;;  %v347_v32 = vld [vmem:[#allocation8 + $0x790] sm:$0xff]  ;;  %12285 = vst [vmem:[#allocation304_spill] sm:$0xff] %v8236_v62  ;;  %v8238_v11 = vcombine.high %v219_v41, %v223_v7  ;;  %v8244_v17 = vcombine.low %v219_v41, %v223_v7 }
 0x155   :  { %v351_v24 = vld [vmem:[#allocation8 + $0x7b0] sm:$0xff] }
 0x156   :  { %12286 = vst [vmem:[#allocation305_spill] sm:$0xff] %v8238_v11  ;;  %v8241_v55 = vcombine.high %v347_v32, %v351_v24  ;;  %v211_v48 = vld [vmem:[#allocation8 + $0x350] sm:$0xff]  ;;  %12288 = vst [vmem:[#allocation307_spill] sm:$0xff] %v8244_v17  ;;  %v8248_v33 = vcombine.low %v347_v32, %v351_v24 }
 0x157   :  { %3561 = vmatpush1.bf16.msra.mxu0 %v8220_v16  ;;  %3604 = vmatpush1.bf16.msra.mxu1 %v8224_v49  ;;  %v215_v31 = vld [vmem:[#allocation8 + $0x370] sm:$0xff] }
 0x158   :  { %3562 = vmatprep.subr.bf16.mxu0 %v8226_v53  ;;  %3605 = vmatprep.subr.bf16.mxu1 %v8229_v61  ;;  %12287 = vst [vmem:[#allocation306_spill] sm:$0xff] %v8241_v55  ;;  %v339_v38 = vld [vmem:[#allocation8 + $0x750] sm:$0xff]  ;;  %12289 = vst [vmem:[#allocation308_spill] sm:$0xff] %v8248_v33  ;;  %v8250_v59 = vcombine.high %v211_v48, %v215_v31  ;;  %v8256_v7 = vcombine.low %v211_v48, %v215_v31 }
 0x159   :  { %v343_v39 = vld [vmem:[#allocation8 + $0x770] sm:$0xff] }
 0x15a   :  { %12290 = vst [vmem:[#allocation309_spill] sm:$0xff] %v8250_v59  ;;  %v8253_v47 = vcombine.high %v339_v38, %v343_v39  ;;  %v203_v61 = vld [vmem:[#allocation8 + $0x310] sm:$0xff]  ;;  %12292 = vst [vmem:[#allocation311_spill] sm:$0xff] %v8256_v7  ;;  %v8260_v24 = vcombine.low %v339_v38, %v343_v39 }
 0x15b   :  { %3563 = vmatpush2.bf16.msra.mxu0 %v8232_v23  ;;  %3606 = vmatpush2.bf16.msra.mxu1 %v8236_v62  ;;  %v207_v49 = vld [vmem:[#allocation8 + $0x330] sm:$0xff] }
 0x15c   :  { %3564 = vmatprep.subr.bf16.mxu0 %v8238_v11  ;;  %3607 = vmatprep.subr.bf16.mxu1 %v8241_v55  ;;  %12291 = vst [vmem:[#allocation310_spill] sm:$0xff] %v8253_v47  ;;  %v331_v53 = vld [vmem:[#allocation8 + $0x710] sm:$0xff]  ;;  %12293 = vst [vmem:[#allocation312_spill] sm:$0xff] %v8260_v24  ;;  %v8262_v32 = vcombine.high %v203_v61, %v207_v49  ;;  %v8268_v31 = vcombine.low %v203_v61, %v207_v49 }
 0x15d   :  { %v335_v16 = vld [vmem:[#allocation8 + $0x730] sm:$0xff] }
 0x15e   :  { %12294 = vst [vmem:[#allocation313_spill] sm:$0xff] %v8262_v32  ;;  %v8265_v41 = vcombine.high %v331_v53, %v335_v16  ;;  %v195_v55 = vld [vmem:[#allocation8 + $0x2d0] sm:$0xff]  ;;  %12296 = vst [vmem:[#allocation315_spill] sm:$0xff] %v8268_v31  ;;  %v8272_v39 = vcombine.low %v331_v53, %v335_v16 }
 0x15f   :  { %3565 = vmatpush2.bf16.msra.mxu0 %v8244_v17  ;;  %3608 = vmatpush2.bf16.msra.mxu1 %v8248_v33  ;;  %v199_v62 = vld [vmem:[#allocation8 + $0x2f0] sm:$0xff] }
 0x160   :  { %3566 = vmatprep.subr.bf16.mxu0 %v8250_v59  ;;  %3609 = vmatprep.subr.bf16.mxu1 %v8253_v47  ;;  %12295 = vst [vmem:[#allocation314_spill] sm:$0xff] %v8265_v41  ;;  %v323_v11 = vld [vmem:[#allocation8 + $0x6d0] sm:$0xff]  ;;  %12297 = vst [vmem:[#allocation316_spill] sm:$0xff] %v8272_v39  ;;  %v8274_v38 = vcombine.high %v195_v55, %v199_v62  ;;  %v8280_v49 = vcombine.low %v195_v55, %v199_v62 }
 0x161   :  { %v327_v23 = vld [vmem:[#allocation8 + $0x6f0] sm:$0xff] }
 0x162   :  { %12298 = vst [vmem:[#allocation317_spill] sm:$0xff] %v8274_v38  ;;  %v8277_v48 = vcombine.high %v323_v11, %v327_v23  ;;  %v187_v47 = vld [vmem:[#allocation8 + $0x290] sm:$0xff]  ;;  %12300 = vst [vmem:[#allocation319_spill] sm:$0xff] %v8280_v49  ;;  %v8284_v16 = vcombine.low %v323_v11, %v327_v23 }
 0x163   :  { %3567 = vmatpush2.bf16.msra.mxu0 %v8256_v7  ;;  %3610 = vmatpush2.bf16.msra.mxu1 %v8260_v24  ;;  %v191_v33 = vld [vmem:[#allocation8 + $0x2b0] sm:$0xff] }
 0x164   :  { %3568 = vmatprep.subr.bf16.mxu0 %v8262_v32  ;;  %3611 = vmatprep.subr.bf16.mxu1 %v8265_v41  ;;  %12299 = vst [vmem:[#allocation318_spill] sm:$0xff] %v8277_v48  ;;  %v315_v59 = vld [vmem:[#allocation8 + $0x690] sm:$0xff]  ;;  %12301 = vst [vmem:[#allocation320_spill] sm:$0xff] %v8284_v16  ;;  %v8286_v53 = vcombine.high %v187_v47, %v191_v33  ;;  %v8292_v62 = vcombine.low %v187_v47, %v191_v33 }
 0x165   :  { %v319_v17 = vld [vmem:[#allocation8 + $0x6b0] sm:$0xff] }
 0x166   :  { %12302 = vst [vmem:[#allocation321_spill] sm:$0xff] %v8286_v53  ;;  %v8289_v61 = vcombine.high %v315_v59, %v319_v17  ;;  %v179_v41 = vld [vmem:[#allocation8 + $0x250] sm:$0xff]  ;;  %12304 = vst [vmem:[#allocation323_spill] sm:$0xff] %v8292_v62  ;;  %v8296_v23 = vcombine.low %v315_v59, %v319_v17 }
 0x167   :  { %3569 = vmatpush2.bf16.msra.mxu0 %v8268_v31  ;;  %3612 = vmatpush2.bf16.msra.mxu1 %v8272_v39  ;;  %v183_v24 = vld [vmem:[#allocation8 + $0x270] sm:$0xff] }
 0x168   :  { %3570 = vmatprep.subr.bf16.mxu0 %v8274_v38  ;;  %3613 = vmatprep.subr.bf16.mxu1 %v8277_v48  ;;  %12303 = vst [vmem:[#allocation322_spill] sm:$0xff] %v8289_v61  ;;  %v307_v32 = vld [vmem:[#allocation8 + $0x650] sm:$0xff]  ;;  %12305 = vst [vmem:[#allocation324_spill] sm:$0xff] %v8296_v23  ;;  %v8298_v11 = vcombine.high %v179_v41, %v183_v24  ;;  %v8304_v33 = vcombine.low %v179_v41, %v183_v24 }
 0x169   :  { %v311_v7 = vld [vmem:[#allocation8 + $0x670] sm:$0xff] }
 0x16a   :  { %12306 = vst [vmem:[#allocation325_spill] sm:$0xff] %v8298_v11  ;;  %v8301_v55 = vcombine.high %v307_v32, %v311_v7  ;;  %v171_v48 = vld [vmem:[#allocation8 + $0x210] sm:$0xff]  ;;  %12308 = vst [vmem:[#allocation327_spill] sm:$0xff] %v8304_v33  ;;  %v8308_v17 = vcombine.low %v307_v32, %v311_v7 }
 0x16b   :  { %3571 = vmatpush2.bf16.msra.mxu0 %v8280_v49  ;;  %3614 = vmatpush2.bf16.msra.mxu1 %v8284_v16  ;;  %v175_v39 = vld [vmem:[#allocation8 + $0x230] sm:$0xff] }
 0x16c   :  { %3572 = vmatprep.subr.bf16.mxu0 %v8286_v53  ;;  %3615 = vmatprep.subr.bf16.mxu1 %v8289_v61  ;;  %12307 = vst [vmem:[#allocation326_spill] sm:$0xff] %v8301_v55  ;;  %v299_v38 = vld [vmem:[#allocation8 + $0x610] sm:$0xff]  ;;  %12309 = vst [vmem:[#allocation328_spill] sm:$0xff] %v8308_v17  ;;  %v8310_v59 = vcombine.high %v171_v48, %v175_v39  ;;  %v8316_v24 = vcombine.low %v171_v48, %v175_v39  ;;  %v8330_v48 = vpop.f32.mrf.mxu0 }
 0x16d   :  { %v303_v31 = vld [vmem:[#allocation8 + $0x630] sm:$0xff] }
 0x16e   :  { %12310 = vst [vmem:[#allocation329_spill] sm:$0xff] %v8310_v59  ;;  %v8313_v47 = vcombine.high %v299_v38, %v303_v31  ;;  %v419_v61 = vld [vmem:[#allocation8 + $0x9d0] sm:$0xff]  ;;  %12312 = vst [vmem:[#allocation331_spill] sm:$0xff] %v8316_v24  ;;  %v8320_v7 = vcombine.low %v299_v38, %v303_v31 }
 0x16f   :  { %3573 = vmatpush2.bf16.msra.mxu0 %v8292_v62  ;;  %3616 = vmatpush2.bf16.msra.mxu1 %v8296_v23  ;;  %v423_v16 = vld [vmem:[#allocation8 + $0x9f0] sm:$0xff] }
 0x170   :  { %3574 = vmatprep.subr.bf16.mxu0 %v8298_v11  ;;  %3617 = vmatprep.subr.bf16.mxu1 %v8301_v55  ;;  %12311 = vst [vmem:[#allocation330_spill] sm:$0xff] %v8313_v47  ;;  %v547_v53 = vld [vmem:[#allocation8 + $0xdd0] sm:$0xff]  ;;  %12313 = vst [vmem:[#allocation332_spill] sm:$0xff] %v8320_v7  ;;  %v8322_v32 = vcombine.high %v419_v61, %v423_v16  ;;  %v8328_v39 = vcombine.low %v419_v61, %v423_v16 }
 0x171   :  { %v551_v49 = vld [vmem:[#allocation8 + $0xdf0] sm:$0xff] }
 0x172   :  { %12314 = vst [vmem:[#allocation333_spill] sm:$0xff] %v8322_v32  ;;  %v8325_v41 = vcombine.high %v547_v53, %v551_v49  ;;  %v411_v55 = vld [vmem:[#allocation8 + $0x990] sm:$0xff]  ;;  %12316 = vst [vmem:[#allocation335_spill] sm:$0xff] %v8328_v39  ;;  %v8334_v31 = vcombine.low %v547_v53, %v551_v49 }
 0x173   :  { %3575 = vmatpush2.bf16.msra.mxu0 %v8304_v33  ;;  %3618 = vmatpush2.bf16.msra.mxu1 %v8308_v17  ;;  %v415_v23 = vld [vmem:[#allocation8 + $0x9b0] sm:$0xff] }
 0x174   :  { %3576 = vmatprep.subr.bf16.mxu0 %v8310_v59  ;;  %3619 = vmatprep.subr.bf16.mxu1 %v8313_v47  ;;  %12315 = vst [vmem:[#allocation334_spill] sm:$0xff] %v8325_v41  ;;  %v539_v11 = vld [vmem:[#allocation8 + $0xd90] sm:$0xff]  ;;  %12317 = vst [vmem:[#allocation336_spill] sm:$0xff] %v8334_v31  ;;  %v8336_v38 = vcombine.high %v411_v55, %v415_v23  ;;  %v8338_v47 = vpop.f32.mrf.mxu1  ;;  %v8347_v49 = vcombine.low %v411_v55, %v415_v23 }
 0x175   :  { %v543_v62 = vld [vmem:[#allocation8 + $0xdb0] sm:$0xff] }
 0x176   :  { %12318 = vst [vmem:[#allocation337_spill] sm:$0xff] %v8336_v38  ;;  %v8341_v17 = vcombine.high %v539_v11, %v543_v62  ;;  %v403_v59 = vld [vmem:[#allocation8 + $0x950] sm:$0xff]  ;;  %12320 = vst [vmem:[#allocation339_spill] sm:$0xff] %v8347_v49 }
 0x177   :  { %3577 = vmatpush2.bf16.msra.mxu0 %v8316_v24  ;;  %3620 = vmatpush2.bf16.msra.mxu1 %v8320_v7  ;;  %v407_v24 = vld [vmem:[#allocation8 + $0x970] sm:$0xff] }
 0x178   :  { %3632 = vmatprep.subr.bf16.mxu0 %v8322_v32  ;;  %3675 = vmatprep.subr.bf16.mxu1 %v8325_v41  ;;  %12319 = vst [vmem:[#allocation338_spill] sm:$0xff] %v8341_v17  ;;  %v531_v61 = vld [vmem:[#allocation8 + $0xd50] sm:$0xff]  ;;  %v8353_v41 = vcombine.low %v539_v11, %v543_v62  ;;  %v8355_v15 = vcombine.high %v403_v59, %v407_v24 }
 0x179   :  { %v535_v33 = vld [vmem:[#allocation8 + $0xd70] sm:$0xff]  ;;  %v8366_v11 = vcombine.low %v403_v59, %v407_v24 }
 0x17a   :  { %v3322_v16 = vpop.f32.mrf.mxu0  ;;  %3579 = vmatmul.mubr.bf16.vlgmr.msra.gmra.mxu0 %v7523_v25  ;;  %v3365_v32 = vpop.f32.mrf.mxu1  ;;  %3622 = vmatmul.mubr.bf16.vlgmr.msra.gmra.mxu1 %v7526_v22  ;;  %12321 = vst [vmem:[#allocation340_spill] sm:$0xff] %v8353_v41  ;;  %12322 = vst [vmem:[#allocation341_spill] sm:$0xff] %v8355_v15  ;;  %v399_v23 = vld [vmem:[#allocation8 + $0x930] sm:$0xff] }
 0x17b   :  { %v3323_v7 = vadd.f32 %v3322_v16, %v8148_v30  ;;  %3633 = vmatpush1.bf16.msra.mxu0 %v8328_v39  ;;  %3676 = vmatpush1.bf16.msra.mxu1 %v8334_v31  ;;  %v8360_v30 = vcombine.high %v531_v61, %v535_v33  ;;  %v395_v16 = vld [vmem:[#allocation8 + $0x910] sm:$0xff]  ;;  %12324 = vst [vmem:[#allocation343_spill] sm:$0xff] %v8366_v11 }
 0x17c   :  { %v8350_v53 = vpop.f32.mrf.mxu0  ;;  %3634 = vmatprep.subr.bf16.mxu0 %v8336_v38  ;;  %v8357_v4 = vpop.f32.mrf.mxu1  ;;  %3677 = vmatprep.subr.bf16.mxu1 %v8341_v17  ;;  %v523_v31 = vld [vmem:[#allocation8 + $0xd10] sm:$0xff]  ;;  %v8372_v17 = vcombine.high %v395_v16, %v399_v23  ;;  %v8378_v59 = vcombine.low %v395_v16, %v399_v23 }
 0x17d   :  { %v3366_v13 = vadd.f32 %v3365_v32, %v3323_v7  ;;  %12323 = vst [vmem:[#allocation342_spill] sm:$0xff] %v8360_v30  ;;  %3664 = vmatprep.mubr.bf16.mxu0 %v7539_v12  ;;  %v527_v39 = vld [vmem:[#allocation8 + $0xd30] sm:$0xff]  ;;  %3707 = vmatprep.mubr.bf16.mxu1 %v7542_v60  ;;  %v8370_v32 = vcombine.low %v531_v61, %v535_v33 }
 0x17e   :  { %v3326_v55 = vpop.f32.mrf.mxu0  ;;  %v3369_v7 = vpop.f32.mrf.mxu1  ;;  %12326 = vst [vmem:[#allocation345_spill] sm:$0xff] %v8372_v17  ;;  %v8375_v2 = vcombine.high %v523_v31, %v527_v39  ;;  %12328 = vst [vmem:[#allocation347_spill] sm:$0xff] %v8378_v59  ;;  %v8382_v33 = vcombine.low %v523_v31, %v527_v39 }
 0x17f   :  { %6984 = vtanh.f32 %v3366_v13  ;;  %v3327_v62 = vadd.f32 %v3326_v55, %v8166_v46  ;;  %3635 = vmatpush1.bf16.msra.mxu0 %v8347_v49  ;;  %3678 = vmatpush1.bf16.msra.mxu1 %v8353_v41  ;;  %12325 = vst [vmem:[#allocation344_spill] sm:$0xff] %v8370_v32  ;;  %v387_v13 = vld [vmem:[#allocation8 + $0x8d0] sm:$0xff] }
 0x180   :  { %3636 = vmatprep.subr.bf16.mxu0 %v8355_v15  ;;  %3679 = vmatprep.subr.bf16.mxu1 %v8360_v30  ;;  %12327 = vst [vmem:[#allocation346_spill] sm:$0xff] %v8375_v2  ;;  %v391_v46 = vld [vmem:[#allocation8 + $0x8f0] sm:$0xff]  ;;  %12329 = vst [vmem:[#allocation348_spill] sm:$0xff] %v8382_v33 }
 0x181   :  { %v3370_v38 = vadd.f32 %v3369_v7, %v3327_v62  ;;  %v515_v55 = vld [vmem:[#allocation8 + $0xcd0] sm:$0xff]  ;;  %v8384_v24 = vcombine.high %v387_v13, %v391_v46  ;;  %v8390_v16 = vcombine.low %v387_v13, %v391_v46 }
 0x182   :  { %v519_v49 = vld [vmem:[#allocation8 + $0xcf0] sm:$0xff] }
 0x183   :  { %6986 = vtanh.f32 %v3370_v38  ;;  %3637 = vmatpush1.bf16.msra.mxu0 %v8366_v11  ;;  %3680 = vmatpush1.bf16.msra.mxu1 %v8370_v32  ;;  %12330 = vst [vmem:[#allocation349_spill] sm:$0xff] %v8384_v24  ;;  %v8387_v61 = vcombine.high %v515_v55, %v519_v49  ;;  %v379_v62 = vld [vmem:[#allocation8 + $0x890] sm:$0xff]  ;;  %12332 = vst [vmem:[#allocation351_spill] sm:$0xff] %v8390_v16  ;;  %v8394_v39 = vcombine.low %v515_v55, %v519_v49 }
 0x184   :  { %3638 = vmatprep.subr.bf16.mxu0 %v8372_v17  ;;  %3681 = vmatprep.subr.bf16.mxu1 %v8375_v2  ;;  %v383_v7 = vld [vmem:[#allocation8 + $0x8b0] sm:$0xff] }
 0x185   :  { %12331 = vst [vmem:[#allocation350_spill] sm:$0xff] %v8387_v61  ;;  %v507_v30 = vld [vmem:[#allocation8 + $0xc90] sm:$0xff]  ;;  %12333 = vst [vmem:[#allocation352_spill] sm:$0xff] %v8394_v39  ;;  %v8396_v31 = vcombine.high %v379_v62, %v383_v7  ;;  %v8402_v13 = vcombine.low %v379_v62, %v383_v7  ;;  %v97_v7 = vld [vmem:[#allocation5 + $0x40] sm:$0xff] }
 0x186   :  { %v511_v38 = vld [vmem:[#allocation8 + $0xcb0] sm:$0xff]  ;;  %v3962_v52 = vmul.f32 0.9919984, %v97_v7 }
 0x187   :  { %3639 = vmatpush1.bf16.msra.mxu0 %v8378_v59  ;;  %3682 = vmatpush1.bf16.msra.mxu1 %v8382_v33  ;;  %12334 = vst [vmem:[#allocation353_spill] sm:$0xff] %v8396_v31  ;;  %v8399_v23 = vcombine.high %v507_v30, %v511_v38  ;;  %v371_v2 = vld [vmem:[#allocation8 + $0x850] sm:$0xff]  ;;  %12336 = vst [vmem:[#allocation355_spill] sm:$0xff] %v8402_v13  ;;  %v89_v33 = vld [vmem:[#allocation5] sm:$0xff]  ;;  %v8406_v49 = vcombine.low %v507_v30, %v511_v38 }
 0x188   :  { %3640 = vmatprep.subr.bf16.mxu0 %v8384_v24  ;;  %3683 = vmatprep.subr.bf16.mxu1 %v8387_v61  ;;  %v375_v32 = vld [vmem:[#allocation8 + $0x870] sm:$0xff]  ;;  %v7112_v24 = vld [vmem:[#allocation2] sm:$0xff] }
 0x189   :  { %12335 = vst [vmem:[#allocation354_spill] sm:$0xff] %v8399_v23  ;;  %v499_v41 = vld [vmem:[#allocation8 + $0xc50] sm:$0xff]  ;;  %12337 = vst [vmem:[#allocation356_spill] sm:$0xff] %v8406_v49  ;;  %v8408_v55 = vcombine.high %v371_v2, %v375_v32  ;;  %v3922_v59 = vmul.f32 0.11185222, %v7112_v24  ;;  %v8414_v30 = vcombine.low %v371_v2, %v375_v32 }
 0x18a   :  { %v503_v17 = vld [vmem:[#allocation8 + $0xc70] sm:$0xff] }
 0x18b   :  { %3641 = vmatpush1.bf16.msra.mxu0 %v8390_v16  ;;  %3684 = vmatpush1.bf16.msra.mxu1 %v8394_v39  ;;  %12338 = vst [vmem:[#allocation357_spill] sm:$0xff] %v8408_v55  ;;  %v8411_v11 = vcombine.high %v499_v41, %v503_v17  ;;  %v363_v16 = vld [vmem:[#allocation8 + $0x810] sm:$0xff]  ;;  %v3930_v39 = vmul.f32 0.11185222, %v7113_v0  ;;  %12340 = vst [vmem:[#allocation359_spill] sm:$0xff] %v8414_v30  ;;  %v8418_v24 = vcombine.low %v499_v41, %v503_v17 }
 0x18c   :  { %v6985_v46 = vpop.eup %6984  ;;  %3642 = vmatprep.subr.bf16.mxu0 %v8396_v31  ;;  %3685 = vmatprep.subr.bf16.mxu1 %v8399_v23  ;;  %v367_v62 = vld [vmem:[#allocation8 + $0x830] sm:$0xff]  ;;  %v3954_v31 = vmul.f32 0.9919984, %v89_v33 }
 0x18d   :  { %v3906_v61 = vmul.f32 0.05782156, %v6985_v46  ;;  %12339 = vst [vmem:[#allocation358_spill] sm:$0xff] %v8411_v11  ;;  %v491_v15 = vld [vmem:[#allocation8 + $0xc10] sm:$0xff]  ;;  %12341 = vst [vmem:[#allocation360_spill] sm:$0xff] %v8418_v24  ;;  %v8420_v46 = vcombine.high %v363_v16, %v367_v62 }
 0x18e   :  { %v8423_v0 = vcombine.high %v491_v15, %v495_v1  ;;  %v487_v2 = vld [vmem:[#allocation8 + $0xbf0] sm:$0xff]  ;;  %v8430_v17 = vcombine.low %v491_v15, %v495_v1 }
 0x18f   :  { %3643 = vmatpush1.bf16.msra.mxu0 %v8402_v13  ;;  %3686 = vmatpush1.bf16.msra.mxu1 %v8406_v49  ;;  %12342 = vst [vmem:[#allocation361_spill] sm:$0xff] %v8420_v46  ;;  %v3938_v23 = vadd.f32 %v3922_v59, %v3906_v61  ;;  %v483_v13 = vld [vmem:[#allocation8 + $0xbd0] sm:$0xff]  ;;  %v8426_v49 = vcombine.low %v363_v16, %v367_v62 }
 0x190   :  { %v6987_v38 = vpop.eup %6986  ;;  %3644 = vmatprep.subr.bf16.mxu0 %v8408_v55  ;;  %3687 = vmatprep.subr.bf16.mxu1 %v8411_v11  ;;  %12343 = vst [vmem:[#allocation362_spill] sm:$0xff] %v8423_v0  ;;  %v611_v32 = vld [vmem:[#allocation8 + $0xfd0] sm:$0xff]  ;;  %12345 = vst [vmem:[#allocation364_spill] sm:$0xff] %v8430_v17  ;;  %v8432_v41 = vcombine.high %v483_v13, %v487_v2 }
 0x191   :  { %v3914_v56 = vmul.f32 0.05782156, %v6987_v38  ;;  %12344 = vst [vmem:[#allocation363_spill] sm:$0xff] %v8426_v49  ;;  %v8434_v59 = vadd.f32 %v3954_v31, %v3938_v23  ;;  %v8439_v7 = vcombine.high %v611_v32, %v615_v51  ;;  %v603_v16 = vld [vmem:[#allocation8 + $0xf90] sm:$0xff]  ;;  %v8442_v38 = vcombine.low %v483_v13, %v487_v2 }
 0x192   :  { %12346 = vst [vmem:[#allocation365_spill] sm:$0xff] %v8432_v41  ;;  %v607_v62 = vld [vmem:[#allocation8 + $0xfb0] sm:$0xff] }
 0x193   :  { %v3946_v33 = vadd.f32 %v3930_v39, %v3914_v56  ;;  %3645 = vmatpush1.bf16.msra.mxu0 %v8414_v30  ;;  %3688 = vmatpush1.bf16.msra.mxu1 %v8418_v24  ;;  %12347 = vst [vmem:[#allocation366_spill] sm:$0xff] %v8434_v59  ;;  %12349 = vst [vmem:[#allocation368_spill] sm:$0xff] %v8439_v7  ;;  %v475_v56 = vld [vmem:[#allocation8 + $0xb90] sm:$0xff]  ;;  %v8455_v31 = vcombine.high %v603_v16, %v607_v62  ;;  %v272_v30 = vld [vmem:[#allocation8 + $0x538] sm:$0xff] }
 0x194   :  { %3646 = vmatprep.subr.bf16.mxu0 %v8420_v46  ;;  %3689 = vmatprep.subr.bf16.mxu1 %v8423_v0  ;;  %v479_v39 = vld [vmem:[#allocation8 + $0xbb0] sm:$0xff]  ;;  %12350 = vst [vmem:[#allocation369_spill] sm:$0xff] %v8442_v38 }
 0x195   :  { %v8436_v61 = vadd.f32 %v3962_v52, %v3946_v33  ;;  %v8450_v52 = vcombine.low %v611_v32, %v615_v51  ;;  %v8452_v15 = vcombine.high %v475_v56, %v479_v39  ;;  %12354 = vst [vmem:[#allocation373_spill] sm:$0xff] %v8455_v31  ;;  %v467_v23 = vld [vmem:[#allocation8 + $0xb50] sm:$0xff]  ;;  %v8458_v0 = vcombine.low %v475_v56, %v479_v39 }
 0x196   :  { %v471_v33 = vld [vmem:[#allocation8 + $0xb70] sm:$0xff]  ;;  %v8462_v51 = vcombine.low %v603_v16, %v607_v62 }
 0x197   :  { %12348 = vst [vmem:[#allocation367_spill] sm:$0xff] %v8436_v61  ;;  %3647 = vmatpush1.bf16.msra.mxu0 %v8426_v49  ;;  %v8446_v1 = vpack.c.bf16 %v8436_v61, %v8434_v59  ;;  %3690 = vmatpush1.bf16.msra.mxu1 %v8430_v17  ;;  %12352 = vst [vmem:[#allocation371_spill] sm:$0xff] %v8450_v52  ;;  %v595_v13 = vld [vmem:[#allocation8 + $0xf50] sm:$0xff]  ;;  %v8464_v32 = vcombine.high %v467_v23, %v471_v33 }
 0x198   :  { %3648 = vmatprep.subr.bf16.mxu0 %v8432_v41  ;;  %12353 = vst [vmem:[#allocation372_spill] sm:$0xff] %v8452_v15  ;;  %3691 = vmatprep.subr.bf16.mxu1 %v8439_v7  ;;  %v599_v2 = vld [vmem:[#allocation8 + $0xf70] sm:$0xff]  ;;  %12355 = vst [vmem:[#allocation374_spill] sm:$0xff] %v8458_v0  ;;  %v8470_v56 = vcombine.low %v467_v23, %v471_v33 }
 0x199   :  { %12351 = vst [vmem:[#allocation370_spill] sm:$0xff] %v8446_v1  ;;  %12356 = vst [vmem:[#allocation375_spill] sm:$0xff] %v8462_v51  ;;  %v8467_v7 = vcombine.high %v595_v13, %v599_v2  ;;  %v459_v17 = vld [vmem:[#allocation8 + $0xb10] sm:$0xff]  ;;  %v8474_v39 = vcombine.low %v595_v13, %v599_v2  ;;  %v496_v1 = vld [vmem:[#allocation8 + $0xc38] sm:$0xff] }
 0x19a   :  { %12357 = vst [vmem:[#allocation376_spill] sm:$0xff] %v8464_v32  ;;  %v463_v24 = vld [vmem:[#allocation8 + $0xb30] sm:$0xff]  ;;  %12359 = vst [vmem:[#allocation378_spill] sm:$0xff] %v8470_v56 }
 0x19b   :  { %3649 = vmatpush2.bf16.msra.mxu0 %v8442_v38  ;;  %3692 = vmatpush2.bf16.msra.mxu1 %v8450_v52  ;;  %12358 = vst [vmem:[#allocation377_spill] sm:$0xff] %v8467_v7  ;;  %v587_v11 = vld [vmem:[#allocation8 + $0xf10] sm:$0xff]  ;;  %12360 = vst [vmem:[#allocation379_spill] sm:$0xff] %v8474_v39  ;;  %v8476_v16 = vcombine.high %v459_v17, %v463_v24  ;;  %v8482_v23 = vcombine.low %v459_v17, %v463_v24 }
 0x19c   :  { %3650 = vmatprep.subr.bf16.mxu0 %v8452_v15  ;;  %3693 = vmatprep.subr.bf16.mxu1 %v8455_v31  ;;  %v591_v61 = vld [vmem:[#allocation8 + $0xf30] sm:$0xff] }
 0x19d   :  { %12361 = vst [vmem:[#allocation380_spill] sm:$0xff] %v8476_v16  ;;  %v8479_v62 = vcombine.high %v587_v11, %v591_v61  ;;  %v451_v31 = vld [vmem:[#allocation8 + $0xad0] sm:$0xff]  ;;  %12363 = vst [vmem:[#allocation382_spill] sm:$0xff] %v8482_v23  ;;  %v8486_v33 = vcombine.low %v587_v11, %v591_v61 }
 0x19e   :  { %v455_v52 = vld [vmem:[#allocation8 + $0xaf0] sm:$0xff] }
 0x19f   :  { %3651 = vmatpush2.bf16.msra.mxu0 %v8458_v0  ;;  %3694 = vmatpush2.bf16.msra.mxu1 %v8462_v51  ;;  %12362 = vst [vmem:[#allocation381_spill] sm:$0xff] %v8479_v62  ;;  %v579_v59 = vld [vmem:[#allocation8 + $0xed0] sm:$0xff]  ;;  %12364 = vst [vmem:[#allocation383_spill] sm:$0xff] %v8486_v33  ;;  %v8488_v13 = vcombine.high %v451_v31, %v455_v52  ;;  %v8494_v24 = vcombine.low %v451_v31, %v455_v52 }
 0x1a0   :  { %3652 = vmatprep.subr.bf16.mxu0 %v8464_v32  ;;  %3695 = vmatprep.subr.bf16.mxu1 %v8467_v7  ;;  %v583_v15 = vld [vmem:[#allocation8 + $0xef0] sm:$0xff] }
 0x1a1   :  { %12365 = vst [vmem:[#allocation384_spill] sm:$0xff] %v8488_v13  ;;  %v8491_v2 = vcombine.high %v579_v59, %v583_v15  ;;  %v443_v7 = vld [vmem:[#allocation8 + $0xa90] sm:$0xff]  ;;  %12367 = vst [vmem:[#allocation386_spill] sm:$0xff] %v8494_v24  ;;  %v8498_v11 = vcombine.low %v579_v59, %v583_v15 }
 0x1a2   :  { %v447_v51 = vld [vmem:[#allocation8 + $0xab0] sm:$0xff] }
 0x1a3   :  { %3653 = vmatpush2.bf16.msra.mxu0 %v8470_v56  ;;  %3696 = vmatpush2.bf16.msra.mxu1 %v8474_v39  ;;  %12366 = vst [vmem:[#allocation385_spill] sm:$0xff] %v8491_v2  ;;  %v571_v32 = vld [vmem:[#allocation8 + $0xe90] sm:$0xff]  ;;  %12368 = vst [vmem:[#allocation387_spill] sm:$0xff] %v8498_v11  ;;  %v8500_v17 = vcombine.high %v443_v7, %v447_v51  ;;  %v8506_v52 = vcombine.low %v443_v7, %v447_v51 }
 0x1a4   :  { %3654 = vmatprep.subr.bf16.mxu0 %v8476_v16  ;;  %3697 = vmatprep.subr.bf16.mxu1 %v8479_v62  ;;  %v575_v0 = vld [vmem:[#allocation8 + $0xeb0] sm:$0xff] }
 0x1a5   :  { %12369 = vst [vmem:[#allocation388_spill] sm:$0xff] %v8500_v17  ;;  %v8503_v61 = vcombine.high %v571_v32, %v575_v0  ;;  %v435_v62 = vld [vmem:[#allocation8 + $0xa50] sm:$0xff]  ;;  %12371 = vst [vmem:[#allocation390_spill] sm:$0xff] %v8506_v52  ;;  %v8510_v59 = vcombine.low %v571_v32, %v575_v0 }
 0x1a6   :  { %v439_v39 = vld [vmem:[#allocation8 + $0xa70] sm:$0xff] }
 0x1a7   :  { %3655 = vmatpush2.bf16.msra.mxu0 %v8482_v23  ;;  %3698 = vmatpush2.bf16.msra.mxu1 %v8486_v33  ;;  %12370 = vst [vmem:[#allocation389_spill] sm:$0xff] %v8503_v61  ;;  %v563_v16 = vld [vmem:[#allocation8 + $0xe50] sm:$0xff]  ;;  %12372 = vst [vmem:[#allocation391_spill] sm:$0xff] %v8510_v59  ;;  %v8512_v15 = vcombine.high %v435_v62, %v439_v39  ;;  %v8518_v7 = vcombine.low %v435_v62, %v439_v39 }
 0x1a8   :  { %3656 = vmatprep.subr.bf16.mxu0 %v8488_v13  ;;  %3699 = vmatprep.subr.bf16.mxu1 %v8491_v2  ;;  %v567_v56 = vld [vmem:[#allocation8 + $0xe70] sm:$0xff] }
 0x1a9   :  { %12373 = vst [vmem:[#allocation392_spill] sm:$0xff] %v8512_v15  ;;  %v8515_v31 = vcombine.high %v563_v16, %v567_v56  ;;  %v427_v2 = vld [vmem:[#allocation8 + $0xa10] sm:$0xff]  ;;  %12375 = vst [vmem:[#allocation394_spill] sm:$0xff] %v8518_v7  ;;  %v8522_v0 = vcombine.low %v563_v16, %v567_v56 }
 0x1aa   :  { %v431_v33 = vld [vmem:[#allocation8 + $0xa30] sm:$0xff] }
 0x1ab   :  { %3657 = vmatpush2.bf16.msra.mxu0 %v8494_v24  ;;  %3700 = vmatpush2.bf16.msra.mxu1 %v8498_v11  ;;  %12374 = vst [vmem:[#allocation393_spill] sm:$0xff] %v8515_v31  ;;  %v555_v13 = vld [vmem:[#allocation8 + $0xe10] sm:$0xff]  ;;  %12376 = vst [vmem:[#allocation395_spill] sm:$0xff] %v8522_v0  ;;  %v8524_v51 = vcombine.high %v427_v2, %v431_v33  ;;  %v168_v11 = vld [vmem:[#allocation8 + $0x1f8] sm:$0xff]  ;;  %v8530_v39 = vcombine.low %v427_v2, %v431_v33  ;;  %v8544_v2 = vpop.f32.mrf.mxu0 }
 0x1ac   :  { %3658 = vmatprep.subr.bf16.mxu0 %v8500_v17  ;;  %3701 = vmatprep.subr.bf16.mxu1 %v8503_v61  ;;  %v559_v23 = vld [vmem:[#allocation8 + $0xe30] sm:$0xff]  ;;  %v164_v61 = vld [vmem:[#allocation8 + $0x1d8] sm:$0xff] }
 0x1ad   :  { %12377 = vst [vmem:[#allocation396_spill] sm:$0xff] %v8524_v51  ;;  %v8527_v32 = vcombine.high %v555_v13, %v559_v23  ;;  %v292_v17 = vld [vmem:[#allocation8 + $0x5d8] sm:$0xff]  ;;  %12379 = vst [vmem:[#allocation398_spill] sm:$0xff] %v8530_v39  ;;  %v8534_v56 = vcombine.low %v555_v13, %v559_v23  ;;  %v8536_v16 = vcombine.high %v164_v61, %v168_v11  ;;  %v628_v23 = vld [vmem:[#allocation7 + $0x190] sm:$0xff] }
 0x1ae   :  { %v296_v24 = vld [vmem:[#allocation8 + $0x5f8] sm:$0xff]  ;;  %v8542_v33 = vcombine.low %v164_v61, %v168_v11 }
 0x1af   :  { %3659 = vmatpush2.bf16.msra.mxu0 %v8506_v52  ;;  %3702 = vmatpush2.bf16.msra.mxu1 %v8510_v59  ;;  %12378 = vst [vmem:[#allocation397_spill] sm:$0xff] %v8527_v32  ;;  %12380 = vst [vmem:[#allocation399_spill] sm:$0xff] %v8534_v56  ;;  %v8539_v62 = vcombine.high %v292_v17, %v296_v24  ;;  %v160_v59 = vld [vmem:[#allocation8 + $0x1b8] sm:$0xff]  ;;  %v8548_v13 = vcombine.low %v292_v17, %v296_v24 }
 0x1b0   :  { %3660 = vmatprep.subr.bf16.mxu0 %v8512_v15  ;;  %3703 = vmatprep.subr.bf16.mxu1 %v8515_v31  ;;  %12381 = vst [vmem:[#allocation400_spill] sm:$0xff] %v8536_v16  ;;  %v156_v31 = vld [vmem:[#allocation8 + $0x198] sm:$0xff]  ;;  %12383 = vst [vmem:[#allocation402_spill] sm:$0xff] %v8542_v33 }
 0x1b1   :  { %12382 = vst [vmem:[#allocation401_spill] sm:$0xff] %v8539_v62  ;;  %v284_v15 = vld [vmem:[#allocation8 + $0x598] sm:$0xff]  ;;  %12384 = vst [vmem:[#allocation403_spill] sm:$0xff] %v8548_v13  ;;  %v8560_v24 = vcombine.low %v156_v31, %v160_v59 }
 0x1b2   :  { %v288_v52 = vld [vmem:[#allocation8 + $0x5b8] sm:$0xff] }
 0x1b3   :  { %3661 = vmatpush2.bf16.msra.mxu0 %v8518_v7  ;;  %3704 = vmatpush2.bf16.msra.mxu1 %v8522_v0  ;;  %v8552_v0 = vpop.f32.mrf.mxu1  ;;  %v152_v11 = vld [vmem:[#allocation8 + $0x178] sm:$0xff]  ;;  %12387 = vst [vmem:[#allocation406_spill] sm:$0xff] %v8560_v24 }
 0x1b4   :  { %3662 = vmatprep.subr.bf16.mxu0 %v8524_v51  ;;  %3705 = vmatprep.subr.bf16.mxu1 %v8527_v32  ;;  %v8550_v32 = vcombine.high %v156_v31, %v160_v59  ;;  %v8555_v51 = vcombine.high %v284_v15, %v288_v52  ;;  %v276_v7 = vld [vmem:[#allocation8 + $0x558] sm:$0xff] }
 0x1b5   :  { %v140_v59 = vld [vmem:[#allocation8 + $0x118] sm:$0xff] }
 0x1b6   :  { %12385 = vst [vmem:[#allocation404_spill] sm:$0xff] %v8550_v32  ;;  %12386 = vst [vmem:[#allocation405_spill] sm:$0xff] %v8555_v51  ;;  %v144_v31 = vld [vmem:[#allocation8 + $0x138] sm:$0xff] }
 0x1b7   :  { %3663 = vmatpush2.bf16.msra.mxu0 %v8530_v39  ;;  %3706 = vmatpush2.bf16.msra.mxu1 %v8534_v56  ;;  %v148_v39 = vld [vmem:[#allocation8 + $0x158] sm:$0xff] }
 0x1b8   :  { %3718 = vmatprep.subr.bf16.mxu0 %v8536_v16  ;;  %3761 = vmatprep.subr.bf16.mxu1 %v8539_v62  ;;  %v280_v56 = vld [vmem:[#allocation8 + $0x578] sm:$0xff]  ;;  %v636_v62 = vld [vmem:[#allocation7 + $0x1d0] sm:$0xff]  ;;  %v8566_v16 = vcombine.low %v284_v15, %v288_v52  ;;  %v8568_v49 = vcombine.high %v148_v39, %v152_v11 }
 0x1b9   :  { %v8584_v15 = vcombine.low %v276_v7, %v280_v56 }
 0x1ba   :  { %v3408_v61 = vpop.f32.mrf.mxu0  ;;  %3665 = vmatmul.mubr.bf16.vlgmr.msra.gmra.mxu0 %v7727_v54  ;;  %v3451_v41 = vpop.f32.mrf.mxu1  ;;  %3708 = vmatmul.mubr.bf16.vlgmr.msra.gmra.mxu1 %v7730_v6  ;;  %12388 = vst [vmem:[#allocation407_spill] sm:$0xff] %v8566_v16  ;;  %12389 = vst [vmem:[#allocation408_spill] sm:$0xff] %v8568_v49 }
 0x1bb   :  { %v3409_v38 = vadd.f32 %v3408_v61, %v628_v23  ;;  %3719 = vmatpush1.bf16.msra.mxu0 %v8542_v33  ;;  %3762 = vmatpush1.bf16.msra.mxu1 %v8548_v13  ;;  %v8575_v61 = vcombine.high %v276_v7, %v280_v56  ;;  %v268_v33 = vld [vmem:[#allocation8 + $0x518] sm:$0xff]  ;;  %12392 = vst [vmem:[#allocation411_spill] sm:$0xff] %v8584_v15 }
 0x1bc   :  { %v8563_v17 = vpop.f32.mrf.mxu0  ;;  %3720 = vmatprep.subr.bf16.mxu0 %v8550_v32  ;;  %v8572_v23 = vpop.f32.mrf.mxu1  ;;  %3763 = vmatprep.subr.bf16.mxu1 %v8555_v51  ;;  %v8586_v51 = vcombine.high %v140_v59, %v144_v31  ;;  %v8591_v32 = vcombine.high %v268_v33, %v272_v30  ;;  %v8598_v7 = vcombine.low %v268_v33, %v272_v30 }
 0x1bd   :  { %v8570_v46 = vadd.f32 %v3451_v41, %v3409_v38  ;;  %12390 = vst [vmem:[#allocation409_spill] sm:$0xff] %v8575_v61  ;;  %3750 = vmatprep.mubr.bf16.mxu0 %v7397_v58  ;;  %3793 = vmatprep.mubr.bf16.mxu1 %v7399_v63  ;;  %v8580_v41 = vcombine.low %v148_v39, %v152_v11  ;;  %v132_v63 = vld [vmem:[#allocation8 + $0xd8] sm:$0xff] }
 0x1be   :  { %v3412_v13 = vpop.f32.mrf.mxu0  ;;  %v3455_v38 = vpop.f32.mrf.mxu1  ;;  %12393 = vst [vmem:[#allocation412_spill] sm:$0xff] %v8586_v51  ;;  %12394 = vst [vmem:[#allocation413_spill] sm:$0xff] %v8591_v32  ;;  %v264_v39 = vld [vmem:[#allocation8 + $0x4f8] sm:$0xff]  ;;  %v8594_v11 = vcombine.low %v140_v59, %v144_v31 }
 0x1bf   :  { %v3413_v52 = vadd.f32 %v3412_v13, %v636_v62  ;;  %3721 = vmatpush1.bf16.msra.mxu0 %v8560_v24  ;;  %12391 = vst [vmem:[#allocation410_spill] sm:$0xff] %v8580_v41  ;;  %3764 = vmatpush1.bf16.msra.mxu1 %v8566_v16  ;;  %v136_v62 = vld [vmem:[#allocation8 + $0xf8] sm:$0xff]  ;;  %12396 = vst [vmem:[#allocation415_spill] sm:$0xff] %v8598_v7 }
 0x1c0   :  { %3722 = vmatprep.subr.bf16.mxu0 %v8568_v49  ;;  %3765 = vmatprep.subr.bf16.mxu1 %v8575_v61  ;;  %v260_v13 = vld [vmem:[#allocation8 + $0x4d8] sm:$0xff]  ;;  %12395 = vst [vmem:[#allocation414_spill] sm:$0xff] %v8594_v11  ;;  %v8600_v56 = vcombine.high %v132_v63, %v136_v62  ;;  %v8606_v59 = vcombine.low %v132_v63, %v136_v62 }
 0x1c1   :  { %v8588_v58 = vadd.f32 %v3455_v38, %v3413_v52  ;;  %v8603_v52 = vcombine.high %v260_v13, %v264_v39  ;;  %v124_v38 = vld [vmem:[#allocation8 + $0x98] sm:$0xff]  ;;  %v8610_v30 = vcombine.low %v260_v13, %v264_v39 }
 0x1c2   :  { %12397 = vst [vmem:[#allocation416_spill] sm:$0xff] %v8600_v56  ;;  %v128_v61 = vld [vmem:[#allocation8 + $0xb8] sm:$0xff]  ;;  %12399 = vst [vmem:[#allocation418_spill] sm:$0xff] %v8606_v59 }
 0x1c3   :  { %3723 = vmatpush1.bf16.msra.mxu0 %v8580_v41  ;;  %3766 = vmatpush1.bf16.msra.mxu1 %v8584_v15  ;;  %12398 = vst [vmem:[#allocation417_spill] sm:$0xff] %v8603_v52  ;;  %v252_v16 = vld [vmem:[#allocation8 + $0x498] sm:$0xff]  ;;  %12400 = vst [vmem:[#allocation419_spill] sm:$0xff] %v8610_v30  ;;  %v8612_v33 = vcombine.high %v124_v38, %v128_v61  ;;  %v8618_v63 = vcombine.low %v124_v38, %v128_v61 }
 0x1c4   :  { %3724 = vmatprep.subr.bf16.mxu0 %v8586_v51  ;;  %3767 = vmatprep.subr.bf16.mxu1 %v8591_v32  ;;  %v256_v49 = vld [vmem:[#allocation8 + $0x4b8] sm:$0xff] }
 0x1c5   :  { %12401 = vst [vmem:[#allocation420_spill] sm:$0xff] %v8612_v33  ;;  %v8615_v31 = vcombine.high %v252_v16, %v256_v49  ;;  %v116_v32 = vld [vmem:[#allocation8 + $0x58] sm:$0xff]  ;;  %12403 = vst [vmem:[#allocation422_spill] sm:$0xff] %v8618_v63  ;;  %v8622_v62 = vcombine.low %v252_v16, %v256_v49 }
 0x1c6   :  { %v120_v15 = vld [vmem:[#allocation8 + $0x78] sm:$0xff] }
 0x1c7   :  { %3725 = vmatpush1.bf16.msra.mxu0 %v8594_v11  ;;  %3768 = vmatpush1.bf16.msra.mxu1 %v8598_v7  ;;  %12402 = vst [vmem:[#allocation421_spill] sm:$0xff] %v8615_v31  ;;  %v244_v51 = vld [vmem:[#allocation8 + $0x458] sm:$0xff]  ;;  %12404 = vst [vmem:[#allocation423_spill] sm:$0xff] %v8622_v62  ;;  %v8624_v13 = vcombine.high %v116_v32, %v120_v15  ;;  %v8630_v61 = vcombine.low %v116_v32, %v120_v15 }
 0x1c8   :  { %3726 = vmatprep.subr.bf16.mxu0 %v8600_v56  ;;  %3769 = vmatprep.subr.bf16.mxu1 %v8603_v52  ;;  %v248_v41 = vld [vmem:[#allocation8 + $0x478] sm:$0xff] }
 0x1c9   :  { %12405 = vst [vmem:[#allocation424_spill] sm:$0xff] %v8624_v13  ;;  %v8627_v39 = vcombine.high %v244_v51, %v248_v41  ;;  %v108_v52 = vld [vmem:[#allocation8 + $0x18] sm:$0xff]  ;;  %12407 = vst [vmem:[#allocation426_spill] sm:$0xff] %v8630_v61  ;;  %v8634_v49 = vcombine.low %v244_v51, %v248_v41 }
 0x1ca   :  { %v112_v7 = vld [vmem:[#allocation8 + $0x38] sm:$0xff] }
 0x1cb   :  { %3727 = vmatpush1.bf16.msra.mxu0 %v8606_v59  ;;  %3770 = vmatpush1.bf16.msra.mxu1 %v8610_v30  ;;  %12406 = vst [vmem:[#allocation425_spill] sm:$0xff] %v8627_v39  ;;  %v236_v56 = vld [vmem:[#allocation8 + $0x418] sm:$0xff]  ;;  %12408 = vst [vmem:[#allocation427_spill] sm:$0xff] %v8634_v49  ;;  %v8636_v16 = vcombine.high %v108_v52, %v112_v7  ;;  %v8642_v32 = vcombine.low %v108_v52, %v112_v7 }
 0x1cc   :  { %3728 = vmatprep.subr.bf16.mxu0 %v8612_v33  ;;  %3771 = vmatprep.subr.bf16.mxu1 %v8615_v31  ;;  %v240_v11 = vld [vmem:[#allocation8 + $0x438] sm:$0xff] }
 0x1cd   :  { %12409 = vst [vmem:[#allocation428_spill] sm:$0xff] %v8636_v16  ;;  %v8639_v38 = vcombine.high %v236_v56, %v240_v11  ;;  %v228_v31 = vld [vmem:[#allocation8 + $0x3d8] sm:$0xff]  ;;  %12411 = vst [vmem:[#allocation430_spill] sm:$0xff] %v8642_v32  ;;  %v8646_v51 = vcombine.low %v236_v56, %v240_v11 }
 0x1ce   :  { %v232_v30 = vld [vmem:[#allocation8 + $0x3f8] sm:$0xff] }
 0x1cf   :  { %3729 = vmatpush1.bf16.msra.mxu0 %v8618_v63  ;;  %3772 = vmatpush1.bf16.msra.mxu1 %v8622_v62  ;;  %12410 = vst [vmem:[#allocation429_spill] sm:$0xff] %v8639_v38  ;;  %v356_v33 = vld [vmem:[#allocation8 + $0x7d8] sm:$0xff]  ;;  %12412 = vst [vmem:[#allocation431_spill] sm:$0xff] %v8646_v51  ;;  %v8648_v41 = vcombine.high %v228_v31, %v232_v30  ;;  %v8654_v7 = vcombine.low %v228_v31, %v232_v30 }
 0x1d0   :  { %3730 = vmatprep.subr.bf16.mxu0 %v8624_v13  ;;  %3773 = vmatprep.subr.bf16.mxu1 %v8627_v39  ;;  %v360_v59 = vld [vmem:[#allocation8 + $0x7f8] sm:$0xff] }
 0x1d1   :  { %12413 = vst [vmem:[#allocation432_spill] sm:$0xff] %v8648_v41  ;;  %v8651_v15 = vcombine.high %v356_v33, %v360_v59  ;;  %v220_v39 = vld [vmem:[#allocation8 + $0x398] sm:$0xff]  ;;  %12415 = vst [vmem:[#allocation434_spill] sm:$0xff] %v8654_v7  ;;  %v8658_v11 = vcombine.low %v356_v33, %v360_v59 }
 0x1d2   :  { %v224_v62 = vld [vmem:[#allocation8 + $0x3b8] sm:$0xff] }
 0x1d3   :  { %3731 = vmatpush1.bf16.msra.mxu0 %v8630_v61  ;;  %3774 = vmatpush1.bf16.msra.mxu1 %v8634_v49  ;;  %12414 = vst [vmem:[#allocation433_spill] sm:$0xff] %v8651_v15  ;;  %v348_v13 = vld [vmem:[#allocation8 + $0x798] sm:$0xff]  ;;  %12416 = vst [vmem:[#allocation435_spill] sm:$0xff] %v8658_v11  ;;  %v8660_v56 = vcombine.high %v220_v39, %v224_v62  ;;  %v8666_v30 = vcombine.low %v220_v39, %v224_v62 }
 0x1d4   :  { %3732 = vmatprep.subr.bf16.mxu0 %v8636_v16  ;;  %3775 = vmatprep.subr.bf16.mxu1 %v8639_v38  ;;  %v352_v63 = vld [vmem:[#allocation8 + $0x7b8] sm:$0xff] }
 0x1d5   :  { %12417 = vst [vmem:[#allocation436_spill] sm:$0xff] %v8660_v56  ;;  %v8663_v52 = vcombine.high %v348_v13, %v352_v63  ;;  %v212_v38 = vld [vmem:[#allocation8 + $0x358] sm:$0xff]  ;;  %12419 = vst [vmem:[#allocation438_spill] sm:$0xff] %v8666_v30  ;;  %v8670_v59 = vcombine.low %v348_v13, %v352_v63 }
 0x1d6   :  { %v216_v49 = vld [vmem:[#allocation8 + $0x378] sm:$0xff] }
 0x1d7   :  { %3733 = vmatpush1.bf16.msra.mxu0 %v8642_v32  ;;  %3776 = vmatpush1.bf16.msra.mxu1 %v8646_v51  ;;  %12418 = vst [vmem:[#allocation437_spill] sm:$0xff] %v8663_v52  ;;  %v340_v16 = vld [vmem:[#allocation8 + $0x758] sm:$0xff]  ;;  %12420 = vst [vmem:[#allocation439_spill] sm:$0xff] %v8670_v59  ;;  %v8672_v33 = vcombine.high %v212_v38, %v216_v49  ;;  %v8678_v62 = vcombine.low %v212_v38, %v216_v49 }
 0x1d8   :  { %3734 = vmatprep.subr.bf16.mxu0 %v8648_v41  ;;  %3777 = vmatprep.subr.bf16.mxu1 %v8651_v15  ;;  %v344_v61 = vld [vmem:[#allocation8 + $0x778] sm:$0xff] }
 0x1d9   :  { %12421 = vst [vmem:[#allocation440_spill] sm:$0xff] %v8672_v33  ;;  %v8675_v31 = vcombine.high %v340_v16, %v344_v61  ;;  %v204_v15 = vld [vmem:[#allocation8 + $0x318] sm:$0xff]  ;;  %12423 = vst [vmem:[#allocation442_spill] sm:$0xff] %v8678_v62  ;;  %v8682_v63 = vcombine.low %v340_v16, %v344_v61 }
 0x1da   :  { %v208_v51 = vld [vmem:[#allocation8 + $0x338] sm:$0xff] }
 0x1db   :  { %3735 = vmatpush2.bf16.msra.mxu0 %v8654_v7  ;;  %3778 = vmatpush2.bf16.msra.mxu1 %v8658_v11  ;;  %12422 = vst [vmem:[#allocation441_spill] sm:$0xff] %v8675_v31  ;;  %v332_v41 = vld [vmem:[#allocation8 + $0x718] sm:$0xff]  ;;  %12424 = vst [vmem:[#allocation443_spill] sm:$0xff] %v8682_v63  ;;  %v8684_v13 = vcombine.high %v204_v15, %v208_v51  ;;  %v8690_v49 = vcombine.low %v204_v15, %v208_v51 }
 0x1dc   :  { %3736 = vmatprep.subr.bf16.mxu0 %v8660_v56  ;;  %3779 = vmatprep.subr.bf16.mxu1 %v8663_v52  ;;  %v336_v32 = vld [vmem:[#allocation8 + $0x738] sm:$0xff] }
 0x1dd   :  { %12425 = vst [vmem:[#allocation444_spill] sm:$0xff] %v8684_v13  ;;  %v8687_v39 = vcombine.high %v332_v41, %v336_v32  ;;  %v196_v52 = vld [vmem:[#allocation8 + $0x2d8] sm:$0xff]  ;;  %12427 = vst [vmem:[#allocation446_spill] sm:$0xff] %v8690_v49  ;;  %v8694_v61 = vcombine.low %v332_v41, %v336_v32 }
 0x1de   :  { %v200_v11 = vld [vmem:[#allocation8 + $0x2f8] sm:$0xff] }
 0x1df   :  { %3737 = vmatpush2.bf16.msra.mxu0 %v8666_v30  ;;  %3780 = vmatpush2.bf16.msra.mxu1 %v8670_v59  ;;  %12426 = vst [vmem:[#allocation445_spill] sm:$0xff] %v8687_v39  ;;  %v324_v56 = vld [vmem:[#allocation8 + $0x6d8] sm:$0xff]  ;;  %12428 = vst [vmem:[#allocation447_spill] sm:$0xff] %v8694_v61  ;;  %v8696_v16 = vcombine.high %v196_v52, %v200_v11  ;;  %v8702_v51 = vcombine.low %v196_v52, %v200_v11 }
 0x1e0   :  { %3738 = vmatprep.subr.bf16.mxu0 %v8672_v33  ;;  %3781 = vmatprep.subr.bf16.mxu1 %v8675_v31  ;;  %v328_v7 = vld [vmem:[#allocation8 + $0x6f8] sm:$0xff] }
 0x1e1   :  { %12429 = vst [vmem:[#allocation448_spill] sm:$0xff] %v8696_v16  ;;  %v8699_v38 = vcombine.high %v324_v56, %v328_v7  ;;  %v188_v31 = vld [vmem:[#allocation8 + $0x298] sm:$0xff]  ;;  %12431 = vst [vmem:[#allocation450_spill] sm:$0xff] %v8702_v51  ;;  %v8706_v32 = vcombine.low %v324_v56, %v328_v7 }
 0x1e2   :  { %v192_v59 = vld [vmem:[#allocation8 + $0x2b8] sm:$0xff] }
 0x1e3   :  { %3739 = vmatpush2.bf16.msra.mxu0 %v8678_v62  ;;  %3782 = vmatpush2.bf16.msra.mxu1 %v8682_v63  ;;  %12430 = vst [vmem:[#allocation449_spill] sm:$0xff] %v8699_v38  ;;  %v316_v33 = vld [vmem:[#allocation8 + $0x698] sm:$0xff]  ;;  %12432 = vst [vmem:[#allocation451_spill] sm:$0xff] %v8706_v32  ;;  %v8708_v41 = vcombine.high %v188_v31, %v192_v59  ;;  %v8714_v11 = vcombine.low %v188_v31, %v192_v59 }
 0x1e4   :  { %3740 = vmatprep.subr.bf16.mxu0 %v8684_v13  ;;  %3783 = vmatprep.subr.bf16.mxu1 %v8687_v39  ;;  %v320_v30 = vld [vmem:[#allocation8 + $0x6b8] sm:$0xff] }
 0x1e5   :  { %12433 = vst [vmem:[#allocation452_spill] sm:$0xff] %v8708_v41  ;;  %v8711_v15 = vcombine.high %v316_v33, %v320_v30  ;;  %v180_v39 = vld [vmem:[#allocation8 + $0x258] sm:$0xff]  ;;  %12435 = vst [vmem:[#allocation454_spill] sm:$0xff] %v8714_v11  ;;  %v8718_v7 = vcombine.low %v316_v33, %v320_v30 }
 0x1e6   :  { %v184_v63 = vld [vmem:[#allocation8 + $0x278] sm:$0xff] }
 0x1e7   :  { %3741 = vmatpush2.bf16.msra.mxu0 %v8690_v49  ;;  %3784 = vmatpush2.bf16.msra.mxu1 %v8694_v61  ;;  %12434 = vst [vmem:[#allocation453_spill] sm:$0xff] %v8711_v15  ;;  %v308_v13 = vld [vmem:[#allocation8 + $0x658] sm:$0xff]  ;;  %12436 = vst [vmem:[#allocation455_spill] sm:$0xff] %v8718_v7  ;;  %v8720_v56 = vcombine.high %v180_v39, %v184_v63  ;;  %v8726_v59 = vcombine.low %v180_v39, %v184_v63 }
 0x1e8   :  { %3742 = vmatprep.subr.bf16.mxu0 %v8696_v16  ;;  %3785 = vmatprep.subr.bf16.mxu1 %v8699_v38  ;;  %v312_v62 = vld [vmem:[#allocation8 + $0x678] sm:$0xff] }
 0x1e9   :  { %12437 = vst [vmem:[#allocation456_spill] sm:$0xff] %v8720_v56  ;;  %v8723_v52 = vcombine.high %v308_v13, %v312_v62  ;;  %v172_v38 = vld [vmem:[#allocation8 + $0x218] sm:$0xff]  ;;  %12439 = vst [vmem:[#allocation458_spill] sm:$0xff] %v8726_v59  ;;  %v8730_v30 = vcombine.low %v308_v13, %v312_v62 }
 0x1ea   :  { %v176_v61 = vld [vmem:[#allocation8 + $0x238] sm:$0xff] }
 0x1eb   :  { %3743 = vmatpush2.bf16.msra.mxu0 %v8702_v51  ;;  %3786 = vmatpush2.bf16.msra.mxu1 %v8706_v32  ;;  %12438 = vst [vmem:[#allocation457_spill] sm:$0xff] %v8723_v52  ;;  %v300_v16 = vld [vmem:[#allocation8 + $0x618] sm:$0xff]  ;;  %12440 = vst [vmem:[#allocation459_spill] sm:$0xff] %v8730_v30  ;;  %v8732_v33 = vcombine.high %v172_v38, %v176_v61  ;;  %v8738_v63 = vcombine.low %v172_v38, %v176_v61  ;;  %v8752_v38 = vpop.f32.mrf.mxu0 }
 0x1ec   :  { %3744 = vmatprep.subr.bf16.mxu0 %v8708_v41  ;;  %3787 = vmatprep.subr.bf16.mxu1 %v8711_v15  ;;  %v304_v49 = vld [vmem:[#allocation8 + $0x638] sm:$0xff] }
 0x1ed   :  { %12441 = vst [vmem:[#allocation460_spill] sm:$0xff] %v8732_v33  ;;  %v8735_v31 = vcombine.high %v300_v16, %v304_v49  ;;  %v420_v15 = vld [vmem:[#allocation8 + $0x9d8] sm:$0xff]  ;;  %12443 = vst [vmem:[#allocation462_spill] sm:$0xff] %v8738_v63  ;;  %v8742_v62 = vcombine.low %v300_v16, %v304_v49 }
 0x1ee   :  { %v424_v32 = vld [vmem:[#allocation8 + $0x9f8] sm:$0xff] }
 0x1ef   :  { %3745 = vmatpush2.bf16.msra.mxu0 %v8714_v11  ;;  %3788 = vmatpush2.bf16.msra.mxu1 %v8718_v7  ;;  %12442 = vst [vmem:[#allocation461_spill] sm:$0xff] %v8735_v31  ;;  %v548_v41 = vld [vmem:[#allocation8 + $0xdd8] sm:$0xff]  ;;  %12444 = vst [vmem:[#allocation463_spill] sm:$0xff] %v8742_v62  ;;  %v8744_v13 = vcombine.high %v420_v15, %v424_v32  ;;  %v8750_v61 = vcombine.low %v420_v15, %v424_v32 }
 0x1f0   :  { %3746 = vmatprep.subr.bf16.mxu0 %v8720_v56  ;;  %3789 = vmatprep.subr.bf16.mxu1 %v8723_v52  ;;  %v552_v51 = vld [vmem:[#allocation8 + $0xdf8] sm:$0xff] }
 0x1f1   :  { %12445 = vst [vmem:[#allocation464_spill] sm:$0xff] %v8744_v13  ;;  %v8747_v39 = vcombine.high %v548_v41, %v552_v51  ;;  %v412_v52 = vld [vmem:[#allocation8 + $0x998] sm:$0xff]  ;;  %12447 = vst [vmem:[#allocation466_spill] sm:$0xff] %v8750_v61  ;;  %v8756_v49 = vcombine.low %v548_v41, %v552_v51 }
 0x1f2   :  { %v416_v7 = vld [vmem:[#allocation8 + $0x9b8] sm:$0xff] }
 0x1f3   :  { %3747 = vmatpush2.bf16.msra.mxu0 %v8726_v59  ;;  %3790 = vmatpush2.bf16.msra.mxu1 %v8730_v30  ;;  %12446 = vst [vmem:[#allocation465_spill] sm:$0xff] %v8747_v39  ;;  %v540_v56 = vld [vmem:[#allocation8 + $0xd98] sm:$0xff]  ;;  %12448 = vst [vmem:[#allocation467_spill] sm:$0xff] %v8756_v49  ;;  %v8758_v16 = vcombine.high %v412_v52, %v416_v7  ;;  %v8769_v51 = vcombine.low %v412_v52, %v416_v7 }
 0x1f4   :  { %3748 = vmatprep.subr.bf16.mxu0 %v8732_v33  ;;  %3791 = vmatprep.subr.bf16.mxu1 %v8735_v31  ;;  %v544_v11 = vld [vmem:[#allocation8 + $0xdb8] sm:$0xff]  ;;  %v8760_v31 = vpop.f32.mrf.mxu1 }
 0x1f5   :  { %12449 = vst [vmem:[#allocation468_spill] sm:$0xff] %v8758_v16  ;;  %v8763_v30 = vcombine.high %v540_v56, %v544_v11  ;;  %v404_v33 = vld [vmem:[#allocation8 + $0x958] sm:$0xff]  ;;  %12451 = vst [vmem:[#allocation470_spill] sm:$0xff] %v8769_v51 }
 0x1f6   :  { %v532_v15 = vld [vmem:[#allocation8 + $0xd58] sm:$0xff] }
 0x1f7   :  { %3749 = vmatpush2.bf16.msra.mxu0 %v8738_v63  ;;  %3792 = vmatpush2.bf16.msra.mxu1 %v8742_v62  ;;  %12450 = vst [vmem:[#allocation469_spill] sm:$0xff] %v8763_v30  ;;  %v408_v63 = vld [vmem:[#allocation8 + $0x978] sm:$0xff] }
 0x1f8   :  { %3804 = vmatprep.subr.bf16.mxu0 %v8744_v13  ;;  %3847 = vmatprep.subr.bf16.mxu1 %v8747_v39  ;;  %v536_v59 = vld [vmem:[#allocation8 + $0xd78] sm:$0xff]  ;;  %v8775_v39 = vcombine.low %v540_v56, %v544_v11  ;;  %v8788_v56 = vcombine.low %v404_v33, %v408_v63 }
 0x1f9   :  { %v400_v7 = vld [vmem:[#allocation8 + $0x938] sm:$0xff] }
 0x1fa   :  { %v3494_v32 = vpop.f32.mrf.mxu0  ;;  %3751 = vmatmul.mubr.bf16.vlgmr.msra.gmra.mxu0 %v7523_v25  ;;  %v3537_v13 = vpop.f32.mrf.mxu1  ;;  %3794 = vmatmul.mubr.bf16.vlgmr.msra.gmra.mxu1 %v7526_v22  ;;  %12452 = vst [vmem:[#allocation471_spill] sm:$0xff] %v8775_v39  ;;  %v8777_v25 = vcombine.high %v404_v33, %v408_v63  ;;  %v8782_v22 = vcombine.high %v532_v15, %v536_v59  ;;  %12455 = vst [vmem:[#allocation474_spill] sm:$0xff] %v8788_v56 }
 0x1fb   :  { %v3495_v62 = vadd.f32 %v3494_v32, %v8570_v46  ;;  %3805 = vmatpush1.bf16.msra.mxu0 %v8750_v61  ;;  %3848 = vmatpush1.bf16.msra.mxu1 %v8756_v49  ;;  %v396_v46 = vld [vmem:[#allocation8 + $0x918] sm:$0xff] }
 0x1fc   :  { %v8772_v41 = vpop.f32.mrf.mxu0  ;;  %3806 = vmatprep.subr.bf16.mxu0 %v8758_v16  ;;  %12453 = vst [vmem:[#allocation472_spill] sm:$0xff] %v8777_v25  ;;  %v8779_v55 = vpop.f32.mrf.mxu1  ;;  %3849 = vmatprep.subr.bf16.mxu1 %v8763_v30  ;;  %12454 = vst [vmem:[#allocation473_spill] sm:$0xff] %v8782_v22  ;;  %v524_v32 = vld [vmem:[#allocation8 + $0xd18] sm:$0xff]  ;;  %v8800_v33 = vcombine.low %v396_v46, %v400_v7 }
 0x1fd   :  { %v3538_v24 = vadd.f32 %v3537_v13, %v3495_v62  ;;  %3836 = vmatprep.mubr.bf16.mxu0 %v7539_v12  ;;  %v528_v49 = vld [vmem:[#allocation8 + $0xd38] sm:$0xff]  ;;  %3879 = vmatprep.mubr.bf16.mxu1 %v7542_v60  ;;  %v8792_v13 = vcombine.low %v532_v15, %v536_v59  ;;  %v8794_v12 = vcombine.high %v396_v46, %v400_v7 }
 0x1fe   :  { %v3498_v52 = vpop.f32.mrf.mxu0  ;;  %v3541_v62 = vpop.f32.mrf.mxu1  ;;  %v8797_v60 = vcombine.high %v524_v32, %v528_v49  ;;  %12459 = vst [vmem:[#allocation478_spill] sm:$0xff] %v8800_v33  ;;  %v8804_v59 = vcombine.low %v524_v32, %v528_v49  ;;  %v637_v16 = vld [vmem:[#allocation7 + $0x1d8] sm:$0xff] }
 0x1ff   :  { %6988 = vtanh.f32 %v3538_v24  ;;  %v3499_v11 = vadd.f32 %v3498_v52, %v8588_v58  ;;  %3807 = vmatpush1.bf16.msra.mxu0 %v8769_v51  ;;  %3850 = vmatpush1.bf16.msra.mxu1 %v8775_v39  ;;  %12456 = vst [vmem:[#allocation475_spill] sm:$0xff] %v8792_v13  ;;  %12457 = vst [vmem:[#allocation476_spill] sm:$0xff] %v8794_v12  ;;  %v388_v24 = vld [vmem:[#allocation8 + $0x8d8] sm:$0xff] }
 0x200   :  { %3808 = vmatprep.subr.bf16.mxu0 %v8777_v25  ;;  %3851 = vmatprep.subr.bf16.mxu1 %v8782_v22  ;;  %12458 = vst [vmem:[#allocation477_spill] sm:$0xff] %v8797_v60  ;;  %v392_v58 = vld [vmem:[#allocation8 + $0x8f8] sm:$0xff]  ;;  %12460 = vst [vmem:[#allocation479_spill] sm:$0xff] %v8804_v59  ;;  %v99_v25 = vld [vmem:[#allocation5 + $0x50] sm:$0xff] }
 0x201   :  { %v3542_v30 = vadd.f32 %v3541_v62, %v3499_v11  ;;  %v516_v52 = vld [vmem:[#allocation8 + $0xcd8] sm:$0xff]  ;;  %v8806_v63 = vcombine.high %v388_v24, %v392_v58  ;;  %v8812_v46 = vcombine.low %v388_v24, %v392_v58 }
 0x202   :  { %v520_v51 = vld [vmem:[#allocation8 + $0xcf8] sm:$0xff] }
 0x203   :  { %6990 = vtanh.f32 %v3542_v30  ;;  %3809 = vmatpush1.bf16.msra.mxu0 %v8788_v56  ;;  %3852 = vmatpush1.bf16.msra.mxu1 %v8792_v13  ;;  %12461 = vst [vmem:[#allocation480_spill] sm:$0xff] %v8806_v63  ;;  %v8809_v15 = vcombine.high %v516_v52, %v520_v51  ;;  %v380_v11 = vld [vmem:[#allocation8 + $0x898] sm:$0xff]  ;;  %12463 = vst [vmem:[#allocation482_spill] sm:$0xff] %v8812_v46  ;;  %v8816_v49 = vcombine.low %v516_v52, %v520_v51 }
 0x204   :  { %3810 = vmatprep.subr.bf16.mxu0 %v8794_v12  ;;  %3853 = vmatprep.subr.bf16.mxu1 %v8797_v60  ;;  %v384_v62 = vld [vmem:[#allocation8 + $0x8b8] sm:$0xff] }
 0x205   :  { %12462 = vst [vmem:[#allocation481_spill] sm:$0xff] %v8809_v15  ;;  %v508_v22 = vld [vmem:[#allocation8 + $0xc98] sm:$0xff]  ;;  %12464 = vst [vmem:[#allocation483_spill] sm:$0xff] %v8816_v49  ;;  %v8818_v7 = vcombine.high %v380_v11, %v384_v62  ;;  %v8824_v24 = vcombine.low %v380_v11, %v384_v62 }
 0x206   :  { %v512_v30 = vld [vmem:[#allocation8 + $0xcb8] sm:$0xff] }
 0x207   :  { %3811 = vmatpush1.bf16.msra.mxu0 %v8800_v33  ;;  %3854 = vmatpush1.bf16.msra.mxu1 %v8804_v59  ;;  %12465 = vst [vmem:[#allocation484_spill] sm:$0xff] %v8818_v7  ;;  %v8821_v32 = vcombine.high %v508_v22, %v512_v30  ;;  %v372_v60 = vld [vmem:[#allocation8 + $0x858] sm:$0xff]  ;;  %12467 = vst [vmem:[#allocation486_spill] sm:$0xff] %v8824_v24  ;;  %v635_v59 = vld [vmem:[#allocation7 + $0x1c8] sm:$0xff]  ;;  %v8828_v52 = vcombine.low %v508_v22, %v512_v30 }
 0x208   :  { %3812 = vmatprep.subr.bf16.mxu0 %v8806_v63  ;;  %3855 = vmatprep.subr.bf16.mxu1 %v8809_v15  ;;  %v376_v13 = vld [vmem:[#allocation8 + $0x878] sm:$0xff]  ;;  %v91_v33 = vld [vmem:[#allocation5 + $0x10] sm:$0xff] }
 0x209   :  { %12466 = vst [vmem:[#allocation485_spill] sm:$0xff] %v8821_v32  ;;  %v500_v39 = vld [vmem:[#allocation8 + $0xc58] sm:$0xff]  ;;  %v7114_v63 = vld [vmem:[#allocation2 + $0x10] sm:$0xff]  ;;  %12468 = vst [vmem:[#allocation487_spill] sm:$0xff] %v8828_v52  ;;  %v8830_v15 = vcombine.high %v372_v60, %v376_v13  ;;  %v8837_v22 = vcombine.low %v372_v60, %v376_v13  ;;  %v3956_v45 = vmul.f32 0.9919984, %v91_v33 }
 0x20a   :  { %v504_v12 = vld [vmem:[#allocation8 + $0xc78] sm:$0xff]  ;;  %v3924_v51 = vmul.f32 0.11185222, %v7114_v63  ;;  %v627_v63 = vld [vmem:[#allocation7 + $0x188] sm:$0xff] }
 0x20b   :  { %3813 = vmatpush1.bf16.msra.mxu0 %v8812_v46  ;;  %3856 = vmatpush1.bf16.msra.mxu1 %v8816_v49  ;;  %12469 = vst [vmem:[#allocation488_spill] sm:$0xff] %v8830_v15  ;;  %v8833_v46 = vcombine.high %v500_v39, %v504_v12  ;;  %v364_v11 = vld [vmem:[#allocation8 + $0x818] sm:$0xff]  ;;  %v3243_v49 = vadd.f32 %v8330_v48, %v635_v59  ;;  %12471 = vst [vmem:[#allocation490_spill] sm:$0xff] %v8837_v22 }
 0x20c   :  { %v6989_v58 = vpop.eup %6988  ;;  %3814 = vmatprep.subr.bf16.mxu0 %v8818_v7  ;;  %3857 = vmatprep.subr.bf16.mxu1 %v8821_v32  ;;  %v368_v62 = vld [vmem:[#allocation8 + $0x838] sm:$0xff]  ;;  %v3932_v7 = vmul.f32 0.11185222, %v7115_v50  ;;  %v3964_v32 = vmul.f32 0.9919984, %v99_v25  ;;  %v8841_v44 = vcombine.low %v500_v39, %v504_v12  ;;  %v3415_v48 = vadd.f32 %v8752_v38, %v637_v16  ;;  %v3500_v16 = vpop.f32.mrf.mxu0 }
 0x20d   :  { %v3908_v56 = vmul.f32 0.05782156, %v6989_v58  ;;  %12470 = vst [vmem:[#allocation489_spill] sm:$0xff] %v8833_v46  ;;  %v492_v61 = vld [vmem:[#allocation8 + $0xc18] sm:$0xff]  ;;  %v8843_v43 = vcombine.high %v364_v11, %v368_v62  ;;  %v3239_v25 = vadd.f32 %v8141_v57, %v627_v63  ;;  %v8852_v12 = vcombine.low %v364_v11, %v368_v62 }
 0x20e   :  { %v629_v58 = vld [vmem:[#allocation7 + $0x198] sm:$0xff]  ;;  %12472 = vst [vmem:[#allocation491_spill] sm:$0xff] %v8841_v44  ;;  %v8847_v13 = vcombine.high %v492_v61, %v496_v1  ;;  %v3286_v38 = vadd.f32 %v8338_v47, %v3243_v49  ;;  %v3458_v57 = vadd.f32 %v8760_v31, %v3415_v48 }
 0x20f   :  { %3815 = vmatpush1.bf16.msra.mxu0 %v8824_v24  ;;  %3858 = vmatpush1.bf16.msra.mxu1 %v8828_v52  ;;  %12473 = vst [vmem:[#allocation492_spill] sm:$0xff] %v8843_v43  ;;  %v3940_v59 = vadd.f32 %v3924_v51, %v3908_v56  ;;  %v484_v60 = vld [vmem:[#allocation8 + $0xbd8] sm:$0xff]  ;;  %12475 = vst [vmem:[#allocation494_spill] sm:$0xff] %v8852_v12  ;;  %v8857_v56 = vcombine.low %v492_v61, %v496_v1 }
 0x210   :  { %v6991_v30 = vpop.eup %6990  ;;  %3816 = vmatprep.subr.bf16.mxu0 %v8830_v15  ;;  %3859 = vmatprep.subr.bf16.mxu1 %v8833_v46  ;;  %12474 = vst [vmem:[#allocation493_spill] sm:$0xff] %v8847_v13  ;;  %v488_v24 = vld [vmem:[#allocation8 + $0xbf8] sm:$0xff]  ;;  %v3411_v15 = vadd.f32 %v8563_v17, %v629_v58  ;;  %v3282_v11 = vadd.f32 %v8150_v40, %v3239_v25 }
 0x211   :  { %v3916_v50 = vmul.f32 0.05782156, %v6991_v30  ;;  %v612_v33 = vld [vmem:[#allocation8 + $0xfd8] sm:$0xff]  ;;  %12476 = vst [vmem:[#allocation495_spill] sm:$0xff] %v8857_v56  ;;  %v8859_v51 = vcombine.high %v484_v60, %v488_v24  ;;  %v8862_v63 = vadd.f32 %v3956_v45, %v3940_v59  ;;  %v3329_v62 = vadd.f32 %v8544_v2, %v3286_v38 }
 0x212   :  { %v616_v52 = vld [vmem:[#allocation8 + $0xff8] sm:$0xff]  ;;  %v3454_v30 = vadd.f32 %v8572_v23, %v3411_v15  ;;  %v3501_v58 = vadd.f32 %v3500_v16, %v3458_v57  ;;  %v8873_v45 = vcombine.low %v484_v60, %v488_v24 }
 0x213   :  { %v3948_v39 = vadd.f32 %v3932_v7, %v3916_v50  ;;  %3817 = vmatpush1.bf16.msra.mxu0 %v8837_v22  ;;  %3860 = vmatpush1.bf16.msra.mxu1 %v8841_v44  ;;  %12477 = vst [vmem:[#allocation496_spill] sm:$0xff] %v8859_v51  ;;  %12478 = vst [vmem:[#allocation497_spill] sm:$0xff] %v8862_v63  ;;  %v8867_v7 = vcombine.high %v612_v33, %v616_v52  ;;  %v476_v47 = vld [vmem:[#allocation8 + $0xb98] sm:$0xff]  ;;  %v3543_v50 = vpop.f32.mrf.mxu1 }
 0x214   :  { %3818 = vmatprep.subr.bf16.mxu0 %v8843_v43  ;;  %3861 = vmatprep.subr.bf16.mxu1 %v8847_v13  ;;  %v480_v49 = vld [vmem:[#allocation8 + $0xbb8] sm:$0xff]  ;;  %v8882_v40 = vcombine.low %v612_v33, %v616_v52  ;;  %v3497_v23 = vadd.f32 %v8772_v41, %v3454_v30  ;;  %v3372_v59 = vadd.f32 %v8552_v0, %v3329_v62 }
 0x215   :  { %v8864_v17 = vadd.f32 %v3964_v32, %v3948_v39  ;;  %12480 = vst [vmem:[#allocation499_spill] sm:$0xff] %v8867_v7  ;;  %v604_v1 = vld [vmem:[#allocation8 + $0xf98] sm:$0xff]  ;;  %v3325_v32 = vadd.f32 %v8350_v53, %v3282_v11  ;;  %v8884_v2 = vcombine.high %v476_v47, %v480_v49  ;;  %v3544_v25 = vadd.f32 %v3543_v50, %v3501_v58 }
 0x216   :  { %v608_v61 = vld [vmem:[#allocation8 + $0xfb8] sm:$0xff]  ;;  %12481 = vst [vmem:[#allocation500_spill] sm:$0xff] %v8882_v40  ;;  %v8892_v52 = vcombine.low %v476_v47, %v480_v49  ;;  %v3540_v0 = vadd.f32 %v8779_v55, %v3497_v23  ;;  %6992 = vtanh.f32 %v3372_v59 }
 0x217   :  { %12479 = vst [vmem:[#allocation498_spill] sm:$0xff] %v8864_v17  ;;  %3819 = vmatpush1.bf16.msra.mxu0 %v8852_v12  ;;  %v8877_v31 = vpack.c.bf16 %v8864_v17, %v8862_v63  ;;  %3862 = vmatpush1.bf16.msra.mxu1 %v8857_v56  ;;  %12482 = vst [vmem:[#allocation501_spill] sm:$0xff] %v8884_v2  ;;  %v8888_v15 = vcombine.high %v604_v1, %v608_v61  ;;  %v468_v24 = vld [vmem:[#allocation8 + $0xb58] sm:$0xff]  ;;  %6994 = vtanh.f32 %v3544_v25 }
 0x218   :  { %3820 = vmatprep.subr.bf16.mxu0 %v8859_v51  ;;  %3863 = vmatprep.subr.bf16.mxu1 %v8867_v7  ;;  %v472_v48 = vld [vmem:[#allocation8 + $0xb78] sm:$0xff]  ;;  %12484 = vst [vmem:[#allocation503_spill] sm:$0xff] %v8892_v52  ;;  %v3368_v33 = vadd.f32 %v8357_v4, %v3325_v32  ;;  %v8897_v41 = vcombine.low %v604_v1, %v608_v61 }
 0x219   :  { %12483 = vst [vmem:[#allocation502_spill] sm:$0xff] %v8888_v15  ;;  %v596_v53 = vld [vmem:[#allocation8 + $0xf58] sm:$0xff]  ;;  %v8899_v39 = vcombine.high %v468_v24, %v472_v48  ;;  %v8906_v4 = vcombine.low %v468_v24, %v472_v48 }
 0x21a   :  { %v600_v60 = vld [vmem:[#allocation8 + $0xf78] sm:$0xff]  ;;  %12485 = vst [vmem:[#allocation504_spill] sm:$0xff] %v8897_v41  ;;  %6996 = vtanh.f32 %v3368_v33 }
 0x21b   :  { %3821 = vmatpush2.bf16.msra.mxu0 %v8873_v45  ;;  %3864 = vmatpush2.bf16.msra.mxu1 %v8882_v40  ;;  %12486 = vst [vmem:[#allocation505_spill] sm:$0xff] %v8899_v39  ;;  %v8903_v38 = vcombine.high %v596_v53, %v600_v60  ;;  %v460_v16 = vld [vmem:[#allocation8 + $0xb18] sm:$0xff]  ;;  %12488 = vst [vmem:[#allocation507_spill] sm:$0xff] %v8906_v4  ;;  %v8910_v55 = vcombine.low %v596_v53, %v600_v60  ;;  %6998 = vtanh.f32 %v3540_v0  ;;  %v7116_v40 = vld [vmem:[#allocation2 + $0x48] sm:$0xff] }
 0x21c   :  { %3822 = vmatprep.subr.bf16.mxu0 %v8884_v2  ;;  %3865 = vmatprep.subr.bf16.mxu1 %v8888_v15  ;;  %v464_v57 = vld [vmem:[#allocation8 + $0xb38] sm:$0xff] }
 0x21d   :  { %12487 = vst [vmem:[#allocation506_spill] sm:$0xff] %v8903_v38  ;;  %v588_v47 = vld [vmem:[#allocation8 + $0xf18] sm:$0xff]  ;;  %12489 = vst [vmem:[#allocation508_spill] sm:$0xff] %v8910_v55  ;;  %v8912_v11 = vcombine.high %v460_v16, %v464_v57  ;;  %v8918_v32 = vcombine.low %v460_v16, %v464_v57 }
 0x21e   :  { %v592_v49 = vld [vmem:[#allocation8 + $0xf38] sm:$0xff] }
 0x21f   :  { %3823 = vmatpush2.bf16.msra.mxu0 %v8892_v52  ;;  %3866 = vmatpush2.bf16.msra.mxu1 %v8897_v41  ;;  %12490 = vst [vmem:[#allocation509_spill] sm:$0xff] %v8912_v11  ;;  %v8915_v62 = vcombine.high %v588_v47, %v592_v49  ;;  %v452_v1 = vld [vmem:[#allocation8 + $0xad8] sm:$0xff]  ;;  %12492 = vst [vmem:[#allocation511_spill] sm:$0xff] %v8918_v32  ;;  %v8922_v23 = vcombine.low %v588_v47, %v592_v49 }
 0x220   :  { %3824 = vmatprep.subr.bf16.mxu0 %v8899_v39  ;;  %3867 = vmatprep.subr.bf16.mxu1 %v8903_v38  ;;  %v456_v61 = vld [vmem:[#allocation8 + $0xaf8] sm:$0xff] }
 0x221   :  { %12491 = vst [vmem:[#allocation510_spill] sm:$0xff] %v8915_v62  ;;  %v580_v30 = vld [vmem:[#allocation8 + $0xed8] sm:$0xff]  ;;  %12493 = vst [vmem:[#allocation512_spill] sm:$0xff] %v8922_v23  ;;  %v8924_v24 = vcombine.high %v452_v1, %v456_v61  ;;  %v8930_v25 = vcombine.low %v452_v1, %v456_v61 }
 0x222   :  { %v584_v58 = vld [vmem:[#allocation8 + $0xef8] sm:$0xff] }
 0x223   :  { %3825 = vmatpush2.bf16.msra.mxu0 %v8906_v4  ;;  %3868 = vmatpush2.bf16.msra.mxu1 %v8910_v55  ;;  %12494 = vst [vmem:[#allocation513_spill] sm:$0xff] %v8924_v24  ;;  %v8927_v48 = vcombine.high %v580_v30, %v584_v58  ;;  %v444_v59 = vld [vmem:[#allocation8 + $0xa98] sm:$0xff]  ;;  %12496 = vst [vmem:[#allocation515_spill] sm:$0xff] %v8930_v25  ;;  %v8934_v33 = vcombine.low %v580_v30, %v584_v58  ;;  %v6993_v55 = vpop.eup %6992 }
 0x224   :  { %3826 = vmatprep.subr.bf16.mxu0 %v8912_v11  ;;  %3869 = vmatprep.subr.bf16.mxu1 %v8915_v62  ;;  %v448_v50 = vld [vmem:[#allocation8 + $0xab8] sm:$0xff]  ;;  %v6995_v61 = vpop.eup %6994 }
 0x225   :  { %12495 = vst [vmem:[#allocation514_spill] sm:$0xff] %v8927_v48  ;;  %v572_v53 = vld [vmem:[#allocation8 + $0xe98] sm:$0xff]  ;;  %12497 = vst [vmem:[#allocation516_spill] sm:$0xff] %v8934_v33  ;;  %v8936_v0 = vcombine.high %v444_v59, %v448_v50  ;;  %v8942_v1 = vcombine.low %v444_v59, %v448_v50  ;;  %v3931_v59 = vmul.f32 0.11185222, %v7116_v40 }
 0x226   :  { %v576_v60 = vld [vmem:[#allocation8 + $0xeb8] sm:$0xff]  ;;  %v3915_v50 = vmul.f32 0.05782156, %v6993_v55  ;;  %v3917_v44 = vmul.f32 0.05782156, %v6995_v61 }
 0x227   :  { %3827 = vmatpush2.bf16.msra.mxu0 %v8918_v32  ;;  %3870 = vmatpush2.bf16.msra.mxu1 %v8922_v23  ;;  %12498 = vst [vmem:[#allocation517_spill] sm:$0xff] %v8936_v0  ;;  %v8939_v16 = vcombine.high %v572_v53, %v576_v60  ;;  %v436_v57 = vld [vmem:[#allocation8 + $0xa58] sm:$0xff]  ;;  %12500 = vst [vmem:[#allocation519_spill] sm:$0xff] %v8942_v1  ;;  %v8946_v30 = vcombine.low %v572_v53, %v576_v60  ;;  %v98_v60 = vld [vmem:[#allocation5 + $0x48] sm:$0xff] }
 0x228   :  { %3828 = vmatprep.subr.bf16.mxu0 %v8924_v24  ;;  %3871 = vmatprep.subr.bf16.mxu1 %v8927_v48  ;;  %v440_v47 = vld [vmem:[#allocation8 + $0xa78] sm:$0xff]  ;;  %v6997_v48 = vpop.eup %6996 }
 0x229   :  { %12499 = vst [vmem:[#allocation518_spill] sm:$0xff] %v8939_v16  ;;  %v564_v49 = vld [vmem:[#allocation8 + $0xe58] sm:$0xff]  ;;  %12501 = vst [vmem:[#allocation520_spill] sm:$0xff] %v8946_v30  ;;  %v8948_v58 = vcombine.high %v436_v57, %v440_v47  ;;  %v6999_v15 = vpop.eup %6998  ;;  %v8954_v53 = vcombine.low %v436_v57, %v440_v47  ;;  %v3907_v46 = vmul.f32 0.05782156, %v6997_v48  ;;  %v3947_v48 = vadd.f32 %v3931_v59, %v3915_v50 }
 0x22a   :  { %v568_v62 = vld [vmem:[#allocation8 + $0xe78] sm:$0xff] }
 0x22b   :  { %3829 = vmatpush2.bf16.msra.mxu0 %v8930_v25  ;;  %3872 = vmatpush2.bf16.msra.mxu1 %v8934_v33  ;;  %12502 = vst [vmem:[#allocation521_spill] sm:$0xff] %v8948_v58  ;;  %v8951_v23 = vcombine.high %v564_v49, %v568_v62  ;;  %v428_v38 = vld [vmem:[#allocation8 + $0xa18] sm:$0xff]  ;;  %12504 = vst [vmem:[#allocation523_spill] sm:$0xff] %v8954_v53  ;;  %v8958_v63 = vcombine.low %v564_v49, %v568_v62 }
 0x22c   :  { %3830 = vmatprep.subr.bf16.mxu0 %v8936_v0  ;;  %3873 = vmatprep.subr.bf16.mxu1 %v8939_v16  ;;  %v432_v41 = vld [vmem:[#allocation8 + $0xa38] sm:$0xff]  ;;  %v7118_v16 = vld [vmem:[#allocation2 + $0x8] sm:$0xff] }
 0x22d   :  { %12503 = vst [vmem:[#allocation522_spill] sm:$0xff] %v8951_v23  ;;  %v556_v7 = vld [vmem:[#allocation8 + $0xe18] sm:$0xff]  ;;  %v3923_v17 = vmul.f32 0.11185222, %v7118_v16  ;;  %12505 = vst [vmem:[#allocation524_spill] sm:$0xff] %v8958_v63  ;;  %v8960_v40 = vcombine.high %v428_v38, %v432_v41  ;;  %v90_v0 = vld [vmem:[#allocation5 + $0x8] sm:$0xff] }
 0x22e   :  { %v560_v56 = vld [vmem:[#allocation8 + $0xe38] sm:$0xff]  ;;  %v3963_v16 = vmul.f32 0.9919984, %v98_v60  ;;  %v12523_v60 = vld [vmem:[#allocation43_spill] sm:$0xff] }
 0x22f   :  { %v7117_v33 = vld [vmem:[#allocation2 + $0x58] sm:$0xff]  ;;  %3831 = vmatpush2.bf16.msra.mxu0 %v8942_v1  ;;  %3874 = vmatpush2.bf16.msra.mxu1 %v8946_v30  ;;  %12506 = vst [vmem:[#allocation525_spill] sm:$0xff] %v8960_v40  ;;  %v8963_v57 = vcombine.high %v556_v7, %v560_v56  ;;  %v8966_v30 = vcombine.low %v428_v38, %v432_v41  ;;  %v12515_v41 = vld [vmem:[#allocation35_spill] sm:$0xff]  ;;  %v12516_v38 = vld [vmem:[#allocation36_spill] sm:$0xff] }
 0x230   :  { %v3933_v13 = vmul.f32 0.11185222, %v7117_v33  ;;  %3832 = vmatprep.subr.bf16.mxu0 %v8948_v58  ;;  %v100_v55 = vld [vmem:[#allocation5 + $0x58] sm:$0xff]  ;;  %v3909_v33 = vmul.f32 0.05782156, %v6999_v15  ;;  %3875 = vmatprep.subr.bf16.mxu1 %v8951_v23  ;;  %v3939_v49 = vadd.f32 %v3923_v17, %v3907_v46  ;;  %v8970_v15 = vcombine.low %v556_v7, %v560_v56 }
 0x231   :  { %v7119_v61 = vld [vmem:[#allocation2 + $0x18] sm:$0xff]  ;;  %12507 = vst [vmem:[#allocation526_spill] sm:$0xff] %v8963_v57  ;;  %12508 = vst [vmem:[#allocation527_spill] sm:$0xff] %v8966_v30  ;;  %v3965_v62 = vmul.f32 0.9919984, %v100_v55  ;;  %v8973_v59 = vadd.f32 %v3963_v16, %v3947_v48  ;;  %v12524_v55 = vld [vmem:[#allocation44_spill] sm:$0xff] }
 0x232   :  { %v3925_v25 = vmul.f32 0.11185222, %v7119_v61  ;;  %v92_v47 = vld [vmem:[#allocation5 + $0x18] sm:$0xff]  ;;  %v3949_v1 = vadd.f32 %v3933_v13, %v3917_v44  ;;  %v3955_v58 = vmul.f32 0.9919984, %v90_v0  ;;  %12509 = vst [vmem:[#allocation528_spill] sm:$0xff] %v8970_v15 }
 0x233   :  { %3833 = vmatpush2.bf16.msra.mxu0 %v8954_v53  ;;  %3876 = vmatpush2.bf16.msra.mxu1 %v8958_v63  ;;  %v3957_v23 = vmul.f32 0.9919984, %v92_v47  ;;  %v12514_v7 = vld [vmem:[#allocation34_spill] sm:$0xff]  ;;  %v12519_v0 = vld [vmem:[#allocation39_spill] sm:$0xff]  ;;  %v12528_v16 = vld [vmem:[#allocation48_spill] sm:$0xff] }
 0x234   :  { %3834 = vmatprep.subr.bf16.mxu0 %v8960_v40  ;;  %v3941_v61 = vadd.f32 %v3925_v25, %v3909_v33  ;;  %3877 = vmatprep.subr.bf16.mxu1 %v8963_v57  ;;  %v8976_v44 = vadd.f32 %v3965_v62, %v3949_v1  ;;  %v8978_v13 = vadd.f32 %v3955_v58, %v3939_v49  ;;  %v12518_v25 = vld [vmem:[#allocation38_spill] sm:$0xff]  ;;  %v12520_v1 = vld [vmem:[#allocation40_spill] sm:$0xff]  ;;  %v12521_v58 = vld [vmem:[#allocation41_spill] sm:$0xff] }
 0x235   :  { %v12522_v50 = vld [vmem:[#allocation42_spill] sm:$0xff]  ;;  %v12525_v33 = vld [vmem:[#allocation45_spill] sm:$0xff]  ;;  %v12527_v47 = vld [vmem:[#allocation47_spill] sm:$0xff] }
 0x236   :  { %12510 = vst [vmem:[#allocation529_spill] sm:$0xff] %v8976_v44  ;;  %v8982_v46 = vadd.f32 %v3957_v23, %v3941_v61  ;;  %v8988_v56 = vpack.c.bf16 %v8973_v59, %v8978_v13  ;;  %v12517_v23 = vld [vmem:[#allocation37_spill] sm:$0xff]  ;;  %v12526_v48 = vld [vmem:[#allocation46_spill] sm:$0xff]  ;;  %v12531_v61 = vld [vmem:[#allocation51_spill] sm:$0xff] }
 0x237   :  { %3835 = vmatpush2.bf16.msra.mxu0 %v8966_v30  ;;  %3878 = vmatpush2.bf16.msra.mxu1 %v8970_v15  ;;  %v12529_v62 = vld [vmem:[#allocation49_spill] sm:$0xff]  ;;  %v12530_v49 = vld [vmem:[#allocation50_spill] sm:$0xff]  ;;  %v12552_v15 = vld [vmem:[#allocation72_spill] sm:$0xff] }
 0x238   :  { %4011 = vmatprep.subr.bf16.mxu0 %v7323_v3  ;;  %12511 = vst [vmem:[#allocation530_spill] sm:$0xff] %v8982_v46  ;;  %4054 = vmatprep.subr.bf16.mxu1 %v7327_v8  ;;  %v8994_v17 = vpack.c.bf16 %v8976_v44, %v8982_v46  ;;  %v631_v8 = vld [vmem:[#allocation7 + $0x1a8] sm:$0xff]  ;;  %v12553_v57 = vld [vmem:[#allocation73_spill] sm:$0xff]  ;;  %v12555_v46 = vld [vmem:[#allocation75_spill] sm:$0xff] }
 0x23a   :  { %3837 = vmatmul.mubr.bf16.vlgmr.msra.gmra.mxu0 %v7727_v54  ;;  %3880 = vmatmul.mubr.bf16.vlgmr.msra.gmra.mxu1 %v7730_v6  ;;  %v12512_v6 = vld [vmem:[#allocation32_spill] sm:$0xff]  ;;  %v12513_v54 = vld [vmem:[#allocation33_spill] sm:$0xff] }
 0x23b   :  { %4012 = vmatpush1.bf16.msra.mxu0 %v7325_v5  ;;  %4043 = vmatprep.mubr.bf16.mxu0 %v8988_v56 }
 0x23c   :  { %4055 = vmatpush1.bf16.msra.mxu1 %v7329_v9  ;;  %4086 = vmatprep.mubr.bf16.mxu1 %v8994_v17  ;;  %v12551_v9 = vld [vmem:[#allocation71_spill] sm:$0xff] }
 0x23d   :  { %4013 = vmatprep.subr.bf16.mxu0 %v7331_v10  ;;  %4056 = vmatprep.subr.bf16.mxu1 %v7334_v14  ;;  %v12550_v14 = vld [vmem:[#allocation70_spill] sm:$0xff] }
 0x23f   :  { %4014 = vmatpush1.bf16.msra.mxu0 %v7338_v18 }
 0x240   :  { %4057 = vmatpush1.bf16.msra.mxu1 %v7342_v19  ;;  %4015 = vmatprep.subr.bf16.mxu0 %v7344_v20  ;;  %v12549_v19 = vld [vmem:[#allocation69_spill] sm:$0xff] }
 0x241   :  { %4058 = vmatprep.subr.bf16.mxu1 %v7347_v21 }
 0x243   :  { %4016 = vmatpush1.bf16.msra.mxu0 %v7350_v26 }
 0x244   :  { %4059 = vmatpush1.bf16.msra.mxu1 %v7354_v27  ;;  %4017 = vmatprep.subr.bf16.mxu0 %v7356_v28  ;;  %v12546_v27 = vld [vmem:[#allocation66_spill] sm:$0xff] }
 0x245   :  { %4060 = vmatprep.subr.bf16.mxu1 %v7359_v29  ;;  %v12545_v29 = vld [vmem:[#allocation65_spill] sm:$0xff] }
 0x247   :  { %4018 = vmatpush1.bf16.msra.mxu0 %v7362_v34 }
 0x248   :  { %4061 = vmatpush1.bf16.msra.mxu1 %v7366_v35  ;;  %4019 = vmatprep.subr.bf16.mxu0 %v7368_v36  ;;  %v9046_v35 = vpop.f32.mrf.mxu0 }
 0x249   :  { %4062 = vmatprep.subr.bf16.mxu1 %v7371_v37  ;;  %v12542_v37 = vld [vmem:[#allocation62_spill] sm:$0xff] }
 0x24a   :  { %v3582_v21 = vpop.f32.mrf.mxu0 }
 0x24b   :  { %4020 = vmatpush1.bf16.msra.mxu0 %v7374_v42  ;;  %v3583_v44 = vadd.f32 %v3582_v21, %v631_v8  ;;  %v12560_v8 = vld [vmem:[#allocation79_spill] sm:$0xff] }
 0x24c   :  { %4063 = vmatpush1.bf16.msra.mxu1 %v12512_v6  ;;  %4021 = vmatprep.subr.bf16.mxu0 %v12513_v54  ;;  %v12540_v6 = vld [vmem:[#allocation60_spill] sm:$0xff] }
 0x24d   :  { %4064 = vmatprep.subr.bf16.mxu1 %v12514_v7  ;;  %v12538_v7 = vld [vmem:[#allocation58_spill] sm:$0xff] }
 0x24f   :  { %4022 = vmatpush1.bf16.msra.mxu0 %v12515_v41 }
 0x250   :  { %4065 = vmatpush1.bf16.msra.mxu1 %v12516_v38  ;;  %4023 = vmatprep.subr.bf16.mxu0 %v12517_v23  ;;  %v12536_v38 = vld [vmem:[#allocation56_spill] sm:$0xff] }
 0x251   :  { %4066 = vmatprep.subr.bf16.mxu1 %v12518_v25  ;;  %v12534_v25 = vld [vmem:[#allocation54_spill] sm:$0xff] }
 0x253   :  { %4024 = vmatpush1.bf16.msra.mxu0 %v12519_v0 }
 0x254   :  { %4067 = vmatpush1.bf16.msra.mxu1 %v12520_v1  ;;  %4025 = vmatprep.subr.bf16.mxu0 %v12521_v58  ;;  %v12532_v1 = vld [vmem:[#allocation52_spill] sm:$0xff] }
 0x255   :  { %4068 = vmatprep.subr.bf16.mxu1 %v12522_v50  ;;  %v12533_v50 = vld [vmem:[#allocation53_spill] sm:$0xff] }
 0x257   :  { %4026 = vmatpush1.bf16.msra.mxu0 %v12523_v60 }
 0x258   :  { %4069 = vmatpush1.bf16.msra.mxu1 %v12524_v55  ;;  %4027 = vmatprep.subr.bf16.mxu0 %v12525_v33  ;;  %v12535_v55 = vld [vmem:[#allocation55_spill] sm:$0xff]  ;;  %v12585_v33 = vld [vmem:[#allocation105_spill] sm:$0xff] }
 0x259   :  { %4070 = vmatprep.subr.bf16.mxu1 %v12526_v48  ;;  %v12537_v48 = vld [vmem:[#allocation57_spill] sm:$0xff] }
 0x25b   :  { %4028 = vmatpush2.bf16.msra.mxu0 %v12527_v47 }
 0x25c   :  { %4071 = vmatpush2.bf16.msra.mxu1 %v12528_v16  ;;  %4029 = vmatprep.subr.bf16.mxu0 %v12529_v62  ;;  %v12539_v16 = vld [vmem:[#allocation59_spill] sm:$0xff]  ;;  %v12583_v62 = vld [vmem:[#allocation102_spill] sm:$0xff] }
 0x25d   :  { %4072 = vmatprep.subr.bf16.mxu1 %v12530_v49  ;;  %v12541_v49 = vld [vmem:[#allocation61_spill] sm:$0xff] }
 0x25f   :  { %4030 = vmatpush2.bf16.msra.mxu0 %v12531_v61  ;;  %v12566_v61 = vld [vmem:[#allocation84_spill] sm:$0xff] }
 0x260   :  { %4073 = vmatpush2.bf16.msra.mxu1 %v12532_v1  ;;  %4031 = vmatprep.subr.bf16.mxu0 %v12533_v50  ;;  %v12543_v1 = vld [vmem:[#allocation63_spill] sm:$0xff] }
 0x261   :  { %4074 = vmatprep.subr.bf16.mxu1 %v12534_v25  ;;  %v12544_v25 = vld [vmem:[#allocation64_spill] sm:$0xff] }
 0x263   :  { %4032 = vmatpush2.bf16.msra.mxu0 %v12535_v55 }
 0x264   :  { %4075 = vmatpush2.bf16.msra.mxu1 %v12536_v38  ;;  %4033 = vmatprep.subr.bf16.mxu0 %v12537_v48  ;;  %v9050_v38 = vpop.f32.mrf.mxu1 }
 0x265   :  { %4076 = vmatprep.subr.bf16.mxu1 %v12538_v7  ;;  %v12547_v7 = vld [vmem:[#allocation67_spill] sm:$0xff] }
 0x267   :  { %4034 = vmatpush2.bf16.msra.mxu0 %v12539_v16 }
 0x268   :  { %4077 = vmatpush2.bf16.msra.mxu1 %v12540_v6  ;;  %4035 = vmatprep.subr.bf16.mxu0 %v12541_v49  ;;  %v12548_v6 = vld [vmem:[#allocation68_spill] sm:$0xff] }
 0x269   :  { %4078 = vmatprep.subr.bf16.mxu1 %v12542_v37  ;;  %v3625_v37 = vpop.f32.mrf.mxu1 }
 0x26b   :  { %4036 = vmatpush2.bf16.msra.mxu0 %v12543_v1  ;;  %v9060_v63 = vpop.f32.mrf.mxu1 }
 0x26c   :  { %4079 = vmatpush2.bf16.msra.mxu1 %v12544_v25  ;;  %4037 = vmatprep.subr.bf16.mxu0 %v12545_v29  ;;  %v3584_v25 = vpop.f32.mrf.mxu0  ;;  %v12558_v29 = vld [vmem:[#allocation78_spill] sm:$0xff] }
 0x26d   :  { %4080 = vmatprep.subr.bf16.mxu1 %v12546_v27  ;;  %v12554_v27 = vld [vmem:[#allocation74_spill] sm:$0xff] }
 0x26f   :  { %4038 = vmatpush2.bf16.msra.mxu0 %v12547_v7  ;;  %v12556_v7 = vld [vmem:[#allocation76_spill] sm:$0xff] }
 0x270   :  { %4081 = vmatpush2.bf16.msra.mxu1 %v12548_v6  ;;  %4039 = vmatprep.subr.bf16.mxu0 %v12549_v19  ;;  %v639_v6 = vld [vmem:[#allocation7 + $0x1e8] sm:$0xff]  ;;  %v3586_v19 = vpop.f32.mrf.mxu0 }
 0x271   :  { %4082 = vmatprep.subr.bf16.mxu1 %v12550_v14  ;;  %v12557_v14 = vld [vmem:[#allocation77_spill] sm:$0xff]  ;;  %v3587_v49 = vadd.f32 %v3586_v19, %v639_v6  ;;  %v12564_v19 = vld [vmem:[#allocation83_spill] sm:$0xff] }
 0x272   :  { %v12565_v6 = vld [vmem:[#allocation85_spill] sm:$0xff] }
 0x273   :  { %4040 = vmatpush2.bf16.msra.mxu0 %v12551_v9  ;;  %v3629_v9 = vpop.f32.mrf.mxu1 }
 0x274   :  { %4083 = vmatpush2.bf16.msra.mxu1 %v12552_v15  ;;  %4041 = vmatprep.subr.bf16.mxu0 %v12553_v57  ;;  %v12559_v15 = vld [vmem:[#allocation370_spill] sm:$0xff]  ;;  %v3626_v57 = vadd.f32 %v3625_v37, %v3583_v44  ;;  %v3630_v55 = vadd.f32 %v3629_v9, %v3587_v49  ;;  %v12570_v9 = vld [vmem:[#allocation88_spill] sm:$0xff]  ;;  %v12573_v49 = vld [vmem:[#allocation93_spill] sm:$0xff] }
 0x275   :  { %4084 = vmatprep.subr.bf16.mxu1 %v12554_v27  ;;  %v12561_v27 = vld [vmem:[#allocation81_spill] sm:$0xff] }
 0x277   :  { %4042 = vmatpush2.bf16.msra.mxu0 %v12555_v46 }
 0x278   :  { %4085 = vmatpush2.bf16.msra.mxu1 %v12556_v7  ;;  %4097 = vmatprep.subr.bf16.mxu0 %v12557_v14  ;;  %v12562_v7 = vld [vmem:[#allocation80_spill] sm:$0xff] }
 0x279   :  { %4140 = vmatprep.subr.bf16.mxu1 %v12558_v29  ;;  %v12563_v29 = vld [vmem:[#allocation82_spill] sm:$0xff] }
 0x27a   :  { %v9067_v1 = vpop.f32.mrf.mxu0  ;;  %4044 = vmatmul.mubr.bf16.vlgmr.msra.gmra.mxu0 %v12559_v15  ;;  %v9070_v16 = vpop.f32.mrf.mxu1 }
 0x27b   :  { %4087 = vmatmul.mubr.bf16.vlgmr.msra.gmra.mxu1 %v8877_v31  ;;  %4098 = vmatpush1.bf16.msra.mxu0 %v12560_v8 }
 0x27c   :  { %v3668_v21 = vpop.f32.mrf.mxu0  ;;  %4099 = vmatprep.subr.bf16.mxu0 %v12561_v27  ;;  %4141 = vmatpush1.bf16.msra.mxu1 %v12562_v7  ;;  %v3711_v46 = vpop.f32.mrf.mxu1  ;;  %v12567_v27 = vld [vmem:[#allocation86_spill] sm:$0xff] }
 0x27d   :  { %v3669_v14 = vadd.f32 %v3668_v21, %v3626_v57  ;;  %4142 = vmatprep.subr.bf16.mxu1 %v12563_v29  ;;  %v12568_v21 = vld [vmem:[#allocation87_spill] sm:$0xff]  ;;  %v12569_v29 = vld [vmem:[#allocation89_spill] sm:$0xff] }
 0x27e   :  { %v3670_v48 = vpop.f32.mrf.mxu0  ;;  %v3713_v37 = vpop.f32.mrf.mxu1 }
 0x27f   :  { %v3712_v50 = vadd.f32 %v3711_v46, %v3669_v14  ;;  %4100 = vmatpush1.bf16.msra.mxu0 %v12564_v19  ;;  %v12571_v14 = vld [vmem:[#allocation90_spill] sm:$0xff]  ;;  %v12572_v46 = vld [vmem:[#allocation91_spill] sm:$0xff]  ;;  %v12581_v19 = vld [vmem:[#allocation101_spill] sm:$0xff] }
 0x280   :  { %v3672_v44 = vpop.f32.mrf.mxu0  ;;  %4101 = vmatprep.subr.bf16.mxu0 %v12565_v6  ;;  %4143 = vmatpush1.bf16.msra.mxu1 %v12566_v61  ;;  %v3715_v7 = vpop.f32.mrf.mxu1  ;;  %v12574_v61 = vld [vmem:[#allocation92_spill] sm:$0xff] }
 0x281   :  { %7000 = vtanh.f32 %v3712_v50  ;;  %v3673_v8 = vadd.f32 %v3672_v44, %v3630_v55  ;;  %4144 = vmatprep.subr.bf16.mxu1 %v12567_v27  ;;  %v12575_v50 = vld [vmem:[#allocation94_spill] sm:$0xff]  ;;  %v638_v55 = vld [vmem:[#allocation7 + $0x1e0] sm:$0xff]  ;;  %v102_v6 = vld [vmem:[#allocation5 + $0x68] sm:$0xff] }
 0x282   :  { %v12576_v44 = vld [vmem:[#allocation95_spill] sm:$0xff]  ;;  %v3967_v47 = vmul.f32 0.9919984, %v102_v6 }
 0x283   :  { %v3716_v57 = vadd.f32 %v3715_v7, %v3673_v8  ;;  %4102 = vmatpush1.bf16.msra.mxu0 %v12568_v21  ;;  %v12577_v7 = vld [vmem:[#allocation97_spill] sm:$0xff]  ;;  %v12578_v8 = vld [vmem:[#allocation96_spill] sm:$0xff]  ;;  %v630_v27 = vld [vmem:[#allocation7 + $0x1a0] sm:$0xff] }
 0x284   :  { %4103 = vmatprep.subr.bf16.mxu0 %v12569_v29  ;;  %4145 = vmatpush1.bf16.msra.mxu1 %v12570_v9  ;;  %v12579_v9 = vld [vmem:[#allocation98_spill] sm:$0xff] }
 0x285   :  { %7002 = vtanh.f32 %v3716_v57  ;;  %4146 = vmatprep.subr.bf16.mxu1 %v12571_v14  ;;  %v3585_v14 = vadd.f32 %v3584_v25, %v638_v55 }
 0x287   :  { %4104 = vmatpush1.bf16.msra.mxu0 %v12572_v46  ;;  %v7120_v46 = vld [vmem:[#allocation2 + $0x28] sm:$0xff]  ;;  %v3628_v25 = vadd.f32 %v9060_v63, %v3585_v14  ;;  %v12590_v63 = vld [vmem:[#allocation107_spill] sm:$0xff]  ;;  %v12597_v14 = vld [vmem:[#allocation114_spill] sm:$0xff] }
 0x288   :  { %4105 = vmatprep.subr.bf16.mxu0 %v12573_v49  ;;  %4147 = vmatpush1.bf16.msra.mxu1 %v12574_v61  ;;  %v3927_v21 = vmul.f32 0.11185222, %v7120_v46  ;;  %v12580_v49 = vld [vmem:[#allocation99_spill] sm:$0xff]  ;;  %v3581_v61 = vadd.f32 %v9046_v35, %v630_v27 }
 0x289   :  { %4148 = vmatprep.subr.bf16.mxu1 %v12575_v50  ;;  %v94_v50 = vld [vmem:[#allocation5 + $0x28] sm:$0xff]  ;;  %v3671_v35 = vadd.f32 %v3670_v48, %v3628_v25  ;;  %v12601_v25 = vld [vmem:[#allocation118_spill] sm:$0xff] }
 0x28a   :  { %v3624_v27 = vadd.f32 %v9050_v38, %v3581_v61  ;;  %v12592_v38 = vld [vmem:[#allocation108_spill] sm:$0xff]  ;;  %v12593_v61 = vld [vmem:[#allocation110_spill] sm:$0xff] }
 0x28b   :  { %4106 = vmatpush1.bf16.msra.mxu0 %v12576_v44  ;;  %v12582_v44 = vld [vmem:[#allocation100_spill] sm:$0xff]  ;;  %v3714_v6 = vadd.f32 %v3713_v37, %v3671_v35 }
 0x28c   :  { %4107 = vmatprep.subr.bf16.mxu0 %v12577_v7  ;;  %4149 = vmatpush1.bf16.msra.mxu1 %v12578_v8  ;;  %v7121_v7 = vld [vmem:[#allocation2 + $0x68] sm:$0xff] }
 0x28d   :  { %4150 = vmatprep.subr.bf16.mxu1 %v12579_v9  ;;  %v3935_v8 = vmul.f32 0.11185222, %v7121_v7  ;;  %v12587_v7 = vld [vmem:[#allocation106_spill] sm:$0xff]  ;;  %7004 = vtanh.f32 %v3714_v6  ;;  %v12596_v37 = vld [vmem:[#allocation112_spill] sm:$0xff] }
 0x28e   :  { %v7001_v57 = vpop.eup %7000  ;;  %v12608_v35 = vld [vmem:[#allocation124_spill] sm:$0xff] }
 0x28f   :  { %v3911_v29 = vmul.f32 0.05782156, %v7001_v57  ;;  %4108 = vmatpush1.bf16.msra.mxu0 %v12580_v49  ;;  %v3959_v57 = vmul.f32 0.9919984, %v94_v50  ;;  %v12584_v49 = vld [vmem:[#allocation103_spill] sm:$0xff] }
 0x290   :  { %4109 = vmatprep.subr.bf16.mxu0 %v12581_v19  ;;  %4151 = vmatpush1.bf16.msra.mxu1 %v12582_v44  ;;  %v12586_v19 = vld [vmem:[#allocation104_spill] sm:$0xff]  ;;  %v12598_v50 = vld [vmem:[#allocation115_spill] sm:$0xff] }
 0x291   :  { %4152 = vmatprep.subr.bf16.mxu1 %v12583_v62  ;;  %v3943_v55 = vadd.f32 %v3927_v21, %v3911_v29  ;;  %v3667_v62 = vadd.f32 %v9067_v1, %v3624_v27  ;;  %v12591_v21 = vld [vmem:[#allocation109_spill] sm:$0xff]  ;;  %v12594_v1 = vld [vmem:[#allocation111_spill] sm:$0xff] }
 0x292   :  { %v7003_v9 = vpop.eup %7002  ;;  %v12607_v27 = vld [vmem:[#allocation125_spill] sm:$0xff] }
 0x293   :  { %v3919_v46 = vmul.f32 0.05782156, %v7003_v9  ;;  %4110 = vmatpush1.bf16.msra.mxu0 %v12584_v49  ;;  %v9105_v60 = vadd.f32 %v3959_v57, %v3943_v55  ;;  %v3710_v9 = vadd.f32 %v9070_v16, %v3667_v62  ;;  %v12602_v16 = vld [vmem:[#allocation119_spill] sm:$0xff]  ;;  %v12603_v62 = vld [vmem:[#allocation121_spill] sm:$0xff]  ;;  %v12604_v55 = vld [vmem:[#allocation120_spill] sm:$0xff] }
 0x294   :  { %4111 = vmatprep.subr.bf16.mxu0 %v12585_v33  ;;  %4153 = vmatpush1.bf16.msra.mxu1 %v12586_v19  ;;  %v12605_v57 = vld [vmem:[#allocation122_spill] sm:$0xff]  ;;  %v12673_v49 = vld [vmem:[#allocation233_spill] sm:$0xff] }
 0x295   :  { %v3951_v44 = vadd.f32 %v3935_v8, %v3919_v46  ;;  %4154 = vmatprep.subr.bf16.mxu1 %v12587_v7  ;;  %12588 = vst [vmem:[#allocation370_spill] sm:$0xff] %v9105_v60  ;;  %7006 = vtanh.f32 %v3710_v9  ;;  %v12600_v8 = vld [vmem:[#allocation116_spill] sm:$0xff]  ;;  %v12606_v46 = vld [vmem:[#allocation123_spill] sm:$0xff]  ;;  %v12609_v9 = vld [vmem:[#allocation126_spill] sm:$0xff] }
 0x296   :  { %v12613_v7 = vld [vmem:[#allocation130_spill] sm:$0xff] }
 0x297   :  { %v9107_v29 = vadd.f32 %v3967_v47, %v3951_v44  ;;  %4112 = vmatpush1.bf16.msra.mxu0 %v12590_v63  ;;  %v12595_v47 = vld [vmem:[#allocation113_spill] sm:$0xff] }
 0x298   :  { %4113 = vmatprep.subr.bf16.mxu0 %v12591_v21  ;;  %4155 = vmatpush1.bf16.msra.mxu1 %v12592_v38  ;;  %v12599_v44 = vld [vmem:[#allocation117_spill] sm:$0xff] }
 0x299   :  { %12589 = vst [vmem:[#allocation531_spill] sm:$0xff] %v9107_v29  ;;  %v9114_v48 = vpack.c.bf16 %v9107_v29, %v9105_v60  ;;  %4156 = vmatprep.subr.bf16.mxu1 %v12593_v61  ;;  %v12611_v38 = vld [vmem:[#allocation129_spill] sm:$0xff]  ;;  %v7123_v29 = vld [vmem:[#allocation2 + $0x20] sm:$0xff] }
 0x29a   :  { %v7005_v6 = vpop.eup %7004  ;;  %v3926_v60 = vmul.f32 0.11185222, %v7123_v29  ;;  %v12621_v29 = vld [vmem:[#allocation136_spill] sm:$0xff] }
 0x29b   :  { %4114 = vmatpush2.bf16.msra.mxu0 %v12594_v1  ;;  %4129 = vmatprep.mubr.bf16.mxu0 %v9114_v48 }
 0x29c   :  { %4115 = vmatprep.subr.bf16.mxu0 %v12595_v47  ;;  %4157 = vmatpush2.bf16.msra.mxu1 %v12596_v37  ;;  %v7122_v37 = vld [vmem:[#allocation2 + $0x60] sm:$0xff] }
 0x29d   :  { %4158 = vmatprep.subr.bf16.mxu1 %v12597_v14  ;;  %v12610_v14 = vld [vmem:[#allocation127_spill] sm:$0xff]  ;;  %v3934_v61 = vmul.f32 0.11185222, %v7122_v37  ;;  %v12617_v37 = vld [vmem:[#allocation134_spill] sm:$0xff] }
 0x29f   :  { %4116 = vmatpush2.bf16.msra.mxu0 %v12598_v50 }
 0x2a0   :  { %4117 = vmatprep.subr.bf16.mxu0 %v12599_v44  ;;  %4159 = vmatpush2.bf16.msra.mxu1 %v12600_v8 }
 0x2a1   :  { %4160 = vmatprep.subr.bf16.mxu1 %v12601_v25  ;;  %v3918_v25 = vmul.f32 0.05782156, %v7005_v6  ;;  %v12616_v6 = vld [vmem:[#allocation132_spill] sm:$0xff] }
 0x2a2   :  { %v7007_v8 = vpop.eup %7006 }
 0x2a3   :  { %4118 = vmatpush2.bf16.msra.mxu0 %v12602_v16  ;;  %v3910_v19 = vmul.f32 0.05782156, %v7007_v8  ;;  %v12620_v8 = vld [vmem:[#allocation137_spill] sm:$0xff] }
 0x2a4   :  { %4119 = vmatprep.subr.bf16.mxu0 %v12603_v62  ;;  %4161 = vmatpush2.bf16.msra.mxu1 %v12604_v55  ;;  %v12612_v55 = vld [vmem:[#allocation128_spill] sm:$0xff]  ;;  %v12615_v62 = vld [vmem:[#allocation133_spill] sm:$0xff] }
 0x2a5   :  { %4162 = vmatprep.subr.bf16.mxu1 %v12605_v57  ;;  %v101_v57 = vld [vmem:[#allocation5 + $0x60] sm:$0xff] }
 0x2a7   :  { %4120 = vmatpush2.bf16.msra.mxu0 %v12606_v46  ;;  %v3966_v46 = vmul.f32 0.9919984, %v101_v57 }
 0x2a8   :  { %4121 = vmatprep.subr.bf16.mxu0 %v12607_v27  ;;  %4163 = vmatpush2.bf16.msra.mxu1 %v12608_v35  ;;  %v93_v35 = vld [vmem:[#allocation5 + $0x20] sm:$0xff] }
 0x2a9   :  { %4164 = vmatprep.subr.bf16.mxu1 %v12609_v9  ;;  %v12614_v27 = vld [vmem:[#allocation131_spill] sm:$0xff]  ;;  %v3950_v9 = vadd.f32 %v3934_v61, %v3918_v25 }
 0x2aa   :  { %v12624_v25 = vld [vmem:[#allocation139_spill] sm:$0xff] }
 0x2ab   :  { %4122 = vmatpush2.bf16.msra.mxu0 %v12610_v14  ;;  %v3958_v14 = vmul.f32 0.9919984, %v93_v35  ;;  %v9144_v16 = vadd.f32 %v3966_v46, %v3950_v9  ;;  %v12627_v46 = vld [vmem:[#allocation142_spill] sm:$0xff]  ;;  %v12628_v35 = vld [vmem:[#allocation143_spill] sm:$0xff]  ;;  %v12631_v9 = vld [vmem:[#allocation149_spill] sm:$0xff] }
 0x2ac   :  { %4123 = vmatprep.subr.bf16.mxu0 %v12611_v38  ;;  %4165 = vmatpush2.bf16.msra.mxu1 %v12612_v55  ;;  %v3942_v38 = vadd.f32 %v3926_v60, %v3910_v19  ;;  %v12618_v55 = vld [vmem:[#allocation135_spill] sm:$0xff]  ;;  %v12625_v60 = vld [vmem:[#allocation141_spill] sm:$0xff]  ;;  %v12626_v19 = vld [vmem:[#allocation140_spill] sm:$0xff] }
 0x2ad   :  { %4166 = vmatprep.subr.bf16.mxu1 %v12613_v7  ;;  %12619 = vst [vmem:[#allocation532_spill] sm:$0xff] %v9144_v16  ;;  %v12622_v7 = vld [vmem:[#allocation138_spill] sm:$0xff] }
 0x2ae   :  { %v9149_v61 = vadd.f32 %v3958_v14, %v3942_v38  ;;  %v12629_v38 = vld [vmem:[#allocation145_spill] sm:$0xff]  ;;  %v12630_v14 = vld [vmem:[#allocation147_spill] sm:$0xff] }
 0x2af   :  { %4124 = vmatpush2.bf16.msra.mxu0 %v12614_v27 }
 0x2b0   :  { %4125 = vmatprep.subr.bf16.mxu0 %v12615_v62  ;;  %4167 = vmatpush2.bf16.msra.mxu1 %v12616_v6  ;;  %12623 = vst [vmem:[#allocation533_spill] sm:$0xff] %v9149_v61  ;;  %v9154_v57 = vpack.c.bf16 %v9144_v16, %v9149_v61  ;;  %v12637_v6 = vld [vmem:[#allocation161_spill] sm:$0xff]  ;;  %v12654_v61 = vld [vmem:[#allocation195_spill] sm:$0xff] }
 0x2b1   :  { %4168 = vmatprep.subr.bf16.mxu1 %v12617_v37  ;;  %v12634_v37 = vld [vmem:[#allocation155_spill] sm:$0xff]  ;;  %v12639_v16 = vld [vmem:[#allocation165_spill] sm:$0xff] }
 0x2b2   :  { %v12658_v62 = vld [vmem:[#allocation203_spill] sm:$0xff] }
 0x2b3   :  { %4126 = vmatpush2.bf16.msra.mxu0 %v12618_v55 }
 0x2b4   :  { %4127 = vmatprep.subr.bf16.mxu0 %v12620_v8  ;;  %4169 = vmatpush2.bf16.msra.mxu1 %v12621_v29  ;;  %v12633_v29 = vld [vmem:[#allocation153_spill] sm:$0xff] }
 0x2b5   :  { %4170 = vmatprep.subr.bf16.mxu1 %v12622_v7  ;;  %v12632_v7 = vld [vmem:[#allocation151_spill] sm:$0xff] }
 0x2b7   :  { %4128 = vmatpush2.bf16.msra.mxu0 %v12624_v25 }
 0x2b8   :  { %4183 = vmatprep.subr.bf16.mxu0 %v12625_v60  ;;  %4171 = vmatpush2.bf16.msra.mxu1 %v12626_v19  ;;  %v12635_v19 = vld [vmem:[#allocation157_spill] sm:$0xff] }
 0x2b9   :  { %4226 = vmatprep.subr.bf16.mxu1 %v12627_v46  ;;  %v12636_v46 = vld [vmem:[#allocation159_spill] sm:$0xff]  ;;  %v632_v60 = vld [vmem:[#allocation7 + $0x1b0] sm:$0xff] }
 0x2ba   :  { %4130 = vmatmul.mubr.bf16.vlgmr.msra.gmra.mxu0 %v9154_v57 }
 0x2bb   :  { %4184 = vmatpush1.bf16.msra.mxu0 %v12628_v35  ;;  %4215 = vmatprep.mubr.bf16.mxu0 %v8988_v56  ;;  %v12638_v35 = vld [vmem:[#allocation163_spill] sm:$0xff] }
 0x2bc   :  { %4185 = vmatprep.subr.bf16.mxu0 %v12629_v38  ;;  %v12640_v38 = vld [vmem:[#allocation167_spill] sm:$0xff] }
 0x2bf   :  { %4186 = vmatpush1.bf16.msra.mxu0 %v12630_v14  ;;  %v12641_v14 = vld [vmem:[#allocation169_spill] sm:$0xff] }
 0x2c0   :  { %4187 = vmatprep.subr.bf16.mxu0 %v12631_v9  ;;  %v12642_v9 = vld [vmem:[#allocation171_spill] sm:$0xff] }
 0x2c3   :  { %4188 = vmatpush1.bf16.msra.mxu0 %v12632_v7  ;;  %v12643_v7 = vld [vmem:[#allocation173_spill] sm:$0xff] }
 0x2c4   :  { %4189 = vmatprep.subr.bf16.mxu0 %v12633_v29  ;;  %v12644_v29 = vld [vmem:[#allocation175_spill] sm:$0xff] }
 0x2c7   :  { %4190 = vmatpush1.bf16.msra.mxu0 %v12634_v37  ;;  %v12645_v37 = vld [vmem:[#allocation177_spill] sm:$0xff] }
 0x2c8   :  { %4191 = vmatprep.subr.bf16.mxu0 %v12635_v19  ;;  %v12646_v19 = vld [vmem:[#allocation179_spill] sm:$0xff] }
 0x2cb   :  { %4192 = vmatpush1.bf16.msra.mxu0 %v12636_v46  ;;  %v12647_v46 = vld [vmem:[#allocation181_spill] sm:$0xff] }
 0x2cc   :  { %4193 = vmatprep.subr.bf16.mxu0 %v12637_v6  ;;  %v12648_v6 = vld [vmem:[#allocation183_spill] sm:$0xff] }
 0x2cf   :  { %4194 = vmatpush1.bf16.msra.mxu0 %v12638_v35  ;;  %v12649_v35 = vld [vmem:[#allocation185_spill] sm:$0xff] }
 0x2d0   :  { %4195 = vmatprep.subr.bf16.mxu0 %v12639_v16  ;;  %v12650_v16 = vld [vmem:[#allocation187_spill] sm:$0xff] }
 0x2d3   :  { %4196 = vmatpush1.bf16.msra.mxu0 %v12640_v38  ;;  %v12651_v38 = vld [vmem:[#allocation189_spill] sm:$0xff] }
 0x2d4   :  { %4197 = vmatprep.subr.bf16.mxu0 %v12641_v14  ;;  %v12652_v14 = vld [vmem:[#allocation191_spill] sm:$0xff] }
 0x2d7   :  { %4198 = vmatpush1.bf16.msra.mxu0 %v12642_v9  ;;  %v3752_v9 = vpop.f32.mrf.mxu0 }
 0x2d8   :  { %4199 = vmatprep.subr.bf16.mxu0 %v12643_v7  ;;  %v12653_v7 = vld [vmem:[#allocation193_spill] sm:$0xff] }
 0x2db   :  { %4200 = vmatpush2.bf16.msra.mxu0 %v12644_v29  ;;  %v3795_v29 = vpop.f32.mrf.mxu1 }
 0x2dc   :  { %4201 = vmatprep.subr.bf16.mxu0 %v12645_v37  ;;  %v3754_v37 = vpop.f32.mrf.mxu0 }
 0x2de   :  { %v3756_v25 = vpop.f32.mrf.mxu0 }
 0x2df   :  { %4202 = vmatpush2.bf16.msra.mxu0 %v12646_v19  ;;  %v12655_v19 = vld [vmem:[#allocation197_spill] sm:$0xff] }
 0x2e0   :  { %4203 = vmatprep.subr.bf16.mxu0 %v12647_v46  ;;  %v3797_v46 = vpop.f32.mrf.mxu1  ;;  %v3758_v27 = vpop.f32.mrf.mxu0 }
 0x2e2   :  { %v3799_v8 = vpop.f32.mrf.mxu1 }
 0x2e3   :  { %4204 = vmatpush2.bf16.msra.mxu0 %v12648_v6  ;;  %v12656_v6 = vld [vmem:[#allocation199_spill] sm:$0xff] }
 0x2e4   :  { %4205 = vmatprep.subr.bf16.mxu0 %v12649_v35  ;;  %v633_v35 = vld [vmem:[#allocation7 + $0x1b8] sm:$0xff]  ;;  %v3801_v50 = vpop.f32.mrf.mxu1 }
 0x2e5   :  { %v3755_v55 = vadd.f32 %v3754_v37, %v633_v35  ;;  %v12661_v35 = vld [vmem:[#allocation209_spill] sm:$0xff] }
 0x2e7   :  { %4206 = vmatpush2.bf16.msra.mxu0 %v12650_v16  ;;  %v12657_v16 = vld [vmem:[#allocation201_spill] sm:$0xff] }
 0x2e8   :  { %4207 = vmatprep.subr.bf16.mxu0 %v12651_v38  ;;  %v3753_v38 = vadd.f32 %v3752_v9, %v632_v60  ;;  %v12660_v60 = vld [vmem:[#allocation207_spill] sm:$0xff] }
 0x2ea   :  { %v3796_v44 = vadd.f32 %v3795_v29, %v3753_v38 }
 0x2eb   :  { %4208 = vmatpush2.bf16.msra.mxu0 %v12652_v14  ;;  %v640_v14 = vld [vmem:[#allocation7 + $0x1f0] sm:$0xff] }
 0x2ec   :  { %4209 = vmatprep.subr.bf16.mxu0 %v12653_v7  ;;  %v641_v7 = vld [vmem:[#allocation7 + $0x1f8] sm:$0xff] }
 0x2ed   :  { %v3759_v1 = vadd.f32 %v3758_v27, %v641_v7 }
 0x2ef   :  { %4210 = vmatpush2.bf16.msra.mxu0 %v12654_v61  ;;  %v12659_v61 = vld [vmem:[#allocation205_spill] sm:$0xff]  ;;  %v3802_v38 = vadd.f32 %v3801_v50, %v3759_v1  ;;  %v12666_v1 = vld [vmem:[#allocation219_spill] sm:$0xff] }
 0x2f0   :  { %4211 = vmatprep.subr.bf16.mxu0 %v12655_v19  ;;  %v3757_v19 = vadd.f32 %v3756_v25, %v640_v14  ;;  %v12667_v50 = vld [vmem:[#allocation221_spill] sm:$0xff] }
 0x2f2   :  { %v3800_v9 = vadd.f32 %v3799_v8, %v3757_v19 }
 0x2f3   :  { %4212 = vmatpush2.bf16.msra.mxu0 %v12656_v6  ;;  %v3798_v6 = vadd.f32 %v3797_v46, %v3755_v55  ;;  %v12662_v55 = vld [vmem:[#allocation211_spill] sm:$0xff] }
 0x2f4   :  { %4213 = vmatprep.subr.bf16.mxu0 %v12657_v16 }
 0x2f7   :  { %4214 = vmatpush2.bf16.msra.mxu0 %v12658_v62 }
 0x2f8   :  { %4269 = vmatprep.subr.bf16.mxu0 %v12659_v61 }
 0x2fa   :  { %v3838_v47 = vpop.f32.mrf.mxu0  ;;  %4216 = vmatmul.mubr.bf16.vlgmr.msra.gmra.mxu0 %v12559_v15  ;;  %v3881_v16 = vpop.f32.mrf.mxu1 }
 0x2fb   :  { %v3839_v21 = vadd.f32 %v3838_v47, %v3796_v44  ;;  %4270 = vmatpush1.bf16.msra.mxu0 %v12660_v60  ;;  %4301 = vmatprep.mubr.bf16.mxu0 %v9114_v48  ;;  %v12663_v47 = vld [vmem:[#allocation213_spill] sm:$0xff]  ;;  %v12672_v60 = vld [vmem:[#allocation231_spill] sm:$0xff] }
 0x2fc   :  { %v3840_v37 = vpop.f32.mrf.mxu0  ;;  %4271 = vmatprep.subr.bf16.mxu0 %v12661_v35  ;;  %v3883_v29 = vpop.f32.mrf.mxu1 }
 0x2fd   :  { %v3882_v62 = vadd.f32 %v3881_v16, %v3839_v21  ;;  %v3841_v61 = vadd.f32 %v3840_v37, %v3798_v6  ;;  %v12664_v21 = vld [vmem:[#allocation215_spill] sm:$0xff]  ;;  %v12665_v16 = vld [vmem:[#allocation217_spill] sm:$0xff]  ;;  %v96_v37 = vld [vmem:[#allocation5 + $0x38] sm:$0xff] }
 0x2fe   :  { %v3842_v25 = vpop.f32.mrf.mxu0  ;;  %v3885_v33 = vpop.f32.mrf.mxu1  ;;  %v12668_v6 = vld [vmem:[#allocation223_spill] sm:$0xff] }
 0x2ff   :  { %v3884_v14 = vadd.f32 %v3883_v29, %v3841_v61  ;;  %v3843_v63 = vadd.f32 %v3842_v25, %v3800_v9  ;;  %4272 = vmatpush1.bf16.msra.mxu0 %v12662_v55  ;;  %7008 = vtanh.f32 %v3882_v62  ;;  %v12669_v62 = vld [vmem:[#allocation225_spill] sm:$0xff] }
 0x300   :  { %v3844_v7 = vpop.f32.mrf.mxu0  ;;  %4273 = vmatprep.subr.bf16.mxu0 %v12663_v47  ;;  %v3887_v46 = vpop.f32.mrf.mxu1  ;;  %v103_v29 = vld [vmem:[#allocation5 + $0x70] sm:$0xff] }
 0x301   :  { %7010 = vtanh.f32 %v3884_v14  ;;  %v3886_v44 = vadd.f32 %v3885_v33, %v3843_v63  ;;  %v3845_v27 = vadd.f32 %v3844_v7, %v3802_v38  ;;  %v7124_v33 = vld [vmem:[#allocation2 + $0x38] sm:$0xff]  ;;  %v7125_v25 = vld [vmem:[#allocation2 + $0x70] sm:$0xff]  ;;  %v12670_v14 = vld [vmem:[#allocation227_spill] sm:$0xff]  ;;  %v3968_v47 = vmul.f32 0.9919984, %v103_v29 }
 0x302   :  { %v3929_v63 = vmul.f32 0.11185222, %v7124_v33  ;;  %v3936_v38 = vmul.f32 0.11185222, %v7125_v25  ;;  %v3961_v33 = vmul.f32 0.9919984, %v96_v37 }
 0x303   :  { %7012 = vtanh.f32 %v3886_v44  ;;  %v3888_v8 = vadd.f32 %v3887_v46, %v3845_v27  ;;  %4274 = vmatpush1.bf16.msra.mxu0 %v12664_v21  ;;  %v7126_v27 = vld [vmem:[#allocation2 + $0x30] sm:$0xff]  ;;  %v12686_v29 = vld [vmem:[#allocation148_spill] sm:$0xff] }
 0x304   :  { %4275 = vmatprep.subr.bf16.mxu0 %v12665_v16  ;;  %v3928_v46 = vmul.f32 0.11185222, %v7126_v27 }
 0x305   :  { %7014 = vtanh.f32 %v3888_v8  ;;  %v104_v8 = vld [vmem:[#allocation5 + $0x78] sm:$0xff] }
 0x306   :  { %v3969_v25 = vmul.f32 0.9919984, %v104_v8  ;;  %v12691_v8 = vld [vmem:[#allocation154_spill] sm:$0xff] }
 0x307   :  { %4276 = vmatpush1.bf16.msra.mxu0 %v12666_v1  ;;  %v7127_v1 = vld [vmem:[#allocation2 + $0x78] sm:$0xff] }
 0x308   :  { %4277 = vmatprep.subr.bf16.mxu0 %v12667_v50  ;;  %v12671_v50 = vld [vmem:[#allocation229_spill] sm:$0xff]  ;;  %v3937_v16 = vmul.f32 0.11185222, %v7127_v1  ;;  %v12677_v1 = vld [vmem:[#allocation235_spill] sm:$0xff] }
 0x30b   :  { %4278 = vmatpush1.bf16.msra.mxu0 %v12668_v6  ;;  %v95_v6 = vld [vmem:[#allocation5 + $0x30] sm:$0xff] }
 0x30c   :  { %4279 = vmatprep.subr.bf16.mxu0 %v12669_v62  ;;  %v7009_v61 = vpop.eup %7008 }
 0x30d   :  { %v3912_v44 = vmul.f32 0.05782156, %v7009_v61  ;;  %v3960_v61 = vmul.f32 0.9919984, %v95_v6 }
 0x30e   :  { %v7011_v19 = vpop.eup %7010 }
 0x30f   :  { %v3913_v9 = vmul.f32 0.05782156, %v7011_v19  ;;  %4280 = vmatpush1.bf16.msra.mxu0 %v12670_v14  ;;  %v3944_v14 = vadd.f32 %v3928_v46, %v3912_v44  ;;  %v12689_v44 = vld [vmem:[#allocation249_spill] sm:$0xff]  ;;  %v12690_v46 = vld [vmem:[#allocation152_spill] sm:$0xff] }
 0x310   :  { %v7013_v7 = vpop.eup %7012  ;;  %4281 = vmatprep.subr.bf16.mxu0 %v12671_v50 }
 0x311   :  { %v3920_v62 = vmul.f32 0.05782156, %v7013_v7  ;;  %v3945_v19 = vadd.f32 %v3929_v63, %v3913_v9  ;;  %v9216_v37 = vadd.f32 %v3960_v61, %v3944_v14  ;;  %v12684_v63 = vld [vmem:[#allocation243_spill] sm:$0xff]  ;;  %v12685_v9 = vld [vmem:[#allocation245_spill] sm:$0xff]  ;;  %v12695_v61 = vld [vmem:[#allocation158_spill] sm:$0xff] }
 0x312   :  { %v7015_v21 = vpop.eup %7014  ;;  %v12688_v14 = vld [vmem:[#allocation247_spill] sm:$0xff] }
 0x313   :  { %v3952_v55 = vadd.f32 %v3936_v38, %v3920_v62  ;;  %v3921_v35 = vmul.f32 0.05782156, %v7015_v21  ;;  %4282 = vmatpush1.bf16.msra.mxu0 %v12672_v60  ;;  %v9211_v50 = vadd.f32 %v3961_v33, %v3945_v19  ;;  %12678 = vst [vmem:[#allocation235_spill] sm:$0xff] %v9216_v37  ;;  %v12679_v62 = vld [vmem:[#allocation237_spill] sm:$0xff]  ;;  %v12687_v38 = vld [vmem:[#allocation150_spill] sm:$0xff]  ;;  %v12692_v33 = vld [vmem:[#allocation251_spill] sm:$0xff] }
 0x314   :  { %4283 = vmatprep.subr.bf16.mxu0 %v12673_v49  ;;  %v12693_v19 = vld [vmem:[#allocation253_spill] sm:$0xff] }
 0x315   :  { %v3953_v27 = vadd.f32 %v3937_v16, %v3921_v35  ;;  %v9209_v58 = vadd.f32 %v3968_v47, %v3952_v55  ;;  %12675 = vst [vmem:[#allocation534_spill] sm:$0xff] %v9211_v50  ;;  %v12680_v35 = vld [vmem:[#allocation239_spill] sm:$0xff]  ;;  %v12681_v55 = vld [vmem:[#allocation241_spill] sm:$0xff]  ;;  %v12682_v47 = vld [vmem:[#allocation144_spill] sm:$0xff] }
 0x316   :  { %v12683_v16 = vld [vmem:[#allocation146_spill] sm:$0xff] }
 0x317   :  { %12674 = vst [vmem:[#allocation233_spill] sm:$0xff] %v9209_v58  ;;  %v9213_v7 = vadd.f32 %v3969_v25, %v3953_v27  ;;  %4284 = vmatpush1.bf16.msra.mxu0 %v12677_v1  ;;  %v9225_v6 = vpack.c.bf16 %v9209_v58, %v9216_v37  ;;  %v12694_v25 = vld [vmem:[#allocation156_spill] sm:$0xff]  ;;  %v12696_v27 = vld [vmem:[#allocation255_spill] sm:$0xff] }
 0x318   :  { %4285 = vmatprep.subr.bf16.mxu0 %v12679_v62  ;;  %v12704_v58 = vld [vmem:[#allocation263_spill] sm:$0xff] }
 0x319   :  { %12676 = vst [vmem:[#allocation535_spill] sm:$0xff] %v9213_v7  ;;  %v9221_v21 = vpack.c.bf16 %v9213_v7, %v9211_v50  ;;  %v12703_v7 = vld [vmem:[#allocation166_spill] sm:$0xff]  ;;  %v12708_v37 = vld [vmem:[#allocation267_spill] sm:$0xff] }
 0x31a   :  { %v12707_v50 = vld [vmem:[#allocation170_spill] sm:$0xff] }
 0x31b   :  { %4172 = vmatprep.mubr.bf16.mxu1 %v9221_v21  ;;  %4286 = vmatpush2.bf16.msra.mxu0 %v12680_v35  ;;  %v12901_v35 = vld [vmem:[#allocation360_spill] sm:$0xff] }
 0x31c   :  { %4173 = vmatmul.mubr.bf16.vlgmr.msra.gmra.mxu1 %v9225_v6  ;;  %4287 = vmatprep.subr.bf16.mxu0 %v12681_v55 }
 0x31d   :  { %4227 = vmatpush1.bf16.msra.mxu1 %v12682_v47  ;;  %4258 = vmatprep.mubr.bf16.mxu1 %v8994_v17  ;;  %v12700_v47 = vld [vmem:[#allocation259_spill] sm:$0xff] }
 0x31e   :  { %4228 = vmatprep.subr.bf16.mxu1 %v12683_v16  ;;  %v12699_v16 = vld [vmem:[#allocation162_spill] sm:$0xff] }
 0x31f   :  { %4288 = vmatpush2.bf16.msra.mxu0 %v12684_v63 }
 0x320   :  { %4289 = vmatprep.subr.bf16.mxu0 %v12685_v9  ;;  %v12872_v9 = vld [vmem:[#allocation434_spill] sm:$0xff] }
 0x321   :  { %4229 = vmatpush1.bf16.msra.mxu1 %v12686_v29  ;;  %v12697_v29 = vld [vmem:[#allocation257_spill] sm:$0xff] }
 0x322   :  { %4230 = vmatprep.subr.bf16.mxu1 %v12687_v38  ;;  %v12698_v38 = vld [vmem:[#allocation160_spill] sm:$0xff] }
 0x323   :  { %4290 = vmatpush2.bf16.msra.mxu0 %v12688_v14  ;;  %v12723_v14 = vld [vmem:[#allocation186_spill] sm:$0xff] }
 0x324   :  { %4291 = vmatprep.subr.bf16.mxu0 %v12689_v44  ;;  %v12718_v44 = vld [vmem:[#allocation180_spill] sm:$0xff] }
 0x325   :  { %4231 = vmatpush1.bf16.msra.mxu1 %v12690_v46  ;;  %v12701_v46 = vld [vmem:[#allocation261_spill] sm:$0xff] }
 0x326   :  { %4232 = vmatprep.subr.bf16.mxu1 %v12691_v8  ;;  %v12702_v8 = vld [vmem:[#allocation164_spill] sm:$0xff] }
 0x327   :  { %4292 = vmatpush2.bf16.msra.mxu0 %v12692_v33 }
 0x328   :  { %4293 = vmatprep.subr.bf16.mxu0 %v12693_v19  ;;  %v12715_v19 = vld [vmem:[#allocation178_spill] sm:$0xff] }
 0x329   :  { %4233 = vmatpush1.bf16.msra.mxu1 %v12694_v25  ;;  %v12705_v25 = vld [vmem:[#allocation265_spill] sm:$0xff] }
 0x32a   :  { %4234 = vmatprep.subr.bf16.mxu1 %v12695_v61  ;;  %v12706_v61 = vld [vmem:[#allocation168_spill] sm:$0xff] }
 0x32b   :  { %4294 = vmatpush2.bf16.msra.mxu0 %v12696_v27 }
 0x32c   :  { %4295 = vmatprep.subr.bf16.mxu0 %v12697_v29  ;;  %v12712_v29 = vld [vmem:[#allocation271_spill] sm:$0xff] }
 0x32d   :  { %4235 = vmatpush1.bf16.msra.mxu1 %v12698_v38  ;;  %v3995_v38 = vld [vmem:[#allocation7 + $0x100] sm:$0xff] }
 0x32e   :  { %4236 = vmatprep.subr.bf16.mxu1 %v12699_v16  ;;  %v12709_v16 = vld [vmem:[#allocation269_spill] sm:$0xff] }
 0x32f   :  { %4296 = vmatpush2.bf16.msra.mxu0 %v12700_v47  ;;  %v12710_v47 = vld [vmem:[#allocation172_spill] sm:$0xff] }
 0x330   :  { %4297 = vmatprep.subr.bf16.mxu0 %v12701_v46 }
 0x331   :  { %4237 = vmatpush1.bf16.msra.mxu1 %v12702_v8  ;;  %v12711_v8 = vld [vmem:[#allocation174_spill] sm:$0xff] }
 0x332   :  { %4238 = vmatprep.subr.bf16.mxu1 %v12703_v7 }
 0x333   :  { %4298 = vmatpush2.bf16.msra.mxu0 %v12704_v58 }
 0x334   :  { %4299 = vmatprep.subr.bf16.mxu0 %v12705_v25 }
 0x335   :  { %4239 = vmatpush1.bf16.msra.mxu1 %v12706_v61 }
 0x336   :  { %4240 = vmatprep.subr.bf16.mxu1 %v12707_v50  ;;  %v4003_v50 = vld [vmem:[#allocation7 + $0x140] sm:$0xff] }
 0x337   :  { %4300 = vmatpush2.bf16.msra.mxu0 %v12708_v37  ;;  %v12713_v37 = vld [vmem:[#allocation273_spill] sm:$0xff] }
 0x338   :  { %4355 = vmatprep.subr.bf16.mxu0 %v12709_v16 }
 0x339   :  { %4241 = vmatpush1.bf16.msra.mxu1 %v12710_v47  ;;  %v12714_v47 = vld [vmem:[#allocation176_spill] sm:$0xff] }
 0x33a   :  { %v4045_v46 = vpop.f32.mrf.mxu0  ;;  %4302 = vmatmul.mubr.bf16.vlgmr.msra.gmra.mxu0 %v9154_v57  ;;  %4242 = vmatprep.subr.bf16.mxu1 %v12711_v8 }
 0x33b   :  { %v4046_v7 = vadd.f32 %v4045_v46, %v3995_v38  ;;  %v4088_v58 = vpop.f32.mrf.mxu1  ;;  %4356 = vmatpush1.bf16.msra.mxu0 %v12712_v29  ;;  %4387 = vmatprep.mubr.bf16.mxu0 %v8988_v56  ;;  %v12716_v46 = vld [vmem:[#allocation275_spill] sm:$0xff]  ;;  %v12717_v29 = vld [vmem:[#allocation277_spill] sm:$0xff] }
 0x33c   :  { %v9265_v61 = vpop.f32.mrf.mxu0  ;;  %4357 = vmatprep.subr.bf16.mxu0 %v12713_v37  ;;  %v12719_v37 = vld [vmem:[#allocation182_spill] sm:$0xff] }
 0x33d   :  { %v9268_v25 = vadd.f32 %v4088_v58, %v4046_v7  ;;  %v9270_v16 = vpop.f32.mrf.mxu1  ;;  %4243 = vmatpush2.bf16.msra.mxu1 %v12714_v47  ;;  %v12720_v58 = vld [vmem:[#allocation279_spill] sm:$0xff]  ;;  %v12721_v7 = vld [vmem:[#allocation281_spill] sm:$0xff]  ;;  %v12722_v47 = vld [vmem:[#allocation184_spill] sm:$0xff] }
 0x33e   :  { %v4049_v27 = vpop.f32.mrf.mxu0  ;;  %4244 = vmatprep.subr.bf16.mxu1 %v12715_v19  ;;  %v12726_v19 = vld [vmem:[#allocation188_spill] sm:$0xff] }
 0x33f   :  { %v4050_v38 = vadd.f32 %v4049_v27, %v4003_v50  ;;  %4358 = vmatpush1.bf16.msra.mxu0 %v12716_v46  ;;  %v4092_v8 = vpop.f32.mrf.mxu1  ;;  %v12724_v50 = vld [vmem:[#allocation283_spill] sm:$0xff]  ;;  %v12725_v27 = vld [vmem:[#allocation285_spill] sm:$0xff] }
 0x340   :  { %4359 = vmatprep.subr.bf16.mxu0 %v12717_v29  ;;  %v12784_v29 = vld [vmem:[#allocation343_spill] sm:$0xff]  ;;  %v12785_v46 = vld [vmem:[#allocation345_spill] sm:$0xff] }
 0x341   :  { %v9276_v33 = vadd.f32 %v4092_v8, %v4050_v38  ;;  %4245 = vmatpush2.bf16.msra.mxu1 %v12718_v44  ;;  %v12727_v8 = vld [vmem:[#allocation190_spill] sm:$0xff]  ;;  %v12728_v38 = vld [vmem:[#allocation287_spill] sm:$0xff]  ;;  %v12729_v44 = vld [vmem:[#allocation289_spill] sm:$0xff] }
 0x342   :  { %4246 = vmatprep.subr.bf16.mxu1 %v12719_v37  ;;  %v12730_v37 = vld [vmem:[#allocation192_spill] sm:$0xff] }
 0x343   :  { %4360 = vmatpush1.bf16.msra.mxu0 %v12720_v58  ;;  %v12731_v58 = vld [vmem:[#allocation194_spill] sm:$0xff] }
 0x344   :  { %4361 = vmatprep.subr.bf16.mxu0 %v12721_v7  ;;  %v12732_v7 = vld [vmem:[#allocation291_spill] sm:$0xff] }
 0x345   :  { %4247 = vmatpush2.bf16.msra.mxu1 %v12722_v47  ;;  %v12733_v47 = vld [vmem:[#allocation293_spill] sm:$0xff] }
 0x346   :  { %4248 = vmatprep.subr.bf16.mxu1 %v12723_v14  ;;  %v12734_v14 = vld [vmem:[#allocation196_spill] sm:$0xff] }
 0x347   :  { %4362 = vmatpush1.bf16.msra.mxu0 %v12724_v50  ;;  %v12735_v50 = vld [vmem:[#allocation198_spill] sm:$0xff] }
 0x348   :  { %4363 = vmatprep.subr.bf16.mxu0 %v12725_v27  ;;  %v12736_v27 = vld [vmem:[#allocation295_spill] sm:$0xff] }
 0x349   :  { %4249 = vmatpush2.bf16.msra.mxu1 %v12726_v19  ;;  %v12737_v19 = vld [vmem:[#allocation297_spill] sm:$0xff] }
 0x34a   :  { %4250 = vmatprep.subr.bf16.mxu1 %v12727_v8  ;;  %v12738_v8 = vld [vmem:[#allocation200_spill] sm:$0xff] }
 0x34b   :  { %4364 = vmatpush1.bf16.msra.mxu0 %v12728_v38  ;;  %v12739_v38 = vld [vmem:[#allocation202_spill] sm:$0xff] }
 0x34c   :  { %4365 = vmatprep.subr.bf16.mxu0 %v12729_v44  ;;  %v12740_v44 = vld [vmem:[#allocation299_spill] sm:$0xff] }
 0x34d   :  { %4251 = vmatpush2.bf16.msra.mxu1 %v12730_v37  ;;  %v12741_v37 = vld [vmem:[#allocation301_spill] sm:$0xff] }
 0x34e   :  { %4252 = vmatprep.subr.bf16.mxu1 %v12731_v58  ;;  %v12742_v58 = vld [vmem:[#allocation204_spill] sm:$0xff] }
 0x34f   :  { %4366 = vmatpush1.bf16.msra.mxu0 %v12732_v7  ;;  %v12743_v7 = vld [vmem:[#allocation206_spill] sm:$0xff] }
 0x350   :  { %4367 = vmatprep.subr.bf16.mxu0 %v12733_v47  ;;  %v12744_v47 = vld [vmem:[#allocation303_spill] sm:$0xff] }
 0x351   :  { %4253 = vmatpush2.bf16.msra.mxu1 %v12734_v14  ;;  %v12746_v14 = vld [vmem:[#allocation208_spill] sm:$0xff] }
 0x352   :  { %4254 = vmatprep.subr.bf16.mxu1 %v12735_v50  ;;  %v12745_v50 = vld [vmem:[#allocation305_spill] sm:$0xff] }
 0x353   :  { %4368 = vmatpush1.bf16.msra.mxu0 %v12736_v27  ;;  %v12757_v27 = vld [vmem:[#allocation317_spill] sm:$0xff] }
 0x354   :  { %4369 = vmatprep.subr.bf16.mxu0 %v12737_v19  ;;  %v12754_v19 = vld [vmem:[#allocation216_spill] sm:$0xff] }
 0x355   :  { %4255 = vmatpush2.bf16.msra.mxu1 %v12738_v8  ;;  %v12747_v8 = vld [vmem:[#allocation210_spill] sm:$0xff] }
 0x356   :  { %4256 = vmatprep.subr.bf16.mxu1 %v12739_v38  ;;  %v12748_v38 = vld [vmem:[#allocation307_spill] sm:$0xff] }
 0x357   :  { %4370 = vmatpush1.bf16.msra.mxu0 %v12740_v44  ;;  %v12749_v44 = vld [vmem:[#allocation309_spill] sm:$0xff] }
 0x358   :  { %4371 = vmatprep.subr.bf16.mxu0 %v12741_v37  ;;  %v12750_v37 = vld [vmem:[#allocation212_spill] sm:$0xff] }
 0x359   :  { %4257 = vmatpush2.bf16.msra.mxu1 %v12742_v58  ;;  %v12751_v58 = vld [vmem:[#allocation214_spill] sm:$0xff] }
 0x35a   :  { %4312 = vmatprep.subr.bf16.mxu1 %v12743_v7  ;;  %v12752_v7 = vld [vmem:[#allocation311_spill] sm:$0xff] }
 0x35b   :  { %4372 = vmatpush2.bf16.msra.mxu0 %v12744_v47  ;;  %v12753_v47 = vld [vmem:[#allocation313_spill] sm:$0xff] }
 0x35c   :  { %4259 = vmatmul.mubr.bf16.vlgmr.msra.gmra.mxu1 %v8877_v31  ;;  %4373 = vmatprep.subr.bf16.mxu0 %v12745_v50  ;;  %v12755_v50 = vld [vmem:[#allocation218_spill] sm:$0xff] }
 0x35d   :  { %4313 = vmatpush1.bf16.msra.mxu1 %v12746_v14  ;;  %4344 = vmatprep.mubr.bf16.mxu1 %v9221_v21  ;;  %v12756_v14 = vld [vmem:[#allocation315_spill] sm:$0xff] }
 0x35e   :  { %4314 = vmatprep.subr.bf16.mxu1 %v12747_v8  ;;  %v12758_v8 = vld [vmem:[#allocation220_spill] sm:$0xff] }
 0x35f   :  { %4374 = vmatpush2.bf16.msra.mxu0 %v12748_v38  ;;  %v12759_v38 = vld [vmem:[#allocation222_spill] sm:$0xff] }
 0x360   :  { %4375 = vmatprep.subr.bf16.mxu0 %v12749_v44  ;;  %v12760_v44 = vld [vmem:[#allocation319_spill] sm:$0xff] }
 0x361   :  { %4315 = vmatpush1.bf16.msra.mxu1 %v12750_v37  ;;  %v12761_v37 = vld [vmem:[#allocation321_spill] sm:$0xff] }
 0x362   :  { %4316 = vmatprep.subr.bf16.mxu1 %v12751_v58  ;;  %v12762_v58 = vld [vmem:[#allocation224_spill] sm:$0xff] }
 0x363   :  { %4376 = vmatpush2.bf16.msra.mxu0 %v12752_v7  ;;  %v12763_v7 = vld [vmem:[#allocation226_spill] sm:$0xff] }
 0x364   :  { %4377 = vmatprep.subr.bf16.mxu0 %v12753_v47  ;;  %v12764_v47 = vld [vmem:[#allocation323_spill] sm:$0xff] }
 0x365   :  { %4317 = vmatpush1.bf16.msra.mxu1 %v12754_v19  ;;  %v12765_v19 = vld [vmem:[#allocation325_spill] sm:$0xff] }
 0x366   :  { %4318 = vmatprep.subr.bf16.mxu1 %v12755_v50  ;;  %v12766_v50 = vld [vmem:[#allocation228_spill] sm:$0xff] }
 0x367   :  { %4378 = vmatpush2.bf16.msra.mxu0 %v12756_v14  ;;  %v12767_v14 = vld [vmem:[#allocation230_spill] sm:$0xff] }
 0x368   :  { %4379 = vmatprep.subr.bf16.mxu0 %v12757_v27  ;;  %v12768_v27 = vld [vmem:[#allocation327_spill] sm:$0xff] }
 0x369   :  { %4319 = vmatpush1.bf16.msra.mxu1 %v12758_v8  ;;  %v12769_v8 = vld [vmem:[#allocation329_spill] sm:$0xff] }
 0x36a   :  { %4320 = vmatprep.subr.bf16.mxu1 %v12759_v38  ;;  %v12770_v38 = vld [vmem:[#allocation232_spill] sm:$0xff] }
 0x36b   :  { %4380 = vmatpush2.bf16.msra.mxu0 %v12760_v44  ;;  %v12771_v44 = vld [vmem:[#allocation234_spill] sm:$0xff] }
 0x36c   :  { %4381 = vmatprep.subr.bf16.mxu0 %v12761_v37  ;;  %v12772_v37 = vld [vmem:[#allocation331_spill] sm:$0xff] }
 0x36d   :  { %4321 = vmatpush1.bf16.msra.mxu1 %v12762_v58  ;;  %v9335_v58 = vpop.f32.mrf.mxu0 }
 0x36e   :  { %4322 = vmatprep.subr.bf16.mxu1 %v12763_v7  ;;  %v12773_v7 = vld [vmem:[#allocation333_spill] sm:$0xff] }
 0x36f   :  { %4382 = vmatpush2.bf16.msra.mxu0 %v12764_v47  ;;  %v12774_v47 = vld [vmem:[#allocation236_spill] sm:$0xff] }
 0x370   :  { %4383 = vmatprep.subr.bf16.mxu0 %v12765_v19 }
 0x371   :  { %4323 = vmatpush1.bf16.msra.mxu1 %v12766_v50 }
 0x372   :  { %4324 = vmatprep.subr.bf16.mxu1 %v12767_v14  ;;  %v12775_v14 = vld [vmem:[#allocation238_spill] sm:$0xff] }
 0x373   :  { %4384 = vmatpush2.bf16.msra.mxu0 %v12768_v27 }
 0x374   :  { %4385 = vmatprep.subr.bf16.mxu0 %v12769_v8  ;;  %v12776_v8 = vld [vmem:[#allocation335_spill] sm:$0xff] }
 0x375   :  { %4325 = vmatpush1.bf16.msra.mxu1 %v12770_v38  ;;  %v12777_v38 = vld [vmem:[#allocation337_spill] sm:$0xff] }
 0x376   :  { %4326 = vmatprep.subr.bf16.mxu1 %v12771_v44 }
 0x377   :  { %4386 = vmatpush2.bf16.msra.mxu0 %v12772_v37  ;;  %v12778_v37 = vld [vmem:[#allocation240_spill] sm:$0xff] }
 0x378   :  { %4441 = vmatprep.subr.bf16.mxu0 %v12773_v7 }
 0x379   :  { %4327 = vmatpush1.bf16.msra.mxu1 %v12774_v47  ;;  %v12779_v47 = vld [vmem:[#allocation242_spill] sm:$0xff] }
 0x37a   :  { %v4131_v19 = vpop.f32.mrf.mxu0  ;;  %4388 = vmatmul.mubr.bf16.vlgmr.msra.gmra.mxu0 %v12559_v15  ;;  %4328 = vmatprep.subr.bf16.mxu1 %v12775_v14  ;;  %v12780_v14 = vld [vmem:[#allocation339_spill] sm:$0xff] }
 0x37b   :  { %v9342_v50 = vadd.f32 %v4131_v19, %v9268_v25  ;;  %4442 = vmatpush1.bf16.msra.mxu0 %v12776_v8  ;;  %4473 = vmatprep.mubr.bf16.mxu0 %v9114_v48  ;;  %v12781_v19 = vld [vmem:[#allocation341_spill] sm:$0xff]  ;;  %v12782_v25 = vld [vmem:[#allocation244_spill] sm:$0xff]  ;;  %v12783_v8 = vld [vmem:[#allocation246_spill] sm:$0xff] }
 0x37c   :  { %v9346_v44 = vpop.f32.mrf.mxu0  ;;  %4443 = vmatprep.subr.bf16.mxu0 %v12777_v38  ;;  %v12786_v38 = vld [vmem:[#allocation248_spill] sm:$0xff] }
 0x37d   :  { %4329 = vmatpush2.bf16.msra.mxu1 %v12778_v37  ;;  %v12787_v37 = vld [vmem:[#allocation250_spill] sm:$0xff] }
 0x37e   :  { %v4135_v7 = vpop.f32.mrf.mxu0  ;;  %4330 = vmatprep.subr.bf16.mxu1 %v12779_v47  ;;  %v12788_v47 = vld [vmem:[#allocation347_spill] sm:$0xff] }
 0x37f   :  { %v9352_v27 = vadd.f32 %v4135_v7, %v9276_v33  ;;  %4444 = vmatpush1.bf16.msra.mxu0 %v12780_v14  ;;  %v12789_v33 = vld [vmem:[#allocation349_spill] sm:$0xff]  ;;  %v12790_v7 = vld [vmem:[#allocation252_spill] sm:$0xff]  ;;  %v12791_v14 = vld [vmem:[#allocation254_spill] sm:$0xff] }
 0x380   :  { %4445 = vmatprep.subr.bf16.mxu0 %v12781_v19  ;;  %v12792_v19 = vld [vmem:[#allocation351_spill] sm:$0xff] }
 0x381   :  { %4331 = vmatpush2.bf16.msra.mxu1 %v12782_v25  ;;  %v12793_v25 = vld [vmem:[#allocation353_spill] sm:$0xff] }
 0x382   :  { %4332 = vmatprep.subr.bf16.mxu1 %v12783_v8  ;;  %v12794_v8 = vld [vmem:[#allocation256_spill] sm:$0xff] }
 0x383   :  { %4446 = vmatpush1.bf16.msra.mxu0 %v12784_v29  ;;  %v12795_v29 = vld [vmem:[#allocation258_spill] sm:$0xff] }
 0x384   :  { %4447 = vmatprep.subr.bf16.mxu0 %v12785_v46  ;;  %v12796_v46 = vld [vmem:[#allocation355_spill] sm:$0xff] }
 0x385   :  { %4333 = vmatpush2.bf16.msra.mxu1 %v12786_v38  ;;  %v12797_v38 = vld [vmem:[#allocation357_spill] sm:$0xff] }
 0x386   :  { %4334 = vmatprep.subr.bf16.mxu1 %v12787_v37  ;;  %v12798_v37 = vld [vmem:[#allocation260_spill] sm:$0xff] }
 0x387   :  { %4448 = vmatpush1.bf16.msra.mxu0 %v12788_v47  ;;  %v12799_v47 = vld [vmem:[#allocation262_spill] sm:$0xff] }
 0x388   :  { %4449 = vmatprep.subr.bf16.mxu0 %v12789_v33  ;;  %v12800_v33 = vld [vmem:[#allocation359_spill] sm:$0xff] }
 0x389   :  { %4335 = vmatpush2.bf16.msra.mxu1 %v12790_v7  ;;  %v12801_v7 = vld [vmem:[#allocation361_spill] sm:$0xff] }
 0x38a   :  { %4336 = vmatprep.subr.bf16.mxu1 %v12791_v14  ;;  %v12802_v14 = vld [vmem:[#allocation264_spill] sm:$0xff] }
 0x38b   :  { %4450 = vmatpush1.bf16.msra.mxu0 %v12792_v19  ;;  %v12803_v19 = vld [vmem:[#allocation266_spill] sm:$0xff] }
 0x38c   :  { %4451 = vmatprep.subr.bf16.mxu0 %v12793_v25  ;;  %v12804_v25 = vld [vmem:[#allocation363_spill] sm:$0xff] }
 0x38d   :  { %4337 = vmatpush2.bf16.msra.mxu1 %v12794_v8  ;;  %v12805_v8 = vld [vmem:[#allocation365_spill] sm:$0xff] }
 0x38e   :  { %4338 = vmatprep.subr.bf16.mxu1 %v12795_v29  ;;  %v12806_v29 = vld [vmem:[#allocation268_spill] sm:$0xff] }
 0x38f   :  { %4452 = vmatpush1.bf16.msra.mxu0 %v12796_v46  ;;  %v12807_v46 = vld [vmem:[#allocation270_spill] sm:$0xff] }
 0x390   :  { %4453 = vmatprep.subr.bf16.mxu0 %v12797_v38  ;;  %v12808_v38 = vld [vmem:[#allocation369_spill] sm:$0xff] }
 0x391   :  { %4339 = vmatpush2.bf16.msra.mxu1 %v12798_v37  ;;  %v12810_v37 = vld [vmem:[#allocation272_spill] sm:$0xff] }
 0x392   :  { %4340 = vmatprep.subr.bf16.mxu1 %v12799_v47  ;;  %v12809_v47 = vld [vmem:[#allocation372_spill] sm:$0xff] }
 0x393   :  { %4454 = vmatpush1.bf16.msra.mxu0 %v12800_v33  ;;  %v12821_v33 = vld [vmem:[#allocation384_spill] sm:$0xff] }
 0x394   :  { %4455 = vmatprep.subr.bf16.mxu0 %v12801_v7  ;;  %v12818_v7 = vld [vmem:[#allocation280_spill] sm:$0xff] }
 0x395   :  { %4341 = vmatpush2.bf16.msra.mxu1 %v12802_v14  ;;  %v12811_v14 = vld [vmem:[#allocation274_spill] sm:$0xff] }
 0x396   :  { %4342 = vmatprep.subr.bf16.mxu1 %v12803_v19  ;;  %v12812_v19 = vld [vmem:[#allocation374_spill] sm:$0xff] }
 0x397   :  { %4456 = vmatpush1.bf16.msra.mxu0 %v12804_v25  ;;  %v12813_v25 = vld [vmem:[#allocation376_spill] sm:$0xff] }
 0x398   :  { %4457 = vmatprep.subr.bf16.mxu0 %v12805_v8  ;;  %v12814_v8 = vld [vmem:[#allocation276_spill] sm:$0xff] }
 0x399   :  { %4343 = vmatpush2.bf16.msra.mxu1 %v12806_v29  ;;  %v12815_v29 = vld [vmem:[#allocation278_spill] sm:$0xff] }
 0x39a   :  { %4398 = vmatprep.subr.bf16.mxu1 %v12807_v46  ;;  %v12816_v46 = vld [vmem:[#allocation378_spill] sm:$0xff] }
 0x39b   :  { %4458 = vmatpush2.bf16.msra.mxu0 %v12808_v38  ;;  %v12817_v38 = vld [vmem:[#allocation380_spill] sm:$0xff] }
 0x39c   :  { %4345 = vmatmul.mubr.bf16.vlgmr.msra.gmra.mxu1 %v9225_v6  ;;  %4459 = vmatprep.subr.bf16.mxu0 %v12809_v47  ;;  %v12819_v47 = vld [vmem:[#allocation282_spill] sm:$0xff] }
 0x39d   :  { %4399 = vmatpush1.bf16.msra.mxu1 %v12810_v37  ;;  %4430 = vmatprep.mubr.bf16.mxu1 %v8994_v17  ;;  %v12820_v37 = vld [vmem:[#allocation382_spill] sm:$0xff] }
 0x39e   :  { %4400 = vmatprep.subr.bf16.mxu1 %v12811_v14  ;;  %v12822_v14 = vld [vmem:[#allocation284_spill] sm:$0xff] }
 0x39f   :  { %4460 = vmatpush2.bf16.msra.mxu0 %v12812_v19  ;;  %v12823_v19 = vld [vmem:[#allocation286_spill] sm:$0xff] }
 0x3a0   :  { %4461 = vmatprep.subr.bf16.mxu0 %v12813_v25  ;;  %v12824_v25 = vld [vmem:[#allocation386_spill] sm:$0xff] }
 0x3a1   :  { %4401 = vmatpush1.bf16.msra.mxu1 %v12814_v8  ;;  %v12825_v8 = vld [vmem:[#allocation388_spill] sm:$0xff] }
 0x3a2   :  { %4402 = vmatprep.subr.bf16.mxu1 %v12815_v29  ;;  %v12826_v29 = vld [vmem:[#allocation288_spill] sm:$0xff] }
 0x3a3   :  { %4462 = vmatpush2.bf16.msra.mxu0 %v12816_v46  ;;  %v12827_v46 = vld [vmem:[#allocation290_spill] sm:$0xff] }
 0x3a4   :  { %4463 = vmatprep.subr.bf16.mxu0 %v12817_v38  ;;  %v12828_v38 = vld [vmem:[#allocation390_spill] sm:$0xff] }
 0x3a5   :  { %4403 = vmatpush1.bf16.msra.mxu1 %v12818_v7  ;;  %v12829_v7 = vld [vmem:[#allocation392_spill] sm:$0xff] }
 0x3a6   :  { %4404 = vmatprep.subr.bf16.mxu1 %v12819_v47  ;;  %v12830_v47 = vld [vmem:[#allocation292_spill] sm:$0xff] }
 0x3a7   :  { %4464 = vmatpush2.bf16.msra.mxu0 %v12820_v37  ;;  %v12831_v37 = vld [vmem:[#allocation294_spill] sm:$0xff] }
 0x3a8   :  { %4465 = vmatprep.subr.bf16.mxu0 %v12821_v33  ;;  %v12832_v33 = vld [vmem:[#allocation394_spill] sm:$0xff] }
 0x3a9   :  { %4405 = vmatpush1.bf16.msra.mxu1 %v12822_v14  ;;  %v12833_v14 = vld [vmem:[#allocation396_spill] sm:$0xff] }
 0x3aa   :  { %4406 = vmatprep.subr.bf16.mxu1 %v12823_v19  ;;  %v12834_v19 = vld [vmem:[#allocation296_spill] sm:$0xff] }
 0x3ab   :  { %4466 = vmatpush2.bf16.msra.mxu0 %v12824_v25  ;;  %v12835_v25 = vld [vmem:[#allocation298_spill] sm:$0xff] }
 0x3ac   :  { %4467 = vmatprep.subr.bf16.mxu0 %v12825_v8  ;;  %v12836_v8 = vld [vmem:[#allocation398_spill] sm:$0xff] }
 0x3ad   :  { %4407 = vmatpush1.bf16.msra.mxu1 %v12826_v29  ;;  %v12837_v29 = vld [vmem:[#allocation400_spill] sm:$0xff] }
 0x3ae   :  { %4408 = vmatprep.subr.bf16.mxu1 %v12827_v46  ;;  %v12838_v46 = vld [vmem:[#allocation300_spill] sm:$0xff] }
 0x3af   :  { %4468 = vmatpush2.bf16.msra.mxu0 %v12828_v38  ;;  %v12869_v38 = vld [vmem:[#allocation432_spill] sm:$0xff] }
 0x3b0   :  { %4469 = vmatprep.subr.bf16.mxu0 %v12829_v7  ;;  %v12839_v7 = vld [vmem:[#allocation302_spill] sm:$0xff] }
 0x3b1   :  { %4409 = vmatpush1.bf16.msra.mxu1 %v12830_v47  ;;  %v12840_v47 = vld [vmem:[#allocation402_spill] sm:$0xff] }
 0x3b2   :  { %4410 = vmatprep.subr.bf16.mxu1 %v12831_v37  ;;  %v12841_v37 = vld [vmem:[#allocation404_spill] sm:$0xff] }
 0x3b3   :  { %4470 = vmatpush2.bf16.msra.mxu0 %v12832_v33  ;;  %v12848_v33 = vld [vmem:[#allocation410_spill] sm:$0xff] }
 0x3b4   :  { %4471 = vmatprep.subr.bf16.mxu0 %v12833_v14  ;;  %v12842_v14 = vld [vmem:[#allocation304_spill] sm:$0xff] }
 0x3b5   :  { %4411 = vmatpush1.bf16.msra.mxu1 %v12834_v19  ;;  %v12843_v19 = vld [vmem:[#allocation306_spill] sm:$0xff] }
 0x3b6   :  { %4412 = vmatprep.subr.bf16.mxu1 %v12835_v25  ;;  %v12844_v25 = vld [vmem:[#allocation406_spill] sm:$0xff] }
 0x3b7   :  { %4472 = vmatpush2.bf16.msra.mxu0 %v12836_v8  ;;  %v12845_v8 = vld [vmem:[#allocation408_spill] sm:$0xff] }
 0x3b8   :  { %4527 = vmatprep.subr.bf16.mxu0 %v12837_v29  ;;  %v12846_v29 = vld [vmem:[#allocation308_spill] sm:$0xff] }
 0x3b9   :  { %4413 = vmatpush1.bf16.msra.mxu1 %v12838_v46  ;;  %v12847_v46 = vld [vmem:[#allocation310_spill] sm:$0xff] }
 0x3ba   :  { %4474 = vmatmul.mubr.bf16.vlgmr.msra.gmra.mxu0 %v9154_v57  ;;  %4414 = vmatprep.subr.bf16.mxu1 %v12839_v7  ;;  %v12849_v7 = vld [vmem:[#allocation412_spill] sm:$0xff] }
 0x3bb   :  { %4528 = vmatpush1.bf16.msra.mxu0 %v12840_v47  ;;  %4559 = vmatprep.mubr.bf16.mxu0 %v8988_v56  ;;  %v12850_v47 = vld [vmem:[#allocation312_spill] sm:$0xff]  ;;  %v12851_v56 = vld [vmem:[#allocation314_spill] sm:$0xff] }
 0x3bc   :  { %4529 = vmatprep.subr.bf16.mxu0 %v12841_v37  ;;  %v12852_v37 = vld [vmem:[#allocation414_spill] sm:$0xff] }
 0x3bd   :  { %4415 = vmatpush2.bf16.msra.mxu1 %v12842_v14  ;;  %v12853_v14 = vld [vmem:[#allocation416_spill] sm:$0xff] }
 0x3be   :  { %4416 = vmatprep.subr.bf16.mxu1 %v12843_v19  ;;  %v12854_v19 = vld [vmem:[#allocation316_spill] sm:$0xff] }
 0x3bf   :  { %4530 = vmatpush1.bf16.msra.mxu0 %v12844_v25  ;;  %v12855_v25 = vld [vmem:[#allocation318_spill] sm:$0xff] }
 0x3c0   :  { %4531 = vmatprep.subr.bf16.mxu0 %v12845_v8  ;;  %v12856_v8 = vld [vmem:[#allocation418_spill] sm:$0xff] }
 0x3c1   :  { %4417 = vmatpush2.bf16.msra.mxu1 %v12846_v29  ;;  %v12857_v29 = vld [vmem:[#allocation420_spill] sm:$0xff] }
 0x3c2   :  { %4418 = vmatprep.subr.bf16.mxu1 %v12847_v46  ;;  %v12858_v46 = vld [vmem:[#allocation320_spill] sm:$0xff] }
 0x3c3   :  { %4532 = vmatpush1.bf16.msra.mxu0 %v12848_v33  ;;  %v12859_v33 = vld [vmem:[#allocation322_spill] sm:$0xff] }
 0x3c4   :  { %4533 = vmatprep.subr.bf16.mxu0 %v12849_v7  ;;  %v12860_v7 = vld [vmem:[#allocation422_spill] sm:$0xff] }
 0x3c5   :  { %4419 = vmatpush2.bf16.msra.mxu1 %v12850_v47  ;;  %v12861_v47 = vld [vmem:[#allocation424_spill] sm:$0xff] }
 0x3c6   :  { %4420 = vmatprep.subr.bf16.mxu1 %v12851_v56  ;;  %v12862_v56 = vld [vmem:[#allocation324_spill] sm:$0xff] }
 0x3c7   :  { %4534 = vmatpush1.bf16.msra.mxu0 %v12852_v37  ;;  %v12863_v37 = vld [vmem:[#allocation326_spill] sm:$0xff] }
 0x3c8   :  { %4535 = vmatprep.subr.bf16.mxu0 %v12853_v14  ;;  %v12864_v14 = vld [vmem:[#allocation426_spill] sm:$0xff] }
 0x3c9   :  { %4421 = vmatpush2.bf16.msra.mxu1 %v12854_v19  ;;  %v3996_v19 = vld [vmem:[#allocation7 + $0x108] sm:$0xff] }
 0x3ca   :  { %4422 = vmatprep.subr.bf16.mxu1 %v12855_v25  ;;  %v12865_v25 = vld [vmem:[#allocation428_spill] sm:$0xff] }
 0x3cb   :  { %4536 = vmatpush1.bf16.msra.mxu0 %v12856_v8  ;;  %v12866_v8 = vld [vmem:[#allocation328_spill] sm:$0xff] }
 0x3cc   :  { %4537 = vmatprep.subr.bf16.mxu0 %v12857_v29  ;;  %v12867_v29 = vld [vmem:[#allocation330_spill] sm:$0xff] }
 0x3cd   :  { %4423 = vmatpush2.bf16.msra.mxu1 %v12858_v46  ;;  %v4048_v46 = vadd.f32 %v9265_v61, %v3996_v19  ;;  %v12873_v61 = vld [vmem:[#allocation436_spill] sm:$0xff] }
 0x3ce   :  { %4424 = vmatprep.subr.bf16.mxu1 %v12859_v33  ;;  %v12868_v33 = vld [vmem:[#allocation430_spill] sm:$0xff] }
 0x3cf   :  { %4538 = vmatpush1.bf16.msra.mxu0 %v12860_v7  ;;  %v4004_v7 = vld [vmem:[#allocation7 + $0x148] sm:$0xff] }
 0x3d0   :  { %4539 = vmatprep.subr.bf16.mxu0 %v12861_v47  ;;  %v12870_v47 = vld [vmem:[#allocation332_spill] sm:$0xff] }
 0x3d1   :  { %4425 = vmatpush2.bf16.msra.mxu1 %v12862_v56  ;;  %v4094_v56 = vpop.f32.mrf.mxu1 }
 0x3d2   :  { %4426 = vmatprep.subr.bf16.mxu1 %v12863_v37  ;;  %v12871_v37 = vld [vmem:[#allocation334_spill] sm:$0xff] }
 0x3d3   :  { %4540 = vmatpush1.bf16.msra.mxu0 %v12864_v14  ;;  %v4091_v14 = vadd.f32 %v9270_v16, %v4048_v46  ;;  %v12875_v16 = vld [vmem:[#allocation338_spill] sm:$0xff] }
 0x3d4   :  { %4541 = vmatprep.subr.bf16.mxu0 %v12865_v25  ;;  %v4052_v25 = vadd.f32 %v9335_v58, %v4004_v7  ;;  %v12876_v7 = vld [vmem:[#allocation438_spill] sm:$0xff] }
 0x3d5   :  { %4427 = vmatpush2.bf16.msra.mxu1 %v12866_v8  ;;  %v4134_v19 = vadd.f32 %v9346_v44, %v4091_v14  ;;  %v12878_v14 = vld [vmem:[#allocation340_spill] sm:$0xff] }
 0x3d6   :  { %4428 = vmatprep.subr.bf16.mxu1 %v12867_v29  ;;  %v4095_v46 = vadd.f32 %v4094_v56, %v4052_v25  ;;  %v12883_v25 = vld [vmem:[#allocation346_spill] sm:$0xff]  ;;  %v12885_v56 = vld [vmem:[#allocation448_spill] sm:$0xff] }
 0x3d7   :  { %4542 = vmatpush1.bf16.msra.mxu0 %v12868_v33  ;;  %v12877_v33 = vld [vmem:[#allocation440_spill] sm:$0xff] }
 0x3d8   :  { %4543 = vmatprep.subr.bf16.mxu0 %v12869_v38  ;;  %v12874_v38 = vld [vmem:[#allocation336_spill] sm:$0xff] }
 0x3d9   :  { %4429 = vmatpush2.bf16.msra.mxu1 %v12870_v47 }
 0x3da   :  { %4484 = vmatprep.subr.bf16.mxu1 %v12871_v37  ;;  %v4137_v37 = vpop.f32.mrf.mxu0 }
 0x3db   :  { %4544 = vmatpush2.bf16.msra.mxu0 %v12872_v9 }
 0x3dc   :  { %4431 = vmatmul.mubr.bf16.vlgmr.msra.gmra.mxu1 %v8877_v31  ;;  %v4174_v29 = vpop.f32.mrf.mxu1  ;;  %4545 = vmatprep.subr.bf16.mxu0 %v12873_v61  ;;  %v4138_v61 = vadd.f32 %v4137_v37, %v4095_v46  ;;  %v12884_v37 = vld [vmem:[#allocation446_spill] sm:$0xff]  ;;  %v12889_v46 = vld [vmem:[#allocation452_spill] sm:$0xff] }
 0x3dd   :  { %v4175_v8 = vadd.f32 %v4174_v29, %v9342_v50  ;;  %4485 = vmatpush1.bf16.msra.mxu1 %v12874_v38  ;;  %4516 = vmatprep.mubr.bf16.mxu1 %v9221_v21  ;;  %v12879_v50 = vld [vmem:[#allocation342_spill] sm:$0xff] }
 0x3de   :  { %v4176_v47 = vpop.f32.mrf.mxu1  ;;  %4486 = vmatprep.subr.bf16.mxu1 %v12875_v16  ;;  %v12880_v16 = vld [vmem:[#allocation442_spill] sm:$0xff] }
 0x3df   :  { %7016 = vtanh.f32 %v4175_v8  ;;  %v4177_v58 = vadd.f32 %v4176_v47, %v4134_v19  ;;  %4546 = vmatpush2.bf16.msra.mxu0 %v12876_v7  ;;  %v12881_v8 = vld [vmem:[#allocation444_spill] sm:$0xff]  ;;  %v12888_v19 = vld [vmem:[#allocation450_spill] sm:$0xff] }
 0x3e0   :  { %v4178_v9 = vpop.f32.mrf.mxu1  ;;  %4547 = vmatprep.subr.bf16.mxu0 %v12877_v33  ;;  %v12882_v47 = vld [vmem:[#allocation344_spill] sm:$0xff] }
 0x3e1   :  { %7018 = vtanh.f32 %v4177_v58  ;;  %v4179_v29 = vadd.f32 %v4178_v9, %v9352_v27  ;;  %4487 = vmatpush1.bf16.msra.mxu1 %v12878_v14  ;;  %v12886_v9 = vld [vmem:[#allocation348_spill] sm:$0xff]  ;;  %v12887_v27 = vld [vmem:[#allocation350_spill] sm:$0xff] }
 0x3e2   :  { %v4180_v44 = vpop.f32.mrf.mxu1  ;;  %4488 = vmatprep.subr.bf16.mxu1 %v12879_v50 }
 0x3e3   :  { %7020 = vtanh.f32 %v4179_v29  ;;  %v4181_v38 = vadd.f32 %v4180_v44, %v4138_v61  ;;  %4548 = vmatpush2.bf16.msra.mxu0 %v12880_v16  ;;  %v12890_v29 = vld [vmem:[#allocation366_spill] sm:$0xff]  ;;  %v12891_v44 = vld [vmem:[#allocation352_spill] sm:$0xff] }
 0x3e4   :  { %4549 = vmatprep.subr.bf16.mxu0 %v12881_v8  ;;  %v12895_v8 = vld [vmem:[#allocation456_spill] sm:$0xff] }
 0x3e5   :  { %7022 = vtanh.f32 %v4181_v38  ;;  %4489 = vmatpush1.bf16.msra.mxu1 %v12882_v47  ;;  %v4731_v38 = vmul.f32 0.19300087, %v12890_v29  ;;  %v7129_v29 = vld [vmem:[#allocation5 + $0x40] sm:$0xff] }
 0x3e6   :  { %4490 = vmatprep.subr.bf16.mxu1 %v12883_v25  ;;  %v12892_v25 = vld [vmem:[#allocation354_spill] sm:$0xff]  ;;  %v4771_v33 = vmul.f32 0.9403203, %v7129_v29 }
 0x3e7   :  { %4550 = vmatpush2.bf16.msra.mxu0 %v12884_v37  ;;  %v12894_v37 = vld [vmem:[#allocation367_spill] sm:$0xff] }
 0x3e8   :  { %4551 = vmatprep.subr.bf16.mxu0 %v12885_v56  ;;  %v12893_v56 = vld [vmem:[#allocation454_spill] sm:$0xff] }
 0x3e9   :  { %4491 = vmatpush1.bf16.msra.mxu1 %v12886_v9 }
 0x3ea   :  { %4492 = vmatprep.subr.bf16.mxu1 %v12887_v27  ;;  %v4732_v27 = vmul.f32 0.19300087, %v8978_v13 }
 0x3eb   :  { %4552 = vmatpush2.bf16.msra.mxu0 %v12888_v19  ;;  %v4739_v19 = vmul.f32 0.19300087, %v12894_v37  ;;  %v7131_v37 = vld [vmem:[#allocation5 + $0x48] sm:$0xff] }
 0x3ec   :  { %v7017_v61 = vpop.eup %7016  ;;  %4553 = vmatprep.subr.bf16.mxu0 %v12889_v46  ;;  %v7128_v46 = vld [vmem:[#allocation5] sm:$0xff]  ;;  %v4772_v55 = vmul.f32 0.9403203, %v7131_v37  ;;  %v12918_v37 = vld [vmem:[#allocation476_spill] sm:$0xff] }
 0x3ed   :  { %v4715_v58 = vmul.f32 0.26919085, %v7017_v61  ;;  %4493 = vmatpush1.bf16.msra.mxu1 %v12891_v44  ;;  %v4763_v61 = vmul.f32 0.9403203, %v7128_v46  ;;  %v12896_v44 = vld [vmem:[#allocation356_spill] sm:$0xff] }
 0x3ee   :  { %v7019_v47 = vpop.eup %7018  ;;  %4494 = vmatprep.subr.bf16.mxu1 %v12892_v25  ;;  %v7130_v25 = vld [vmem:[#allocation5 + $0x8] sm:$0xff] }
 0x3ef   :  { %v4747_v50 = vadd.f32 %v4731_v38, %v4715_v58  ;;  %v4716_v14 = vmul.f32 0.26919085, %v7019_v47  ;;  %4554 = vmatpush2.bf16.msra.mxu0 %v12893_v56  ;;  %v4764_v58 = vmul.f32 0.9403203, %v7130_v25  ;;  %v4740_v47 = vmul.f32 0.19300087, %v8973_v59 }
 0x3f0   :  { %v7021_v9 = vpop.eup %7020  ;;  %4555 = vmatprep.subr.bf16.mxu0 %v12895_v8  ;;  %v12897_v38 = vld [vmem:[#allocation358_spill] sm:$0xff]  ;;  %v12899_v46 = vld [vmem:[#allocation460_spill] sm:$0xff] }
 0x3f1   :  { %v4723_v16 = vmul.f32 0.26919085, %v7021_v9  ;;  %4495 = vmatpush1.bf16.msra.mxu1 %v12896_v44  ;;  %v4748_v56 = vadd.f32 %v4732_v27, %v4716_v14  ;;  %v12898_v8 = vld [vmem:[#allocation458_spill] sm:$0xff]  ;;  %v9488_v9 = vadd.f32 %v4763_v61, %v4747_v50  ;;  %v12906_v27 = vld [vmem:[#allocation464_spill] sm:$0xff] }
 0x3f2   :  { %v7023_v7 = vpop.eup %7022  ;;  %4496 = vmatprep.subr.bf16.mxu1 %v12897_v38  ;;  %v12902_v25 = vld [vmem:[#allocation362_spill] sm:$0xff]  ;;  %v12907_v50 = vld [vmem:[#allocation364_spill] sm:$0xff]  ;;  %v12927_v38 = vld [vmem:[#allocation387_spill] sm:$0xff] }
 0x3f3   :  { %v4755_v13 = vadd.f32 %v4739_v19, %v4723_v16  ;;  %v4724_v63 = vmul.f32 0.26919085, %v7023_v7  ;;  %4556 = vmatpush2.bf16.msra.mxu0 %v12898_v8  ;;  %v9494_v59 = vadd.f32 %v4764_v58, %v4748_v56  ;;  %v12905_v16 = vld [vmem:[#allocation462_spill] sm:$0xff]  ;;  %v12910_v56 = vld [vmem:[#allocation468_spill] sm:$0xff]  ;;  %v12911_v19 = vld [vmem:[#allocation371_spill] sm:$0xff] }
 0x3f4   :  { %4557 = vmatprep.subr.bf16.mxu0 %v12899_v46  ;;  %v12913_v61 = vld [vmem:[#allocation470_spill] sm:$0xff]  ;;  %v12914_v58 = vld [vmem:[#allocation472_spill] sm:$0xff] }
 0x3f5   :  { %v9490_v29 = vadd.f32 %v4771_v33, %v4755_v13  ;;  %v4756_v44 = vadd.f32 %v4740_v47, %v4724_v63  ;;  %4497 = vmatpush1.bf16.msra.mxu1 %v12901_v35  ;;  %12903 = vst [vmem:[#allocation366_spill] sm:$0xff] %v9494_v59  ;;  %v12908_v33 = vld [vmem:[#allocation368_spill] sm:$0xff]  ;;  %v12915_v47 = vld [vmem:[#allocation375_spill] sm:$0xff]  ;;  %v12916_v13 = vld [vmem:[#allocation377_spill] sm:$0xff] }
 0x3f6   :  { %4498 = vmatprep.subr.bf16.mxu1 %v12902_v25  ;;  %v12924_v25 = vld [vmem:[#allocation385_spill] sm:$0xff]  ;;  %v12925_v35 = vld [vmem:[#allocation482_spill] sm:$0xff] }
 0x3f7   :  { %12900 = vst [vmem:[#allocation237_spill] sm:$0xff] %v9490_v29  ;;  %v9496_v14 = vadd.f32 %v4772_v55, %v4756_v44  ;;  %4558 = vmatpush2.bf16.msra.mxu0 %v12905_v16  ;;  %v9501_v7 = vpack.c.bf16 %v9490_v29, %v9488_v9  ;;  %v12909_v55 = vld [vmem:[#allocation466_spill] sm:$0xff]  ;;  %v12912_v44 = vld [vmem:[#allocation373_spill] sm:$0xff]  ;;  %v12930_v29 = vld [vmem:[#allocation488_spill] sm:$0xff] }
 0x3f8   :  { %4613 = vmatprep.subr.bf16.mxu0 %v12906_v27 }
 0x3f9   :  { %12904 = vst [vmem:[#allocation367_spill] sm:$0xff] %v9496_v14  ;;  %4499 = vmatpush1.bf16.msra.mxu1 %v12907_v50  ;;  %v9507_v63 = vpack.c.bf16 %v9496_v14, %v9494_v59  ;;  %v12921_v50 = vld [vmem:[#allocation478_spill] sm:$0xff]  ;;  %v12928_v14 = vld [vmem:[#allocation389_spill] sm:$0xff]  ;;  %v12931_v59 = vld [vmem:[#allocation391_spill] sm:$0xff] }
 0x3fa   :  { %4560 = vmatmul.mubr.bf16.vlgmr.msra.gmra.mxu0 %v12559_v15  ;;  %4500 = vmatprep.subr.bf16.mxu1 %v12908_v33  ;;  %v12917_v15 = vld [vmem:[#allocation474_spill] sm:$0xff]  ;;  %v12919_v33 = vld [vmem:[#allocation379_spill] sm:$0xff] }
 0x3fb   :  { %4614 = vmatpush1.bf16.msra.mxu0 %v12909_v55  ;;  %4645 = vmatprep.mubr.bf16.mxu0 %v9114_v48  ;;  %v12920_v48 = vld [vmem:[#allocation381_spill] sm:$0xff] }
 0x3fc   :  { %4615 = vmatprep.subr.bf16.mxu0 %v12910_v56 }
 0x3fd   :  { %4501 = vmatpush2.bf16.msra.mxu1 %v12911_v19  ;;  %v12922_v19 = vld [vmem:[#allocation480_spill] sm:$0xff] }
 0x3fe   :  { %4502 = vmatprep.subr.bf16.mxu1 %v12912_v44  ;;  %v12923_v44 = vld [vmem:[#allocation383_spill] sm:$0xff] }
 0x3ff   :  { %4616 = vmatpush1.bf16.msra.mxu0 %v12913_v61 }
 0x400   :  { %4617 = vmatprep.subr.bf16.mxu0 %v12914_v58 }
 0x401   :  { %4503 = vmatpush2.bf16.msra.mxu1 %v12915_v47  ;;  %v4217_v47 = vpop.f32.mrf.mxu0 }
 0x402   :  { %4504 = vmatprep.subr.bf16.mxu1 %v12916_v13  ;;  %v12926_v13 = vld [vmem:[#allocation484_spill] sm:$0xff] }
 0x403   :  { %4618 = vmatpush1.bf16.msra.mxu0 %v12917_v15 }
 0x404   :  { %4619 = vmatprep.subr.bf16.mxu0 %v12918_v37 }
 0x405   :  { %4505 = vmatpush2.bf16.msra.mxu1 %v12919_v33  ;;  %v12929_v33 = vld [vmem:[#allocation486_spill] sm:$0xff] }
 0x406   :  { %4506 = vmatprep.subr.bf16.mxu1 %v12920_v48  ;;  %v9533_v48 = vpop.f32.mrf.mxu0 }
 0x407   :  { %4620 = vmatpush1.bf16.msra.mxu0 %v12921_v50 }
 0x408   :  { %4621 = vmatprep.subr.bf16.mxu0 %v12922_v19 }
 0x409   :  { %4507 = vmatpush2.bf16.msra.mxu1 %v12923_v44  ;;  %v12932_v44 = vld [vmem:[#allocation393_spill] sm:$0xff] }
 0x40a   :  { %4508 = vmatprep.subr.bf16.mxu1 %v12924_v25  ;;  %v4221_v25 = vpop.f32.mrf.mxu0 }
 0x40b   :  { %4622 = vmatpush1.bf16.msra.mxu0 %v12925_v35 }
 0x40c   :  { %4623 = vmatprep.subr.bf16.mxu0 %v12926_v13  ;;  %v12933_v13 = vld [vmem:[#allocation395_spill] sm:$0xff] }
 0x40d   :  { %4509 = vmatpush2.bf16.msra.mxu1 %v12927_v38  ;;  %v12934_v38 = vld [vmem:[#allocation397_spill] sm:$0xff] }
 0x40e   :  { %4510 = vmatprep.subr.bf16.mxu1 %v12928_v14  ;;  %v3997_v14 = vld [vmem:[#allocation7 + $0x110] sm:$0xff] }
 0x40f   :  { %4624 = vmatpush1.bf16.msra.mxu0 %v12929_v33  ;;  %v9543_v33 = vpop.f32.mrf.mxu0 }
 0x410   :  { %4625 = vmatprep.subr.bf16.mxu0 %v12930_v29  ;;  %v12935_v29 = vld [vmem:[#allocation399_spill] sm:$0xff] }
 0x411   :  { %4511 = vmatpush2.bf16.msra.mxu1 %v12931_v59  ;;  %v4303_v59 = vpop.f32.mrf.mxu0 }
 0x412   :  { %4512 = vmatprep.subr.bf16.mxu1 %v12932_v44  ;;  %v12936_v44 = vld [vmem:[#allocation401_spill] sm:$0xff] }
 0x413   :  { %4626 = vmatpush1.bf16.msra.mxu0 %v8837_v22  ;;  %v4218_v22 = vadd.f32 %v4217_v47, %v3997_v14 }
 0x414   :  { %4627 = vmatprep.subr.bf16.mxu0 %v8843_v43  ;;  %v4005_v43 = vld [vmem:[#allocation7 + $0x150] sm:$0xff] }
 0x415   :  { %4513 = vmatpush2.bf16.msra.mxu1 %v12933_v13  ;;  %v12937_v13 = vld [vmem:[#allocation403_spill] sm:$0xff]  ;;  %v4222_v14 = vadd.f32 %v4221_v25, %v4005_v43  ;;  %v12942_v25 = vld [vmem:[#allocation413_spill] sm:$0xff] }
 0x416   :  { %4514 = vmatprep.subr.bf16.mxu1 %v12934_v38  ;;  %v12941_v43 = vld [vmem:[#allocation411_spill] sm:$0xff] }
 0x417   :  { %4628 = vmatpush1.bf16.msra.mxu0 %v8852_v12  ;;  %v12938_v12 = vld [vmem:[#allocation405_spill] sm:$0xff] }
 0x418   :  { %4629 = vmatprep.subr.bf16.mxu0 %v8859_v51  ;;  %v9553_v51 = vpop.f32.mrf.mxu0 }
 0x419   :  { %4515 = vmatpush2.bf16.msra.mxu1 %v12935_v29 }
 0x41a   :  { %4570 = vmatprep.subr.bf16.mxu1 %v12936_v44 }
 0x41b   :  { %4630 = vmatpush2.bf16.msra.mxu0 %v8873_v45 }
 0x41c   :  { %v4260_v35 = vpop.f32.mrf.mxu1  ;;  %4517 = vmatmul.mubr.bf16.vlgmr.msra.gmra.mxu1 %v9225_v6  ;;  %4631 = vmatprep.subr.bf16.mxu0 %v8884_v2 }
 0x41d   :  { %v4261_v38 = vadd.f32 %v4260_v35, %v4218_v22  ;;  %4571 = vmatpush1.bf16.msra.mxu1 %v12937_v13  ;;  %4602 = vmatprep.mubr.bf16.mxu1 %v8994_v17  ;;  %v12939_v22 = vld [vmem:[#allocation407_spill] sm:$0xff]  ;;  %v4307_v35 = vpop.f32.mrf.mxu0  ;;  %v12940_v13 = vld [vmem:[#allocation409_spill] sm:$0xff] }
 0x41e   :  { %v9555_v29 = vpop.f32.mrf.mxu1  ;;  %4572 = vmatprep.subr.bf16.mxu1 %v12938_v12 }
 0x41f   :  { %4632 = vmatpush2.bf16.msra.mxu0 %v8892_v52  ;;  %v9559_v47 = vadd.f32 %v4303_v59, %v4261_v38  ;;  %v12943_v38 = vld [vmem:[#allocation415_spill] sm:$0xff]  ;;  %v12944_v59 = vld [vmem:[#allocation417_spill] sm:$0xff] }
 0x420   :  { %v4264_v44 = vpop.f32.mrf.mxu1  ;;  %4633 = vmatprep.subr.bf16.mxu0 %v8899_v39 }
 0x421   :  { %v4265_v2 = vadd.f32 %v4264_v44, %v4222_v14  ;;  %4573 = vmatpush1.bf16.msra.mxu1 %v12939_v22  ;;  %v12945_v44 = vld [vmem:[#allocation515_spill] sm:$0xff]  ;;  %v12946_v14 = vld [vmem:[#allocation517_spill] sm:$0xff] }
 0x422   :  { %4574 = vmatprep.subr.bf16.mxu1 %v12940_v13  ;;  %v12949_v13 = vld [vmem:[#allocation519_spill] sm:$0xff]  ;;  %v12952_v22 = vld [vmem:[#allocation425_spill] sm:$0xff] }
 0x423   :  { %4634 = vmatpush2.bf16.msra.mxu0 %v8906_v4  ;;  %v9565_v17 = vadd.f32 %v4307_v35, %v4265_v2  ;;  %v12947_v2 = vld [vmem:[#allocation419_spill] sm:$0xff]  ;;  %v12948_v35 = vld [vmem:[#allocation421_spill] sm:$0xff] }
 0x424   :  { %4635 = vmatprep.subr.bf16.mxu0 %v8912_v11 }
 0x425   :  { %4575 = vmatpush1.bf16.msra.mxu1 %v12941_v43  ;;  %v12950_v43 = vld [vmem:[#allocation521_spill] sm:$0xff] }
 0x426   :  { %4576 = vmatprep.subr.bf16.mxu1 %v12942_v25  ;;  %v12951_v25 = vld [vmem:[#allocation423_spill] sm:$0xff] }
 0x427   :  { %4636 = vmatpush2.bf16.msra.mxu0 %v8918_v32 }
 0x428   :  { %4637 = vmatprep.subr.bf16.mxu0 %v8924_v24 }
 0x429   :  { %4577 = vmatpush1.bf16.msra.mxu1 %v12943_v38  ;;  %v12954_v38 = vld [vmem:[#allocation429_spill] sm:$0xff] }
 0x42a   :  { %4578 = vmatprep.subr.bf16.mxu1 %v12944_v59  ;;  %v12953_v59 = vld [vmem:[#allocation427_spill] sm:$0xff] }
 0x42b   :  { %4638 = vmatpush2.bf16.msra.mxu0 %v12945_v44 }
 0x42c   :  { %4639 = vmatprep.subr.bf16.mxu0 %v12946_v14 }
 0x42d   :  { %4579 = vmatpush1.bf16.msra.mxu1 %v12947_v2  ;;  %v12956_v2 = vld [vmem:[#allocation433_spill] sm:$0xff] }
 0x42e   :  { %4580 = vmatprep.subr.bf16.mxu1 %v12948_v35  ;;  %v12955_v35 = vld [vmem:[#allocation431_spill] sm:$0xff] }
 0x42f   :  { %4640 = vmatpush2.bf16.msra.mxu0 %v12949_v13 }
 0x430   :  { %4641 = vmatprep.subr.bf16.mxu0 %v12950_v43 }
 0x431   :  { %4581 = vmatpush1.bf16.msra.mxu1 %v12951_v25  ;;  %v12970_v25 = vld [vmem:[#allocation459_spill] sm:$0xff] }
 0x432   :  { %4582 = vmatprep.subr.bf16.mxu1 %v12952_v22  ;;  %v12957_v22 = vld [vmem:[#allocation435_spill] sm:$0xff] }
 0x433   :  { %4642 = vmatpush2.bf16.msra.mxu0 %v8954_v53 }
 0x434   :  { %4643 = vmatprep.subr.bf16.mxu0 %v8960_v40 }
 0x435   :  { %4583 = vmatpush1.bf16.msra.mxu1 %v12953_v59  ;;  %v12958_v59 = vld [vmem:[#allocation437_spill] sm:$0xff] }
 0x436   :  { %4584 = vmatprep.subr.bf16.mxu1 %v12954_v38  ;;  %v12959_v38 = vld [vmem:[#allocation439_spill] sm:$0xff] }
 0x437   :  { %4644 = vmatpush2.bf16.msra.mxu0 %v8966_v30 }
 0x438   :  { %4820 = vmatprep.subr.bf16.mxu0 %v7323_v3 }
 0x439   :  { %4585 = vmatpush1.bf16.msra.mxu1 %v12955_v35  ;;  %v12960_v35 = vld [vmem:[#allocation441_spill] sm:$0xff] }
 0x43a   :  { %4646 = vmatmul.mubr.bf16.vlgmr.msra.gmra.mxu0 %v9154_v57  ;;  %4586 = vmatprep.subr.bf16.mxu1 %v12956_v2  ;;  %v12961_v57 = vld [vmem:[#allocation443_spill] sm:$0xff]  ;;  %v12962_v2 = vld [vmem:[#allocation445_spill] sm:$0xff] }
 0x43b   :  { %4821 = vmatpush1.bf16.msra.mxu0 %v7325_v5  ;;  %4852 = vmatprep.mubr.bf16.mxu0 %v9507_v63 }
 0x43c   :  { %4822 = vmatprep.subr.bf16.mxu0 %v7331_v10 }
 0x43d   :  { %4587 = vmatpush2.bf16.msra.mxu1 %v12957_v22  ;;  %v12964_v22 = vld [vmem:[#allocation449_spill] sm:$0xff] }
 0x43e   :  { %4588 = vmatprep.subr.bf16.mxu1 %v12958_v59  ;;  %v12963_v59 = vld [vmem:[#allocation447_spill] sm:$0xff] }
 0x43f   :  { %4823 = vmatpush1.bf16.msra.mxu0 %v7338_v18 }
 0x440   :  { %4824 = vmatprep.subr.bf16.mxu0 %v7344_v20  ;;  %v13095_v20 = vld [vmem:[#allocation78_spill] sm:$0xff] }
 0x441   :  { %4589 = vmatpush2.bf16.msra.mxu1 %v12959_v38  ;;  %v12966_v38 = vld [vmem:[#allocation453_spill] sm:$0xff] }
 0x442   :  { %4590 = vmatprep.subr.bf16.mxu1 %v12960_v35  ;;  %v12965_v35 = vld [vmem:[#allocation451_spill] sm:$0xff] }
 0x443   :  { %4825 = vmatpush1.bf16.msra.mxu0 %v7350_v26  ;;  %v13008_v26 = vld [vmem:[#allocation491_spill] sm:$0xff] }
 0x444   :  { %4826 = vmatprep.subr.bf16.mxu0 %v7356_v28 }
 0x445   :  { %4591 = vmatpush2.bf16.msra.mxu1 %v12961_v57  ;;  %v12968_v57 = vld [vmem:[#allocation457_spill] sm:$0xff] }
 0x446   :  { %4592 = vmatprep.subr.bf16.mxu1 %v12962_v2  ;;  %v12967_v2 = vld [vmem:[#allocation455_spill] sm:$0xff] }
 0x447   :  { %4827 = vmatpush1.bf16.msra.mxu0 %v7362_v34 }
 0x448   :  { %4828 = vmatprep.subr.bf16.mxu0 %v7368_v36  ;;  %v12976_v36 = vld [vmem:[#allocation47_spill] sm:$0xff] }
 0x449   :  { %4593 = vmatpush2.bf16.msra.mxu1 %v12963_v59  ;;  %v3998_v59 = vld [vmem:[#allocation7 + $0x118] sm:$0xff] }
 0x44a   :  { %4594 = vmatprep.subr.bf16.mxu1 %v12964_v22  ;;  %v12969_v22 = vld [vmem:[#allocation41_spill] sm:$0xff] }
 0x44b   :  { %4829 = vmatpush1.bf16.msra.mxu0 %v7374_v42  ;;  %v12973_v42 = vld [vmem:[#allocation45_spill] sm:$0xff] }
 0x44c   :  { %4830 = vmatprep.subr.bf16.mxu0 %v12513_v54  ;;  %v12971_v54 = vld [vmem:[#allocation461_spill] sm:$0xff] }
 0x44d   :  { %4595 = vmatpush2.bf16.msra.mxu1 %v12965_v35  ;;  %v4220_v35 = vadd.f32 %v9533_v48, %v3998_v59  ;;  %v12977_v48 = vld [vmem:[#allocation49_spill] sm:$0xff] }
 0x44e   :  { %4596 = vmatprep.subr.bf16.mxu1 %v12966_v38  ;;  %v12972_v38 = vld [vmem:[#allocation43_spill] sm:$0xff] }
 0x44f   :  { %4831 = vmatpush1.bf16.msra.mxu0 %v12515_v41  ;;  %v4006_v41 = vld [vmem:[#allocation7 + $0x158] sm:$0xff] }
 0x450   :  { %4832 = vmatprep.subr.bf16.mxu0 %v12517_v23  ;;  %v12974_v23 = vld [vmem:[#allocation463_spill] sm:$0xff] }
 0x451   :  { %4597 = vmatpush2.bf16.msra.mxu1 %v12967_v2  ;;  %v4263_v2 = vadd.f32 %v9555_v29, %v4220_v35 }
 0x452   :  { %4598 = vmatprep.subr.bf16.mxu1 %v12968_v57  ;;  %v4266_v57 = vpop.f32.mrf.mxu1 }
 0x453   :  { %4833 = vmatpush1.bf16.msra.mxu0 %v12519_v0  ;;  %v12975_v0 = vld [vmem:[#allocation465_spill] sm:$0xff]  ;;  %v4306_v29 = vadd.f32 %v9553_v51, %v4263_v2  ;;  %v12984_v2 = vld [vmem:[#allocation55_spill] sm:$0xff] }
 0x454   :  { %4834 = vmatprep.subr.bf16.mxu0 %v12969_v22  ;;  %v4224_v22 = vadd.f32 %v9543_v33, %v4006_v41  ;;  %v12980_v33 = vld [vmem:[#allocation51_spill] sm:$0xff] }
 0x455   :  { %4599 = vmatpush2.bf16.msra.mxu1 %v12970_v25 }
 0x456   :  { %4600 = vmatprep.subr.bf16.mxu1 %v12971_v54  ;;  %v4267_v59 = vadd.f32 %v4266_v57, %v4224_v22  ;;  %v12982_v22 = vld [vmem:[#allocation471_spill] sm:$0xff]  ;;  %v12983_v57 = vld [vmem:[#allocation473_spill] sm:$0xff] }
 0x457   :  { %4835 = vmatpush1.bf16.msra.mxu0 %v12972_v38 }
 0x458   :  { %4836 = vmatprep.subr.bf16.mxu0 %v12973_v42  ;;  %v12978_v42 = vld [vmem:[#allocation467_spill] sm:$0xff] }
 0x459   :  { %4601 = vmatpush2.bf16.msra.mxu1 %v12974_v23  ;;  %v4309_v23 = vpop.f32.mrf.mxu0 }
 0x45a   :  { %4656 = vmatprep.subr.bf16.mxu1 %v12975_v0  ;;  %v12979_v0 = vld [vmem:[#allocation469_spill] sm:$0xff] }
 0x45b   :  { %4837 = vmatpush2.bf16.msra.mxu0 %v12976_v36  ;;  %v12981_v36 = vld [vmem:[#allocation53_spill] sm:$0xff] }
 0x45c   :  { %v4346_v25 = vpop.f32.mrf.mxu1  ;;  %4603 = vmatmul.mubr.bf16.vlgmr.msra.gmra.mxu1 %v8877_v31  ;;  %4838 = vmatprep.subr.bf16.mxu0 %v12977_v48 }
 0x45d   :  { %v4347_v54 = vadd.f32 %v4346_v25, %v9559_v47  ;;  %4657 = vmatpush1.bf16.msra.mxu1 %v12978_v42  ;;  %4688 = vmatprep.mubr.bf16.mxu1 %v9221_v21  ;;  %v4310_v25 = vadd.f32 %v4309_v23, %v4267_v59  ;;  %v12991_v23 = vld [vmem:[#allocation481_spill] sm:$0xff]  ;;  %v12992_v59 = vld [vmem:[#allocation63_spill] sm:$0xff] }
 0x45e   :  { %v4348_v35 = vpop.f32.mrf.mxu1  ;;  %4658 = vmatprep.subr.bf16.mxu1 %v12979_v0 }
 0x45f   :  { %7024 = vtanh.f32 %v4347_v54  ;;  %v4349_v41 = vadd.f32 %v4348_v35, %v4306_v29  ;;  %4839 = vmatpush2.bf16.msra.mxu0 %v12980_v33  ;;  %v12985_v54 = vld [vmem:[#allocation57_spill] sm:$0xff]  ;;  %v12986_v29 = vld [vmem:[#allocation475_spill] sm:$0xff] }
 0x460   :  { %v4350_v31 = vpop.f32.mrf.mxu1  ;;  %4840 = vmatprep.subr.bf16.mxu0 %v12981_v36  ;;  %v12987_v35 = vld [vmem:[#allocation477_spill] sm:$0xff] }
 0x461   :  { %7026 = vtanh.f32 %v4349_v41  ;;  %v4351_v47 = vadd.f32 %v4350_v31, %v9565_v17  ;;  %4659 = vmatpush1.bf16.msra.mxu1 %v12982_v22  ;;  %v12988_v41 = vld [vmem:[#allocation59_spill] sm:$0xff]  ;;  %v12989_v17 = vld [vmem:[#allocation61_spill] sm:$0xff] }
 0x462   :  { %v4352_v21 = vpop.f32.mrf.mxu1  ;;  %4660 = vmatprep.subr.bf16.mxu1 %v12983_v57  ;;  %v12990_v31 = vld [vmem:[#allocation479_spill] sm:$0xff]  ;;  %v12994_v57 = vld [vmem:[#allocation497_spill] sm:$0xff] }
 0x463   :  { %7028 = vtanh.f32 %v4351_v47  ;;  %v4353_v51 = vadd.f32 %v4352_v21, %v4310_v25  ;;  %4841 = vmatpush2.bf16.msra.mxu0 %v12984_v2  ;;  %v12993_v25 = vld [vmem:[#allocation65_spill] sm:$0xff]  ;;  %v12995_v22 = vld [vmem:[#allocation483_spill] sm:$0xff] }
 0x464   :  { %4842 = vmatprep.subr.bf16.mxu0 %v12985_v54  ;;  %v12999_v54 = vld [vmem:[#allocation498_spill] sm:$0xff]  ;;  %v13000_v2 = vld [vmem:[#allocation69_spill] sm:$0xff] }
 0x465   :  { %7030 = vtanh.f32 %v4353_v51  ;;  %4661 = vmatpush1.bf16.msra.mxu1 %v12986_v29  ;;  %v4733_v51 = vmul.f32 0.19300087, %v12994_v57  ;;  %v7133_v57 = vld [vmem:[#allocation5 + $0x50] sm:$0xff] }
 0x466   :  { %4662 = vmatprep.subr.bf16.mxu1 %v12987_v35  ;;  %v12996_v35 = vld [vmem:[#allocation485_spill] sm:$0xff]  ;;  %v4773_v33 = vmul.f32 0.9403203, %v7133_v57 }
 0x467   :  { %4843 = vmatpush2.bf16.msra.mxu0 %v12988_v41  ;;  %v12998_v41 = vld [vmem:[#allocation530_spill] sm:$0xff] }
 0x468   :  { %4844 = vmatprep.subr.bf16.mxu0 %v12989_v17  ;;  %v12997_v17 = vld [vmem:[#allocation67_spill] sm:$0xff] }
 0x469   :  { %4663 = vmatpush1.bf16.msra.mxu1 %v12990_v31 }
 0x46a   :  { %4664 = vmatprep.subr.bf16.mxu1 %v12991_v23  ;;  %v4734_v23 = vmul.f32 0.19300087, %v12998_v41 }
 0x46b   :  { %4845 = vmatpush2.bf16.msra.mxu0 %v12992_v59  ;;  %v4741_v59 = vmul.f32 0.19300087, %v12999_v54  ;;  %v7135_v54 = vld [vmem:[#allocation5 + $0x58] sm:$0xff] }
 0x46c   :  { %v7025_v47 = vpop.eup %7024  ;;  %4846 = vmatprep.subr.bf16.mxu0 %v12993_v25  ;;  %v7132_v25 = vld [vmem:[#allocation5 + $0x10] sm:$0xff]  ;;  %v4774_v28 = vmul.f32 0.9403203, %v7135_v54  ;;  %v13024_v54 = vld [vmem:[#allocation87_spill] sm:$0xff] }
 0x46d   :  { %v4717_v21 = vmul.f32 0.26919085, %v7025_v47  ;;  %4665 = vmatpush1.bf16.msra.mxu1 %v12995_v22  ;;  %v4765_v47 = vmul.f32 0.9403203, %v7132_v25  ;;  %v13001_v22 = vld [vmem:[#allocation487_spill] sm:$0xff]  ;;  %v13005_v25 = vld [vmem:[#allocation73_spill] sm:$0xff] }
 0x46e   :  { %v7027_v29 = vpop.eup %7026  ;;  %4666 = vmatprep.subr.bf16.mxu1 %v12996_v35  ;;  %v7134_v35 = vld [vmem:[#allocation5 + $0x18] sm:$0xff] }
 0x46f   :  { %v4749_v0 = vadd.f32 %v4733_v51, %v4717_v21  ;;  %v4718_v42 = vmul.f32 0.26919085, %v7027_v29  ;;  %4847 = vmatpush2.bf16.msra.mxu0 %v12997_v17  ;;  %v4766_v21 = vmul.f32 0.9403203, %v7134_v35  ;;  %v13002_v29 = vld [vmem:[#allocation529_spill] sm:$0xff] }
 0x470   :  { %v7029_v31 = vpop.eup %7028  ;;  %4848 = vmatprep.subr.bf16.mxu0 %v13000_v2  ;;  %v4742_v51 = vmul.f32 0.19300087, %v13002_v29  ;;  %v13003_v17 = vld [vmem:[#allocation489_spill] sm:$0xff]  ;;  %v13004_v2 = vld [vmem:[#allocation71_spill] sm:$0xff] }
 0x471   :  { %v4725_v36 = vmul.f32 0.26919085, %v7029_v31  ;;  %4667 = vmatpush1.bf16.msra.mxu1 %v13001_v22  ;;  %v4750_v38 = vadd.f32 %v4734_v23, %v4718_v42  ;;  %v9662_v31 = vadd.f32 %v4765_v47, %v4749_v0  ;;  %v13009_v35 = vld [vmem:[#allocation493_spill] sm:$0xff]  ;;  %v13014_v0 = vld [vmem:[#allocation495_spill] sm:$0xff] }
 0x472   :  { %v7031_v48 = vpop.eup %7030  ;;  %4668 = vmatprep.subr.bf16.mxu1 %v13003_v17  ;;  %v13013_v23 = vld [vmem:[#allocation77_spill] sm:$0xff]  ;;  %v13020_v47 = vld [vmem:[#allocation83_spill] sm:$0xff]  ;;  %v13031_v17 = vld [vmem:[#allocation514_spill] sm:$0xff] }
 0x473   :  { %v4757_v41 = vadd.f32 %v4741_v59, %v4725_v36  ;;  %v4726_v34 = vmul.f32 0.26919085, %v7031_v48  ;;  %4849 = vmatpush2.bf16.msra.mxu0 %v13004_v2  ;;  %13006 = vst [vmem:[#allocation466_spill] sm:$0xff] %v9662_v31  ;;  %v9668_v29 = vadd.f32 %v4766_v21, %v4750_v38  ;;  %v13012_v36 = vld [vmem:[#allocation75_spill] sm:$0xff]  ;;  %v13019_v59 = vld [vmem:[#allocation502_spill] sm:$0xff]  ;;  %v13021_v21 = vld [vmem:[#allocation85_spill] sm:$0xff] }
 0x474   :  { %4850 = vmatprep.subr.bf16.mxu0 %v13005_v25  ;;  %v13015_v38 = vld [vmem:[#allocation499_spill] sm:$0xff]  ;;  %v13094_v25 = vld [vmem:[#allocation76_spill] sm:$0xff] }
 0x475   :  { %v9664_v57 = vadd.f32 %v4773_v33, %v4757_v41  ;;  %v4758_v22 = vadd.f32 %v4742_v51, %v4726_v34  ;;  %4669 = vmatpush1.bf16.msra.mxu1 %v13008_v26  ;;  %13010 = vst [vmem:[#allocation530_spill] sm:$0xff] %v9668_v29  ;;  %v13017_v33 = vld [vmem:[#allocation81_spill] sm:$0xff]  ;;  %v13022_v51 = vld [vmem:[#allocation504_spill] sm:$0xff]  ;;  %v13023_v41 = vld [vmem:[#allocation506_spill] sm:$0xff] }
 0x476   :  { %4670 = vmatprep.subr.bf16.mxu1 %v13009_v35  ;;  %v13027_v35 = vld [vmem:[#allocation510_spill] sm:$0xff]  ;;  %v13028_v26 = vld [vmem:[#allocation91_spill] sm:$0xff] }
 0x477   :  { %13007 = vst [vmem:[#allocation497_spill] sm:$0xff] %v9664_v57  ;;  %v9670_v42 = vadd.f32 %v4774_v28, %v4758_v22  ;;  %4851 = vmatpush2.bf16.msra.mxu0 %v13012_v36  ;;  %v9675_v48 = vpack.c.bf16 %v9664_v57, %v9662_v31  ;;  %v13016_v28 = vld [vmem:[#allocation79_spill] sm:$0xff]  ;;  %v13018_v22 = vld [vmem:[#allocation500_spill] sm:$0xff]  ;;  %v13035_v57 = vld [vmem:[#allocation518_spill] sm:$0xff] }
 0x478   :  { %4906 = vmatprep.subr.bf16.mxu0 %v13013_v23  ;;  %v13039_v31 = vld [vmem:[#allocation522_spill] sm:$0xff]  ;;  %v4008_v23 = vld [vmem:[#allocation7 + $0x168] sm:$0xff] }
 0x479   :  { %13011 = vst [vmem:[#allocation498_spill] sm:$0xff] %v9670_v42  ;;  %4671 = vmatpush1.bf16.msra.mxu1 %v13014_v0  ;;  %v9681_v34 = vpack.c.bf16 %v9670_v42, %v9668_v29  ;;  %v13025_v0 = vld [vmem:[#allocation89_spill] sm:$0xff]  ;;  %v13032_v42 = vld [vmem:[#allocation95_spill] sm:$0xff] }
 0x47a   :  { %4853 = vmatmul.mubr.bf16.vlgmr.msra.gmra.mxu0 %v9501_v7  ;;  %4672 = vmatprep.subr.bf16.mxu1 %v13015_v38  ;;  %v13026_v38 = vld [vmem:[#allocation508_spill] sm:$0xff]  ;;  %v13036_v29 = vld [vmem:[#allocation99_spill] sm:$0xff] }
 0x47b   :  { %4907 = vmatpush1.bf16.msra.mxu0 %v13016_v28 }
 0x47c   :  { %4908 = vmatprep.subr.bf16.mxu0 %v13017_v33  ;;  %v13093_v33 = vld [vmem:[#allocation74_spill] sm:$0xff] }
 0x47d   :  { %4673 = vmatpush2.bf16.msra.mxu1 %v13018_v22  ;;  %v13029_v22 = vld [vmem:[#allocation93_spill] sm:$0xff] }
 0x47e   :  { %4674 = vmatprep.subr.bf16.mxu1 %v13019_v59  ;;  %v13030_v59 = vld [vmem:[#allocation512_spill] sm:$0xff] }
 0x47f   :  { %4909 = vmatpush1.bf16.msra.mxu0 %v13020_v47  ;;  %v4007_v47 = vld [vmem:[#allocation7 + $0x160] sm:$0xff] }
 0x480   :  { %4910 = vmatprep.subr.bf16.mxu0 %v13021_v21 }
 0x481   :  { %4675 = vmatpush2.bf16.msra.mxu1 %v13022_v51  ;;  %v13033_v51 = vld [vmem:[#allocation97_spill] sm:$0xff] }
 0x482   :  { %4676 = vmatprep.subr.bf16.mxu1 %v13023_v41  ;;  %v13034_v41 = vld [vmem:[#allocation516_spill] sm:$0xff] }
 0x483   :  { %4911 = vmatpush1.bf16.msra.mxu0 %v13024_v54  ;;  %v4000_v54 = vld [vmem:[#allocation7 + $0x128] sm:$0xff] }
 0x484   :  { %4912 = vmatprep.subr.bf16.mxu0 %v13025_v0 }
 0x485   :  { %4677 = vmatpush2.bf16.msra.mxu1 %v13026_v38  ;;  %v13037_v38 = vld [vmem:[#allocation101_spill] sm:$0xff] }
 0x486   :  { %4678 = vmatprep.subr.bf16.mxu1 %v13027_v35  ;;  %v13038_v35 = vld [vmem:[#allocation520_spill] sm:$0xff] }
 0x487   :  { %4913 = vmatpush1.bf16.msra.mxu0 %v13028_v26  ;;  %v13089_v26 = vld [vmem:[#allocation66_spill] sm:$0xff] }
 0x488   :  { %4914 = vmatprep.subr.bf16.mxu0 %v13029_v22  ;;  %v13040_v22 = vld [vmem:[#allocation103_spill] sm:$0xff] }
 0x489   :  { %4679 = vmatpush2.bf16.msra.mxu1 %v13030_v59  ;;  %v13041_v59 = vld [vmem:[#allocation105_spill] sm:$0xff] }
 0x48a   :  { %4680 = vmatprep.subr.bf16.mxu1 %v13031_v17  ;;  %v13042_v17 = vld [vmem:[#allocation524_spill] sm:$0xff] }
 0x48b   :  { %4915 = vmatpush1.bf16.msra.mxu0 %v13032_v42  ;;  %v13043_v42 = vld [vmem:[#allocation526_spill] sm:$0xff] }
 0x48c   :  { %4916 = vmatprep.subr.bf16.mxu0 %v13033_v51  ;;  %v13044_v51 = vld [vmem:[#allocation107_spill] sm:$0xff] }
 0x48d   :  { %4681 = vmatpush2.bf16.msra.mxu1 %v13034_v41  ;;  %v13045_v41 = vld [vmem:[#allocation109_spill] sm:$0xff] }
 0x48e   :  { %4682 = vmatprep.subr.bf16.mxu1 %v13035_v57  ;;  %v13046_v57 = vld [vmem:[#allocation528_spill] sm:$0xff] }
 0x48f   :  { %4917 = vmatpush1.bf16.msra.mxu0 %v13036_v29  ;;  %v13047_v29 = vld [vmem:[#allocation15_spill] sm:$0xff] }
 0x490   :  { %4918 = vmatprep.subr.bf16.mxu0 %v13037_v38  ;;  %v13048_v38 = vld [vmem:[#allocation111_spill] sm:$0xff] }
 0x491   :  { %4683 = vmatpush2.bf16.msra.mxu1 %v13038_v35  ;;  %v13050_v35 = vld [vmem:[#allocation16_spill] sm:$0xff] }
 0x492   :  { %4684 = vmatprep.subr.bf16.mxu1 %v13039_v31  ;;  %v13049_v31 = vld [vmem:[#allocation113_spill] sm:$0xff] }
 0x493   :  { %4919 = vmatpush1.bf16.msra.mxu0 %v13040_v22  ;;  %v13087_v22 = vld [vmem:[#allocation62_spill] sm:$0xff] }
 0x494   :  { %4920 = vmatprep.subr.bf16.mxu0 %v13041_v59  ;;  %v13061_v59 = vld [vmem:[#allocation125_spill] sm:$0xff] }
 0x495   :  { %4685 = vmatpush2.bf16.msra.mxu1 %v13042_v17  ;;  %v13051_v17 = vld [vmem:[#allocation18_spill] sm:$0xff] }
 0x496   :  { %4686 = vmatprep.subr.bf16.mxu1 %v13043_v42  ;;  %v13052_v42 = vld [vmem:[#allocation115_spill] sm:$0xff] }
 0x497   :  { %4921 = vmatpush1.bf16.msra.mxu0 %v13044_v51  ;;  %v13053_v51 = vld [vmem:[#allocation117_spill] sm:$0xff] }
 0x498   :  { %4922 = vmatprep.subr.bf16.mxu0 %v13045_v41  ;;  %v13054_v41 = vld [vmem:[#allocation20_spill] sm:$0xff] }
 0x499   :  { %4687 = vmatpush2.bf16.msra.mxu1 %v13046_v57  ;;  %v13055_v57 = vld [vmem:[#allocation22_spill] sm:$0xff] }
 0x49a   :  { %4863 = vmatprep.subr.bf16.mxu1 %v13047_v29  ;;  %v13056_v29 = vld [vmem:[#allocation119_spill] sm:$0xff] }
 0x49b   :  { %4923 = vmatpush2.bf16.msra.mxu0 %v13048_v38  ;;  %v13057_v38 = vld [vmem:[#allocation121_spill] sm:$0xff] }
 0x49c   :  { %4689 = vmatmul.mubr.bf16.vlgmr.msra.gmra.mxu1 %v9225_v6  ;;  %4924 = vmatprep.subr.bf16.mxu0 %v13049_v31  ;;  %v13058_v6 = vld [vmem:[#allocation24_spill] sm:$0xff]  ;;  %v13059_v31 = vld [vmem:[#allocation26_spill] sm:$0xff] }
 0x49d   :  { %4864 = vmatpush1.bf16.msra.mxu1 %v13050_v35  ;;  %4895 = vmatprep.mubr.bf16.mxu1 %v9681_v34  ;;  %v13060_v35 = vld [vmem:[#allocation123_spill] sm:$0xff] }
 0x49e   :  { %4865 = vmatprep.subr.bf16.mxu1 %v13051_v17  ;;  %v13062_v17 = vld [vmem:[#allocation28_spill] sm:$0xff] }
 0x49f   :  { %4925 = vmatpush2.bf16.msra.mxu0 %v13052_v42  ;;  %v13063_v42 = vld [vmem:[#allocation30_spill] sm:$0xff] }
 0x4a0   :  { %4926 = vmatprep.subr.bf16.mxu0 %v13053_v51  ;;  %v13064_v51 = vld [vmem:[#allocation127_spill] sm:$0xff] }
 0x4a1   :  { %4866 = vmatpush1.bf16.msra.mxu1 %v13054_v41  ;;  %v13065_v41 = vld [vmem:[#allocation129_spill] sm:$0xff] }
 0x4a2   :  { %4867 = vmatprep.subr.bf16.mxu1 %v13055_v57  ;;  %v13066_v57 = vld [vmem:[#allocation32_spill] sm:$0xff] }
 0x4a3   :  { %4927 = vmatpush2.bf16.msra.mxu0 %v13056_v29  ;;  %v13067_v29 = vld [vmem:[#allocation34_spill] sm:$0xff] }
 0x4a4   :  { %4928 = vmatprep.subr.bf16.mxu0 %v13057_v38  ;;  %v13068_v38 = vld [vmem:[#allocation131_spill] sm:$0xff] }
 0x4a5   :  { %4868 = vmatpush1.bf16.msra.mxu1 %v13058_v6  ;;  %v13069_v6 = vld [vmem:[#allocation133_spill] sm:$0xff] }
 0x4a6   :  { %4869 = vmatprep.subr.bf16.mxu1 %v13059_v31  ;;  %v13070_v31 = vld [vmem:[#allocation36_spill] sm:$0xff] }
 0x4a7   :  { %4929 = vmatpush2.bf16.msra.mxu0 %v13060_v35  ;;  %v13071_v35 = vld [vmem:[#allocation38_spill] sm:$0xff] }
 0x4a8   :  { %4930 = vmatprep.subr.bf16.mxu0 %v13061_v59  ;;  %v13072_v59 = vld [vmem:[#allocation135_spill] sm:$0xff] }
 0x4a9   :  { %4870 = vmatpush1.bf16.msra.mxu1 %v13062_v17  ;;  %v13073_v17 = vld [vmem:[#allocation137_spill] sm:$0xff] }
 0x4aa   :  { %4871 = vmatprep.subr.bf16.mxu1 %v13063_v42  ;;  %v13074_v42 = vld [vmem:[#allocation40_spill] sm:$0xff] }
 0x4ab   :  { %4931 = vmatpush2.bf16.msra.mxu0 %v13064_v51  ;;  %v13075_v51 = vld [vmem:[#allocation42_spill] sm:$0xff] }
 0x4ac   :  { %4932 = vmatprep.subr.bf16.mxu0 %v13065_v41  ;;  %v13076_v41 = vld [vmem:[#allocation139_spill] sm:$0xff] }
 0x4ad   :  { %4872 = vmatpush1.bf16.msra.mxu1 %v13066_v57  ;;  %v13077_v57 = vld [vmem:[#allocation141_spill] sm:$0xff] }
 0x4ae   :  { %4873 = vmatprep.subr.bf16.mxu1 %v13067_v29  ;;  %v13078_v29 = vld [vmem:[#allocation44_spill] sm:$0xff] }
 0x4af   :  { %4933 = vmatpush2.bf16.msra.mxu0 %v13068_v38  ;;  %v13079_v38 = vld [vmem:[#allocation46_spill] sm:$0xff] }
 0x4b0   :  { %4934 = vmatprep.subr.bf16.mxu0 %v13069_v6  ;;  %v13080_v6 = vld [vmem:[#allocation48_spill] sm:$0xff] }
 0x4b1   :  { %4874 = vmatpush1.bf16.msra.mxu1 %v13070_v31  ;;  %v13081_v31 = vld [vmem:[#allocation50_spill] sm:$0xff] }
 0x4b2   :  { %4875 = vmatprep.subr.bf16.mxu1 %v13071_v35  ;;  %v13082_v35 = vld [vmem:[#allocation52_spill] sm:$0xff] }
 0x4b3   :  { %4935 = vmatpush2.bf16.msra.mxu0 %v13072_v59  ;;  %v13083_v59 = vld [vmem:[#allocation54_spill] sm:$0xff] }
 0x4b4   :  { %4936 = vmatprep.subr.bf16.mxu0 %v13073_v17  ;;  %v13084_v17 = vld [vmem:[#allocation56_spill] sm:$0xff] }
 0x4b5   :  { %4876 = vmatpush1.bf16.msra.mxu1 %v13074_v42  ;;  %v4389_v42 = vpop.f32.mrf.mxu0 }
 0x4b6   :  { %4877 = vmatprep.subr.bf16.mxu1 %v13075_v51  ;;  %v13085_v51 = vld [vmem:[#allocation58_spill] sm:$0xff] }
 0x4b7   :  { %4937 = vmatpush2.bf16.msra.mxu0 %v13076_v41  ;;  %v13086_v41 = vld [vmem:[#allocation60_spill] sm:$0xff] }
 0x4b8   :  { %4992 = vmatprep.subr.bf16.mxu0 %v13077_v57  ;;  %v4391_v57 = vpop.f32.mrf.mxu0 }
 0x4b9   :  { %4878 = vmatpush1.bf16.msra.mxu1 %v13078_v29  ;;  %v13088_v29 = vld [vmem:[#allocation64_spill] sm:$0xff] }
 0x4ba   :  { %4879 = vmatprep.subr.bf16.mxu1 %v13079_v38  ;;  %v4393_v38 = vpop.f32.mrf.mxu0 }
 0x4bb   :  { %v4394_v36 = vadd.f32 %v4393_v38, %v4007_v47  ;;  %v13097_v38 = vld [vmem:[#allocation82_spill] sm:$0xff] }
 0x4bd   :  { %4880 = vmatpush2.bf16.msra.mxu1 %v13080_v6  ;;  %v4432_v6 = vpop.f32.mrf.mxu1 }
 0x4be   :  { %4881 = vmatprep.subr.bf16.mxu1 %v13081_v31  ;;  %v13090_v31 = vld [vmem:[#allocation68_spill] sm:$0xff] }
 0x4bf   :  { %v4434_v0 = vpop.f32.mrf.mxu1 }
 0x4c1   :  { %4882 = vmatpush2.bf16.msra.mxu1 %v13082_v35  ;;  %v3999_v35 = vld [vmem:[#allocation7 + $0x120] sm:$0xff] }
 0x4c2   :  { %4883 = vmatprep.subr.bf16.mxu1 %v13083_v59  ;;  %v4395_v59 = vpop.f32.mrf.mxu0  ;;  %v4390_v21 = vadd.f32 %v4389_v42, %v3999_v35 }
 0x4c4   :  { %v4433_v28 = vadd.f32 %v4432_v6, %v4390_v21  ;;  %v13096_v21 = vld [vmem:[#allocation80_spill] sm:$0xff] }
 0x4c5   :  { %4884 = vmatpush2.bf16.msra.mxu1 %v13084_v17  ;;  %v13091_v17 = vld [vmem:[#allocation70_spill] sm:$0xff] }
 0x4c6   :  { %4885 = vmatprep.subr.bf16.mxu1 %v13085_v51  ;;  %v4475_v51 = vpop.f32.mrf.mxu0 }
 0x4c7   :  { %v4476_v35 = vadd.f32 %v4475_v51, %v4433_v28  ;;  %v13098_v28 = vld [vmem:[#allocation84_spill] sm:$0xff] }
 0x4c9   :  { %4886 = vmatpush2.bf16.msra.mxu1 %v13086_v41  ;;  %v13092_v41 = vld [vmem:[#allocation72_spill] sm:$0xff] }
 0x4ca   :  { %4887 = vmatprep.subr.bf16.mxu1 %v13087_v22  ;;  %v4436_v22 = vpop.f32.mrf.mxu1 }
 0x4cb   :  { %v4437_v18 = vadd.f32 %v4436_v22, %v4394_v36 }
 0x4cc   :  { %v4438_v2 = vpop.f32.mrf.mxu1 }
 0x4cd   :  { %4888 = vmatpush2.bf16.msra.mxu1 %v13088_v29  ;;  %v4392_v29 = vadd.f32 %v4391_v57, %v4000_v54 }
 0x4ce   :  { %4889 = vmatprep.subr.bf16.mxu1 %v13089_v26  ;;  %v4477_v26 = vpop.f32.mrf.mxu0 }
 0x4d0   :  { %v4479_v42 = vpop.f32.mrf.mxu0 }
 0x4d1   :  { %4890 = vmatpush2.bf16.msra.mxu1 %v13090_v31  ;;  %v4435_v31 = vadd.f32 %v4434_v0, %v4392_v29  ;;  %v4480_v0 = vadd.f32 %v4479_v42, %v4437_v18  ;;  %v13103_v18 = vld [vmem:[#allocation94_spill] sm:$0xff]  ;;  %v13106_v42 = vld [vmem:[#allocation533_spill] sm:$0xff] }
 0x4d2   :  { %4891 = vmatprep.subr.bf16.mxu1 %v13091_v17  ;;  %v4396_v17 = vadd.f32 %v4395_v59, %v4008_v23  ;;  %v4481_v47 = vpop.f32.mrf.mxu0  ;;  %v13099_v59 = vld [vmem:[#allocation86_spill] sm:$0xff] }
 0x4d3   :  { %v4478_v57 = vadd.f32 %v4477_v26, %v4435_v31  ;;  %v13102_v31 = vld [vmem:[#allocation92_spill] sm:$0xff] }
 0x4d4   :  { %v4439_v10 = vadd.f32 %v4438_v2, %v4396_v17  ;;  %v13100_v2 = vld [vmem:[#allocation88_spill] sm:$0xff]  ;;  %v13101_v17 = vld [vmem:[#allocation90_spill] sm:$0xff] }
 0x4d5   :  { %4892 = vmatpush2.bf16.msra.mxu1 %v13092_v41 }
 0x4d6   :  { %4893 = vmatprep.subr.bf16.mxu1 %v13093_v33  ;;  %v4482_v23 = vadd.f32 %v4481_v47, %v4439_v10 }
 0x4d9   :  { %4894 = vmatpush2.bf16.msra.mxu1 %v13094_v25  ;;  %v13180_v25 = vld [vmem:[#allocation239_spill] sm:$0xff] }
 0x4da   :  { %4949 = vmatprep.subr.bf16.mxu1 %v13095_v20 }
 0x4dc   :  { %v4518_v41 = vpop.f32.mrf.mxu1  ;;  %4896 = vmatmul.mubr.bf16.vlgmr.msra.gmra.mxu1 %v9675_v48 }
 0x4dd   :  { %v4519_v33 = vadd.f32 %v4518_v41, %v4476_v35  ;;  %4950 = vmatpush1.bf16.msra.mxu1 %v13096_v21  ;;  %v13104_v41 = vld [vmem:[#allocation96_spill] sm:$0xff]  ;;  %v13105_v35 = vld [vmem:[#allocation98_spill] sm:$0xff] }
 0x4de   :  { %v4520_v54 = vpop.f32.mrf.mxu1  ;;  %4951 = vmatprep.subr.bf16.mxu1 %v13097_v38  ;;  %v7139_v21 = vld [vmem:[#allocation5 + $0x68] sm:$0xff] }
 0x4df   :  { %7032 = vtanh.f32 %v4519_v33  ;;  %v4521_v29 = vadd.f32 %v4520_v54, %v4478_v57  ;;  %v4735_v57 = vmul.f32 0.19300087, %v13106_v42  ;;  %v13111_v42 = vld [vmem:[#allocation102_spill] sm:$0xff] }
 0x4e0   :  { %v4522_v6 = vpop.f32.mrf.mxu1 }
 0x4e1   :  { %7034 = vtanh.f32 %v4521_v29  ;;  %v4523_v36 = vadd.f32 %v4522_v6, %v4480_v0  ;;  %4952 = vmatpush1.bf16.msra.mxu1 %v13098_v28  ;;  %v13107_v0 = vld [vmem:[#allocation370_spill] sm:$0xff]  ;;  %v13108_v6 = vld [vmem:[#allocation532_spill] sm:$0xff] }
 0x4e2   :  { %v4524_v22 = vpop.f32.mrf.mxu1  ;;  %4953 = vmatprep.subr.bf16.mxu1 %v13099_v59  ;;  %v4736_v47 = vmul.f32 0.19300087, %v13107_v0 }
 0x4e3   :  { %7036 = vtanh.f32 %v4523_v36  ;;  %v4525_v26 = vadd.f32 %v4524_v22, %v4482_v23  ;;  %v4743_v36 = vmul.f32 0.19300087, %v13108_v6  ;;  %v7136_v22 = vld [vmem:[#allocation5 + $0x20] sm:$0xff]  ;;  %v4776_v6 = vmul.f32 0.9403203, %v7139_v21 }
 0x4e5   :  { %7038 = vtanh.f32 %v4525_v26  ;;  %4954 = vmatpush1.bf16.msra.mxu1 %v13100_v2  ;;  %v4767_v26 = vmul.f32 0.9403203, %v7136_v22  ;;  %v7138_v2 = vld [vmem:[#allocation5 + $0x28] sm:$0xff]  ;;  %v13115_v22 = vld [vmem:[#allocation106_spill] sm:$0xff] }
 0x4e6   :  { %4955 = vmatprep.subr.bf16.mxu1 %v13101_v17  ;;  %v4768_v59 = vmul.f32 0.9403203, %v7138_v2 }
 0x4e9   :  { %4956 = vmatpush1.bf16.msra.mxu1 %v13102_v31 }
 0x4ea   :  { %4957 = vmatprep.subr.bf16.mxu1 %v13103_v18  ;;  %v7137_v18 = vld [vmem:[#allocation5 + $0x60] sm:$0xff] }
 0x4eb   :  { %v4775_v17 = vmul.f32 0.9403203, %v7137_v18  ;;  %v13114_v18 = vld [vmem:[#allocation104_spill] sm:$0xff] }
 0x4ec   :  { %v7033_v33 = vpop.eup %7032 }
 0x4ed   :  { %v4719_v51 = vmul.f32 0.26919085, %v7033_v33  ;;  %4958 = vmatpush1.bf16.msra.mxu1 %v13104_v41  ;;  %v13109_v33 = vld [vmem:[#allocation100_spill] sm:$0xff] }
 0x4ee   :  { %v7035_v10 = vpop.eup %7034  ;;  %4959 = vmatprep.subr.bf16.mxu1 %v13105_v35  ;;  %v13110_v35 = vld [vmem:[#allocation531_spill] sm:$0xff] }
 0x4ef   :  { %v4720_v54 = vmul.f32 0.26919085, %v7035_v10  ;;  %v4751_v23 = vadd.f32 %v4735_v57, %v4719_v51  ;;  %v4744_v28 = vmul.f32 0.19300087, %v13110_v35 }
 0x4f0   :  { %v7037_v29 = vpop.eup %7036 }
 0x4f1   :  { %v4727_v31 = vmul.f32 0.26919085, %v7037_v29  ;;  %4960 = vmatpush1.bf16.msra.mxu1 %v13109_v33  ;;  %v4752_v10 = vadd.f32 %v4736_v47, %v4720_v54  ;;  %v9784_v51 = vadd.f32 %v4767_v26, %v4751_v23  ;;  %v13124_v54 = vld [vmem:[#allocation147_spill] sm:$0xff]  ;;  %v13125_v47 = vld [vmem:[#allocation149_spill] sm:$0xff]  ;;  %v13127_v23 = vld [vmem:[#allocation118_spill] sm:$0xff] }
 0x4f2   :  { %v7039_v41 = vpop.eup %7038  ;;  %4961 = vmatprep.subr.bf16.mxu1 %v13111_v42  ;;  %v13128_v26 = vld [vmem:[#allocation151_spill] sm:$0xff]  ;;  %v4010_v42 = vld [vmem:[#allocation7 + $0x178] sm:$0xff] }
 0x4f3   :  { %v4759_v38 = vadd.f32 %v4743_v36, %v4727_v31  ;;  %v4728_v0 = vmul.f32 0.26919085, %v7039_v41  ;;  %13112 = vst [vmem:[#allocation529_spill] sm:$0xff] %v9784_v51  ;;  %v9790_v33 = vadd.f32 %v4768_v59, %v4752_v10  ;;  %v13118_v31 = vld [vmem:[#allocation108_spill] sm:$0xff]  ;;  %v13121_v59 = vld [vmem:[#allocation145_spill] sm:$0xff]  ;;  %v13123_v41 = vld [vmem:[#allocation114_spill] sm:$0xff] }
 0x4f4   :  { %v13126_v36 = vld [vmem:[#allocation116_spill] sm:$0xff]  ;;  %v13129_v10 = vld [vmem:[#allocation153_spill] sm:$0xff] }
 0x4f5   :  { %v9786_v57 = vadd.f32 %v4775_v17, %v4759_v38  ;;  %v4760_v29 = vadd.f32 %v4744_v28, %v4728_v0  ;;  %4962 = vmatpush1.bf16.msra.mxu1 %v13114_v18  ;;  %13116 = vst [vmem:[#allocation370_spill] sm:$0xff] %v9790_v33  ;;  %v13119_v38 = vld [vmem:[#allocation110_spill] sm:$0xff]  ;;  %v13120_v28 = vld [vmem:[#allocation143_spill] sm:$0xff]  ;;  %v13122_v17 = vld [vmem:[#allocation112_spill] sm:$0xff] }
 0x4f6   :  { %4963 = vmatprep.subr.bf16.mxu1 %v13115_v22  ;;  %v13130_v0 = vld [vmem:[#allocation120_spill] sm:$0xff] }
 0x4f7   :  { %13113 = vst [vmem:[#allocation533_spill] sm:$0xff] %v9786_v57  ;;  %v9792_v2 = vadd.f32 %v4776_v6, %v4760_v29  ;;  %v9796_v35 = vpack.c.bf16 %v9786_v57, %v9784_v51  ;;  %v13131_v6 = vld [vmem:[#allocation122_spill] sm:$0xff]  ;;  %v13132_v29 = vld [vmem:[#allocation155_spill] sm:$0xff] }
 0x4f9   :  { %13117 = vst [vmem:[#allocation532_spill] sm:$0xff] %v9792_v2  ;;  %v9800_v21 = vpack.c.bf16 %v9792_v2, %v9790_v33  ;;  %4964 = vmatpush1.bf16.msra.mxu1 %v13118_v31  ;;  %v4002_v31 = vld [vmem:[#allocation7 + $0x138] sm:$0xff] }
 0x4fa   :  { %4965 = vmatprep.subr.bf16.mxu1 %v13119_v38 }
 0x4fb   :  { %4938 = vmatprep.mubr.bf16.mxu0 %v9800_v21 }
 0x4fc   :  { %4939 = vmatmul.mubr.bf16.vlgmr.msra.gmra.mxu0 %v9796_v35 }
 0x4fd   :  { %4993 = vmatpush1.bf16.msra.mxu0 %v13120_v28  ;;  %5024 = vmatprep.mubr.bf16.mxu0 %v9507_v63  ;;  %v13177_v28 = vld [vmem:[#allocation225_spill] sm:$0xff] }
 0x4fe   :  { %4994 = vmatprep.subr.bf16.mxu0 %v13121_v59  ;;  %4966 = vmatpush2.bf16.msra.mxu1 %v13122_v17  ;;  %v13133_v17 = vld [vmem:[#allocation157_spill] sm:$0xff] }
 0x4ff   :  { %4967 = vmatprep.subr.bf16.mxu1 %v13123_v41  ;;  %v13134_v41 = vld [vmem:[#allocation124_spill] sm:$0xff] }
 0x501   :  { %4995 = vmatpush1.bf16.msra.mxu0 %v13124_v54  ;;  %v13135_v54 = vld [vmem:[#allocation126_spill] sm:$0xff] }
 0x502   :  { %4996 = vmatprep.subr.bf16.mxu0 %v13125_v47  ;;  %4968 = vmatpush2.bf16.msra.mxu1 %v13126_v36  ;;  %v13136_v47 = vld [vmem:[#allocation159_spill] sm:$0xff]  ;;  %v13137_v36 = vld [vmem:[#allocation161_spill] sm:$0xff] }
 0x503   :  { %4969 = vmatprep.subr.bf16.mxu1 %v13127_v23  ;;  %v13138_v23 = vld [vmem:[#allocation128_spill] sm:$0xff] }
 0x505   :  { %4997 = vmatpush1.bf16.msra.mxu0 %v13128_v26  ;;  %v13139_v26 = vld [vmem:[#allocation130_spill] sm:$0xff] }
 0x506   :  { %4998 = vmatprep.subr.bf16.mxu0 %v13129_v10  ;;  %4970 = vmatpush2.bf16.msra.mxu1 %v13130_v0  ;;  %v13140_v10 = vld [vmem:[#allocation163_spill] sm:$0xff]  ;;  %v13141_v0 = vld [vmem:[#allocation165_spill] sm:$0xff] }
 0x507   :  { %4971 = vmatprep.subr.bf16.mxu1 %v13131_v6  ;;  %v13142_v6 = vld [vmem:[#allocation132_spill] sm:$0xff] }
 0x509   :  { %4999 = vmatpush1.bf16.msra.mxu0 %v13132_v29  ;;  %v13143_v29 = vld [vmem:[#allocation134_spill] sm:$0xff] }
 0x50a   :  { %5000 = vmatprep.subr.bf16.mxu0 %v13133_v17  ;;  %4972 = vmatpush2.bf16.msra.mxu1 %v13134_v41  ;;  %v13144_v17 = vld [vmem:[#allocation167_spill] sm:$0xff]  ;;  %v13145_v41 = vld [vmem:[#allocation169_spill] sm:$0xff] }
 0x50b   :  { %4973 = vmatprep.subr.bf16.mxu1 %v13135_v54  ;;  %v13146_v54 = vld [vmem:[#allocation136_spill] sm:$0xff] }
 0x50d   :  { %5001 = vmatpush1.bf16.msra.mxu0 %v13136_v47  ;;  %v13147_v47 = vld [vmem:[#allocation138_spill] sm:$0xff] }
 0x50e   :  { %5002 = vmatprep.subr.bf16.mxu0 %v13137_v36  ;;  %4974 = vmatpush2.bf16.msra.mxu1 %v13138_v23  ;;  %v13148_v36 = vld [vmem:[#allocation171_spill] sm:$0xff]  ;;  %v13149_v23 = vld [vmem:[#allocation173_spill] sm:$0xff] }
 0x50f   :  { %4975 = vmatprep.subr.bf16.mxu1 %v13139_v26  ;;  %v13150_v26 = vld [vmem:[#allocation140_spill] sm:$0xff] }
 0x511   :  { %5003 = vmatpush1.bf16.msra.mxu0 %v13140_v10  ;;  %v13151_v10 = vld [vmem:[#allocation142_spill] sm:$0xff] }
 0x512   :  { %5004 = vmatprep.subr.bf16.mxu0 %v13141_v0  ;;  %4976 = vmatpush2.bf16.msra.mxu1 %v13142_v6  ;;  %v13152_v0 = vld [vmem:[#allocation175_spill] sm:$0xff]  ;;  %v13153_v6 = vld [vmem:[#allocation177_spill] sm:$0xff] }
 0x513   :  { %4977 = vmatprep.subr.bf16.mxu1 %v13143_v29  ;;  %v13154_v29 = vld [vmem:[#allocation179_spill] sm:$0xff] }
 0x515   :  { %5005 = vmatpush1.bf16.msra.mxu0 %v13144_v17  ;;  %v13155_v17 = vld [vmem:[#allocation181_spill] sm:$0xff] }
 0x516   :  { %5006 = vmatprep.subr.bf16.mxu0 %v13145_v41  ;;  %4978 = vmatpush2.bf16.msra.mxu1 %v13146_v54  ;;  %v13156_v41 = vld [vmem:[#allocation183_spill] sm:$0xff]  ;;  %v13157_v54 = vld [vmem:[#allocation185_spill] sm:$0xff] }
 0x517   :  { %4979 = vmatprep.subr.bf16.mxu1 %v13147_v47  ;;  %v13158_v47 = vld [vmem:[#allocation187_spill] sm:$0xff] }
 0x519   :  { %5007 = vmatpush1.bf16.msra.mxu0 %v13148_v36  ;;  %v13159_v36 = vld [vmem:[#allocation189_spill] sm:$0xff] }
 0x51a   :  { %5008 = vmatprep.subr.bf16.mxu0 %v13149_v23  ;;  %4980 = vmatpush2.bf16.msra.mxu1 %v13150_v26  ;;  %v13160_v23 = vld [vmem:[#allocation191_spill] sm:$0xff]  ;;  %v13161_v26 = vld [vmem:[#allocation193_spill] sm:$0xff] }
 0x51b   :  { %5035 = vmatprep.subr.bf16.mxu1 %v13151_v10  ;;  %v13162_v10 = vld [vmem:[#allocation195_spill] sm:$0xff] }
 0x51c   :  { %v4604_v59 = vpop.f32.mrf.mxu1 }
 0x51d   :  { %5009 = vmatpush2.bf16.msra.mxu0 %v13152_v0  ;;  %v13163_v0 = vld [vmem:[#allocation197_spill] sm:$0xff] }
 0x51e   :  { %5010 = vmatprep.subr.bf16.mxu0 %v13153_v6  ;;  %v13164_v6 = vld [vmem:[#allocation199_spill] sm:$0xff]  ;;  %v4606_v38 = vpop.f32.mrf.mxu1 }
 0x521   :  { %5011 = vmatpush2.bf16.msra.mxu0 %v13154_v29  ;;  %v13165_v29 = vld [vmem:[#allocation201_spill] sm:$0xff] }
 0x522   :  { %5012 = vmatprep.subr.bf16.mxu0 %v13155_v17  ;;  %v13166_v17 = vld [vmem:[#allocation203_spill] sm:$0xff] }
 0x525   :  { %5013 = vmatpush2.bf16.msra.mxu0 %v13156_v41  ;;  %v13167_v41 = vld [vmem:[#allocation205_spill] sm:$0xff] }
 0x526   :  { %5014 = vmatprep.subr.bf16.mxu0 %v13157_v54  ;;  %v13176_v54 = vld [vmem:[#allocation223_spill] sm:$0xff] }
 0x529   :  { %5015 = vmatpush2.bf16.msra.mxu0 %v13158_v47  ;;  %v13168_v47 = vld [vmem:[#allocation207_spill] sm:$0xff] }
 0x52a   :  { %5016 = vmatprep.subr.bf16.mxu0 %v13159_v36  ;;  %v13175_v36 = vld [vmem:[#allocation221_spill] sm:$0xff] }
 0x52d   :  { %5017 = vmatpush2.bf16.msra.mxu0 %v13160_v23  ;;  %v13169_v23 = vld [vmem:[#allocation209_spill] sm:$0xff] }
 0x52e   :  { %5018 = vmatprep.subr.bf16.mxu0 %v13161_v26  ;;  %v13170_v26 = vld [vmem:[#allocation211_spill] sm:$0xff] }
 0x531   :  { %5019 = vmatpush2.bf16.msra.mxu0 %v13162_v10  ;;  %v13171_v10 = vld [vmem:[#allocation213_spill] sm:$0xff] }
 0x532   :  { %5020 = vmatprep.subr.bf16.mxu0 %v13163_v0  ;;  %v13172_v0 = vld [vmem:[#allocation215_spill] sm:$0xff] }
 0x535   :  { %5021 = vmatpush2.bf16.msra.mxu0 %v13164_v6  ;;  %v4561_v6 = vpop.f32.mrf.mxu0 }
 0x536   :  { %5022 = vmatprep.subr.bf16.mxu0 %v13165_v29  ;;  %v13173_v29 = vld [vmem:[#allocation217_spill] sm:$0xff] }
 0x539   :  { %5023 = vmatpush2.bf16.msra.mxu0 %v13166_v17  ;;  %v13174_v17 = vld [vmem:[#allocation219_spill] sm:$0xff] }
 0x53a   :  { %5078 = vmatprep.subr.bf16.mxu0 %v13167_v41  ;;  %v4563_v41 = vpop.f32.mrf.mxu0 }
 0x53c   :  { %5025 = vmatmul.mubr.bf16.vlgmr.msra.gmra.mxu0 %v9501_v7 }
 0x53d   :  { %5079 = vmatpush1.bf16.msra.mxu0 %v13168_v47  ;;  %5110 = vmatprep.mubr.bf16.mxu0 %v9800_v21  ;;  %v4565_v47 = vpop.f32.mrf.mxu0 }
 0x53e   :  { %5080 = vmatprep.subr.bf16.mxu0 %v13169_v23  ;;  %v13178_v23 = vld [vmem:[#allocation227_spill] sm:$0xff] }
 0x541   :  { %5081 = vmatpush1.bf16.msra.mxu0 %v13170_v26  ;;  %v4001_v26 = vld [vmem:[#allocation7 + $0x130] sm:$0xff] }
 0x542   :  { %5082 = vmatprep.subr.bf16.mxu0 %v13171_v10  ;;  %v4567_v10 = vpop.f32.mrf.mxu0  ;;  %v4562_v22 = vadd.f32 %v4561_v6, %v4001_v26 }
 0x544   :  { %v4605_v18 = vadd.f32 %v4604_v59, %v4562_v22  ;;  %v13181_v59 = vld [vmem:[#allocation241_spill] sm:$0xff] }
 0x545   :  { %5083 = vmatpush1.bf16.msra.mxu0 %v13172_v0  ;;  %v13179_v0 = vld [vmem:[#allocation229_spill] sm:$0xff] }
 0x546   :  { %5084 = vmatprep.subr.bf16.mxu0 %v13173_v29  ;;  %v4647_v29 = vpop.f32.mrf.mxu0 }
 0x547   :  { %v4648_v26 = vadd.f32 %v4647_v29, %v4605_v18 }
 0x549   :  { %5085 = vmatpush1.bf16.msra.mxu0 %v13174_v17  ;;  %v4009_v17 = vld [vmem:[#allocation7 + $0x170] sm:$0xff] }
 0x54a   :  { %5086 = vmatprep.subr.bf16.mxu0 %v13175_v36  ;;  %v4608_v36 = vpop.f32.mrf.mxu1  ;;  %v4566_v2 = vadd.f32 %v4565_v47, %v4009_v17 }
 0x54c   :  { %v4610_v57 = vpop.f32.mrf.mxu1  ;;  %v4609_v33 = vadd.f32 %v4608_v36, %v4566_v2  ;;  %v13183_v36 = vld [vmem:[#allocation245_spill] sm:$0xff] }
 0x54d   :  { %5087 = vmatpush1.bf16.msra.mxu0 %v13176_v54  ;;  %v4564_v54 = vadd.f32 %v4563_v41, %v4002_v31 }
 0x54e   :  { %5088 = vmatprep.subr.bf16.mxu0 %v13177_v28  ;;  %v4649_v28 = vpop.f32.mrf.mxu0 }
 0x550   :  { %v4651_v6 = vpop.f32.mrf.mxu0 }
 0x551   :  { %5089 = vmatpush1.bf16.msra.mxu0 %v13178_v23  ;;  %v4607_v23 = vadd.f32 %v4606_v38, %v4564_v54  ;;  %v4652_v17 = vadd.f32 %v4651_v6, %v4609_v33  ;;  %v13187_v33 = vld [vmem:[#allocation253_spill] sm:$0xff] }
 0x552   :  { %5090 = vmatprep.subr.bf16.mxu0 %v13179_v0  ;;  %v4568_v0 = vadd.f32 %v4567_v10, %v4010_v42  ;;  %v4653_v41 = vpop.f32.mrf.mxu0  ;;  %v13182_v42 = vld [vmem:[#allocation243_spill] sm:$0xff] }
 0x553   :  { %v4650_v31 = vadd.f32 %v4649_v28, %v4607_v23  ;;  %v13185_v28 = vld [vmem:[#allocation249_spill] sm:$0xff] }
 0x554   :  { %v4611_v51 = vadd.f32 %v4610_v57, %v4568_v0  ;;  %v13184_v57 = vld [vmem:[#allocation247_spill] sm:$0xff] }
 0x555   :  { %5091 = vmatpush1.bf16.msra.mxu0 %v12672_v60  ;;  %v13188_v0 = vld [vmem:[#allocation255_spill] sm:$0xff] }
 0x556   :  { %5092 = vmatprep.subr.bf16.mxu0 %v12673_v49  ;;  %v4654_v18 = vadd.f32 %v4653_v41, %v4611_v51  ;;  %v13189_v51 = vld [vmem:[#allocation257_spill] sm:$0xff] }
 0x557   :  { %v13192_v41 = vld [vmem:[#allocation233_spill] sm:$0xff] }
 0x559   :  { %5093 = vmatpush1.bf16.msra.mxu0 %v12677_v1 }
 0x55a   :  { %5094 = vmatprep.subr.bf16.mxu0 %v12679_v62 }
 0x55c   :  { %v4690_v60 = vpop.f32.mrf.mxu1 }
 0x55d   :  { %v4691_v20 = vadd.f32 %v4690_v60, %v4648_v26  ;;  %5095 = vmatpush2.bf16.msra.mxu0 %v13180_v25  ;;  %v13190_v26 = vld [vmem:[#allocation235_spill] sm:$0xff] }
 0x55e   :  { %v4692_v22 = vpop.f32.mrf.mxu1  ;;  %5096 = vmatprep.subr.bf16.mxu0 %v13181_v59  ;;  %v4737_v6 = vmul.f32 0.19300087, %v13190_v26  ;;  %v13195_v26 = vld [vmem:[#allocation261_spill] sm:$0xff]  ;;  %v7143_v59 = vld [vmem:[#allocation5 + $0x78] sm:$0xff] }
 0x55f   :  { %7040 = vtanh.f32 %v4691_v20  ;;  %v4693_v38 = vadd.f32 %v4692_v22, %v4650_v31  ;;  %v13186_v20 = vld [vmem:[#allocation251_spill] sm:$0xff] }
 0x560   :  { %v4694_v54 = vpop.f32.mrf.mxu1 }
 0x561   :  { %7042 = vtanh.f32 %v4693_v38  ;;  %v4695_v47 = vadd.f32 %v4694_v54, %v4652_v17  ;;  %5097 = vmatpush2.bf16.msra.mxu0 %v13182_v42  ;;  %v13191_v38 = vld [vmem:[#allocation534_spill] sm:$0xff]  ;;  %v4745_v54 = vmul.f32 0.19300087, %v13192_v41  ;;  %v4778_v41 = vmul.f32 0.9403203, %v7143_v59 }
 0x562   :  { %v4696_v2 = vpop.f32.mrf.mxu1  ;;  %5098 = vmatprep.subr.bf16.mxu0 %v13183_v36  ;;  %v4738_v17 = vmul.f32 0.19300087, %v13191_v38 }
 0x563   :  { %7044 = vtanh.f32 %v4695_v47  ;;  %v4697_v60 = vadd.f32 %v4696_v2, %v4654_v18  ;;  %v7140_v18 = vld [vmem:[#allocation5 + $0x30] sm:$0xff] }
 0x564   :  { %v4769_v2 = vmul.f32 0.9403203, %v7140_v18  ;;  %v13197_v18 = vld [vmem:[#allocation265_spill] sm:$0xff] }
 0x565   :  { %7046 = vtanh.f32 %v4697_v60  ;;  %5099 = vmatpush2.bf16.msra.mxu0 %v13184_v57 }
 0x566   :  { %5100 = vmatprep.subr.bf16.mxu0 %v13185_v28  ;;  %v7142_v28 = vld [vmem:[#allocation5 + $0x38] sm:$0xff] }
 0x567   :  { %v4770_v57 = vmul.f32 0.9403203, %v7142_v28 }
 0x569   :  { %5101 = vmatpush2.bf16.msra.mxu0 %v13186_v20 }
 0x56a   :  { %5102 = vmatprep.subr.bf16.mxu0 %v13187_v33  ;;  %v7141_v33 = vld [vmem:[#allocation5 + $0x70] sm:$0xff] }
 0x56b   :  { %v4777_v20 = vmul.f32 0.9403203, %v7141_v33  ;;  %v13196_v33 = vld [vmem:[#allocation263_spill] sm:$0xff] }
 0x56c   :  { %v7041_v23 = vpop.eup %7040 }
 0x56d   :  { %v4721_v10 = vmul.f32 0.26919085, %v7041_v23  ;;  %5103 = vmatpush2.bf16.msra.mxu0 %v13188_v0  ;;  %v13193_v23 = vld [vmem:[#allocation259_spill] sm:$0xff] }
 0x56e   :  { %v7043_v29 = vpop.eup %7042  ;;  %5104 = vmatprep.subr.bf16.mxu0 %v13189_v51  ;;  %v13194_v51 = vld [vmem:[#allocation535_spill] sm:$0xff] }
 0x56f   :  { %v4722_v31 = vmul.f32 0.26919085, %v7043_v29  ;;  %v4753_v47 = vadd.f32 %v4737_v6, %v4721_v10  ;;  %v4746_v36 = vmul.f32 0.19300087, %v13194_v51 }
 0x570   :  { %v7045_v22 = vpop.eup %7044 }
 0x571   :  { %v4729_v60 = vmul.f32 0.26919085, %v7045_v22  ;;  %5105 = vmatpush2.bf16.msra.mxu0 %v13193_v23  ;;  %v4754_v29 = vadd.f32 %v4738_v17, %v4722_v31  ;;  %v9889_v10 = vadd.f32 %v4769_v2, %v4753_v47  ;;  %v13203_v31 = vld [vmem:[#allocation273_spill] sm:$0xff]  ;;  %v13204_v17 = vld [vmem:[#allocation148_spill] sm:$0xff]  ;;  %v13206_v47 = vld [vmem:[#allocation150_spill] sm:$0xff] }
 0x572   :  { %v7047_v0 = vpop.eup %7046  ;;  %5106 = vmatprep.subr.bf16.mxu0 %v13195_v26  ;;  %v13207_v2 = vld [vmem:[#allocation277_spill] sm:$0xff]  ;;  %v13236_v26 = vld [vmem:[#allocation180_spill] sm:$0xff] }
 0x573   :  { %v4761_v42 = vadd.f32 %v4745_v54, %v4729_v60  ;;  %v4730_v38 = vmul.f32 0.26919085, %v7047_v0  ;;  %v9895_v23 = vadd.f32 %v4770_v57, %v4754_v29  ;;  %v13198_v0 = vld [vmem:[#allocation267_spill] sm:$0xff]  ;;  %v13208_v60 = vld [vmem:[#allocation152_spill] sm:$0xff] }
 0x574   :  { %v13201_v57 = vld [vmem:[#allocation271_spill] sm:$0xff] }
 0x575   :  { %v9891_v6 = vadd.f32 %v4777_v20, %v4761_v42  ;;  %v4762_v22 = vadd.f32 %v4746_v36, %v4730_v38  ;;  %5107 = vmatpush2.bf16.msra.mxu0 %v13196_v33  ;;  %v13199_v42 = vld [vmem:[#allocation269_spill] sm:$0xff]  ;;  %v13200_v36 = vld [vmem:[#allocation144_spill] sm:$0xff]  ;;  %v13202_v20 = vld [vmem:[#allocation146_spill] sm:$0xff] }
 0x576   :  { %5108 = vmatprep.subr.bf16.mxu0 %v13197_v18  ;;  %v13205_v54 = vld [vmem:[#allocation275_spill] sm:$0xff]  ;;  %v13210_v38 = vld [vmem:[#allocation154_spill] sm:$0xff] }
 0x577   :  { %v9897_v28 = vadd.f32 %v4778_v41, %v4762_v22  ;;  %v9901_v51 = vpack.c.bf16 %v9891_v6, %v9889_v10  ;;  %v13209_v29 = vld [vmem:[#allocation279_spill] sm:$0xff]  ;;  %v13211_v41 = vld [vmem:[#allocation281_spill] sm:$0xff]  ;;  %v13212_v22 = vld [vmem:[#allocation156_spill] sm:$0xff] }
 0x578   :  { %v13234_v18 = vld [vmem:[#allocation178_spill] sm:$0xff] }
 0x579   :  { %5109 = vmatpush2.bf16.msra.mxu0 %v13198_v0  ;;  %v9906_v59 = vpack.c.bf16 %v9897_v28, %v9895_v23  ;;  %v13232_v0 = vld [vmem:[#allocation176_spill] sm:$0xff] }
 0x57a   :  { %5164 = vmatprep.subr.bf16.mxu0 %v13199_v42 }
 0x57b   :  { %4981 = vmatprep.mubr.bf16.mxu1 %v9906_v59 }
 0x57c   :  { %5111 = vmatmul.mubr.bf16.vlgmr.msra.gmra.mxu0 %v9796_v35  ;;  %4982 = vmatmul.mubr.bf16.vlgmr.msra.gmra.mxu1 %v9901_v51 }
 0x57d   :  { %5036 = vmatpush1.bf16.msra.mxu1 %v13200_v36  ;;  %5165 = vmatpush1.bf16.msra.mxu0 %v13201_v57  ;;  %v4812_v36 = vld [vmem:[#allocation7 + $0xc0] sm:$0xff] }
 0x57e   :  { %5196 = vmatprep.mubr.bf16.mxu0 %v9507_v63  ;;  %5067 = vmatprep.mubr.bf16.mxu1 %v9681_v34 }
 0x57f   :  { %5037 = vmatprep.subr.bf16.mxu1 %v13202_v20  ;;  %5166 = vmatprep.subr.bf16.mxu0 %v13203_v31  ;;  %v13213_v20 = vld [vmem:[#allocation283_spill] sm:$0xff]  ;;  %v13214_v31 = vld [vmem:[#allocation158_spill] sm:$0xff] }
 0x581   :  { %5038 = vmatpush1.bf16.msra.mxu1 %v13204_v17  ;;  %5167 = vmatpush1.bf16.msra.mxu0 %v13205_v54  ;;  %v13215_v17 = vld [vmem:[#allocation285_spill] sm:$0xff]  ;;  %v13216_v54 = vld [vmem:[#allocation160_spill] sm:$0xff] }
 0x582   :  { %5039 = vmatprep.subr.bf16.mxu1 %v13206_v47  ;;  %5168 = vmatprep.subr.bf16.mxu0 %v13207_v2  ;;  %v13217_v47 = vld [vmem:[#allocation287_spill] sm:$0xff]  ;;  %v13218_v2 = vld [vmem:[#allocation162_spill] sm:$0xff] }
 0x585   :  { %5040 = vmatpush1.bf16.msra.mxu1 %v13208_v60  ;;  %5169 = vmatpush1.bf16.msra.mxu0 %v13209_v29  ;;  %v13219_v60 = vld [vmem:[#allocation289_spill] sm:$0xff]  ;;  %v13220_v29 = vld [vmem:[#allocation164_spill] sm:$0xff] }
 0x586   :  { %5041 = vmatprep.subr.bf16.mxu1 %v13210_v38  ;;  %5170 = vmatprep.subr.bf16.mxu0 %v13211_v41  ;;  %v13221_v38 = vld [vmem:[#allocation291_spill] sm:$0xff]  ;;  %v13222_v41 = vld [vmem:[#allocation166_spill] sm:$0xff] }
 0x589   :  { %5042 = vmatpush1.bf16.msra.mxu1 %v13212_v22  ;;  %5171 = vmatpush1.bf16.msra.mxu0 %v13213_v20  ;;  %v13223_v22 = vld [vmem:[#allocation293_spill] sm:$0xff]  ;;  %v4854_v20 = vpop.f32.mrf.mxu0 }
 0x58a   :  { %5043 = vmatprep.subr.bf16.mxu1 %v13214_v31  ;;  %5172 = vmatprep.subr.bf16.mxu0 %v13215_v17  ;;  %v13224_v31 = vld [vmem:[#allocation168_spill] sm:$0xff]  ;;  %v13225_v17 = vld [vmem:[#allocation295_spill] sm:$0xff] }
 0x58b   :  { %v9942_v57 = vpop.f32.mrf.mxu0 }
 0x58d   :  { %5044 = vmatpush1.bf16.msra.mxu1 %v13216_v54  ;;  %5173 = vmatpush1.bf16.msra.mxu0 %v13217_v47  ;;  %v13226_v54 = vld [vmem:[#allocation170_spill] sm:$0xff]  ;;  %v13227_v47 = vld [vmem:[#allocation297_spill] sm:$0xff] }
 0x58e   :  { %5045 = vmatprep.subr.bf16.mxu1 %v13218_v2  ;;  %5174 = vmatprep.subr.bf16.mxu0 %v13219_v60  ;;  %v4804_v2 = vld [vmem:[#allocation7 + $0x80] sm:$0xff]  ;;  %v13228_v60 = vld [vmem:[#allocation172_spill] sm:$0xff] }
 0x591   :  { %5046 = vmatpush1.bf16.msra.mxu1 %v13220_v29  ;;  %5175 = vmatpush1.bf16.msra.mxu0 %v13221_v38  ;;  %v13229_v29 = vld [vmem:[#allocation299_spill] sm:$0xff]  ;;  %v13230_v38 = vld [vmem:[#allocation174_spill] sm:$0xff] }
 0x592   :  { %5047 = vmatprep.subr.bf16.mxu1 %v13222_v41  ;;  %5176 = vmatprep.subr.bf16.mxu0 %v13223_v22  ;;  %v13231_v41 = vld [vmem:[#allocation301_spill] sm:$0xff]  ;;  %v4855_v22 = vadd.f32 %v4854_v20, %v4804_v2  ;;  %v13237_v20 = vld [vmem:[#allocation307_spill] sm:$0xff]  ;;  %v13238_v2 = vld [vmem:[#allocation182_spill] sm:$0xff] }
 0x595   :  { %5048 = vmatpush1.bf16.msra.mxu1 %v13224_v31  ;;  %5177 = vmatpush1.bf16.msra.mxu0 %v13225_v17  ;;  %v4858_v31 = vpop.f32.mrf.mxu0 }
 0x596   :  { %5049 = vmatprep.subr.bf16.mxu1 %v13226_v54  ;;  %5178 = vmatprep.subr.bf16.mxu0 %v13227_v47  ;;  %v13233_v54 = vld [vmem:[#allocation303_spill] sm:$0xff] }
 0x599   :  { %5050 = vmatpush1.bf16.msra.mxu1 %v13228_v60  ;;  %5179 = vmatpush1.bf16.msra.mxu0 %v13229_v29  ;;  %v13235_v60 = vld [vmem:[#allocation305_spill] sm:$0xff]  ;;  %v4859_v29 = vadd.f32 %v4858_v31, %v4812_v36  ;;  %v13245_v36 = vld [vmem:[#allocation315_spill] sm:$0xff] }
 0x59a   :  { %5051 = vmatprep.subr.bf16.mxu1 %v13230_v38  ;;  %5180 = vmatprep.subr.bf16.mxu0 %v13231_v41  ;;  %v13247_v31 = vld [vmem:[#allocation317_spill] sm:$0xff] }
 0x59c   :  { %v4897_v42 = vpop.f32.mrf.mxu1 }
 0x59d   :  { %v4898_v17 = vadd.f32 %v4897_v42, %v4855_v22  ;;  %5052 = vmatpush2.bf16.msra.mxu1 %v13232_v0  ;;  %5181 = vmatpush2.bf16.msra.mxu0 %v13233_v54  ;;  %v13239_v42 = vld [vmem:[#allocation309_spill] sm:$0xff]  ;;  %v13240_v22 = vld [vmem:[#allocation184_spill] sm:$0xff]  ;;  %v13241_v54 = vld [vmem:[#allocation311_spill] sm:$0xff] }
 0x59e   :  { %v9950_v47 = vpop.f32.mrf.mxu1  ;;  %5053 = vmatprep.subr.bf16.mxu1 %v13234_v18  ;;  %5182 = vmatprep.subr.bf16.mxu0 %v13235_v60  ;;  %v13242_v0 = vld [vmem:[#allocation186_spill] sm:$0xff]  ;;  %v13243_v18 = vld [vmem:[#allocation313_spill] sm:$0xff]  ;;  %v13244_v60 = vld [vmem:[#allocation188_spill] sm:$0xff] }
 0x5a0   :  { %v4901_v33 = vpop.f32.mrf.mxu1 }
 0x5a1   :  { %v4902_v38 = vadd.f32 %v4901_v33, %v4859_v29  ;;  %5054 = vmatpush2.bf16.msra.mxu1 %v13236_v26  ;;  %5183 = vmatpush2.bf16.msra.mxu0 %v13237_v20  ;;  %v13246_v33 = vld [vmem:[#allocation190_spill] sm:$0xff]  ;;  %v13248_v29 = vld [vmem:[#allocation192_spill] sm:$0xff]  ;;  %v13273_v20 = vld [vmem:[#allocation343_spill] sm:$0xff] }
 0x5a2   :  { %5055 = vmatprep.subr.bf16.mxu1 %v13238_v2  ;;  %5184 = vmatprep.subr.bf16.mxu0 %v13239_v42  ;;  %v13249_v2 = vld [vmem:[#allocation319_spill] sm:$0xff]  ;;  %v13250_v42 = vld [vmem:[#allocation194_spill] sm:$0xff] }
 0x5a3   :  { %v13274_v26 = vld [vmem:[#allocation218_spill] sm:$0xff] }
 0x5a5   :  { %5056 = vmatpush2.bf16.msra.mxu1 %v13240_v22  ;;  %5185 = vmatpush2.bf16.msra.mxu0 %v13241_v54  ;;  %v13251_v22 = vld [vmem:[#allocation321_spill] sm:$0xff]  ;;  %v13252_v54 = vld [vmem:[#allocation196_spill] sm:$0xff] }
 0x5a6   :  { %5057 = vmatprep.subr.bf16.mxu1 %v13242_v0  ;;  %5186 = vmatprep.subr.bf16.mxu0 %v13243_v18  ;;  %v13253_v0 = vld [vmem:[#allocation323_spill] sm:$0xff]  ;;  %v13254_v18 = vld [vmem:[#allocation198_spill] sm:$0xff] }
 0x5a9   :  { %5058 = vmatpush2.bf16.msra.mxu1 %v13244_v60  ;;  %5187 = vmatpush2.bf16.msra.mxu0 %v13245_v36  ;;  %v13255_v60 = vld [vmem:[#allocation325_spill] sm:$0xff]  ;;  %v13256_v36 = vld [vmem:[#allocation200_spill] sm:$0xff] }
 0x5aa   :  { %5059 = vmatprep.subr.bf16.mxu1 %v13246_v33  ;;  %5188 = vmatprep.subr.bf16.mxu0 %v13247_v31  ;;  %v13257_v33 = vld [vmem:[#allocation327_spill] sm:$0xff]  ;;  %v13258_v31 = vld [vmem:[#allocation202_spill] sm:$0xff] }
 0x5ad   :  { %5060 = vmatpush2.bf16.msra.mxu1 %v13248_v29  ;;  %5189 = vmatpush2.bf16.msra.mxu0 %v13249_v2  ;;  %v13259_v29 = vld [vmem:[#allocation329_spill] sm:$0xff]  ;;  %v13260_v2 = vld [vmem:[#allocation204_spill] sm:$0xff] }
 0x5ae   :  { %5061 = vmatprep.subr.bf16.mxu1 %v13250_v42  ;;  %5190 = vmatprep.subr.bf16.mxu0 %v13251_v22  ;;  %v13261_v42 = vld [vmem:[#allocation331_spill] sm:$0xff]  ;;  %v9980_v22 = vpop.f32.mrf.mxu0 }
 0x5b1   :  { %5062 = vmatpush2.bf16.msra.mxu1 %v13252_v54  ;;  %5191 = vmatpush2.bf16.msra.mxu0 %v13253_v0  ;;  %v13262_v54 = vld [vmem:[#allocation206_spill] sm:$0xff]  ;;  %v13263_v0 = vld [vmem:[#allocation333_spill] sm:$0xff] }
 0x5b2   :  { %5063 = vmatprep.subr.bf16.mxu1 %v13254_v18  ;;  %5192 = vmatprep.subr.bf16.mxu0 %v13255_v60  ;;  %v13268_v18 = vld [vmem:[#allocation212_spill] sm:$0xff] }
 0x5b5   :  { %5064 = vmatpush2.bf16.msra.mxu1 %v13256_v36  ;;  %5193 = vmatpush2.bf16.msra.mxu0 %v13257_v33 }
 0x5b6   :  { %5065 = vmatprep.subr.bf16.mxu1 %v13258_v31  ;;  %5194 = vmatprep.subr.bf16.mxu0 %v13259_v29  ;;  %v13264_v31 = vld [vmem:[#allocation208_spill] sm:$0xff] }
 0x5b9   :  { %5066 = vmatpush2.bf16.msra.mxu1 %v13260_v2  ;;  %5195 = vmatpush2.bf16.msra.mxu0 %v13261_v42  ;;  %v13265_v2 = vld [vmem:[#allocation335_spill] sm:$0xff] }
 0x5ba   :  { %5121 = vmatprep.subr.bf16.mxu1 %v13262_v54  ;;  %5250 = vmatprep.subr.bf16.mxu0 %v13263_v0  ;;  %v13266_v54 = vld [vmem:[#allocation210_spill] sm:$0xff]  ;;  %v13267_v0 = vld [vmem:[#allocation337_spill] sm:$0xff] }
 0x5bc   :  { %5068 = vmatmul.mubr.bf16.vlgmr.msra.gmra.mxu1 %v9675_v48  ;;  %5197 = vmatmul.mubr.bf16.vlgmr.msra.gmra.mxu0 %v9501_v7  ;;  %v4940_v36 = vpop.f32.mrf.mxu0 }
 0x5bd   :  { %v9986_v33 = vadd.f32 %v4940_v36, %v4898_v17  ;;  %5122 = vmatpush1.bf16.msra.mxu1 %v13264_v31  ;;  %5153 = vmatprep.mubr.bf16.mxu1 %v9906_v59  ;;  %v13269_v17 = vld [vmem:[#allocation339_spill] sm:$0xff]  ;;  %v13270_v36 = vld [vmem:[#allocation214_spill] sm:$0xff]  ;;  %v13271_v31 = vld [vmem:[#allocation341_spill] sm:$0xff] }
 0x5be   :  { %5251 = vmatpush1.bf16.msra.mxu0 %v13265_v2  ;;  %5282 = vmatprep.mubr.bf16.mxu0 %v9800_v21  ;;  %v9992_v42 = vpop.f32.mrf.mxu0  ;;  %v13272_v2 = vld [vmem:[#allocation216_spill] sm:$0xff] }
 0x5bf   :  { %5123 = vmatprep.subr.bf16.mxu1 %v13266_v54  ;;  %5252 = vmatprep.subr.bf16.mxu0 %v13267_v0  ;;  %v13275_v54 = vld [vmem:[#allocation345_spill] sm:$0xff]  ;;  %v13276_v0 = vld [vmem:[#allocation220_spill] sm:$0xff] }
 0x5c0   :  { %v4944_v29 = vpop.f32.mrf.mxu0 }
 0x5c1   :  { %v9996_v60 = vadd.f32 %v4944_v29, %v4902_v38  ;;  %5124 = vmatpush1.bf16.msra.mxu1 %v13268_v18  ;;  %v13277_v38 = vld [vmem:[#allocation347_spill] sm:$0xff]  ;;  %v13278_v29 = vld [vmem:[#allocation222_spill] sm:$0xff]  ;;  %v13279_v18 = vld [vmem:[#allocation349_spill] sm:$0xff] }
 0x5c2   :  { %5253 = vmatpush1.bf16.msra.mxu0 %v13269_v17  ;;  %5125 = vmatprep.subr.bf16.mxu1 %v13270_v36  ;;  %v13280_v17 = vld [vmem:[#allocation224_spill] sm:$0xff]  ;;  %v13281_v36 = vld [vmem:[#allocation351_spill] sm:$0xff] }
 0x5c3   :  { %5254 = vmatprep.subr.bf16.mxu0 %v13271_v31  ;;  %v13282_v31 = vld [vmem:[#allocation226_spill] sm:$0xff] }
 0x5c5   :  { %5126 = vmatpush1.bf16.msra.mxu1 %v13272_v2  ;;  %v13283_v2 = vld [vmem:[#allocation353_spill] sm:$0xff] }
 0x5c6   :  { %5255 = vmatpush1.bf16.msra.mxu0 %v13273_v20  ;;  %5127 = vmatprep.subr.bf16.mxu1 %v13274_v26  ;;  %v13284_v20 = vld [vmem:[#allocation228_spill] sm:$0xff]  ;;  %v13285_v26 = vld [vmem:[#allocation355_spill] sm:$0xff] }
 0x5c7   :  { %5256 = vmatprep.subr.bf16.mxu0 %v13275_v54  ;;  %v13286_v54 = vld [vmem:[#allocation230_spill] sm:$0xff] }
 0x5c9   :  { %5128 = vmatpush1.bf16.msra.mxu1 %v13276_v0  ;;  %v13287_v0 = vld [vmem:[#allocation357_spill] sm:$0xff] }
 0x5ca   :  { %5257 = vmatpush1.bf16.msra.mxu0 %v13277_v38  ;;  %5129 = vmatprep.subr.bf16.mxu1 %v13278_v29  ;;  %v13288_v38 = vld [vmem:[#allocation232_spill] sm:$0xff]  ;;  %v13289_v29 = vld [vmem:[#allocation359_spill] sm:$0xff] }
 0x5cb   :  { %5258 = vmatprep.subr.bf16.mxu0 %v13279_v18  ;;  %v13290_v18 = vld [vmem:[#allocation234_spill] sm:$0xff] }
 0x5cd   :  { %5130 = vmatpush1.bf16.msra.mxu1 %v13280_v17  ;;  %v13291_v17 = vld [vmem:[#allocation361_spill] sm:$0xff] }
 0x5ce   :  { %5259 = vmatpush1.bf16.msra.mxu0 %v13281_v36  ;;  %5131 = vmatprep.subr.bf16.mxu1 %v13282_v31  ;;  %v13292_v36 = vld [vmem:[#allocation236_spill] sm:$0xff]  ;;  %v13293_v31 = vld [vmem:[#allocation363_spill] sm:$0xff] }
 0x5cf   :  { %5260 = vmatprep.subr.bf16.mxu0 %v13283_v2  ;;  %v13294_v2 = vld [vmem:[#allocation238_spill] sm:$0xff] }
 0x5d1   :  { %5132 = vmatpush1.bf16.msra.mxu1 %v13284_v20  ;;  %v13295_v20 = vld [vmem:[#allocation365_spill] sm:$0xff] }
 0x5d2   :  { %5261 = vmatpush1.bf16.msra.mxu0 %v13285_v26  ;;  %5133 = vmatprep.subr.bf16.mxu1 %v13286_v54  ;;  %v13296_v26 = vld [vmem:[#allocation240_spill] sm:$0xff]  ;;  %v13297_v54 = vld [vmem:[#allocation369_spill] sm:$0xff] }
 0x5d3   :  { %5262 = vmatprep.subr.bf16.mxu0 %v13287_v0  ;;  %v13298_v0 = vld [vmem:[#allocation242_spill] sm:$0xff] }
 0x5d5   :  { %5134 = vmatpush1.bf16.msra.mxu1 %v13288_v38  ;;  %v13299_v38 = vld [vmem:[#allocation372_spill] sm:$0xff] }
 0x5d6   :  { %5263 = vmatpush1.bf16.msra.mxu0 %v13289_v29  ;;  %5135 = vmatprep.subr.bf16.mxu1 %v13290_v18  ;;  %v13300_v29 = vld [vmem:[#allocation244_spill] sm:$0xff]  ;;  %v13301_v18 = vld [vmem:[#allocation374_spill] sm:$0xff] }
 0x5d7   :  { %5264 = vmatprep.subr.bf16.mxu0 %v13291_v17  ;;  %v13302_v17 = vld [vmem:[#allocation246_spill] sm:$0xff] }
 0x5d9   :  { %5136 = vmatpush1.bf16.msra.mxu1 %v13292_v36  ;;  %v13303_v36 = vld [vmem:[#allocation376_spill] sm:$0xff] }
 0x5da   :  { %5265 = vmatpush1.bf16.msra.mxu0 %v13293_v31  ;;  %5137 = vmatprep.subr.bf16.mxu1 %v13294_v2  ;;  %v13304_v31 = vld [vmem:[#allocation248_spill] sm:$0xff]  ;;  %v13305_v2 = vld [vmem:[#allocation378_spill] sm:$0xff] }
 0x5db   :  { %5266 = vmatprep.subr.bf16.mxu0 %v13295_v20  ;;  %v13306_v20 = vld [vmem:[#allocation250_spill] sm:$0xff] }
 0x5dd   :  { %5138 = vmatpush2.bf16.msra.mxu1 %v13296_v26  ;;  %v13307_v26 = vld [vmem:[#allocation380_spill] sm:$0xff] }
 0x5de   :  { %5267 = vmatpush2.bf16.msra.mxu0 %v13297_v54  ;;  %5139 = vmatprep.subr.bf16.mxu1 %v13298_v0  ;;  %v13308_v54 = vld [vmem:[#allocation252_spill] sm:$0xff]  ;;  %v13309_v0 = vld [vmem:[#allocation382_spill] sm:$0xff] }
 0x5df   :  { %5268 = vmatprep.subr.bf16.mxu0 %v13299_v38  ;;  %v13310_v38 = vld [vmem:[#allocation254_spill] sm:$0xff] }
 0x5e1   :  { %5140 = vmatpush2.bf16.msra.mxu1 %v13300_v29  ;;  %v13311_v29 = vld [vmem:[#allocation384_spill] sm:$0xff] }
 0x5e2   :  { %5269 = vmatpush2.bf16.msra.mxu0 %v13301_v18  ;;  %5141 = vmatprep.subr.bf16.mxu1 %v13302_v17  ;;  %v13312_v18 = vld [vmem:[#allocation256_spill] sm:$0xff]  ;;  %v13313_v17 = vld [vmem:[#allocation386_spill] sm:$0xff] }
 0x5e3   :  { %5270 = vmatprep.subr.bf16.mxu0 %v13303_v36  ;;  %v13314_v36 = vld [vmem:[#allocation258_spill] sm:$0xff] }
 0x5e5   :  { %5142 = vmatpush2.bf16.msra.mxu1 %v13304_v31  ;;  %v13315_v31 = vld [vmem:[#allocation388_spill] sm:$0xff] }
 0x5e6   :  { %5271 = vmatpush2.bf16.msra.mxu0 %v13305_v2  ;;  %5143 = vmatprep.subr.bf16.mxu1 %v13306_v20  ;;  %v13316_v2 = vld [vmem:[#allocation260_spill] sm:$0xff]  ;;  %v13317_v20 = vld [vmem:[#allocation390_spill] sm:$0xff] }
 0x5e7   :  { %5272 = vmatprep.subr.bf16.mxu0 %v13307_v26  ;;  %v13318_v26 = vld [vmem:[#allocation262_spill] sm:$0xff] }
 0x5e9   :  { %5144 = vmatpush2.bf16.msra.mxu1 %v13308_v54  ;;  %v13319_v54 = vld [vmem:[#allocation392_spill] sm:$0xff] }
 0x5ea   :  { %5273 = vmatpush2.bf16.msra.mxu0 %v13309_v0  ;;  %5145 = vmatprep.subr.bf16.mxu1 %v13310_v38  ;;  %v13320_v0 = vld [vmem:[#allocation264_spill] sm:$0xff]  ;;  %v13321_v38 = vld [vmem:[#allocation394_spill] sm:$0xff] }
 0x5eb   :  { %5274 = vmatprep.subr.bf16.mxu0 %v13311_v29  ;;  %v13322_v29 = vld [vmem:[#allocation266_spill] sm:$0xff] }
 0x5ed   :  { %5146 = vmatpush2.bf16.msra.mxu1 %v13312_v18  ;;  %v13323_v18 = vld [vmem:[#allocation396_spill] sm:$0xff] }
 0x5ee   :  { %5275 = vmatpush2.bf16.msra.mxu0 %v13313_v17  ;;  %5147 = vmatprep.subr.bf16.mxu1 %v13314_v36  ;;  %v13324_v17 = vld [vmem:[#allocation268_spill] sm:$0xff]  ;;  %v13325_v36 = vld [vmem:[#allocation398_spill] sm:$0xff] }
 0x5ef   :  { %5276 = vmatprep.subr.bf16.mxu0 %v13315_v31  ;;  %v13326_v31 = vld [vmem:[#allocation270_spill] sm:$0xff] }
 0x5f1   :  { %5148 = vmatpush2.bf16.msra.mxu1 %v13316_v2  ;;  %v13327_v2 = vld [vmem:[#allocation400_spill] sm:$0xff] }
 0x5f2   :  { %5277 = vmatpush2.bf16.msra.mxu0 %v13317_v20  ;;  %5149 = vmatprep.subr.bf16.mxu1 %v13318_v26  ;;  %v13338_v26 = vld [vmem:[#allocation282_spill] sm:$0xff] }
 0x5f3   :  { %5278 = vmatprep.subr.bf16.mxu0 %v13319_v54  ;;  %v13328_v54 = vld [vmem:[#allocation272_spill] sm:$0xff] }
 0x5f5   :  { %5150 = vmatpush2.bf16.msra.mxu1 %v13320_v0  ;;  %v13336_v0 = vld [vmem:[#allocation280_spill] sm:$0xff] }
 0x5f6   :  { %5279 = vmatpush2.bf16.msra.mxu0 %v13321_v38  ;;  %5151 = vmatprep.subr.bf16.mxu1 %v13322_v29  ;;  %v13329_v38 = vld [vmem:[#allocation402_spill] sm:$0xff]  ;;  %v13335_v29 = vld [vmem:[#allocation408_spill] sm:$0xff] }
 0x5f7   :  { %5280 = vmatprep.subr.bf16.mxu0 %v13323_v18  ;;  %v13330_v18 = vld [vmem:[#allocation274_spill] sm:$0xff] }
 0x5f9   :  { %5152 = vmatpush2.bf16.msra.mxu1 %v13324_v17  ;;  %v13331_v17 = vld [vmem:[#allocation404_spill] sm:$0xff] }
 0x5fa   :  { %5281 = vmatpush2.bf16.msra.mxu0 %v13325_v36  ;;  %5207 = vmatprep.subr.bf16.mxu1 %v13326_v31  ;;  %v13332_v36 = vld [vmem:[#allocation276_spill] sm:$0xff]  ;;  %v13333_v31 = vld [vmem:[#allocation406_spill] sm:$0xff] }
 0x5fb   :  { %5336 = vmatprep.subr.bf16.mxu0 %v13327_v2  ;;  %v13334_v2 = vld [vmem:[#allocation278_spill] sm:$0xff] }
 0x5fc   :  { %5154 = vmatmul.mubr.bf16.vlgmr.msra.gmra.mxu1 %v9901_v51 }
 0x5fd   :  { %5283 = vmatmul.mubr.bf16.vlgmr.msra.gmra.mxu0 %v9796_v35  ;;  %5208 = vmatpush1.bf16.msra.mxu1 %v13328_v54  ;;  %v13337_v54 = vld [vmem:[#allocation410_spill] sm:$0xff] }
 0x5fe   :  { %5239 = vmatprep.mubr.bf16.mxu1 %v9681_v34  ;;  %5337 = vmatpush1.bf16.msra.mxu0 %v13329_v38  ;;  %v13339_v38 = vld [vmem:[#allocation412_spill] sm:$0xff] }
 0x5ff   :  { %5368 = vmatprep.mubr.bf16.mxu0 %v9507_v63  ;;  %5209 = vmatprep.subr.bf16.mxu1 %v13330_v18  ;;  %v13340_v63 = vld [vmem:[#allocation284_spill] sm:$0xff]  ;;  %v13341_v18 = vld [vmem:[#allocation414_spill] sm:$0xff] }
 0x600   :  { %5338 = vmatprep.subr.bf16.mxu0 %v13331_v17  ;;  %v13342_v17 = vld [vmem:[#allocation286_spill] sm:$0xff] }
 0x601   :  { %5210 = vmatpush1.bf16.msra.mxu1 %v13332_v36  ;;  %v13343_v36 = vld [vmem:[#allocation416_spill] sm:$0xff] }
 0x602   :  { %5339 = vmatpush1.bf16.msra.mxu0 %v13333_v31  ;;  %5211 = vmatprep.subr.bf16.mxu1 %v13334_v2  ;;  %v13344_v31 = vld [vmem:[#allocation288_spill] sm:$0xff]  ;;  %v13345_v2 = vld [vmem:[#allocation418_spill] sm:$0xff] }
 0x603   :  { %5340 = vmatprep.subr.bf16.mxu0 %v13335_v29  ;;  %v13346_v29 = vld [vmem:[#allocation290_spill] sm:$0xff] }
 0x605   :  { %5212 = vmatpush1.bf16.msra.mxu1 %v13336_v0  ;;  %v13347_v0 = vld [vmem:[#allocation420_spill] sm:$0xff] }
 0x606   :  { %5341 = vmatpush1.bf16.msra.mxu0 %v13337_v54  ;;  %5213 = vmatprep.subr.bf16.mxu1 %v13338_v26  ;;  %v13348_v54 = vld [vmem:[#allocation292_spill] sm:$0xff]  ;;  %v13349_v26 = vld [vmem:[#allocation422_spill] sm:$0xff] }
 0x607   :  { %5342 = vmatprep.subr.bf16.mxu0 %v13339_v38  ;;  %v13350_v38 = vld [vmem:[#allocation294_spill] sm:$0xff] }
 0x609   :  { %5214 = vmatpush1.bf16.msra.mxu1 %v13340_v63  ;;  %v13351_v63 = vld [vmem:[#allocation424_spill] sm:$0xff] }
 0x60a   :  { %5343 = vmatpush1.bf16.msra.mxu0 %v13341_v18  ;;  %5215 = vmatprep.subr.bf16.mxu1 %v13342_v17  ;;  %v13352_v18 = vld [vmem:[#allocation296_spill] sm:$0xff]  ;;  %v13353_v17 = vld [vmem:[#allocation426_spill] sm:$0xff] }
 0x60b   :  { %5344 = vmatprep.subr.bf16.mxu0 %v13343_v36  ;;  %v13354_v36 = vld [vmem:[#allocation298_spill] sm:$0xff] }
 0x60d   :  { %5216 = vmatpush1.bf16.msra.mxu1 %v13344_v31  ;;  %v13355_v31 = vld [vmem:[#allocation428_spill] sm:$0xff] }
 0x60e   :  { %5345 = vmatpush1.bf16.msra.mxu0 %v13345_v2  ;;  %5217 = vmatprep.subr.bf16.mxu1 %v13346_v29  ;;  %v13356_v2 = vld [vmem:[#allocation300_spill] sm:$0xff]  ;;  %v13357_v29 = vld [vmem:[#allocation430_spill] sm:$0xff] }
 0x60f   :  { %5346 = vmatprep.subr.bf16.mxu0 %v13347_v0  ;;  %v13358_v0 = vld [vmem:[#allocation302_spill] sm:$0xff] }
 0x611   :  { %5218 = vmatpush1.bf16.msra.mxu1 %v13348_v54  ;;  %v13359_v54 = vld [vmem:[#allocation432_spill] sm:$0xff] }
 0x612   :  { %5347 = vmatpush1.bf16.msra.mxu0 %v13349_v26  ;;  %5219 = vmatprep.subr.bf16.mxu1 %v13350_v38  ;;  %v13360_v26 = vld [vmem:[#allocation304_spill] sm:$0xff]  ;;  %v13361_v38 = vld [vmem:[#allocation434_spill] sm:$0xff] }
 0x613   :  { %5348 = vmatprep.subr.bf16.mxu0 %v13351_v63  ;;  %v13362_v63 = vld [vmem:[#allocation306_spill] sm:$0xff] }
 0x615   :  { %5220 = vmatpush1.bf16.msra.mxu1 %v13352_v18  ;;  %v13363_v18 = vld [vmem:[#allocation436_spill] sm:$0xff] }
 0x616   :  { %5349 = vmatpush1.bf16.msra.mxu0 %v13353_v17  ;;  %5221 = vmatprep.subr.bf16.mxu1 %v13354_v36  ;;  %v13364_v17 = vld [vmem:[#allocation308_spill] sm:$0xff]  ;;  %v13365_v36 = vld [vmem:[#allocation438_spill] sm:$0xff] }
 0x617   :  { %5350 = vmatprep.subr.bf16.mxu0 %v13355_v31  ;;  %v13366_v31 = vld [vmem:[#allocation310_spill] sm:$0xff] }
 0x619   :  { %5222 = vmatpush1.bf16.msra.mxu1 %v13356_v2  ;;  %v13367_v2 = vld [vmem:[#allocation440_spill] sm:$0xff] }
 0x61a   :  { %5351 = vmatpush1.bf16.msra.mxu0 %v13357_v29  ;;  %5223 = vmatprep.subr.bf16.mxu1 %v13358_v0  ;;  %v13368_v29 = vld [vmem:[#allocation312_spill] sm:$0xff]  ;;  %v13369_v0 = vld [vmem:[#allocation442_spill] sm:$0xff] }
 0x61b   :  { %5352 = vmatprep.subr.bf16.mxu0 %v13359_v54  ;;  %v13370_v54 = vld [vmem:[#allocation314_spill] sm:$0xff] }
 0x61d   :  { %5224 = vmatpush2.bf16.msra.mxu1 %v13360_v26  ;;  %v13371_v26 = vld [vmem:[#allocation444_spill] sm:$0xff] }
 0x61e   :  { %5353 = vmatpush2.bf16.msra.mxu0 %v13361_v38  ;;  %5225 = vmatprep.subr.bf16.mxu1 %v13362_v63  ;;  %v13372_v38 = vld [vmem:[#allocation316_spill] sm:$0xff]  ;;  %v13373_v63 = vld [vmem:[#allocation446_spill] sm:$0xff] }
 0x61f   :  { %5354 = vmatprep.subr.bf16.mxu0 %v13363_v18  ;;  %v13374_v18 = vld [vmem:[#allocation318_spill] sm:$0xff] }
 0x621   :  { %5226 = vmatpush2.bf16.msra.mxu1 %v13364_v17  ;;  %v13375_v17 = vld [vmem:[#allocation448_spill] sm:$0xff] }
 0x622   :  { %5355 = vmatpush2.bf16.msra.mxu0 %v13365_v36  ;;  %5227 = vmatprep.subr.bf16.mxu1 %v13366_v31  ;;  %v13376_v36 = vld [vmem:[#allocation320_spill] sm:$0xff]  ;;  %v13377_v31 = vld [vmem:[#allocation450_spill] sm:$0xff] }
 0x623   :  { %5356 = vmatprep.subr.bf16.mxu0 %v13367_v2  ;;  %v13378_v2 = vld [vmem:[#allocation322_spill] sm:$0xff] }
 0x625   :  { %5228 = vmatpush2.bf16.msra.mxu1 %v13368_v29  ;;  %v13379_v29 = vld [vmem:[#allocation452_spill] sm:$0xff] }
 0x626   :  { %5357 = vmatpush2.bf16.msra.mxu0 %v13369_v0  ;;  %5229 = vmatprep.subr.bf16.mxu1 %v13370_v54  ;;  %v13380_v0 = vld [vmem:[#allocation324_spill] sm:$0xff]  ;;  %v13381_v54 = vld [vmem:[#allocation454_spill] sm:$0xff] }
 0x627   :  { %5358 = vmatprep.subr.bf16.mxu0 %v13371_v26  ;;  %v13382_v26 = vld [vmem:[#allocation326_spill] sm:$0xff] }
 0x629   :  { %5230 = vmatpush2.bf16.msra.mxu1 %v13372_v38  ;;  %v13383_v38 = vld [vmem:[#allocation456_spill] sm:$0xff] }
 0x62a   :  { %5359 = vmatpush2.bf16.msra.mxu0 %v13373_v63  ;;  %5231 = vmatprep.subr.bf16.mxu1 %v13374_v18  ;;  %v13384_v63 = vld [vmem:[#allocation328_spill] sm:$0xff] }
 0x62b   :  { %5360 = vmatprep.subr.bf16.mxu0 %v13375_v17  ;;  %v4805_v18 = vld [vmem:[#allocation7 + $0x88] sm:$0xff] }
 0x62d   :  { %5232 = vmatpush2.bf16.msra.mxu1 %v13376_v36  ;;  %v13385_v36 = vld [vmem:[#allocation330_spill] sm:$0xff] }
 0x62e   :  { %5361 = vmatpush2.bf16.msra.mxu0 %v13377_v31  ;;  %5233 = vmatprep.subr.bf16.mxu1 %v13378_v2  ;;  %v4857_v2 = vadd.f32 %v9942_v57, %v4805_v18  ;;  %v4903_v31 = vpop.f32.mrf.mxu1  ;;  %v13388_v57 = vld [vmem:[#allocation336_spill] sm:$0xff] }
 0x62f   :  { %5362 = vmatprep.subr.bf16.mxu0 %v13379_v29  ;;  %v13386_v29 = vld [vmem:[#allocation332_spill] sm:$0xff] }
 0x631   :  { %5234 = vmatpush2.bf16.msra.mxu1 %v13380_v0  ;;  %v4813_v0 = vld [vmem:[#allocation7 + $0xc8] sm:$0xff] }
 0x632   :  { %5363 = vmatpush2.bf16.msra.mxu0 %v13381_v54  ;;  %5235 = vmatprep.subr.bf16.mxu1 %v13382_v26  ;;  %v13387_v26 = vld [vmem:[#allocation334_spill] sm:$0xff] }
 0x633   :  { %5364 = vmatprep.subr.bf16.mxu0 %v13383_v38  ;;  %v4900_v38 = vadd.f32 %v9950_v47, %v4857_v2 }
 0x635   :  { %5236 = vmatpush2.bf16.msra.mxu1 %v13384_v63 }
 0x636   :  { %5365 = vmatpush2.bf16.msra.mxu0 %v12898_v8  ;;  %5237 = vmatprep.subr.bf16.mxu1 %v13385_v36  ;;  %v4861_v36 = vadd.f32 %v9980_v22, %v4813_v0  ;;  %v13389_v0 = vld [vmem:[#allocation338_spill] sm:$0xff]  ;;  %v13390_v22 = vld [vmem:[#allocation340_spill] sm:$0xff] }
 0x637   :  { %5366 = vmatprep.subr.bf16.mxu0 %v12899_v46  ;;  %v4943_v46 = vadd.f32 %v9992_v42, %v4900_v38  ;;  %v13391_v38 = vld [vmem:[#allocation342_spill] sm:$0xff] }
 0x638   :  { %v4904_v2 = vadd.f32 %v4903_v31, %v4861_v36 }
 0x639   :  { %5238 = vmatpush2.bf16.msra.mxu1 %v13386_v29 }
 0x63a   :  { %5367 = vmatpush2.bf16.msra.mxu0 %v12905_v16  ;;  %5293 = vmatprep.subr.bf16.mxu1 %v13387_v26  ;;  %v4946_v16 = vpop.f32.mrf.mxu0 }
 0x63b   :  { %5422 = vmatprep.subr.bf16.mxu0 %v12906_v27  ;;  %v4947_v42 = vadd.f32 %v4946_v16, %v4904_v2  ;;  %v13393_v16 = vld [vmem:[#allocation346_spill] sm:$0xff] }
 0x63c   :  { %5240 = vmatmul.mubr.bf16.vlgmr.msra.gmra.mxu1 %v9675_v48  ;;  %v4983_v8 = vpop.f32.mrf.mxu1 }
 0x63d   :  { %5369 = vmatmul.mubr.bf16.vlgmr.msra.gmra.mxu0 %v9501_v7  ;;  %v4984_v18 = vadd.f32 %v4983_v8, %v9986_v33  ;;  %5294 = vmatpush1.bf16.msra.mxu1 %v13388_v57 }
 0x63e   :  { %5325 = vmatprep.mubr.bf16.mxu1 %v9906_v59  ;;  %5423 = vmatpush1.bf16.msra.mxu0 %v12909_v55  ;;  %v4985_v47 = vpop.f32.mrf.mxu1 }
 0x63f   :  { %7048 = vtanh.f32 %v4984_v18  ;;  %5454 = vmatprep.mubr.bf16.mxu0 %v9800_v21  ;;  %v4986_v27 = vadd.f32 %v4985_v47, %v4943_v46  ;;  %5295 = vmatprep.subr.bf16.mxu1 %v13389_v0  ;;  %v13392_v46 = vld [vmem:[#allocation344_spill] sm:$0xff]  ;;  %v13395_v21 = vld [vmem:[#allocation350_spill] sm:$0xff]  ;;  %v5540_v18 = vmul.f32 0.20157626, %v9488_v9  ;;  %v7145_v9 = vld [vmem:[#allocation5 + $0x40] sm:$0xff] }
 0x640   :  { %5424 = vmatprep.subr.bf16.mxu0 %v12910_v56  ;;  %v4987_v7 = vpop.f32.mrf.mxu1  ;;  %v13396_v47 = vld [vmem:[#allocation352_spill] sm:$0xff] }
 0x641   :  { %7050 = vtanh.f32 %v4986_v27  ;;  %v4988_v8 = vadd.f32 %v4987_v7, %v9996_v60  ;;  %5296 = vmatpush1.bf16.msra.mxu1 %v13390_v22  ;;  %v13394_v27 = vld [vmem:[#allocation348_spill] sm:$0xff]  ;;  %v13397_v7 = vld [vmem:[#allocation482_spill] sm:$0xff] }
 0x642   :  { %5425 = vmatpush1.bf16.msra.mxu0 %v12913_v61  ;;  %v4989_v33 = vpop.f32.mrf.mxu1  ;;  %5297 = vmatprep.subr.bf16.mxu1 %v13391_v38  ;;  %v13407_v56 = vld [vmem:[#allocation360_spill] sm:$0xff] }
 0x643   :  { %7052 = vtanh.f32 %v4988_v8  ;;  %v4990_v31 = vadd.f32 %v4989_v33, %v4947_v42  ;;  %5426 = vmatprep.subr.bf16.mxu0 %v12914_v58  ;;  %v13398_v42 = vld [vmem:[#allocation354_spill] sm:$0xff] }
 0x645   :  { %7054 = vtanh.f32 %v4990_v31  ;;  %5298 = vmatpush1.bf16.msra.mxu1 %v13392_v46  ;;  %v13399_v31 = vld [vmem:[#allocation484_spill] sm:$0xff]  ;;  %v5580_v46 = vmul.f32 0.66394216, %v7145_v9 }
 0x646   :  { %5427 = vmatpush1.bf16.msra.mxu0 %v12917_v15  ;;  %5299 = vmatprep.subr.bf16.mxu1 %v13393_v16  ;;  %v7144_v16 = vld [vmem:[#allocation5] sm:$0xff] }
 0x647   :  { %5428 = vmatprep.subr.bf16.mxu0 %v12918_v37  ;;  %v13401_v37 = vld [vmem:[#allocation237_spill] sm:$0xff] }
 0x649   :  { %5300 = vmatpush1.bf16.msra.mxu1 %v13394_v27  ;;  %v13400_v27 = vld [vmem:[#allocation366_spill] sm:$0xff] }
 0x64a   :  { %5429 = vmatpush1.bf16.msra.mxu0 %v12921_v50  ;;  %5301 = vmatprep.subr.bf16.mxu1 %v13395_v21  ;;  %v5541_v21 = vmul.f32 0.20157626, %v13400_v27 }
 0x64b   :  { %5430 = vmatprep.subr.bf16.mxu0 %v12922_v19  ;;  %v5548_v19 = vmul.f32 0.20157626, %v13401_v37  ;;  %v7147_v37 = vld [vmem:[#allocation5 + $0x48] sm:$0xff] }
 0x64c   :  { %v7049_v60 = vpop.eup %7048  ;;  %v5581_v22 = vmul.f32 0.66394216, %v7147_v37  ;;  %v13422_v37 = vld [vmem:[#allocation383_spill] sm:$0xff] }
 0x64d   :  { %v5524_v36 = vmul.f32 0.66577846, %v7049_v60  ;;  %5302 = vmatpush1.bf16.msra.mxu1 %v13396_v47  ;;  %v5572_v60 = vmul.f32 0.66394216, %v7144_v16  ;;  %v13402_v47 = vld [vmem:[#allocation356_spill] sm:$0xff] }
 0x64e   :  { %v7051_v2 = vpop.eup %7050  ;;  %5431 = vmatpush1.bf16.msra.mxu0 %v13397_v7  ;;  %5303 = vmatprep.subr.bf16.mxu1 %v13398_v42  ;;  %v7146_v7 = vld [vmem:[#allocation5 + $0x8] sm:$0xff]  ;;  %v13403_v42 = vld [vmem:[#allocation367_spill] sm:$0xff] }
 0x64f   :  { %v5556_v8 = vadd.f32 %v5540_v18, %v5524_v36  ;;  %v5525_v33 = vmul.f32 0.66577846, %v7051_v2  ;;  %5432 = vmatprep.subr.bf16.mxu0 %v13399_v31  ;;  %v5573_v38 = vmul.f32 0.66394216, %v7146_v7  ;;  %v5549_v36 = vmul.f32 0.20157626, %v13403_v42 }
 0x650   :  { %v7053_v50 = vpop.eup %7052  ;;  %v13404_v18 = vld [vmem:[#allocation486_spill] sm:$0xff]  ;;  %v13406_v16 = vld [vmem:[#allocation488_spill] sm:$0xff] }
 0x651   :  { %v5532_v15 = vmul.f32 0.66577846, %v7053_v50  ;;  %5304 = vmatpush1.bf16.msra.mxu1 %v13402_v47  ;;  %v13405_v2 = vld [vmem:[#allocation358_spill] sm:$0xff]  ;;  %v5557_v31 = vadd.f32 %v5541_v21, %v5525_v33  ;;  %v10164_v50 = vadd.f32 %v5572_v60, %v5556_v8  ;;  %v13413_v8 = vld [vmem:[#allocation368_spill] sm:$0xff]  ;;  %v13417_v33 = vld [vmem:[#allocation501_spill] sm:$0xff] }
 0x652   :  { %v7055_v58 = vpop.eup %7054  ;;  %5433 = vmatpush1.bf16.msra.mxu0 %v13404_v18  ;;  %5305 = vmatprep.subr.bf16.mxu1 %v13405_v2  ;;  %v13408_v7 = vld [vmem:[#allocation490_spill] sm:$0xff]  ;;  %v13419_v60 = vld [vmem:[#allocation377_spill] sm:$0xff] }
 0x653   :  { %v5564_v27 = vadd.f32 %v5548_v19, %v5532_v15  ;;  %v5533_v61 = vmul.f32 0.66577846, %v7055_v58  ;;  %5434 = vmatprep.subr.bf16.mxu0 %v13406_v16  ;;  %v13409_v42 = vld [vmem:[#allocation362_spill] sm:$0xff]  ;;  %v10171_v18 = vadd.f32 %v5573_v38, %v5557_v31  ;;  %v13410_v19 = vld [vmem:[#allocation492_spill] sm:$0xff]  ;;  %v13418_v31 = vld [vmem:[#allocation375_spill] sm:$0xff] }
 0x654   :  { %v13411_v15 = vld [vmem:[#allocation364_spill] sm:$0xff] }
 0x655   :  { %v10166_v9 = vadd.f32 %v5580_v46, %v5564_v27  ;;  %v5565_v47 = vadd.f32 %v5549_v36, %v5533_v61  ;;  %5306 = vmatpush1.bf16.msra.mxu1 %v13407_v56  ;;  %v13412_v46 = vld [vmem:[#allocation494_spill] sm:$0xff]  ;;  %v13414_v38 = vld [vmem:[#allocation496_spill] sm:$0xff]  ;;  %v13420_v36 = vld [vmem:[#allocation379_spill] sm:$0xff] }
 0x656   :  { %5435 = vmatpush1.bf16.msra.mxu0 %v13408_v7  ;;  %5307 = vmatprep.subr.bf16.mxu1 %v13409_v42  ;;  %v13421_v27 = vld [vmem:[#allocation381_spill] sm:$0xff] }
 0x657   :  { %v10173_v21 = vadd.f32 %v5581_v22, %v5565_v47  ;;  %5436 = vmatprep.subr.bf16.mxu0 %v13410_v19  ;;  %v10178_v58 = vpack.c.bf16 %v10166_v9, %v10164_v50  ;;  %v13415_v22 = vld [vmem:[#allocation371_spill] sm:$0xff]  ;;  %v13416_v47 = vld [vmem:[#allocation373_spill] sm:$0xff] }
 0x659   :  { %5308 = vmatpush1.bf16.msra.mxu1 %v13411_v15  ;;  %v10183_v61 = vpack.c.bf16 %v10173_v21, %v10171_v18 }
 0x65a   :  { %5437 = vmatpush1.bf16.msra.mxu0 %v13412_v46  ;;  %5309 = vmatprep.subr.bf16.mxu1 %v13413_v8 }
 0x65b   :  { %5438 = vmatprep.subr.bf16.mxu0 %v13414_v38 }
 0x65d   :  { %5310 = vmatpush2.bf16.msra.mxu1 %v13415_v22 }
 0x65e   :  { %5439 = vmatpush2.bf16.msra.mxu0 %v8873_v45  ;;  %5311 = vmatprep.subr.bf16.mxu1 %v13416_v47 }
 0x65f   :  { %5440 = vmatprep.subr.bf16.mxu0 %v13417_v33  ;;  %v13423_v33 = vld [vmem:[#allocation385_spill] sm:$0xff] }
 0x661   :  { %5312 = vmatpush2.bf16.msra.mxu1 %v13418_v31 }
 0x662   :  { %5441 = vmatpush2.bf16.msra.mxu0 %v8892_v52  ;;  %5313 = vmatprep.subr.bf16.mxu1 %v13419_v60  ;;  %v5026_v52 = vpop.f32.mrf.mxu0  ;;  %v13424_v60 = vld [vmem:[#allocation387_spill] sm:$0xff] }
 0x663   :  { %5442 = vmatprep.subr.bf16.mxu0 %v8899_v39  ;;  %v13597_v39 = vld [vmem:[#allocation78_spill] sm:$0xff] }
 0x665   :  { %5314 = vmatpush2.bf16.msra.mxu1 %v13420_v36  ;;  %v13425_v36 = vld [vmem:[#allocation389_spill] sm:$0xff] }
 0x666   :  { %5443 = vmatpush2.bf16.msra.mxu0 %v8906_v4  ;;  %5315 = vmatprep.subr.bf16.mxu1 %v13421_v27  ;;  %v10208_v27 = vpop.f32.mrf.mxu0  ;;  %v13524_v4 = vld [vmem:[#allocation491_spill] sm:$0xff] }
 0x667   :  { %5444 = vmatprep.subr.bf16.mxu0 %v8912_v11  ;;  %v13426_v11 = vld [vmem:[#allocation391_spill] sm:$0xff] }
 0x669   :  { %5316 = vmatpush2.bf16.msra.mxu1 %v13422_v37 }
 0x66a   :  { %5445 = vmatpush2.bf16.msra.mxu0 %v8918_v32  ;;  %5317 = vmatprep.subr.bf16.mxu1 %v13423_v33  ;;  %v13427_v32 = vld [vmem:[#allocation393_spill] sm:$0xff]  ;;  %v13428_v33 = vld [vmem:[#allocation395_spill] sm:$0xff] }
 0x66b   :  { %5446 = vmatprep.subr.bf16.mxu0 %v8924_v24  ;;  %v5030_v24 = vpop.f32.mrf.mxu0 }
 0x66d   :  { %5318 = vmatpush2.bf16.msra.mxu1 %v13424_v60  ;;  %v13430_v60 = vld [vmem:[#allocation399_spill] sm:$0xff] }
 0x66e   :  { %5447 = vmatpush2.bf16.msra.mxu0 %v12945_v44  ;;  %5319 = vmatprep.subr.bf16.mxu1 %v13425_v36  ;;  %v13429_v44 = vld [vmem:[#allocation397_spill] sm:$0xff]  ;;  %v10218_v36 = vpop.f32.mrf.mxu0 }
 0x66f   :  { %5448 = vmatprep.subr.bf16.mxu0 %v12946_v14  ;;  %v4806_v14 = vld [vmem:[#allocation7 + $0x90] sm:$0xff] }
 0x671   :  { %5320 = vmatpush2.bf16.msra.mxu1 %v13426_v11  ;;  %v10221_v11 = vpop.f32.mrf.mxu0 }
 0x672   :  { %5449 = vmatpush2.bf16.msra.mxu0 %v12949_v13  ;;  %5321 = vmatprep.subr.bf16.mxu1 %v13427_v32  ;;  %v13431_v32 = vld [vmem:[#allocation401_spill] sm:$0xff] }
 0x673   :  { %5450 = vmatprep.subr.bf16.mxu0 %v12950_v43  ;;  %v5027_v43 = vadd.f32 %v5026_v52, %v4806_v14  ;;  %v13434_v14 = vld [vmem:[#allocation407_spill] sm:$0xff]  ;;  %v13441_v13 = vld [vmem:[#allocation25_spill] sm:$0xff] }
 0x675   :  { %5322 = vmatpush2.bf16.msra.mxu1 %v13428_v33  ;;  %v4814_v33 = vld [vmem:[#allocation7 + $0xd0] sm:$0xff] }
 0x676   :  { %5451 = vmatpush2.bf16.msra.mxu0 %v8954_v53  ;;  %5323 = vmatprep.subr.bf16.mxu1 %v13429_v44  ;;  %v5031_v52 = vadd.f32 %v5030_v24, %v4814_v33  ;;  %v13438_v24 = vld [vmem:[#allocation411_spill] sm:$0xff] }
 0x677   :  { %5452 = vmatprep.subr.bf16.mxu0 %v8960_v40  ;;  %v13432_v40 = vld [vmem:[#allocation403_spill] sm:$0xff] }
 0x678   :  { %v13439_v33 = vld [vmem:[#allocation23_spill] sm:$0xff] }
 0x679   :  { %5324 = vmatpush2.bf16.msra.mxu1 %v13430_v60  ;;  %v10231_v60 = vpop.f32.mrf.mxu0 }
 0x67a   :  { %5453 = vmatpush2.bf16.msra.mxu0 %v8966_v30  ;;  %5379 = vmatprep.subr.bf16.mxu1 %v13431_v32  ;;  %v13436_v30 = vld [vmem:[#allocation409_spill] sm:$0xff] }
 0x67b   :  { %5628 = vmatprep.subr.bf16.mxu0 %v7323_v3 }
 0x67c   :  { %v5069_v53 = vpop.f32.mrf.mxu1  ;;  %5326 = vmatmul.mubr.bf16.vlgmr.msra.gmra.mxu1 %v9901_v51 }
 0x67d   :  { %v10227_v44 = vadd.f32 %v5069_v53, %v5027_v43  ;;  %5455 = vmatmul.mubr.bf16.vlgmr.msra.gmra.mxu0 %v9796_v35  ;;  %5380 = vmatpush1.bf16.msra.mxu1 %v13432_v40  ;;  %v13433_v53 = vld [vmem:[#allocation17_spill] sm:$0xff]  ;;  %v5116_v35 = vpop.f32.mrf.mxu0  ;;  %v13435_v40 = vld [vmem:[#allocation19_spill] sm:$0xff] }
 0x67e   :  { %5411 = vmatprep.mubr.bf16.mxu1 %v9681_v34  ;;  %5629 = vmatpush1.bf16.msra.mxu0 %v7325_v5  ;;  %v10235_v32 = vpop.f32.mrf.mxu1  ;;  %v13437_v34 = vld [vmem:[#allocation21_spill] sm:$0xff] }
 0x67f   :  { %5660 = vmatprep.mubr.bf16.mxu0 %v10183_v61  ;;  %5381 = vmatprep.subr.bf16.mxu1 %v12938_v12  ;;  %v13440_v12 = vld [vmem:[#allocation413_spill] sm:$0xff] }
 0x680   :  { %v5073_v3 = vpop.f32.mrf.mxu1  ;;  %5630 = vmatprep.subr.bf16.mxu0 %v13433_v53  ;;  %v13444_v53 = vld [vmem:[#allocation417_spill] sm:$0xff] }
 0x681   :  { %v5074_v43 = vadd.f32 %v5073_v3, %v5031_v52  ;;  %5382 = vmatpush1.bf16.msra.mxu1 %v13434_v14  ;;  %v13442_v52 = vld [vmem:[#allocation415_spill] sm:$0xff] }
 0x682   :  { %5631 = vmatpush1.bf16.msra.mxu0 %v13435_v40  ;;  %5383 = vmatprep.subr.bf16.mxu1 %v13436_v30  ;;  %v13443_v3 = vld [vmem:[#allocation27_spill] sm:$0xff]  ;;  %v13445_v40 = vld [vmem:[#allocation29_spill] sm:$0xff] }
 0x683   :  { %5632 = vmatprep.subr.bf16.mxu0 %v13437_v34  ;;  %v10244_v5 = vadd.f32 %v5116_v35, %v5074_v43  ;;  %v13446_v30 = vld [vmem:[#allocation419_spill] sm:$0xff]  ;;  %v13448_v35 = vld [vmem:[#allocation421_spill] sm:$0xff] }
 0x684   :  { %v13447_v43 = vld [vmem:[#allocation31_spill] sm:$0xff]  ;;  %v13449_v34 = vld [vmem:[#allocation33_spill] sm:$0xff] }
 0x685   :  { %5384 = vmatpush1.bf16.msra.mxu1 %v13438_v24  ;;  %v13490_v24 = vld [vmem:[#allocation463_spill] sm:$0xff] }
 0x686   :  { %5633 = vmatpush1.bf16.msra.mxu0 %v13439_v33  ;;  %5385 = vmatprep.subr.bf16.mxu1 %v13440_v12  ;;  %v13450_v33 = vld [vmem:[#allocation423_spill] sm:$0xff] }
 0x687   :  { %5634 = vmatprep.subr.bf16.mxu0 %v13441_v13  ;;  %v13451_v12 = vld [vmem:[#allocation35_spill] sm:$0xff]  ;;  %v13452_v13 = vld [vmem:[#allocation425_spill] sm:$0xff] }
 0x689   :  { %5386 = vmatpush1.bf16.msra.mxu1 %v13442_v52  ;;  %v13453_v52 = vld [vmem:[#allocation37_spill] sm:$0xff] }
 0x68a   :  { %5635 = vmatpush1.bf16.msra.mxu0 %v13443_v3  ;;  %5387 = vmatprep.subr.bf16.mxu1 %v13444_v53  ;;  %v13454_v3 = vld [vmem:[#allocation427_spill] sm:$0xff] }
 0x68b   :  { %5636 = vmatprep.subr.bf16.mxu0 %v13445_v40  ;;  %v13455_v53 = vld [vmem:[#allocation39_spill] sm:$0xff]  ;;  %v13456_v40 = vld [vmem:[#allocation429_spill] sm:$0xff] }
 0x68d   :  { %5388 = vmatpush1.bf16.msra.mxu1 %v13446_v30  ;;  %v13457_v30 = vld [vmem:[#allocation41_spill] sm:$0xff] }
 0x68e   :  { %5637 = vmatpush1.bf16.msra.mxu0 %v13447_v43  ;;  %5389 = vmatprep.subr.bf16.mxu1 %v13448_v35  ;;  %v13458_v43 = vld [vmem:[#allocation431_spill] sm:$0xff] }
 0x68f   :  { %5638 = vmatprep.subr.bf16.mxu0 %v13449_v34  ;;  %v13459_v35 = vld [vmem:[#allocation43_spill] sm:$0xff]  ;;  %v13460_v34 = vld [vmem:[#allocation433_spill] sm:$0xff] }
 0x691   :  { %5390 = vmatpush1.bf16.msra.mxu1 %v13450_v33  ;;  %v13461_v33 = vld [vmem:[#allocation45_spill] sm:$0xff] }
 0x692   :  { %5639 = vmatpush1.bf16.msra.mxu0 %v13451_v12  ;;  %5391 = vmatprep.subr.bf16.mxu1 %v13452_v13  ;;  %v13462_v12 = vld [vmem:[#allocation435_spill] sm:$0xff] }
 0x693   :  { %5640 = vmatprep.subr.bf16.mxu0 %v13453_v52  ;;  %v13463_v13 = vld [vmem:[#allocation47_spill] sm:$0xff]  ;;  %v13464_v52 = vld [vmem:[#allocation437_spill] sm:$0xff] }
 0x695   :  { %5392 = vmatpush1.bf16.msra.mxu1 %v13454_v3  ;;  %v13465_v3 = vld [vmem:[#allocation49_spill] sm:$0xff] }
 0x696   :  { %5641 = vmatpush1.bf16.msra.mxu0 %v13455_v53  ;;  %5393 = vmatprep.subr.bf16.mxu1 %v13456_v40  ;;  %v13466_v53 = vld [vmem:[#allocation439_spill] sm:$0xff] }
 0x697   :  { %5642 = vmatprep.subr.bf16.mxu0 %v13457_v30  ;;  %v13467_v40 = vld [vmem:[#allocation51_spill] sm:$0xff]  ;;  %v13468_v30 = vld [vmem:[#allocation441_spill] sm:$0xff] }
 0x699   :  { %5394 = vmatpush1.bf16.msra.mxu1 %v13458_v43  ;;  %v13469_v43 = vld [vmem:[#allocation53_spill] sm:$0xff] }
 0x69a   :  { %5643 = vmatpush1.bf16.msra.mxu0 %v13459_v35  ;;  %5395 = vmatprep.subr.bf16.mxu1 %v13460_v34  ;;  %v13470_v35 = vld [vmem:[#allocation443_spill] sm:$0xff] }
 0x69b   :  { %5644 = vmatprep.subr.bf16.mxu0 %v13461_v33  ;;  %v13471_v34 = vld [vmem:[#allocation55_spill] sm:$0xff]  ;;  %v13472_v33 = vld [vmem:[#allocation445_spill] sm:$0xff] }
 0x69d   :  { %5396 = vmatpush2.bf16.msra.mxu1 %v13462_v12  ;;  %v13473_v12 = vld [vmem:[#allocation57_spill] sm:$0xff] }
 0x69e   :  { %5645 = vmatpush2.bf16.msra.mxu0 %v13463_v13  ;;  %5397 = vmatprep.subr.bf16.mxu1 %v13464_v52  ;;  %v13474_v13 = vld [vmem:[#allocation447_spill] sm:$0xff] }
 0x69f   :  { %5646 = vmatprep.subr.bf16.mxu0 %v13465_v3  ;;  %v13475_v52 = vld [vmem:[#allocation59_spill] sm:$0xff]  ;;  %v13476_v3 = vld [vmem:[#allocation449_spill] sm:$0xff] }
 0x6a1   :  { %5398 = vmatpush2.bf16.msra.mxu1 %v13466_v53  ;;  %v13477_v53 = vld [vmem:[#allocation61_spill] sm:$0xff] }
 0x6a2   :  { %5647 = vmatpush2.bf16.msra.mxu0 %v13467_v40  ;;  %5399 = vmatprep.subr.bf16.mxu1 %v13468_v30  ;;  %v13478_v40 = vld [vmem:[#allocation451_spill] sm:$0xff] }
 0x6a3   :  { %5648 = vmatprep.subr.bf16.mxu0 %v13469_v43  ;;  %v13479_v30 = vld [vmem:[#allocation63_spill] sm:$0xff]  ;;  %v13480_v43 = vld [vmem:[#allocation453_spill] sm:$0xff] }
 0x6a5   :  { %5400 = vmatpush2.bf16.msra.mxu1 %v13470_v35  ;;  %v13481_v35 = vld [vmem:[#allocation65_spill] sm:$0xff] }
 0x6a6   :  { %5649 = vmatpush2.bf16.msra.mxu0 %v13471_v34  ;;  %5401 = vmatprep.subr.bf16.mxu1 %v13472_v33  ;;  %v13482_v34 = vld [vmem:[#allocation455_spill] sm:$0xff] }
 0x6a7   :  { %5650 = vmatprep.subr.bf16.mxu0 %v13473_v12  ;;  %v13483_v33 = vld [vmem:[#allocation67_spill] sm:$0xff]  ;;  %v13484_v12 = vld [vmem:[#allocation457_spill] sm:$0xff] }
 0x6a9   :  { %5402 = vmatpush2.bf16.msra.mxu1 %v13474_v13  ;;  %v13485_v13 = vld [vmem:[#allocation69_spill] sm:$0xff] }
 0x6aa   :  { %5651 = vmatpush2.bf16.msra.mxu0 %v13475_v52  ;;  %5403 = vmatprep.subr.bf16.mxu1 %v13476_v3  ;;  %v4807_v52 = vld [vmem:[#allocation7 + $0x98] sm:$0xff]  ;;  %v13486_v3 = vld [vmem:[#allocation459_spill] sm:$0xff] }
 0x6ab   :  { %5652 = vmatprep.subr.bf16.mxu0 %v13477_v53  ;;  %v13487_v53 = vld [vmem:[#allocation71_spill] sm:$0xff] }
 0x6ad   :  { %5404 = vmatpush2.bf16.msra.mxu1 %v13478_v40  ;;  %v13488_v40 = vld [vmem:[#allocation461_spill] sm:$0xff] }
 0x6ae   :  { %5653 = vmatpush2.bf16.msra.mxu0 %v13479_v30  ;;  %5405 = vmatprep.subr.bf16.mxu1 %v13480_v43  ;;  %v5029_v30 = vadd.f32 %v10208_v27, %v4807_v52  ;;  %v13489_v43 = vld [vmem:[#allocation73_spill] sm:$0xff] }
 0x6af   :  { %5654 = vmatprep.subr.bf16.mxu0 %v13481_v35  ;;  %v4815_v35 = vld [vmem:[#allocation7 + $0xd8] sm:$0xff] }
 0x6b1   :  { %5406 = vmatpush2.bf16.msra.mxu1 %v13482_v34  ;;  %v5072_v34 = vadd.f32 %v10235_v32, %v5029_v30  ;;  %v13494_v32 = vld [vmem:[#allocation467_spill] sm:$0xff] }
 0x6b2   :  { %5655 = vmatpush2.bf16.msra.mxu0 %v13483_v33  ;;  %5407 = vmatprep.subr.bf16.mxu1 %v13484_v12  ;;  %v5075_v33 = vpop.f32.mrf.mxu1  ;;  %v13491_v12 = vld [vmem:[#allocation75_spill] sm:$0xff] }
 0x6b3   :  { %5656 = vmatprep.subr.bf16.mxu0 %v13485_v13  ;;  %v13492_v13 = vld [vmem:[#allocation465_spill] sm:$0xff] }
 0x6b5   :  { %5408 = vmatpush2.bf16.msra.mxu1 %v13486_v3  ;;  %v5033_v3 = vadd.f32 %v10218_v36, %v4815_v35  ;;  %v13495_v36 = vld [vmem:[#allocation469_spill] sm:$0xff] }
 0x6b6   :  { %5657 = vmatpush2.bf16.msra.mxu0 %v13487_v53  ;;  %5409 = vmatprep.subr.bf16.mxu1 %v13488_v40  ;;  %v5113_v53 = vadd.f32 %v10221_v11, %v10227_v44  ;;  %v13493_v40 = vld [vmem:[#allocation77_spill] sm:$0xff]  ;;  %v13496_v44 = vld [vmem:[#allocation79_spill] sm:$0xff] }
 0x6b7   :  { %5658 = vmatprep.subr.bf16.mxu0 %v13489_v43  ;;  %v5076_v43 = vadd.f32 %v5075_v33, %v5033_v3  ;;  %v13498_v33 = vld [vmem:[#allocation471_spill] sm:$0xff] }
 0x6b9   :  { %5410 = vmatpush2.bf16.msra.mxu1 %v13490_v24 }
 0x6ba   :  { %5659 = vmatpush2.bf16.msra.mxu0 %v13491_v12  ;;  %5465 = vmatprep.subr.bf16.mxu1 %v13492_v13  ;;  %v5115_v12 = vadd.f32 %v10231_v60, %v5072_v34  ;;  %v13499_v34 = vld [vmem:[#allocation473_spill] sm:$0xff] }
 0x6bb   :  { %5714 = vmatprep.subr.bf16.mxu0 %v13493_v40  ;;  %v5118_v40 = vpop.f32.mrf.mxu0 }
 0x6bc   :  { %v5155_v27 = vpop.f32.mrf.mxu1  ;;  %5412 = vmatmul.mubr.bf16.vlgmr.msra.gmra.mxu1 %v9675_v48  ;;  %v13497_v48 = vld [vmem:[#allocation81_spill] sm:$0xff] }
 0x6bd   :  { %v5156_v52 = vadd.f32 %v5155_v27, %v5113_v53  ;;  %5661 = vmatmul.mubr.bf16.vlgmr.msra.gmra.mxu0 %v10178_v58  ;;  %5466 = vmatpush1.bf16.msra.mxu1 %v13494_v32  ;;  %v5119_v53 = vadd.f32 %v5118_v40, %v5076_v43  ;;  %v13500_v27 = vld [vmem:[#allocation83_spill] sm:$0xff]  ;;  %v13507_v43 = vld [vmem:[#allocation481_spill] sm:$0xff] }
 0x6be   :  { %5497 = vmatprep.mubr.bf16.mxu1 %v9906_v59  ;;  %v5157_v30 = vpop.f32.mrf.mxu1  ;;  %5467 = vmatprep.subr.bf16.mxu1 %v13495_v36  ;;  %v13508_v40 = vld [vmem:[#allocation91_spill] sm:$0xff] }
 0x6bf   :  { %7056 = vtanh.f32 %v5156_v52  ;;  %v5158_v11 = vadd.f32 %v5157_v30, %v5115_v12  ;;  %5715 = vmatpush1.bf16.msra.mxu0 %v13496_v44  ;;  %v13501_v52 = vld [vmem:[#allocation85_spill] sm:$0xff]  ;;  %v13502_v12 = vld [vmem:[#allocation475_spill] sm:$0xff] }
 0x6c0   :  { %v5159_v35 = vpop.f32.mrf.mxu1  ;;  %5716 = vmatprep.subr.bf16.mxu0 %v13497_v48  ;;  %v13503_v30 = vld [vmem:[#allocation477_spill] sm:$0xff]  ;;  %v13506_v44 = vld [vmem:[#allocation479_spill] sm:$0xff] }
 0x6c1   :  { %7058 = vtanh.f32 %v5158_v11  ;;  %v5160_v3 = vadd.f32 %v5159_v35, %v10244_v5  ;;  %5468 = vmatpush1.bf16.msra.mxu1 %v13498_v33  ;;  %v13504_v11 = vld [vmem:[#allocation87_spill] sm:$0xff]  ;;  %v13505_v5 = vld [vmem:[#allocation89_spill] sm:$0xff] }
 0x6c2   :  { %v5161_v60 = vpop.f32.mrf.mxu1  ;;  %5469 = vmatprep.subr.bf16.mxu1 %v13499_v34  ;;  %v13509_v48 = vld [vmem:[#allocation93_spill] sm:$0xff] }
 0x6c3   :  { %7060 = vtanh.f32 %v5160_v3  ;;  %v5162_v59 = vadd.f32 %v5161_v60, %v5119_v53  ;;  %5717 = vmatpush1.bf16.msra.mxu0 %v13500_v27  ;;  %v13510_v53 = vld [vmem:[#allocation466_spill] sm:$0xff]  ;;  %v13515_v34 = vld [vmem:[#allocation497_spill] sm:$0xff] }
 0x6c4   :  { %5718 = vmatprep.subr.bf16.mxu0 %v13501_v52  ;;  %v5542_v60 = vmul.f32 0.20157626, %v13510_v53  ;;  %v13512_v52 = vld [vmem:[#allocation485_spill] sm:$0xff] }
 0x6c5   :  { %7062 = vtanh.f32 %v5162_v59  ;;  %5470 = vmatpush1.bf16.msra.mxu1 %v13502_v12  ;;  %v13511_v59 = vld [vmem:[#allocation483_spill] sm:$0xff]  ;;  %v13514_v12 = vld [vmem:[#allocation530_spill] sm:$0xff]  ;;  %v13516_v33 = vld [vmem:[#allocation97_spill] sm:$0xff] }
 0x6c6   :  { %5471 = vmatprep.subr.bf16.mxu1 %v13503_v30  ;;  %v7149_v53 = vld [vmem:[#allocation5 + $0x50] sm:$0xff] }
 0x6c7   :  { %5719 = vmatpush1.bf16.msra.mxu0 %v13504_v11  ;;  %v5582_v32 = vmul.f32 0.66394216, %v7149_v53 }
 0x6c8   :  { %5720 = vmatprep.subr.bf16.mxu0 %v13505_v5  ;;  %v13513_v5 = vld [vmem:[#allocation95_spill] sm:$0xff] }
 0x6c9   :  { %5472 = vmatpush1.bf16.msra.mxu1 %v13506_v44 }
 0x6ca   :  { %5473 = vmatprep.subr.bf16.mxu1 %v13507_v43  ;;  %v5543_v43 = vmul.f32 0.20157626, %v13514_v12 }
 0x6cb   :  { %5721 = vmatpush1.bf16.msra.mxu0 %v13508_v40  ;;  %v5550_v40 = vmul.f32 0.20157626, %v13515_v34  ;;  %v7151_v34 = vld [vmem:[#allocation5 + $0x58] sm:$0xff] }
 0x6cc   :  { %v7057_v35 = vpop.eup %7056  ;;  %5722 = vmatprep.subr.bf16.mxu0 %v13509_v48  ;;  %v7148_v48 = vld [vmem:[#allocation5 + $0x10] sm:$0xff]  ;;  %v5583_v37 = vmul.f32 0.66394216, %v7151_v34  ;;  %v13540_v34 = vld [vmem:[#allocation115_spill] sm:$0xff] }
 0x6cd   :  { %v5526_v3 = vmul.f32 0.66577846, %v7057_v35  ;;  %5474 = vmatpush1.bf16.msra.mxu1 %v13511_v59  ;;  %v5574_v35 = vmul.f32 0.66394216, %v7148_v48  ;;  %v13517_v59 = vld [vmem:[#allocation487_spill] sm:$0xff]  ;;  %v13521_v48 = vld [vmem:[#allocation101_spill] sm:$0xff] }
 0x6ce   :  { %v7059_v27 = vpop.eup %7058  ;;  %5475 = vmatprep.subr.bf16.mxu1 %v13512_v52  ;;  %v7150_v52 = vld [vmem:[#allocation5 + $0x18] sm:$0xff] }
 0x6cf   :  { %v5558_v11 = vadd.f32 %v5542_v60, %v5526_v3  ;;  %v5527_v30 = vmul.f32 0.66577846, %v7059_v27  ;;  %5723 = vmatpush1.bf16.msra.mxu0 %v13513_v5  ;;  %v5575_v3 = vmul.f32 0.66394216, %v7150_v52  ;;  %v13518_v60 = vld [vmem:[#allocation498_spill] sm:$0xff]  ;;  %v13519_v5 = vld [vmem:[#allocation489_spill] sm:$0xff] }
 0x6d0   :  { %v7061_v44 = vpop.eup %7060  ;;  %5724 = vmatprep.subr.bf16.mxu0 %v13516_v33  ;;  %v5551_v27 = vmul.f32 0.20157626, %v13518_v60  ;;  %v13520_v33 = vld [vmem:[#allocation99_spill] sm:$0xff]  ;;  %v13525_v52 = vld [vmem:[#allocation493_spill] sm:$0xff] }
 0x6d1   :  { %v5534_v36 = vmul.f32 0.66577846, %v7061_v44  ;;  %5476 = vmatpush1.bf16.msra.mxu1 %v13517_v59  ;;  %v5559_v24 = vadd.f32 %v5543_v43, %v5527_v30  ;;  %v10340_v44 = vadd.f32 %v5574_v35, %v5558_v11  ;;  %v13529_v43 = vld [vmem:[#allocation105_spill] sm:$0xff]  ;;  %v13530_v11 = vld [vmem:[#allocation495_spill] sm:$0xff] }
 0x6d2   :  { %v7063_v13 = vpop.eup %7062  ;;  %5477 = vmatprep.subr.bf16.mxu1 %v13519_v5  ;;  %v13536_v35 = vld [vmem:[#allocation111_spill] sm:$0xff]  ;;  %v4817_v5 = vld [vmem:[#allocation7 + $0xe8] sm:$0xff] }
 0x6d3   :  { %v5566_v12 = vadd.f32 %v5550_v40, %v5534_v36  ;;  %v5535_v14 = vmul.f32 0.66577846, %v7063_v13  ;;  %5725 = vmatpush1.bf16.msra.mxu0 %v13520_v33  ;;  %13522 = vst [vmem:[#allocation531_spill] sm:$0xff] %v10340_v44  ;;  %v10346_v60 = vadd.f32 %v5575_v3, %v5559_v24  ;;  %v13528_v13 = vld [vmem:[#allocation103_spill] sm:$0xff]  ;;  %v13535_v40 = vld [vmem:[#allocation502_spill] sm:$0xff]  ;;  %v13537_v3 = vld [vmem:[#allocation113_spill] sm:$0xff] }
 0x6d4   :  { %5726 = vmatprep.subr.bf16.mxu0 %v13521_v48  ;;  %v13532_v24 = vld [vmem:[#allocation107_spill] sm:$0xff]  ;;  %v13541_v33 = vld [vmem:[#allocation117_spill] sm:$0xff]  ;;  %v13542_v48 = vld [vmem:[#allocation508_spill] sm:$0xff] }
 0x6d5   :  { %v10342_v53 = vadd.f32 %v5582_v32, %v5566_v12  ;;  %v5567_v59 = vadd.f32 %v5551_v27, %v5535_v14  ;;  %5478 = vmatpush1.bf16.msra.mxu1 %v13524_v4  ;;  %13526 = vst [vmem:[#allocation235_spill] sm:$0xff] %v10346_v60  ;;  %v13531_v32 = vld [vmem:[#allocation499_spill] sm:$0xff]  ;;  %v13538_v27 = vld [vmem:[#allocation504_spill] sm:$0xff]  ;;  %v13539_v12 = vld [vmem:[#allocation506_spill] sm:$0xff] }
 0x6d6   :  { %5479 = vmatprep.subr.bf16.mxu1 %v13525_v52  ;;  %v4816_v52 = vld [vmem:[#allocation7 + $0xe0] sm:$0xff]  ;;  %v13595_v4 = vld [vmem:[#allocation74_spill] sm:$0xff] }
 0x6d7   :  { %13523 = vst [vmem:[#allocation239_spill] sm:$0xff] %v10342_v53  ;;  %v10348_v30 = vadd.f32 %v5583_v37, %v5567_v59  ;;  %5727 = vmatpush1.bf16.msra.mxu0 %v13528_v13  ;;  %v10353_v36 = vpack.c.bf16 %v10342_v53, %v10340_v44  ;;  %v13533_v37 = vld [vmem:[#allocation109_spill] sm:$0xff]  ;;  %v13534_v59 = vld [vmem:[#allocation500_spill] sm:$0xff]  ;;  %v13543_v13 = vld [vmem:[#allocation510_spill] sm:$0xff] }
 0x6d8   :  { %5728 = vmatprep.subr.bf16.mxu0 %v13529_v43  ;;  %v13544_v43 = vld [vmem:[#allocation119_spill] sm:$0xff] }
 0x6d9   :  { %13527 = vst [vmem:[#allocation534_spill] sm:$0xff] %v10348_v30  ;;  %5480 = vmatpush1.bf16.msra.mxu1 %v13530_v11  ;;  %v10359_v14 = vpack.c.bf16 %v10348_v30, %v10346_v60  ;;  %v13596_v60 = vld [vmem:[#allocation76_spill] sm:$0xff] }
 0x6da   :  { %5481 = vmatprep.subr.bf16.mxu1 %v13531_v32  ;;  %v4809_v32 = vld [vmem:[#allocation7 + $0xa8] sm:$0xff] }
 0x6db   :  { %5729 = vmatpush1.bf16.msra.mxu0 %v13532_v24  ;;  %v13545_v24 = vld [vmem:[#allocation121_spill] sm:$0xff] }
 0x6dc   :  { %5730 = vmatprep.subr.bf16.mxu0 %v13533_v37  ;;  %v13546_v37 = vld [vmem:[#allocation512_spill] sm:$0xff] }
 0x6dd   :  { %5482 = vmatpush2.bf16.msra.mxu1 %v13534_v59 }
 0x6de   :  { %5483 = vmatprep.subr.bf16.mxu1 %v13535_v40  ;;  %v13591_v40 = vld [vmem:[#allocation66_spill] sm:$0xff] }
 0x6df   :  { %5731 = vmatpush2.bf16.msra.mxu0 %v13536_v35  ;;  %v13547_v35 = vld [vmem:[#allocation514_spill] sm:$0xff] }
 0x6e0   :  { %5732 = vmatprep.subr.bf16.mxu0 %v13537_v3  ;;  %v13548_v3 = vld [vmem:[#allocation123_spill] sm:$0xff] }
 0x6e1   :  { %5484 = vmatpush2.bf16.msra.mxu1 %v13538_v27  ;;  %v13549_v27 = vld [vmem:[#allocation125_spill] sm:$0xff] }
 0x6e2   :  { %5485 = vmatprep.subr.bf16.mxu1 %v13539_v12  ;;  %v13550_v12 = vld [vmem:[#allocation516_spill] sm:$0xff] }
 0x6e3   :  { %5733 = vmatpush2.bf16.msra.mxu0 %v13540_v34  ;;  %v13551_v34 = vld [vmem:[#allocation518_spill] sm:$0xff] }
 0x6e4   :  { %5734 = vmatprep.subr.bf16.mxu0 %v13541_v33  ;;  %v13552_v33 = vld [vmem:[#allocation127_spill] sm:$0xff] }
 0x6e5   :  { %5486 = vmatpush2.bf16.msra.mxu1 %v13542_v48  ;;  %v13553_v48 = vld [vmem:[#allocation129_spill] sm:$0xff] }
 0x6e6   :  { %5487 = vmatprep.subr.bf16.mxu1 %v13543_v13  ;;  %v13554_v13 = vld [vmem:[#allocation520_spill] sm:$0xff] }
 0x6e7   :  { %5735 = vmatpush2.bf16.msra.mxu0 %v13544_v43  ;;  %v13555_v43 = vld [vmem:[#allocation522_spill] sm:$0xff] }
 0x6e8   :  { %5736 = vmatprep.subr.bf16.mxu0 %v13545_v24  ;;  %v13556_v24 = vld [vmem:[#allocation131_spill] sm:$0xff] }
 0x6e9   :  { %5488 = vmatpush2.bf16.msra.mxu1 %v13546_v37  ;;  %v13557_v37 = vld [vmem:[#allocation133_spill] sm:$0xff] }
 0x6ea   :  { %5489 = vmatprep.subr.bf16.mxu1 %v13547_v35  ;;  %v13558_v35 = vld [vmem:[#allocation524_spill] sm:$0xff] }
 0x6eb   :  { %5737 = vmatpush2.bf16.msra.mxu0 %v13548_v3  ;;  %v13559_v3 = vld [vmem:[#allocation526_spill] sm:$0xff] }
 0x6ec   :  { %5738 = vmatprep.subr.bf16.mxu0 %v13549_v27  ;;  %v13560_v27 = vld [vmem:[#allocation135_spill] sm:$0xff] }
 0x6ed   :  { %5490 = vmatpush2.bf16.msra.mxu1 %v13550_v12  ;;  %v13561_v12 = vld [vmem:[#allocation137_spill] sm:$0xff] }
 0x6ee   :  { %5491 = vmatprep.subr.bf16.mxu1 %v13551_v34  ;;  %v13562_v34 = vld [vmem:[#allocation528_spill] sm:$0xff] }
 0x6ef   :  { %5739 = vmatpush2.bf16.msra.mxu0 %v13552_v33  ;;  %v13563_v33 = vld [vmem:[#allocation15_spill] sm:$0xff] }
 0x6f0   :  { %5740 = vmatprep.subr.bf16.mxu0 %v13553_v48  ;;  %v13564_v48 = vld [vmem:[#allocation139_spill] sm:$0xff] }
 0x6f1   :  { %5492 = vmatpush2.bf16.msra.mxu1 %v13554_v13  ;;  %v13589_v13 = vld [vmem:[#allocation62_spill] sm:$0xff] }
 0x6f2   :  { %5493 = vmatprep.subr.bf16.mxu1 %v13555_v43  ;;  %v13565_v43 = vld [vmem:[#allocation141_spill] sm:$0xff] }
 0x6f3   :  { %5741 = vmatpush2.bf16.msra.mxu0 %v13556_v24  ;;  %v13566_v24 = vld [vmem:[#allocation16_spill] sm:$0xff] }
 0x6f4   :  { %5742 = vmatprep.subr.bf16.mxu0 %v13557_v37  ;;  %v13567_v37 = vld [vmem:[#allocation18_spill] sm:$0xff] }
 0x6f5   :  { %5494 = vmatpush2.bf16.msra.mxu1 %v13558_v35  ;;  %v13577_v35 = vld [vmem:[#allocation38_spill] sm:$0xff] }
 0x6f6   :  { %5495 = vmatprep.subr.bf16.mxu1 %v13559_v3  ;;  %v13568_v3 = vld [vmem:[#allocation20_spill] sm:$0xff] }
 0x6f7   :  { %5743 = vmatpush2.bf16.msra.mxu0 %v13560_v27  ;;  %v13569_v27 = vld [vmem:[#allocation22_spill] sm:$0xff] }
 0x6f8   :  { %5744 = vmatprep.subr.bf16.mxu0 %v13561_v12  ;;  %v13570_v12 = vld [vmem:[#allocation24_spill] sm:$0xff] }
 0x6f9   :  { %5496 = vmatpush2.bf16.msra.mxu1 %v13562_v34  ;;  %v13571_v34 = vld [vmem:[#allocation26_spill] sm:$0xff] }
 0x6fa   :  { %5671 = vmatprep.subr.bf16.mxu1 %v13563_v33  ;;  %v13572_v33 = vld [vmem:[#allocation28_spill] sm:$0xff] }
 0x6fb   :  { %5745 = vmatpush2.bf16.msra.mxu0 %v13564_v48  ;;  %v13573_v48 = vld [vmem:[#allocation30_spill] sm:$0xff] }
 0x6fc   :  { %5498 = vmatmul.mubr.bf16.vlgmr.msra.gmra.mxu1 %v9901_v51  ;;  %5800 = vmatprep.subr.bf16.mxu0 %v13565_v43  ;;  %v13574_v51 = vld [vmem:[#allocation32_spill] sm:$0xff]  ;;  %v13575_v43 = vld [vmem:[#allocation34_spill] sm:$0xff] }
 0x6fd   :  { %5672 = vmatpush1.bf16.msra.mxu1 %v13566_v24  ;;  %5703 = vmatprep.mubr.bf16.mxu1 %v10359_v14  ;;  %v13576_v24 = vld [vmem:[#allocation36_spill] sm:$0xff] }
 0x6fe   :  { %5673 = vmatprep.subr.bf16.mxu1 %v13567_v37  ;;  %v13578_v37 = vld [vmem:[#allocation40_spill] sm:$0xff] }
 0x701   :  { %5674 = vmatpush1.bf16.msra.mxu1 %v13568_v3  ;;  %v13579_v3 = vld [vmem:[#allocation42_spill] sm:$0xff] }
 0x702   :  { %5675 = vmatprep.subr.bf16.mxu1 %v13569_v27  ;;  %v13580_v27 = vld [vmem:[#allocation44_spill] sm:$0xff] }
 0x705   :  { %5676 = vmatpush1.bf16.msra.mxu1 %v13570_v12  ;;  %v13581_v12 = vld [vmem:[#allocation46_spill] sm:$0xff] }
 0x706   :  { %5677 = vmatprep.subr.bf16.mxu1 %v13571_v34  ;;  %v13582_v34 = vld [vmem:[#allocation48_spill] sm:$0xff] }
 0x709   :  { %5678 = vmatpush1.bf16.msra.mxu1 %v13572_v33  ;;  %v13583_v33 = vld [vmem:[#allocation50_spill] sm:$0xff] }
 0x70a   :  { %5679 = vmatprep.subr.bf16.mxu1 %v13573_v48  ;;  %v13584_v48 = vld [vmem:[#allocation52_spill] sm:$0xff] }
 0x70d   :  { %5680 = vmatpush1.bf16.msra.mxu1 %v13574_v51  ;;  %v13585_v51 = vld [vmem:[#allocation54_spill] sm:$0xff] }
 0x70e   :  { %5681 = vmatprep.subr.bf16.mxu1 %v13575_v43  ;;  %v13586_v43 = vld [vmem:[#allocation56_spill] sm:$0xff] }
 0x711   :  { %5682 = vmatpush1.bf16.msra.mxu1 %v13576_v24  ;;  %v5198_v24 = vpop.f32.mrf.mxu0 }
 0x712   :  { %5683 = vmatprep.subr.bf16.mxu1 %v13577_v35  ;;  %v13587_v35 = vld [vmem:[#allocation58_spill] sm:$0xff] }
 0x715   :  { %5684 = vmatpush1.bf16.msra.mxu1 %v13578_v37  ;;  %v13588_v37 = vld [vmem:[#allocation60_spill] sm:$0xff] }
 0x716   :  { %5685 = vmatprep.subr.bf16.mxu1 %v13579_v3  ;;  %v5200_v3 = vpop.f32.mrf.mxu0 }
 0x719   :  { %5686 = vmatpush1.bf16.msra.mxu1 %v13580_v27  ;;  %v13590_v27 = vld [vmem:[#allocation64_spill] sm:$0xff] }
 0x71a   :  { %5687 = vmatprep.subr.bf16.mxu1 %v13581_v12  ;;  %v5202_v12 = vpop.f32.mrf.mxu0 }
 0x71b   :  { %v5203_v53 = vadd.f32 %v5202_v12, %v4816_v52  ;;  %v13599_v52 = vld [vmem:[#allocation82_spill] sm:$0xff] }
 0x71d   :  { %5688 = vmatpush2.bf16.msra.mxu1 %v13582_v34  ;;  %v5241_v34 = vpop.f32.mrf.mxu1 }
 0x71e   :  { %5689 = vmatprep.subr.bf16.mxu1 %v13583_v33  ;;  %v13592_v33 = vld [vmem:[#allocation68_spill] sm:$0xff] }
 0x71f   :  { %v5243_v59 = vpop.f32.mrf.mxu1 }
 0x721   :  { %5690 = vmatpush2.bf16.msra.mxu1 %v13584_v48  ;;  %v4808_v48 = vld [vmem:[#allocation7 + $0xa0] sm:$0xff] }
 0x722   :  { %5691 = vmatprep.subr.bf16.mxu1 %v13585_v51  ;;  %v5204_v51 = vpop.f32.mrf.mxu0  ;;  %v5199_v11 = vadd.f32 %v5198_v24, %v4808_v48 }
 0x724   :  { %v5242_v30 = vadd.f32 %v5241_v34, %v5199_v11  ;;  %v13598_v11 = vld [vmem:[#allocation80_spill] sm:$0xff] }
 0x725   :  { %5692 = vmatpush2.bf16.msra.mxu1 %v13586_v43  ;;  %v13593_v43 = vld [vmem:[#allocation70_spill] sm:$0xff] }
 0x726   :  { %5693 = vmatprep.subr.bf16.mxu1 %v13587_v35  ;;  %v5284_v35 = vpop.f32.mrf.mxu0 }
 0x727   :  { %v5285_v24 = vadd.f32 %v5284_v35, %v5242_v30  ;;  %v13600_v30 = vld [vmem:[#allocation84_spill] sm:$0xff] }
 0x728   :  { %v13602_v35 = vld [vmem:[#allocation88_spill] sm:$0xff] }
 0x729   :  { %5694 = vmatpush2.bf16.msra.mxu1 %v13588_v37  ;;  %v13594_v37 = vld [vmem:[#allocation72_spill] sm:$0xff] }
 0x72a   :  { %5695 = vmatprep.subr.bf16.mxu1 %v13589_v13  ;;  %v5245_v13 = vpop.f32.mrf.mxu1 }
 0x72b   :  { %v5246_v31 = vadd.f32 %v5245_v13, %v5203_v53  ;;  %v13603_v13 = vld [vmem:[#allocation90_spill] sm:$0xff] }
 0x72c   :  { %v5247_v44 = vpop.f32.mrf.mxu1 }
 0x72d   :  { %5696 = vmatpush2.bf16.msra.mxu1 %v13590_v27  ;;  %v5201_v27 = vadd.f32 %v5200_v3, %v4809_v32 }
 0x72e   :  { %5697 = vmatprep.subr.bf16.mxu1 %v13591_v40  ;;  %v5286_v40 = vpop.f32.mrf.mxu0 }
 0x730   :  { %v5288_v48 = vpop.f32.mrf.mxu0 }
 0x731   :  { %5698 = vmatpush2.bf16.msra.mxu1 %v13592_v33  ;;  %v5244_v33 = vadd.f32 %v5243_v59, %v5201_v27  ;;  %v5289_v59 = vadd.f32 %v5288_v48, %v5246_v31  ;;  %v13604_v27 = vld [vmem:[#allocation92_spill] sm:$0xff]  ;;  %v13605_v31 = vld [vmem:[#allocation94_spill] sm:$0xff]  ;;  %v13608_v48 = vld [vmem:[#allocation529_spill] sm:$0xff] }
 0x732   :  { %5699 = vmatprep.subr.bf16.mxu1 %v13593_v43  ;;  %v5205_v43 = vadd.f32 %v5204_v51, %v4817_v5  ;;  %v5290_v12 = vpop.f32.mrf.mxu0  ;;  %v13601_v51 = vld [vmem:[#allocation86_spill] sm:$0xff] }
 0x733   :  { %v5287_v32 = vadd.f32 %v5286_v40, %v5244_v33 }
 0x734   :  { %v5248_v47 = vadd.f32 %v5247_v44, %v5205_v43  ;;  %v13606_v43 = vld [vmem:[#allocation96_spill] sm:$0xff] }
 0x735   :  { %5700 = vmatpush2.bf16.msra.mxu1 %v13594_v37 }
 0x736   :  { %5701 = vmatprep.subr.bf16.mxu1 %v13595_v4  ;;  %v5291_v53 = vadd.f32 %v5290_v12, %v5248_v47  ;;  %v7152_v12 = vld [vmem:[#allocation5 + $0x20] sm:$0xff] }
 0x739   :  { %5702 = vmatpush2.bf16.msra.mxu1 %v13596_v60 }
 0x73a   :  { %5757 = vmatprep.subr.bf16.mxu1 %v13597_v39 }
 0x73c   :  { %v5327_v37 = vpop.f32.mrf.mxu1  ;;  %5704 = vmatmul.mubr.bf16.vlgmr.msra.gmra.mxu1 %v10353_v36 }
 0x73d   :  { %v5328_v4 = vadd.f32 %v5327_v37, %v5285_v24  ;;  %5758 = vmatpush1.bf16.msra.mxu1 %v13598_v11  ;;  %v13607_v24 = vld [vmem:[#allocation98_spill] sm:$0xff]  ;;  %v5544_v37 = vmul.f32 0.20157626, %v13608_v48 }
 0x73e   :  { %v5329_v3 = vpop.f32.mrf.mxu1  ;;  %5759 = vmatprep.subr.bf16.mxu1 %v13599_v52  ;;  %v13609_v11 = vld [vmem:[#allocation370_spill] sm:$0xff]  ;;  %v13610_v52 = vld [vmem:[#allocation533_spill] sm:$0xff] }
 0x73f   :  { %7064 = vtanh.f32 %v5328_v4  ;;  %v5330_v60 = vadd.f32 %v5329_v3, %v5287_v32  ;;  %v5545_v3 = vmul.f32 0.20157626, %v13609_v11  ;;  %v13616_v11 = vld [vmem:[#allocation104_spill] sm:$0xff] }
 0x740   :  { %v5331_v39 = vpop.f32.mrf.mxu1 }
 0x741   :  { %7066 = vtanh.f32 %v5330_v60  ;;  %v5332_v5 = vadd.f32 %v5331_v39, %v5289_v59  ;;  %5760 = vmatpush1.bf16.msra.mxu1 %v13600_v30  ;;  %v5552_v60 = vmul.f32 0.20157626, %v13610_v52  ;;  %v5576_v39 = vmul.f32 0.66394216, %v7152_v12  ;;  %v13617_v52 = vld [vmem:[#allocation106_spill] sm:$0xff] }
 0x742   :  { %v5333_v34 = vpop.f32.mrf.mxu1  ;;  %5761 = vmatprep.subr.bf16.mxu1 %v13601_v51 }
 0x743   :  { %7068 = vtanh.f32 %v5332_v5  ;;  %v5334_v44 = vadd.f32 %v5333_v34, %v5291_v53  ;;  %v7153_v53 = vld [vmem:[#allocation5 + $0x60] sm:$0xff]  ;;  %v13611_v34 = vld [vmem:[#allocation100_spill] sm:$0xff] }
 0x744   :  { %v5584_v30 = vmul.f32 0.66394216, %v7153_v53 }
 0x745   :  { %7070 = vtanh.f32 %v5334_v44  ;;  %5762 = vmatpush1.bf16.msra.mxu1 %v13602_v35  ;;  %v7154_v44 = vld [vmem:[#allocation5 + $0x28] sm:$0xff] }
 0x746   :  { %5763 = vmatprep.subr.bf16.mxu1 %v13603_v13  ;;  %v5577_v35 = vmul.f32 0.66394216, %v7154_v44  ;;  %v13612_v13 = vld [vmem:[#allocation532_spill] sm:$0xff]  ;;  %v13627_v44 = vld [vmem:[#allocation149_spill] sm:$0xff] }
 0x749   :  { %5764 = vmatpush1.bf16.msra.mxu1 %v13604_v27  ;;  %v5553_v27 = vmul.f32 0.20157626, %v13612_v13  ;;  %v13629_v13 = vld [vmem:[#allocation118_spill] sm:$0xff] }
 0x74a   :  { %5765 = vmatprep.subr.bf16.mxu1 %v13605_v31  ;;  %v13613_v31 = vld [vmem:[#allocation102_spill] sm:$0xff] }
 0x74c   :  { %v7065_v40 = vpop.eup %7064 }
 0x74d   :  { %v5528_v33 = vmul.f32 0.66577846, %v7065_v40  ;;  %5766 = vmatpush1.bf16.msra.mxu1 %v13606_v43 }
 0x74e   :  { %v7067_v47 = vpop.eup %7066  ;;  %5767 = vmatprep.subr.bf16.mxu1 %v13607_v24  ;;  %v7155_v24 = vld [vmem:[#allocation5 + $0x68] sm:$0xff] }
 0x74f   :  { %v5529_v4 = vmul.f32 0.66577846, %v7067_v47  ;;  %v5560_v59 = vadd.f32 %v5544_v37, %v5528_v33  ;;  %v5585_v48 = vmul.f32 0.66394216, %v7155_v24  ;;  %v13635_v24 = vld [vmem:[#allocation157_spill] sm:$0xff] }
 0x750   :  { %v7069_v32 = vpop.eup %7068 }
 0x751   :  { %v5536_v5 = vmul.f32 0.66577846, %v7069_v32  ;;  %5768 = vmatpush1.bf16.msra.mxu1 %v13611_v34  ;;  %v5561_v40 = vadd.f32 %v5545_v3, %v5529_v4  ;;  %v10447_v33 = vadd.f32 %v5576_v39, %v5560_v59  ;;  %v13621_v59 = vld [vmem:[#allocation110_spill] sm:$0xff]  ;;  %v13622_v39 = vld [vmem:[#allocation143_spill] sm:$0xff] }
 0x752   :  { %v7071_v51 = vpop.eup %7070  ;;  %5769 = vmatprep.subr.bf16.mxu1 %v13613_v31  ;;  %v13625_v34 = vld [vmem:[#allocation114_spill] sm:$0xff]  ;;  %v13631_v31 = vld [vmem:[#allocation153_spill] sm:$0xff] }
 0x753   :  { %v5568_v43 = vadd.f32 %v5552_v60, %v5536_v5  ;;  %v5537_v47 = vmul.f32 0.66577846, %v7071_v51  ;;  %13614 = vst [vmem:[#allocation233_spill] sm:$0xff] %v10447_v33  ;;  %v10453_v12 = vadd.f32 %v5577_v35, %v5561_v40  ;;  %v13620_v60 = vld [vmem:[#allocation108_spill] sm:$0xff]  ;;  %v13623_v5 = vld [vmem:[#allocation145_spill] sm:$0xff]  ;;  %v13626_v51 = vld [vmem:[#allocation147_spill] sm:$0xff] }
 0x754   :  { %v13628_v35 = vld [vmem:[#allocation116_spill] sm:$0xff] }
 0x755   :  { %v10449_v37 = vadd.f32 %v5584_v30, %v5568_v43  ;;  %v5569_v32 = vadd.f32 %v5553_v27, %v5537_v47  ;;  %5770 = vmatpush1.bf16.msra.mxu1 %v13616_v11  ;;  %13618 = vst [vmem:[#allocation301_spill] sm:$0xff] %v10453_v12  ;;  %v13624_v30 = vld [vmem:[#allocation112_spill] sm:$0xff]  ;;  %v13630_v27 = vld [vmem:[#allocation151_spill] sm:$0xff]  ;;  %v13633_v43 = vld [vmem:[#allocation122_spill] sm:$0xff] }
 0x756   :  { %5771 = vmatprep.subr.bf16.mxu1 %v13617_v52  ;;  %v13632_v40 = vld [vmem:[#allocation120_spill] sm:$0xff]  ;;  %v13634_v47 = vld [vmem:[#allocation155_spill] sm:$0xff]  ;;  %v13639_v52 = vld [vmem:[#allocation161_spill] sm:$0xff] }
 0x757   :  { %13615 = vst [vmem:[#allocation535_spill] sm:$0xff] %v10449_v37  ;;  %v10455_v53 = vadd.f32 %v5585_v48, %v5569_v32  ;;  %v10459_v4 = vpack.c.bf16 %v10449_v37, %v10447_v33  ;;  %v13636_v48 = vld [vmem:[#allocation124_spill] sm:$0xff]  ;;  %v13637_v32 = vld [vmem:[#allocation126_spill] sm:$0xff]  ;;  %v13638_v11 = vld [vmem:[#allocation159_spill] sm:$0xff] }
 0x759   :  { %13619 = vst [vmem:[#allocation390_spill] sm:$0xff] %v10455_v53  ;;  %v10463_v3 = vpack.c.bf16 %v10455_v53, %v10453_v12  ;;  %5772 = vmatpush1.bf16.msra.mxu1 %v13620_v60  ;;  %v13640_v60 = vld [vmem:[#allocation128_spill] sm:$0xff] }
 0x75a   :  { %5773 = vmatprep.subr.bf16.mxu1 %v13621_v59  ;;  %v13641_v59 = vld [vmem:[#allocation130_spill] sm:$0xff] }
 0x75b   :  { %5746 = vmatprep.mubr.bf16.mxu0 %v10463_v3 }
 0x75c   :  { %5747 = vmatmul.mubr.bf16.vlgmr.msra.gmra.mxu0 %v10459_v4 }
 0x75d   :  { %5801 = vmatpush1.bf16.msra.mxu0 %v13622_v39  ;;  %5832 = vmatprep.mubr.bf16.mxu0 %v10183_v61  ;;  %v13642_v39 = vld [vmem:[#allocation163_spill] sm:$0xff] }
 0x75e   :  { %5802 = vmatprep.subr.bf16.mxu0 %v13623_v5  ;;  %5774 = vmatpush2.bf16.msra.mxu1 %v13624_v30  ;;  %v13643_v5 = vld [vmem:[#allocation165_spill] sm:$0xff]  ;;  %v13644_v30 = vld [vmem:[#allocation132_spill] sm:$0xff] }
 0x75f   :  { %5775 = vmatprep.subr.bf16.mxu1 %v13625_v34  ;;  %v13645_v34 = vld [vmem:[#allocation134_spill] sm:$0xff] }
 0x761   :  { %5803 = vmatpush1.bf16.msra.mxu0 %v13626_v51  ;;  %v13646_v51 = vld [vmem:[#allocation167_spill] sm:$0xff] }
 0x762   :  { %5804 = vmatprep.subr.bf16.mxu0 %v13627_v44  ;;  %5776 = vmatpush2.bf16.msra.mxu1 %v13628_v35  ;;  %v13647_v44 = vld [vmem:[#allocation169_spill] sm:$0xff]  ;;  %v13648_v35 = vld [vmem:[#allocation136_spill] sm:$0xff] }
 0x763   :  { %5777 = vmatprep.subr.bf16.mxu1 %v13629_v13  ;;  %v13649_v13 = vld [vmem:[#allocation138_spill] sm:$0xff] }
 0x765   :  { %5805 = vmatpush1.bf16.msra.mxu0 %v13630_v27  ;;  %v13650_v27 = vld [vmem:[#allocation171_spill] sm:$0xff] }
 0x766   :  { %5806 = vmatprep.subr.bf16.mxu0 %v13631_v31  ;;  %5778 = vmatpush2.bf16.msra.mxu1 %v13632_v40  ;;  %v13651_v31 = vld [vmem:[#allocation173_spill] sm:$0xff]  ;;  %v13652_v40 = vld [vmem:[#allocation140_spill] sm:$0xff] }
 0x767   :  { %5779 = vmatprep.subr.bf16.mxu1 %v13633_v43  ;;  %v13653_v43 = vld [vmem:[#allocation142_spill] sm:$0xff] }
 0x769   :  { %5807 = vmatpush1.bf16.msra.mxu0 %v13634_v47  ;;  %v13654_v47 = vld [vmem:[#allocation175_spill] sm:$0xff] }
 0x76a   :  { %5808 = vmatprep.subr.bf16.mxu0 %v13635_v24  ;;  %5780 = vmatpush2.bf16.msra.mxu1 %v13636_v48  ;;  %v13655_v24 = vld [vmem:[#allocation177_spill] sm:$0xff]  ;;  %v13656_v48 = vld [vmem:[#allocation179_spill] sm:$0xff] }
 0x76b   :  { %5781 = vmatprep.subr.bf16.mxu1 %v13637_v32  ;;  %v13657_v32 = vld [vmem:[#allocation181_spill] sm:$0xff] }
 0x76d   :  { %5809 = vmatpush1.bf16.msra.mxu0 %v13638_v11  ;;  %v13658_v11 = vld [vmem:[#allocation183_spill] sm:$0xff] }
 0x76e   :  { %5810 = vmatprep.subr.bf16.mxu0 %v13639_v52  ;;  %5782 = vmatpush2.bf16.msra.mxu1 %v13640_v60  ;;  %v13659_v52 = vld [vmem:[#allocation185_spill] sm:$0xff]  ;;  %v13660_v60 = vld [vmem:[#allocation187_spill] sm:$0xff] }
 0x76f   :  { %5783 = vmatprep.subr.bf16.mxu1 %v13641_v59  ;;  %v13661_v59 = vld [vmem:[#allocation189_spill] sm:$0xff] }
 0x771   :  { %5811 = vmatpush1.bf16.msra.mxu0 %v13642_v39  ;;  %v13662_v39 = vld [vmem:[#allocation191_spill] sm:$0xff] }
 0x772   :  { %5812 = vmatprep.subr.bf16.mxu0 %v13643_v5  ;;  %5784 = vmatpush2.bf16.msra.mxu1 %v13644_v30  ;;  %v13663_v5 = vld [vmem:[#allocation193_spill] sm:$0xff]  ;;  %v13664_v30 = vld [vmem:[#allocation195_spill] sm:$0xff] }
 0x773   :  { %5785 = vmatprep.subr.bf16.mxu1 %v13645_v34  ;;  %v13665_v34 = vld [vmem:[#allocation197_spill] sm:$0xff] }
 0x775   :  { %5813 = vmatpush1.bf16.msra.mxu0 %v13646_v51  ;;  %v13666_v51 = vld [vmem:[#allocation199_spill] sm:$0xff] }
 0x776   :  { %5814 = vmatprep.subr.bf16.mxu0 %v13647_v44  ;;  %5786 = vmatpush2.bf16.msra.mxu1 %v13648_v35  ;;  %v13667_v44 = vld [vmem:[#allocation201_spill] sm:$0xff]  ;;  %v13668_v35 = vld [vmem:[#allocation203_spill] sm:$0xff] }
 0x777   :  { %5787 = vmatprep.subr.bf16.mxu1 %v13649_v13  ;;  %v13669_v13 = vld [vmem:[#allocation205_spill] sm:$0xff] }
 0x779   :  { %5815 = vmatpush1.bf16.msra.mxu0 %v13650_v27  ;;  %v13670_v27 = vld [vmem:[#allocation207_spill] sm:$0xff] }
 0x77a   :  { %5816 = vmatprep.subr.bf16.mxu0 %v13651_v31  ;;  %5788 = vmatpush2.bf16.msra.mxu1 %v13652_v40  ;;  %v13671_v31 = vld [vmem:[#allocation209_spill] sm:$0xff]  ;;  %v13672_v40 = vld [vmem:[#allocation211_spill] sm:$0xff] }
 0x77b   :  { %5843 = vmatprep.subr.bf16.mxu1 %v13653_v43  ;;  %v13673_v43 = vld [vmem:[#allocation213_spill] sm:$0xff] }
 0x77d   :  { %5817 = vmatpush2.bf16.msra.mxu0 %v13654_v47  ;;  %v13674_v47 = vld [vmem:[#allocation215_spill] sm:$0xff] }
 0x77e   :  { %5818 = vmatprep.subr.bf16.mxu0 %v13655_v24  ;;  %v5370_v24 = vpop.f32.mrf.mxu0 }
 0x781   :  { %5819 = vmatpush2.bf16.msra.mxu0 %v13656_v48  ;;  %v13675_v48 = vld [vmem:[#allocation217_spill] sm:$0xff] }
 0x782   :  { %5820 = vmatprep.subr.bf16.mxu0 %v13657_v32  ;;  %v13676_v32 = vld [vmem:[#allocation219_spill] sm:$0xff] }
 0x785   :  { %5821 = vmatpush2.bf16.msra.mxu0 %v13658_v11  ;;  %v5372_v11 = vpop.f32.mrf.mxu0 }
 0x786   :  { %5822 = vmatprep.subr.bf16.mxu0 %v13659_v52  ;;  %v13677_v52 = vld [vmem:[#allocation221_spill] sm:$0xff] }
 0x789   :  { %5823 = vmatpush2.bf16.msra.mxu0 %v13660_v60  ;;  %v13678_v60 = vld [vmem:[#allocation223_spill] sm:$0xff] }
 0x78a   :  { %5824 = vmatprep.subr.bf16.mxu0 %v13661_v59  ;;  %v5374_v59 = vpop.f32.mrf.mxu0 }
 0x78d   :  { %5825 = vmatpush2.bf16.msra.mxu0 %v13662_v39  ;;  %v5413_v39 = vpop.f32.mrf.mxu1 }
 0x78e   :  { %5826 = vmatprep.subr.bf16.mxu0 %v13663_v5  ;;  %v13679_v5 = vld [vmem:[#allocation225_spill] sm:$0xff] }
 0x791   :  { %5827 = vmatpush2.bf16.msra.mxu0 %v13664_v30  ;;  %v13680_v30 = vld [vmem:[#allocation227_spill] sm:$0xff] }
 0x792   :  { %5828 = vmatprep.subr.bf16.mxu0 %v13665_v34  ;;  %v4810_v34 = vld [vmem:[#allocation7 + $0xb0] sm:$0xff] }
 0x795   :  { %5829 = vmatpush2.bf16.msra.mxu0 %v13666_v51  ;;  %v5376_v51 = vpop.f32.mrf.mxu0 }
 0x796   :  { %5830 = vmatprep.subr.bf16.mxu0 %v13667_v44  ;;  %v5415_v44 = vpop.f32.mrf.mxu1 }
 0x799   :  { %5831 = vmatpush2.bf16.msra.mxu0 %v13668_v35  ;;  %v13681_v35 = vld [vmem:[#allocation229_spill] sm:$0xff] }
 0x79a   :  { %5886 = vmatprep.subr.bf16.mxu0 %v13669_v13  ;;  %v4811_v13 = vld [vmem:[#allocation7 + $0xb8] sm:$0xff] }
 0x79c   :  { %5833 = vmatmul.mubr.bf16.vlgmr.msra.gmra.mxu0 %v10178_v58 }
 0x79d   :  { %5887 = vmatpush1.bf16.msra.mxu0 %v13670_v27  ;;  %5918 = vmatprep.mubr.bf16.mxu0 %v10463_v3  ;;  %v5456_v27 = vpop.f32.mrf.mxu0 }
 0x79e   :  { %5888 = vmatprep.subr.bf16.mxu0 %v13671_v31  ;;  %v5371_v31 = vadd.f32 %v5370_v24, %v4810_v34 }
 0x7a1   :  { %5889 = vmatpush1.bf16.msra.mxu0 %v13672_v40  ;;  %v13682_v40 = vld [vmem:[#allocation231_spill] sm:$0xff] }
 0x7a2   :  { %5890 = vmatprep.subr.bf16.mxu0 %v13673_v43  ;;  %v4818_v43 = vld [vmem:[#allocation7 + $0xf0] sm:$0xff] }
 0x7a5   :  { %5891 = vmatpush1.bf16.msra.mxu0 %v13674_v47  ;;  %v5417_v47 = vpop.f32.mrf.mxu1 }
 0x7a6   :  { %5892 = vmatprep.subr.bf16.mxu0 %v13675_v48  ;;  %v5373_v48 = vadd.f32 %v5372_v11, %v4811_v13 }
 0x7a7   :  { %v5419_v53 = vpop.f32.mrf.mxu1 }
 0x7a9   :  { %5893 = vmatpush1.bf16.msra.mxu0 %v13676_v32  ;;  %v5414_v32 = vadd.f32 %v5413_v39, %v5371_v31  ;;  %v13683_v39 = vld [vmem:[#allocation241_spill] sm:$0xff] }
 0x7aa   :  { %5894 = vmatprep.subr.bf16.mxu0 %v13677_v52  ;;  %v4819_v52 = vld [vmem:[#allocation7 + $0xf8] sm:$0xff] }
 0x7ab   :  { %v5457_v24 = vadd.f32 %v5456_v27, %v5414_v32 }
 0x7ad   :  { %5895 = vmatpush1.bf16.msra.mxu0 %v13678_v60  ;;  %v5458_v60 = vpop.f32.mrf.mxu0 }
 0x7ae   :  { %5896 = vmatprep.subr.bf16.mxu0 %v13679_v5  ;;  %v5375_v5 = vadd.f32 %v5374_v59, %v4818_v43  ;;  %v13685_v43 = vld [vmem:[#allocation245_spill] sm:$0xff] }
 0x7af   :  { %v5460_v34 = vpop.f32.mrf.mxu0 }
 0x7b0   :  { %v5418_v37 = vadd.f32 %v5417_v47, %v5375_v5  ;;  %v13687_v47 = vld [vmem:[#allocation249_spill] sm:$0xff]  ;;  %v5546_v5 = vmul.f32 0.20157626, %v9889_v10 }
 0x7b1   :  { %5897 = vmatpush1.bf16.msra.mxu0 %v13680_v30  ;;  %v5416_v30 = vadd.f32 %v5415_v44, %v5373_v48  ;;  %v13693_v10 = vld [vmem:[#allocation261_spill] sm:$0xff] }
 0x7b2   :  { %5898 = vmatprep.subr.bf16.mxu0 %v13681_v35  ;;  %v5377_v35 = vadd.f32 %v5376_v51, %v4819_v52  ;;  %v5461_v44 = vadd.f32 %v5460_v34, %v5418_v37  ;;  %v13684_v51 = vld [vmem:[#allocation243_spill] sm:$0xff]  ;;  %v13689_v37 = vld [vmem:[#allocation253_spill] sm:$0xff]  ;;  %v5554_v34 = vmul.f32 0.20157626, %v9891_v6 }
 0x7b3   :  { %v13690_v52 = vld [vmem:[#allocation255_spill] sm:$0xff] }
 0x7b4   :  { %v5420_v12 = vadd.f32 %v5419_v53, %v5377_v35 }
 0x7b5   :  { %5899 = vmatpush1.bf16.msra.mxu0 %v13682_v40 }
 0x7b6   :  { %5900 = vmatprep.subr.bf16.mxu0 %v12673_v49  ;;  %v5459_v49 = vadd.f32 %v5458_v60, %v5416_v30 }
 0x7b9   :  { %5901 = vmatpush1.bf16.msra.mxu0 %v12677_v1  ;;  %v5462_v1 = vpop.f32.mrf.mxu0 }
 0x7ba   :  { %5902 = vmatprep.subr.bf16.mxu0 %v12679_v62  ;;  %v5463_v27 = vadd.f32 %v5462_v1, %v5420_v12  ;;  %v13691_v12 = vld [vmem:[#allocation257_spill] sm:$0xff]  ;;  %v13692_v1 = vld [vmem:[#allocation259_spill] sm:$0xff] }
 0x7bc   :  { %v5499_v40 = vpop.f32.mrf.mxu1 }
 0x7bd   :  { %v5500_v33 = vadd.f32 %v5499_v40, %v5457_v24  ;;  %5903 = vmatpush2.bf16.msra.mxu0 %v13180_v25  ;;  %v13686_v25 = vld [vmem:[#allocation247_spill] sm:$0xff]  ;;  %v5547_v24 = vmul.f32 0.20157626, %v9895_v23 }
 0x7be   :  { %v5501_v11 = vpop.f32.mrf.mxu1  ;;  %5904 = vmatprep.subr.bf16.mxu0 %v13683_v39 }
 0x7bf   :  { %7072 = vtanh.f32 %v5500_v33  ;;  %v5502_v59 = vadd.f32 %v5501_v11, %v5459_v49  ;;  %v13688_v33 = vld [vmem:[#allocation251_spill] sm:$0xff]  ;;  %v7156_v49 = vld [vmem:[#allocation5 + $0x30] sm:$0xff] }
 0x7c0   :  { %v5503_v13 = vpop.f32.mrf.mxu1  ;;  %v5578_v11 = vmul.f32 0.66394216, %v7156_v49  ;;  %v13703_v49 = vld [vmem:[#allocation275_spill] sm:$0xff] }
 0x7c1   :  { %7074 = vtanh.f32 %v5502_v59  ;;  %v5504_v62 = vadd.f32 %v5503_v13, %v5461_v44  ;;  %5905 = vmatpush2.bf16.msra.mxu0 %v13684_v51  ;;  %v7157_v59 = vld [vmem:[#allocation5 + $0x70] sm:$0xff] }
 0x7c2   :  { %v5505_v31 = vpop.f32.mrf.mxu1  ;;  %5906 = vmatprep.subr.bf16.mxu0 %v13685_v43  ;;  %v5586_v44 = vmul.f32 0.66394216, %v7157_v59  ;;  %v13706_v59 = vld [vmem:[#allocation152_spill] sm:$0xff] }
 0x7c3   :  { %7076 = vtanh.f32 %v5504_v62  ;;  %v5506_v53 = vadd.f32 %v5505_v31, %v5463_v27  ;;  %v7158_v62 = vld [vmem:[#allocation5 + $0x38] sm:$0xff]  ;;  %v5555_v27 = vmul.f32 0.20157626, %v9897_v28 }
 0x7c4   :  { %v5579_v51 = vmul.f32 0.66394216, %v7158_v62  ;;  %v13710_v62 = vld [vmem:[#allocation156_spill] sm:$0xff] }
 0x7c5   :  { %7078 = vtanh.f32 %v5506_v53  ;;  %5907 = vmatpush2.bf16.msra.mxu0 %v13686_v25  ;;  %v7159_v53 = vld [vmem:[#allocation5 + $0x78] sm:$0xff] }
 0x7c6   :  { %5908 = vmatprep.subr.bf16.mxu0 %v13687_v47  ;;  %v5587_v6 = vmul.f32 0.66394216, %v7159_v53  ;;  %v13717_v53 = vld [vmem:[#allocation289_spill] sm:$0xff] }
 0x7c9   :  { %5909 = vmatpush2.bf16.msra.mxu0 %v13688_v33 }
 0x7ca   :  { %5910 = vmatprep.subr.bf16.mxu0 %v13689_v37  ;;  %v13694_v37 = vld [vmem:[#allocation263_spill] sm:$0xff] }
 0x7cc   :  { %v7073_v48 = vpop.eup %7072 }
 0x7cd   :  { %v5530_v32 = vmul.f32 0.66577846, %v7073_v48  ;;  %5911 = vmatpush2.bf16.msra.mxu0 %v13690_v52  ;;  %v13695_v48 = vld [vmem:[#allocation265_spill] sm:$0xff] }
 0x7ce   :  { %v7075_v60 = vpop.eup %7074  ;;  %5912 = vmatprep.subr.bf16.mxu0 %v13691_v12 }
 0x7cf   :  { %v5531_v30 = vmul.f32 0.66577846, %v7075_v60  ;;  %v5562_v40 = vadd.f32 %v5546_v5, %v5530_v32  ;;  %v13696_v60 = vld [vmem:[#allocation267_spill] sm:$0xff]  ;;  %v13697_v5 = vld [vmem:[#allocation269_spill] sm:$0xff] }
 0x7d0   :  { %v7077_v35 = vpop.eup %7076 }
 0x7d1   :  { %v5538_v39 = vmul.f32 0.66577846, %v7077_v35  ;;  %5913 = vmatpush2.bf16.msra.mxu0 %v13692_v1  ;;  %v5563_v31 = vadd.f32 %v5547_v24, %v5531_v30  ;;  %v10552_v25 = vadd.f32 %v5578_v11, %v5562_v40  ;;  %v13698_v30 = vld [vmem:[#allocation144_spill] sm:$0xff]  ;;  %v13699_v35 = vld [vmem:[#allocation271_spill] sm:$0xff]  ;;  %v13700_v24 = vld [vmem:[#allocation146_spill] sm:$0xff] }
 0x7d2   :  { %v7079_v13 = vpop.eup %7078  ;;  %5914 = vmatprep.subr.bf16.mxu0 %v13693_v10  ;;  %v13702_v40 = vld [vmem:[#allocation148_spill] sm:$0xff]  ;;  %v13704_v11 = vld [vmem:[#allocation150_spill] sm:$0xff]  ;;  %v13713_v10 = vld [vmem:[#allocation285_spill] sm:$0xff] }
 0x7d3   :  { %v5570_v43 = vadd.f32 %v5554_v34, %v5538_v39  ;;  %v5539_v23 = vmul.f32 0.66577846, %v7079_v13  ;;  %v10558_v32 = vadd.f32 %v5579_v51, %v5563_v31  ;;  %v13701_v34 = vld [vmem:[#allocation273_spill] sm:$0xff]  ;;  %v13708_v1 = vld [vmem:[#allocation154_spill] sm:$0xff]  ;;  %v13711_v51 = vld [vmem:[#allocation283_spill] sm:$0xff] }
 0x7d4   :  { %v13705_v39 = vld [vmem:[#allocation277_spill] sm:$0xff]  ;;  %v13714_v31 = vld [vmem:[#allocation160_spill] sm:$0xff] }
 0x7d5   :  { %v10554_v47 = vadd.f32 %v5586_v44, %v5570_v43  ;;  %v5571_v33 = vadd.f32 %v5555_v27, %v5539_v23  ;;  %5915 = vmatpush2.bf16.msra.mxu0 %v13694_v37  ;;  %v13707_v44 = vld [vmem:[#allocation279_spill] sm:$0xff]  ;;  %v13709_v13 = vld [vmem:[#allocation281_spill] sm:$0xff]  ;;  %v13712_v27 = vld [vmem:[#allocation158_spill] sm:$0xff] }
 0x7d6   :  { %5916 = vmatprep.subr.bf16.mxu0 %v13695_v48  ;;  %v13715_v43 = vld [vmem:[#allocation287_spill] sm:$0xff]  ;;  %v13716_v23 = vld [vmem:[#allocation162_spill] sm:$0xff]  ;;  %v13721_v48 = vld [vmem:[#allocation293_spill] sm:$0xff] }
 0x7d7   :  { %v10560_v52 = vadd.f32 %v5587_v6, %v5571_v33  ;;  %v10564_v28 = vpack.c.bf16 %v10554_v47, %v10552_v25  ;;  %v13718_v6 = vld [vmem:[#allocation164_spill] sm:$0xff]  ;;  %v13719_v33 = vld [vmem:[#allocation291_spill] sm:$0xff]  ;;  %v13720_v37 = vld [vmem:[#allocation166_spill] sm:$0xff] }
 0x7d9   :  { %5917 = vmatpush2.bf16.msra.mxu0 %v13696_v60  ;;  %v10569_v12 = vpack.c.bf16 %v10560_v52, %v10558_v32  ;;  %v13722_v60 = vld [vmem:[#allocation168_spill] sm:$0xff] }
 0x7da   :  { %5972 = vmatprep.subr.bf16.mxu0 %v13697_v5  ;;  %v13723_v5 = vld [vmem:[#allocation295_spill] sm:$0xff] }
 0x7db   :  { %5789 = vmatprep.mubr.bf16.mxu1 %v10569_v12 }
 0x7dc   :  { %5919 = vmatmul.mubr.bf16.vlgmr.msra.gmra.mxu0 %v10459_v4  ;;  %5790 = vmatmul.mubr.bf16.vlgmr.msra.gmra.mxu1 %v10564_v28 }
 0x7dd   :  { %5844 = vmatpush1.bf16.msra.mxu1 %v13698_v30  ;;  %5973 = vmatpush1.bf16.msra.mxu0 %v13699_v35  ;;  %v13724_v30 = vld [vmem:[#allocation170_spill] sm:$0xff]  ;;  %v13725_v35 = vld [vmem:[#allocation297_spill] sm:$0xff] }
 0x7de   :  { %6004 = vmatprep.mubr.bf16.mxu0 %v10183_v61  ;;  %5875 = vmatprep.mubr.bf16.mxu1 %v10359_v14 }
 0x7df   :  { %5845 = vmatprep.subr.bf16.mxu1 %v13700_v24  ;;  %5974 = vmatprep.subr.bf16.mxu0 %v13701_v34  ;;  %v13726_v24 = vld [vmem:[#allocation172_spill] sm:$0xff]  ;;  %v13727_v34 = vld [vmem:[#allocation299_spill] sm:$0xff] }
 0x7e1   :  { %5846 = vmatpush1.bf16.msra.mxu1 %v13702_v40  ;;  %5975 = vmatpush1.bf16.msra.mxu0 %v13703_v49  ;;  %v13728_v40 = vld [vmem:[#allocation174_spill] sm:$0xff]  ;;  %v13729_v49 = vld [vmem:[#allocation176_spill] sm:$0xff] }
 0x7e2   :  { %5847 = vmatprep.subr.bf16.mxu1 %v13704_v11  ;;  %5976 = vmatprep.subr.bf16.mxu0 %v13705_v39  ;;  %v13730_v11 = vld [vmem:[#allocation303_spill] sm:$0xff]  ;;  %v13731_v39 = vld [vmem:[#allocation178_spill] sm:$0xff] }
 0x7e5   :  { %5848 = vmatpush1.bf16.msra.mxu1 %v13706_v59  ;;  %5977 = vmatpush1.bf16.msra.mxu0 %v13707_v44  ;;  %v13732_v59 = vld [vmem:[#allocation305_spill] sm:$0xff]  ;;  %v13733_v44 = vld [vmem:[#allocation180_spill] sm:$0xff] }
 0x7e6   :  { %5849 = vmatprep.subr.bf16.mxu1 %v13708_v1  ;;  %5978 = vmatprep.subr.bf16.mxu0 %v13709_v13  ;;  %v13734_v1 = vld [vmem:[#allocation307_spill] sm:$0xff]  ;;  %v13735_v13 = vld [vmem:[#allocation182_spill] sm:$0xff] }
 0x7e9   :  { %5850 = vmatpush1.bf16.msra.mxu1 %v13710_v62  ;;  %5979 = vmatpush1.bf16.msra.mxu0 %v13711_v51  ;;  %v13736_v62 = vld [vmem:[#allocation309_spill] sm:$0xff]  ;;  %v13737_v51 = vld [vmem:[#allocation184_spill] sm:$0xff] }
 0x7ea   :  { %5851 = vmatprep.subr.bf16.mxu1 %v13712_v27  ;;  %5980 = vmatprep.subr.bf16.mxu0 %v13713_v10  ;;  %v13738_v27 = vld [vmem:[#allocation311_spill] sm:$0xff]  ;;  %v13740_v10 = vld [vmem:[#allocation313_spill] sm:$0xff] }
 0x7ed   :  { %5852 = vmatpush1.bf16.msra.mxu1 %v13714_v31  ;;  %5981 = vmatpush1.bf16.msra.mxu0 %v13715_v43  ;;  %v13741_v31 = vld [vmem:[#allocation188_spill] sm:$0xff]  ;;  %v13742_v43 = vld [vmem:[#allocation315_spill] sm:$0xff] }
 0x7ee   :  { %5853 = vmatprep.subr.bf16.mxu1 %v13716_v23  ;;  %5982 = vmatprep.subr.bf16.mxu0 %v13717_v53  ;;  %v13743_v23 = vld [vmem:[#allocation190_spill] sm:$0xff]  ;;  %v13744_v53 = vld [vmem:[#allocation317_spill] sm:$0xff] }
 0x7f1   :  { %5854 = vmatpush1.bf16.msra.mxu1 %v13718_v6  ;;  %5983 = vmatpush1.bf16.msra.mxu0 %v13719_v33  ;;  %v13745_v6 = vld [vmem:[#allocation192_spill] sm:$0xff]  ;;  %v13746_v33 = vld [vmem:[#allocation319_spill] sm:$0xff] }
 0x7f2   :  { %5855 = vmatprep.subr.bf16.mxu1 %v13720_v37  ;;  %5984 = vmatprep.subr.bf16.mxu0 %v13721_v48  ;;  %v13747_v37 = vld [vmem:[#allocation194_spill] sm:$0xff]  ;;  %v13748_v48 = vld [vmem:[#allocation321_spill] sm:$0xff] }
 0x7f5   :  { %5856 = vmatpush1.bf16.msra.mxu1 %v13722_v60  ;;  %5985 = vmatpush1.bf16.msra.mxu0 %v13723_v5  ;;  %v13749_v60 = vld [vmem:[#allocation196_spill] sm:$0xff]  ;;  %v13750_v5 = vld [vmem:[#allocation323_spill] sm:$0xff] }
 0x7f6   :  { %5857 = vmatprep.subr.bf16.mxu1 %v13724_v30  ;;  %5986 = vmatprep.subr.bf16.mxu0 %v13725_v35  ;;  %v13751_v30 = vld [vmem:[#allocation198_spill] sm:$0xff]  ;;  %v13752_v35 = vld [vmem:[#allocation325_spill] sm:$0xff] }
 0x7f9   :  { %5858 = vmatpush1.bf16.msra.mxu1 %v13726_v24  ;;  %5987 = vmatpush1.bf16.msra.mxu0 %v13727_v34  ;;  %v13753_v24 = vld [vmem:[#allocation200_spill] sm:$0xff]  ;;  %v13754_v34 = vld [vmem:[#allocation327_spill] sm:$0xff] }
 0x7fa   :  { %5859 = vmatprep.subr.bf16.mxu1 %v13728_v40  ;;  %5988 = vmatprep.subr.bf16.mxu0 %v13231_v41  ;;  %v13739_v41 = vld [vmem:[#allocation186_spill] sm:$0xff] }
 0x7fb   :  { %v13755_v40 = vld [vmem:[#allocation202_spill] sm:$0xff] }
 0x7fd   :  { %5860 = vmatpush2.bf16.msra.mxu1 %v13729_v49  ;;  %5989 = vmatpush2.bf16.msra.mxu0 %v13730_v11  ;;  %v13756_v49 = vld [vmem:[#allocation329_spill] sm:$0xff]  ;;  %v13757_v11 = vld [vmem:[#allocation204_spill] sm:$0xff] }
 0x7fe   :  { %5861 = vmatprep.subr.bf16.mxu1 %v13731_v39  ;;  %5990 = vmatprep.subr.bf16.mxu0 %v13732_v59  ;;  %v13758_v39 = vld [vmem:[#allocation331_spill] sm:$0xff]  ;;  %v13759_v59 = vld [vmem:[#allocation206_spill] sm:$0xff] }
 0x801   :  { %5862 = vmatpush2.bf16.msra.mxu1 %v13733_v44  ;;  %5991 = vmatpush2.bf16.msra.mxu0 %v13734_v1  ;;  %v13760_v44 = vld [vmem:[#allocation333_spill] sm:$0xff]  ;;  %v13761_v1 = vld [vmem:[#allocation208_spill] sm:$0xff] }
 0x802   :  { %5863 = vmatprep.subr.bf16.mxu1 %v13735_v13  ;;  %5992 = vmatprep.subr.bf16.mxu0 %v13736_v62  ;;  %v13762_v13 = vld [vmem:[#allocation335_spill] sm:$0xff]  ;;  %v13763_v62 = vld [vmem:[#allocation210_spill] sm:$0xff] }
 0x805   :  { %5864 = vmatpush2.bf16.msra.mxu1 %v13737_v51  ;;  %5993 = vmatpush2.bf16.msra.mxu0 %v13738_v27  ;;  %v13764_v51 = vld [vmem:[#allocation337_spill] sm:$0xff]  ;;  %v13765_v27 = vld [vmem:[#allocation212_spill] sm:$0xff] }
 0x806   :  { %5865 = vmatprep.subr.bf16.mxu1 %v13739_v41  ;;  %5994 = vmatprep.subr.bf16.mxu0 %v13740_v10  ;;  %v13766_v41 = vld [vmem:[#allocation339_spill] sm:$0xff]  ;;  %v13767_v10 = vld [vmem:[#allocation214_spill] sm:$0xff] }
 0x809   :  { %5866 = vmatpush2.bf16.msra.mxu1 %v13741_v31  ;;  %5995 = vmatpush2.bf16.msra.mxu0 %v13742_v43  ;;  %v13768_v31 = vld [vmem:[#allocation341_spill] sm:$0xff]  ;;  %v13769_v43 = vld [vmem:[#allocation216_spill] sm:$0xff] }
 0x80a   :  { %5867 = vmatprep.subr.bf16.mxu1 %v13743_v23  ;;  %5996 = vmatprep.subr.bf16.mxu0 %v13744_v53  ;;  %v13770_v23 = vld [vmem:[#allocation343_spill] sm:$0xff]  ;;  %v13771_v53 = vld [vmem:[#allocation218_spill] sm:$0xff] }
 0x80d   :  { %5868 = vmatpush2.bf16.msra.mxu1 %v13745_v6  ;;  %5997 = vmatpush2.bf16.msra.mxu0 %v13746_v33  ;;  %v13772_v6 = vld [vmem:[#allocation345_spill] sm:$0xff]  ;;  %v13773_v33 = vld [vmem:[#allocation220_spill] sm:$0xff] }
 0x80e   :  { %5869 = vmatprep.subr.bf16.mxu1 %v13747_v37  ;;  %5998 = vmatprep.subr.bf16.mxu0 %v13748_v48  ;;  %v13774_v37 = vld [vmem:[#allocation347_spill] sm:$0xff]  ;;  %v13775_v48 = vld [vmem:[#allocation222_spill] sm:$0xff] }
 0x811   :  { %5870 = vmatpush2.bf16.msra.mxu1 %v13749_v60  ;;  %5999 = vmatpush2.bf16.msra.mxu0 %v13750_v5  ;;  %v13776_v60 = vld [vmem:[#allocation349_spill] sm:$0xff]  ;;  %v13777_v5 = vld [vmem:[#allocation224_spill] sm:$0xff] }
 0x812   :  { %5871 = vmatprep.subr.bf16.mxu1 %v13751_v30  ;;  %6000 = vmatprep.subr.bf16.mxu0 %v13752_v35  ;;  %v13778_v30 = vld [vmem:[#allocation351_spill] sm:$0xff]  ;;  %v13779_v35 = vld [vmem:[#allocation226_spill] sm:$0xff] }
 0x815   :  { %5872 = vmatpush2.bf16.msra.mxu1 %v13753_v24  ;;  %6001 = vmatpush2.bf16.msra.mxu0 %v13754_v34  ;;  %v13780_v24 = vld [vmem:[#allocation353_spill] sm:$0xff]  ;;  %v13781_v34 = vld [vmem:[#allocation228_spill] sm:$0xff] }
 0x816   :  { %5873 = vmatprep.subr.bf16.mxu1 %v13755_v40  ;;  %6002 = vmatprep.subr.bf16.mxu0 %v13756_v49  ;;  %v13782_v40 = vld [vmem:[#allocation355_spill] sm:$0xff]  ;;  %v13783_v49 = vld [vmem:[#allocation230_spill] sm:$0xff] }
 0x819   :  { %5874 = vmatpush2.bf16.msra.mxu1 %v13757_v11  ;;  %6003 = vmatpush2.bf16.msra.mxu0 %v13758_v39  ;;  %v13784_v11 = vld [vmem:[#allocation357_spill] sm:$0xff]  ;;  %v13785_v39 = vld [vmem:[#allocation232_spill] sm:$0xff] }
 0x81a   :  { %5929 = vmatprep.subr.bf16.mxu1 %v13759_v59  ;;  %6058 = vmatprep.subr.bf16.mxu0 %v13760_v44  ;;  %v13786_v59 = vld [vmem:[#allocation359_spill] sm:$0xff]  ;;  %v13787_v44 = vld [vmem:[#allocation234_spill] sm:$0xff] }
 0x81c   :  { %5876 = vmatmul.mubr.bf16.vlgmr.msra.gmra.mxu1 %v10353_v36  ;;  %6005 = vmatmul.mubr.bf16.vlgmr.msra.gmra.mxu0 %v10178_v58 }
 0x81d   :  { %5930 = vmatpush1.bf16.msra.mxu1 %v13761_v1  ;;  %5961 = vmatprep.mubr.bf16.mxu1 %v10569_v12  ;;  %v13788_v1 = vld [vmem:[#allocation361_spill] sm:$0xff] }
 0x81e   :  { %6059 = vmatpush1.bf16.msra.mxu0 %v13762_v13  ;;  %6090 = vmatprep.mubr.bf16.mxu0 %v10463_v3  ;;  %v13789_v13 = vld [vmem:[#allocation236_spill] sm:$0xff] }
 0x81f   :  { %5931 = vmatprep.subr.bf16.mxu1 %v13763_v62  ;;  %6060 = vmatprep.subr.bf16.mxu0 %v13764_v51  ;;  %v13790_v62 = vld [vmem:[#allocation363_spill] sm:$0xff]  ;;  %v13791_v51 = vld [vmem:[#allocation238_spill] sm:$0xff] }
 0x821   :  { %5932 = vmatpush1.bf16.msra.mxu1 %v13765_v27  ;;  %v13792_v27 = vld [vmem:[#allocation365_spill] sm:$0xff] }
 0x822   :  { %6061 = vmatpush1.bf16.msra.mxu0 %v13766_v41  ;;  %5933 = vmatprep.subr.bf16.mxu1 %v13767_v10  ;;  %v13793_v41 = vld [vmem:[#allocation240_spill] sm:$0xff]  ;;  %v13794_v10 = vld [vmem:[#allocation369_spill] sm:$0xff] }
 0x823   :  { %6062 = vmatprep.subr.bf16.mxu0 %v13768_v31  ;;  %v13795_v31 = vld [vmem:[#allocation242_spill] sm:$0xff] }
 0x825   :  { %5934 = vmatpush1.bf16.msra.mxu1 %v13769_v43  ;;  %v13796_v43 = vld [vmem:[#allocation372_spill] sm:$0xff] }
 0x826   :  { %6063 = vmatpush1.bf16.msra.mxu0 %v13770_v23  ;;  %5935 = vmatprep.subr.bf16.mxu1 %v13771_v53  ;;  %v13797_v23 = vld [vmem:[#allocation244_spill] sm:$0xff]  ;;  %v13798_v53 = vld [vmem:[#allocation374_spill] sm:$0xff] }
 0x827   :  { %6064 = vmatprep.subr.bf16.mxu0 %v13772_v6  ;;  %v13799_v6 = vld [vmem:[#allocation246_spill] sm:$0xff] }
 0x829   :  { %5936 = vmatpush1.bf16.msra.mxu1 %v13773_v33  ;;  %v13800_v33 = vld [vmem:[#allocation376_spill] sm:$0xff] }
 0x82a   :  { %6065 = vmatpush1.bf16.msra.mxu0 %v13774_v37  ;;  %5937 = vmatprep.subr.bf16.mxu1 %v13775_v48  ;;  %v13801_v37 = vld [vmem:[#allocation248_spill] sm:$0xff]  ;;  %v13802_v48 = vld [vmem:[#allocation378_spill] sm:$0xff] }
 0x82b   :  { %6066 = vmatprep.subr.bf16.mxu0 %v13776_v60  ;;  %v13803_v60 = vld [vmem:[#allocation250_spill] sm:$0xff] }
 0x82d   :  { %5938 = vmatpush1.bf16.msra.mxu1 %v13777_v5  ;;  %v13804_v5 = vld [vmem:[#allocation380_spill] sm:$0xff] }
 0x82e   :  { %6067 = vmatpush1.bf16.msra.mxu0 %v13778_v30  ;;  %5939 = vmatprep.subr.bf16.mxu1 %v13779_v35  ;;  %v13805_v30 = vld [vmem:[#allocation252_spill] sm:$0xff]  ;;  %v13806_v35 = vld [vmem:[#allocation382_spill] sm:$0xff] }
 0x82f   :  { %6068 = vmatprep.subr.bf16.mxu0 %v13780_v24  ;;  %v13807_v24 = vld [vmem:[#allocation254_spill] sm:$0xff] }
 0x831   :  { %5940 = vmatpush1.bf16.msra.mxu1 %v13781_v34  ;;  %v13808_v34 = vld [vmem:[#allocation384_spill] sm:$0xff] }
 0x832   :  { %6069 = vmatpush1.bf16.msra.mxu0 %v13782_v40  ;;  %5941 = vmatprep.subr.bf16.mxu1 %v13783_v49  ;;  %v13809_v40 = vld [vmem:[#allocation256_spill] sm:$0xff]  ;;  %v13810_v49 = vld [vmem:[#allocation386_spill] sm:$0xff] }
 0x833   :  { %6070 = vmatprep.subr.bf16.mxu0 %v13784_v11  ;;  %v13811_v11 = vld [vmem:[#allocation258_spill] sm:$0xff] }
 0x835   :  { %5942 = vmatpush1.bf16.msra.mxu1 %v13785_v39  ;;  %v13812_v39 = vld [vmem:[#allocation388_spill] sm:$0xff] }
 0x836   :  { %6071 = vmatpush1.bf16.msra.mxu0 %v13786_v59  ;;  %5943 = vmatprep.subr.bf16.mxu1 %v13787_v44  ;;  %v13813_v59 = vld [vmem:[#allocation260_spill] sm:$0xff]  ;;  %v13814_v44 = vld [vmem:[#allocation262_spill] sm:$0xff] }
 0x837   :  { %6072 = vmatprep.subr.bf16.mxu0 %v13788_v1  ;;  %v13815_v1 = vld [vmem:[#allocation392_spill] sm:$0xff] }
 0x839   :  { %5944 = vmatpush1.bf16.msra.mxu1 %v13789_v13  ;;  %v13816_v13 = vld [vmem:[#allocation264_spill] sm:$0xff] }
 0x83a   :  { %6073 = vmatpush1.bf16.msra.mxu0 %v13790_v62  ;;  %5945 = vmatprep.subr.bf16.mxu1 %v13791_v51  ;;  %v13817_v62 = vld [vmem:[#allocation394_spill] sm:$0xff] }
 0x83b   :  { %6074 = vmatprep.subr.bf16.mxu0 %v13792_v27  ;;  %v13818_v51 = vld [vmem:[#allocation266_spill] sm:$0xff]  ;;  %v13819_v27 = vld [vmem:[#allocation396_spill] sm:$0xff] }
 0x83d   :  { %5946 = vmatpush2.bf16.msra.mxu1 %v13793_v41  ;;  %v13820_v41 = vld [vmem:[#allocation268_spill] sm:$0xff] }
 0x83e   :  { %6075 = vmatpush2.bf16.msra.mxu0 %v13794_v10  ;;  %5947 = vmatprep.subr.bf16.mxu1 %v13795_v31  ;;  %v13821_v10 = vld [vmem:[#allocation398_spill] sm:$0xff] }
 0x83f   :  { %6076 = vmatprep.subr.bf16.mxu0 %v13796_v43  ;;  %v13822_v31 = vld [vmem:[#allocation270_spill] sm:$0xff]  ;;  %v13823_v43 = vld [vmem:[#allocation400_spill] sm:$0xff] }
 0x841   :  { %5948 = vmatpush2.bf16.msra.mxu1 %v13797_v23  ;;  %v13825_v23 = vld [vmem:[#allocation402_spill] sm:$0xff] }
 0x842   :  { %6077 = vmatpush2.bf16.msra.mxu0 %v13798_v53  ;;  %5949 = vmatprep.subr.bf16.mxu1 %v13799_v6  ;;  %v13826_v53 = vld [vmem:[#allocation274_spill] sm:$0xff]  ;;  %v13827_v6 = vld [vmem:[#allocation404_spill] sm:$0xff] }
 0x843   :  { %6078 = vmatprep.subr.bf16.mxu0 %v13800_v33  ;;  %v13828_v33 = vld [vmem:[#allocation276_spill] sm:$0xff] }
 0x845   :  { %5950 = vmatpush2.bf16.msra.mxu1 %v13801_v37  ;;  %v13829_v37 = vld [vmem:[#allocation406_spill] sm:$0xff] }
 0x846   :  { %6079 = vmatpush2.bf16.msra.mxu0 %v13802_v48  ;;  %5951 = vmatprep.subr.bf16.mxu1 %v13803_v60  ;;  %v13830_v48 = vld [vmem:[#allocation278_spill] sm:$0xff]  ;;  %v13831_v60 = vld [vmem:[#allocation408_spill] sm:$0xff] }
 0x847   :  { %6080 = vmatprep.subr.bf16.mxu0 %v13804_v5  ;;  %v13832_v5 = vld [vmem:[#allocation280_spill] sm:$0xff] }
 0x849   :  { %5952 = vmatpush2.bf16.msra.mxu1 %v13805_v30  ;;  %v13833_v30 = vld [vmem:[#allocation410_spill] sm:$0xff] }
 0x84a   :  { %6081 = vmatpush2.bf16.msra.mxu0 %v13806_v35  ;;  %5953 = vmatprep.subr.bf16.mxu1 %v13807_v24  ;;  %v13834_v35 = vld [vmem:[#allocation282_spill] sm:$0xff]  ;;  %v13835_v24 = vld [vmem:[#allocation412_spill] sm:$0xff] }
 0x84b   :  { %6082 = vmatprep.subr.bf16.mxu0 %v13808_v34  ;;  %v13837_v34 = vld [vmem:[#allocation414_spill] sm:$0xff] }
 0x84d   :  { %5954 = vmatpush2.bf16.msra.mxu1 %v13809_v40  ;;  %v13838_v40 = vld [vmem:[#allocation286_spill] sm:$0xff] }
 0x84e   :  { %6083 = vmatpush2.bf16.msra.mxu0 %v13810_v49  ;;  %5955 = vmatprep.subr.bf16.mxu1 %v13811_v11  ;;  %v13839_v49 = vld [vmem:[#allocation416_spill] sm:$0xff] }
 0x84f   :  { %6084 = vmatprep.subr.bf16.mxu0 %v13812_v39  ;;  %v13840_v11 = vld [vmem:[#allocation288_spill] sm:$0xff]  ;;  %v13841_v39 = vld [vmem:[#allocation418_spill] sm:$0xff] }
 0x851   :  { %5956 = vmatpush2.bf16.msra.mxu1 %v13813_v59  ;;  %v13842_v59 = vld [vmem:[#allocation290_spill] sm:$0xff] }
 0x852   :  { %6085 = vmatpush2.bf16.msra.mxu0 %v13317_v20  ;;  %5957 = vmatprep.subr.bf16.mxu1 %v13814_v44  ;;  %v13824_v20 = vld [vmem:[#allocation272_spill] sm:$0xff] }
 0x853   :  { %6086 = vmatprep.subr.bf16.mxu0 %v13815_v1  ;;  %v13843_v44 = vld [vmem:[#allocation420_spill] sm:$0xff] }
 0x854   :  { %v13844_v1 = vld [vmem:[#allocation292_spill] sm:$0xff] }
 0x855   :  { %5958 = vmatpush2.bf16.msra.mxu1 %v13816_v13  ;;  %v13845_v13 = vld [vmem:[#allocation422_spill] sm:$0xff] }
 0x856   :  { %6087 = vmatpush2.bf16.msra.mxu0 %v13817_v62  ;;  %5959 = vmatprep.subr.bf16.mxu1 %v13818_v51  ;;  %v13846_v62 = vld [vmem:[#allocation294_spill] sm:$0xff]  ;;  %v13847_v51 = vld [vmem:[#allocation424_spill] sm:$0xff] }
 0x857   :  { %6088 = vmatprep.subr.bf16.mxu0 %v13819_v27  ;;  %v13848_v27 = vld [vmem:[#allocation296_spill] sm:$0xff] }
 0x859   :  { %5960 = vmatpush2.bf16.msra.mxu1 %v13820_v41  ;;  %v13849_v41 = vld [vmem:[#allocation426_spill] sm:$0xff] }
 0x85a   :  { %6089 = vmatpush2.bf16.msra.mxu0 %v13821_v10  ;;  %6015 = vmatprep.subr.bf16.mxu1 %v13822_v31  ;;  %v13850_v10 = vld [vmem:[#allocation298_spill] sm:$0xff]  ;;  %v13851_v31 = vld [vmem:[#allocation428_spill] sm:$0xff] }
 0x85b   :  { %6144 = vmatprep.subr.bf16.mxu0 %v13823_v43  ;;  %v13852_v43 = vld [vmem:[#allocation300_spill] sm:$0xff] }
 0x85c   :  { %5962 = vmatmul.mubr.bf16.vlgmr.msra.gmra.mxu1 %v10564_v28 }
 0x85d   :  { %6091 = vmatmul.mubr.bf16.vlgmr.msra.gmra.mxu0 %v10459_v4  ;;  %6016 = vmatpush1.bf16.msra.mxu1 %v13824_v20  ;;  %v13853_v20 = vld [vmem:[#allocation430_spill] sm:$0xff] }
 0x85e   :  { %6047 = vmatprep.mubr.bf16.mxu1 %v10359_v14  ;;  %6145 = vmatpush1.bf16.msra.mxu0 %v13825_v23  ;;  %v13854_v23 = vld [vmem:[#allocation302_spill] sm:$0xff] }
 0x85f   :  { %6176 = vmatprep.mubr.bf16.mxu0 %v10183_v61  ;;  %6017 = vmatprep.subr.bf16.mxu1 %v13826_v53  ;;  %v13836_v61 = vld [vmem:[#allocation284_spill] sm:$0xff] }
 0x860   :  { %6146 = vmatprep.subr.bf16.mxu0 %v13827_v6  ;;  %v13855_v53 = vld [vmem:[#allocation432_spill] sm:$0xff] }
 0x861   :  { %6018 = vmatpush1.bf16.msra.mxu1 %v13828_v33  ;;  %v13856_v6 = vld [vmem:[#allocation304_spill] sm:$0xff]  ;;  %v13857_v33 = vld [vmem:[#allocation434_spill] sm:$0xff] }
 0x862   :  { %6147 = vmatpush1.bf16.msra.mxu0 %v13829_v37  ;;  %6019 = vmatprep.subr.bf16.mxu1 %v13830_v48  ;;  %v13858_v37 = vld [vmem:[#allocation306_spill] sm:$0xff]  ;;  %v13859_v48 = vld [vmem:[#allocation436_spill] sm:$0xff] }
 0x863   :  { %6148 = vmatprep.subr.bf16.mxu0 %v13831_v60  ;;  %v13860_v60 = vld [vmem:[#allocation308_spill] sm:$0xff] }
 0x865   :  { %6020 = vmatpush1.bf16.msra.mxu1 %v13832_v5  ;;  %v13861_v5 = vld [vmem:[#allocation438_spill] sm:$0xff] }
 0x866   :  { %6149 = vmatpush1.bf16.msra.mxu0 %v13833_v30  ;;  %6021 = vmatprep.subr.bf16.mxu1 %v13834_v35  ;;  %v13862_v30 = vld [vmem:[#allocation310_spill] sm:$0xff]  ;;  %v13863_v35 = vld [vmem:[#allocation440_spill] sm:$0xff] }
 0x867   :  { %6150 = vmatprep.subr.bf16.mxu0 %v13835_v24  ;;  %v5662_v24 = vpop.f32.mrf.mxu0 }
 0x869   :  { %6022 = vmatpush1.bf16.msra.mxu1 %v13836_v61  ;;  %v13864_v61 = vld [vmem:[#allocation312_spill] sm:$0xff] }
 0x86a   :  { %6151 = vmatpush1.bf16.msra.mxu0 %v13837_v34  ;;  %6023 = vmatprep.subr.bf16.mxu1 %v13838_v40  ;;  %v13865_v34 = vld [vmem:[#allocation442_spill] sm:$0xff] }
 0x86b   :  { %6152 = vmatprep.subr.bf16.mxu0 %v13839_v49  ;;  %v13866_v40 = vld [vmem:[#allocation314_spill] sm:$0xff]  ;;  %v13867_v49 = vld [vmem:[#allocation444_spill] sm:$0xff] }
 0x86d   :  { %6024 = vmatpush1.bf16.msra.mxu1 %v13840_v11  ;;  %v5664_v11 = vpop.f32.mrf.mxu0 }
 0x86e   :  { %6153 = vmatpush1.bf16.msra.mxu0 %v13841_v39  ;;  %6025 = vmatprep.subr.bf16.mxu1 %v13842_v59  ;;  %v13868_v39 = vld [vmem:[#allocation316_spill] sm:$0xff]  ;;  %v13869_v59 = vld [vmem:[#allocation446_spill] sm:$0xff] }
 0x86f   :  { %6154 = vmatprep.subr.bf16.mxu0 %v13843_v44  ;;  %v13870_v44 = vld [vmem:[#allocation318_spill] sm:$0xff] }
 0x871   :  { %6026 = vmatpush1.bf16.msra.mxu1 %v13844_v1  ;;  %v5666_v1 = vpop.f32.mrf.mxu0 }
 0x872   :  { %6155 = vmatpush1.bf16.msra.mxu0 %v13845_v13  ;;  %6027 = vmatprep.subr.bf16.mxu1 %v13846_v62  ;;  %v13871_v13 = vld [vmem:[#allocation320_spill] sm:$0xff]  ;;  %v5705_v62 = vpop.f32.mrf.mxu1 }
 0x873   :  { %6156 = vmatprep.subr.bf16.mxu0 %v13847_v51  ;;  %v13872_v51 = vld [vmem:[#allocation450_spill] sm:$0xff] }
 0x875   :  { %6028 = vmatpush1.bf16.msra.mxu1 %v13848_v27  ;;  %v13873_v27 = vld [vmem:[#allocation322_spill] sm:$0xff] }
 0x876   :  { %6157 = vmatpush1.bf16.msra.mxu0 %v13849_v41  ;;  %6029 = vmatprep.subr.bf16.mxu1 %v13850_v10  ;;  %v13874_v41 = vld [vmem:[#allocation452_spill] sm:$0xff]  ;;  %v5668_v10 = vpop.f32.mrf.mxu0 }
 0x877   :  { %6158 = vmatprep.subr.bf16.mxu0 %v13851_v31  ;;  %v13875_v31 = vld [vmem:[#allocation324_spill] sm:$0xff] }
 0x879   :  { %6030 = vmatpush1.bf16.msra.mxu1 %v13852_v43  ;;  %v5707_v43 = vpop.f32.mrf.mxu1 }
 0x87a   :  { %6159 = vmatpush1.bf16.msra.mxu0 %v13853_v20  ;;  %6031 = vmatprep.subr.bf16.mxu1 %v13854_v23  ;;  %v5748_v20 = vpop.f32.mrf.mxu0  ;;  %v13876_v23 = vld [vmem:[#allocation326_spill] sm:$0xff] }
 0x87b   :  { %6160 = vmatprep.subr.bf16.mxu0 %v13855_v53  ;;  %v5612_v53 = vld [vmem:[#allocation7] sm:$0xff] }
 0x87d   :  { %6032 = vmatpush2.bf16.msra.mxu1 %v13856_v6  ;;  %v5613_v6 = vld [vmem:[#allocation7 + $0x8] sm:$0xff] }
 0x87e   :  { %6161 = vmatpush2.bf16.msra.mxu0 %v13857_v33  ;;  %6033 = vmatprep.subr.bf16.mxu1 %v13858_v37  ;;  %v5709_v33 = vpop.f32.mrf.mxu1  ;;  %v5750_v37 = vpop.f32.mrf.mxu0 }
 0x87f   :  { %6162 = vmatprep.subr.bf16.mxu0 %v13859_v48  ;;  %v13878_v48 = vld [vmem:[#allocation458_spill] sm:$0xff] }
 0x881   :  { %6034 = vmatpush2.bf16.msra.mxu1 %v13860_v60  ;;  %v13879_v60 = vld [vmem:[#allocation330_spill] sm:$0xff] }
 0x882   :  { %6163 = vmatpush2.bf16.msra.mxu0 %v13861_v5  ;;  %6035 = vmatprep.subr.bf16.mxu1 %v13862_v30  ;;  %v5663_v5 = vadd.f32 %v5662_v24, %v5612_v53  ;;  %v13880_v30 = vld [vmem:[#allocation460_spill] sm:$0xff] }
 0x883   :  { %6164 = vmatprep.subr.bf16.mxu0 %v13863_v35  ;;  %v5620_v35 = vld [vmem:[#allocation7 + $0x40] sm:$0xff] }
 0x885   :  { %6036 = vmatpush2.bf16.msra.mxu1 %v13864_v61  ;;  %v5665_v61 = vadd.f32 %v5664_v11, %v5613_v6  ;;  %v13887_v6 = vld [vmem:[#allocation472_spill] sm:$0xff] }
 0x886   :  { %6165 = vmatpush2.bf16.msra.mxu0 %v13865_v34  ;;  %6037 = vmatprep.subr.bf16.mxu1 %v13866_v40  ;;  %v5706_v34 = vadd.f32 %v5705_v62, %v5663_v5  ;;  %v5711_v40 = vpop.f32.mrf.mxu1  ;;  %v13894_v5 = vld [vmem:[#allocation350_spill] sm:$0xff] }
 0x887   :  { %6166 = vmatprep.subr.bf16.mxu0 %v13867_v49  ;;  %v5752_v49 = vpop.f32.mrf.mxu0 }
 0x889   :  { %6038 = vmatpush2.bf16.msra.mxu1 %v13868_v39  ;;  %v13881_v39 = vld [vmem:[#allocation462_spill] sm:$0xff]  ;;  %v5754_v62 = vpop.f32.mrf.mxu0 }
 0x88a   :  { %6167 = vmatpush2.bf16.msra.mxu0 %v13869_v59  ;;  %6039 = vmatprep.subr.bf16.mxu1 %v13870_v44  ;;  %v5708_v59 = vadd.f32 %v5707_v43, %v5665_v61  ;;  %v5749_v44 = vadd.f32 %v5748_v20, %v5706_v34  ;;  %v13884_v20 = vld [vmem:[#allocation340_spill] sm:$0xff] }
 0x88b   :  { %6168 = vmatprep.subr.bf16.mxu0 %v13375_v17  ;;  %v13877_v17 = vld [vmem:[#allocation456_spill] sm:$0xff] }
 0x88c   :  { %v13896_v34 = vld [vmem:[#allocation352_spill] sm:$0xff] }
 0x88d   :  { %6040 = vmatpush2.bf16.msra.mxu1 %v13871_v13  ;;  %v13882_v13 = vld [vmem:[#allocation464_spill] sm:$0xff] }
 0x88e   :  { %6169 = vmatpush2.bf16.msra.mxu0 %v13872_v51  ;;  %6041 = vmatprep.subr.bf16.mxu1 %v13873_v27  ;;  %v5751_v27 = vadd.f32 %v5750_v37, %v5708_v59  ;;  %v13891_v37 = vld [vmem:[#allocation476_spill] sm:$0xff] }
 0x88f   :  { %6170 = vmatprep.subr.bf16.mxu0 %v13874_v41 }
 0x891   :  { %6042 = vmatpush2.bf16.msra.mxu1 %v13875_v31  ;;  %v13883_v31 = vld [vmem:[#allocation468_spill] sm:$0xff] }
 0x892   :  { %6171 = vmatpush2.bf16.msra.mxu0 %v13381_v54  ;;  %6043 = vmatprep.subr.bf16.mxu1 %v13876_v23  ;;  %v5621_v54 = vld [vmem:[#allocation7 + $0x48] sm:$0xff]  ;;  %v13885_v23 = vld [vmem:[#allocation470_spill] sm:$0xff] }
 0x893   :  { %6172 = vmatprep.subr.bf16.mxu0 %v13877_v17  ;;  %v5669_v24 = vadd.f32 %v5668_v10, %v5621_v54  ;;  %v13886_v17 = vld [vmem:[#allocation342_spill] sm:$0xff]  ;;  %v6348_v54 = vmul.f32 0.0, %v10164_v50  ;;  %v13900_v50 = vld [vmem:[#allocation356_spill] sm:$0xff] }
 0x895   :  { %6044 = vmatpush2.bf16.msra.mxu1 %v13384_v63  ;;  %v5667_v63 = vadd.f32 %v5666_v1, %v5620_v35  ;;  %v5712_v1 = vadd.f32 %v5711_v40, %v5669_v24 }
 0x896   :  { %6173 = vmatpush2.bf16.msra.mxu0 %v13878_v48  ;;  %6045 = vmatprep.subr.bf16.mxu1 %v13879_v60  ;;  %v13892_v48 = vld [vmem:[#allocation348_spill] sm:$0xff]  ;;  %v13893_v60 = vld [vmem:[#allocation478_spill] sm:$0xff] }
 0x897   :  { %6174 = vmatprep.subr.bf16.mxu0 %v13880_v30  ;;  %v5710_v11 = vadd.f32 %v5709_v33, %v5667_v63  ;;  %v5755_v43 = vadd.f32 %v5754_v62, %v5712_v1  ;;  %v13890_v33 = vld [vmem:[#allocation346_spill] sm:$0xff]  ;;  %v13895_v30 = vld [vmem:[#allocation480_spill] sm:$0xff] }
 0x899   :  { %6046 = vmatpush2.bf16.msra.mxu1 %v13386_v29  ;;  %v5753_v41 = vadd.f32 %v5752_v49, %v5710_v11  ;;  %v13897_v49 = vld [vmem:[#allocation482_spill] sm:$0xff] }
 0x89a   :  { %6175 = vmatpush2.bf16.msra.mxu0 %v13881_v39  ;;  %6101 = vmatprep.subr.bf16.mxu1 %v13387_v26  ;;  %v13898_v39 = vld [vmem:[#allocation354_spill] sm:$0xff] }
 0x89b   :  { %6230 = vmatprep.subr.bf16.mxu0 %v13882_v13  ;;  %v13899_v13 = vld [vmem:[#allocation484_spill] sm:$0xff] }
 0x89c   :  { %6048 = vmatmul.mubr.bf16.vlgmr.msra.gmra.mxu1 %v10353_v36  ;;  %v5791_v51 = vpop.f32.mrf.mxu1 }
 0x89d   :  { %6177 = vmatmul.mubr.bf16.vlgmr.msra.gmra.mxu0 %v10178_v58  ;;  %v5792_v29 = vadd.f32 %v5791_v51, %v5749_v44  ;;  %6102 = vmatpush1.bf16.msra.mxu1 %v13388_v57  ;;  %v6349_v44 = vmul.f32 0.0, %v10171_v18  ;;  %v6357_v18 = vmul.f32 0.0, %v10173_v21  ;;  %v13907_v21 = vld [vmem:[#allocation505_spill] sm:$0xff] }
 0x89e   :  { %6133 = vmatprep.mubr.bf16.mxu1 %v10569_v12  ;;  %6231 = vmatpush1.bf16.msra.mxu0 %v12909_v55  ;;  %v5793_v26 = vpop.f32.mrf.mxu1 }
 0x89f   :  { %7080 = vtanh.f32 %v5792_v29  ;;  %6262 = vmatprep.mubr.bf16.mxu0 %v10463_v3  ;;  %v5794_v10 = vadd.f32 %v5793_v26, %v5751_v27  ;;  %6103 = vmatprep.subr.bf16.mxu1 %v13389_v0  ;;  %v13888_v3 = vld [vmem:[#allocation344_spill] sm:$0xff]  ;;  %v13889_v0 = vld [vmem:[#allocation474_spill] sm:$0xff]  ;;  %v6356_v29 = vmul.f32 0.0, %v10166_v9 }
 0x8a0   :  { %6232 = vmatprep.subr.bf16.mxu0 %v13883_v31  ;;  %v5795_v58 = vpop.f32.mrf.mxu1  ;;  %v13901_v26 = vld [vmem:[#allocation486_spill] sm:$0xff] }
 0x8a1   :  { %7082 = vtanh.f32 %v5794_v10  ;;  %v5796_v57 = vadd.f32 %v5795_v58, %v5753_v41  ;;  %6104 = vmatpush1.bf16.msra.mxu1 %v13884_v20  ;;  %v13917_v20 = vld [vmem:[#allocation515_spill] sm:$0xff] }
 0x8a2   :  { %6233 = vmatpush1.bf16.msra.mxu0 %v13885_v23  ;;  %v5797_v55 = vpop.f32.mrf.mxu1  ;;  %6105 = vmatprep.subr.bf16.mxu1 %v13886_v17  ;;  %v13918_v23 = vld [vmem:[#allocation389_spill] sm:$0xff]  ;;  %v13920_v17 = vld [vmem:[#allocation391_spill] sm:$0xff] }
 0x8a3   :  { %7084 = vtanh.f32 %v5796_v57  ;;  %v5798_v53 = vadd.f32 %v5797_v55, %v5755_v43  ;;  %6234 = vmatprep.subr.bf16.mxu0 %v13887_v6  ;;  %v13915_v43 = vld [vmem:[#allocation513_spill] sm:$0xff]  ;;  %v13916_v57 = vld [vmem:[#allocation387_spill] sm:$0xff] }
 0x8a4   :  { %v13919_v55 = vld [vmem:[#allocation517_spill] sm:$0xff] }
 0x8a5   :  { %7086 = vtanh.f32 %v5798_v53  ;;  %6106 = vmatpush1.bf16.msra.mxu1 %v13888_v3  ;;  %v13921_v53 = vld [vmem:[#allocation519_spill] sm:$0xff]  ;;  %v13922_v6 = vld [vmem:[#allocation393_spill] sm:$0xff] }
 0x8a6   :  { %6235 = vmatpush1.bf16.msra.mxu0 %v13889_v0  ;;  %6107 = vmatprep.subr.bf16.mxu1 %v13890_v33  ;;  %v13923_v3 = vld [vmem:[#allocation521_spill] sm:$0xff]  ;;  %v13924_v0 = vld [vmem:[#allocation395_spill] sm:$0xff] }
 0x8a7   :  { %6236 = vmatprep.subr.bf16.mxu0 %v13891_v37  ;;  %v13925_v33 = vld [vmem:[#allocation523_spill] sm:$0xff]  ;;  %v13926_v37 = vld [vmem:[#allocation397_spill] sm:$0xff] }
 0x8a9   :  { %6108 = vmatpush1.bf16.msra.mxu1 %v13892_v48  ;;  %v13927_v48 = vld [vmem:[#allocation525_spill] sm:$0xff] }
 0x8aa   :  { %6237 = vmatpush1.bf16.msra.mxu0 %v13893_v60  ;;  %6109 = vmatprep.subr.bf16.mxu1 %v13894_v5  ;;  %v13928_v60 = vld [vmem:[#allocation399_spill] sm:$0xff] }
 0x8ab   :  { %6238 = vmatprep.subr.bf16.mxu0 %v13895_v30  ;;  %v13929_v5 = vld [vmem:[#allocation527_spill] sm:$0xff]  ;;  %v13930_v30 = vld [vmem:[#allocation401_spill] sm:$0xff] }
 0x8ac   :  { %v7081_v35 = vpop.eup %7080 }
 0x8ad   :  { %v6332_v61 = vmul.f32 1.0000001, %v7081_v35  ;;  %6110 = vmatpush1.bf16.msra.mxu1 %v13896_v34  ;;  %v13931_v35 = vld [vmem:[#allocation403_spill] sm:$0xff]  ;;  %v13934_v34 = vld [vmem:[#allocation409_spill] sm:$0xff] }
 0x8ae   :  { %v7083_v40 = vpop.eup %7082  ;;  %6239 = vmatpush1.bf16.msra.mxu0 %v13897_v49  ;;  %6111 = vmatprep.subr.bf16.mxu1 %v13898_v39  ;;  %v13936_v49 = vld [vmem:[#allocation413_spill] sm:$0xff]  ;;  %v13937_v39 = vld [vmem:[#allocation415_spill] sm:$0xff] }
 0x8af   :  { %v6364_v63 = vadd.f32 %v6348_v54, %v6332_v61  ;;  %v6333_v59 = vmul.f32 1.0000001, %v7083_v40  ;;  %6240 = vmatprep.subr.bf16.mxu0 %v13899_v13  ;;  %v13932_v61 = vld [vmem:[#allocation405_spill] sm:$0xff]  ;;  %v13933_v54 = vld [vmem:[#allocation407_spill] sm:$0xff] }
 0x8b0   :  { %v7085_v24 = vpop.eup %7084  ;;  %v13935_v40 = vld [vmem:[#allocation411_spill] sm:$0xff] }
 0x8b1   :  { %v6959_v51 = vclamps-f32 %v6364_v63, 1.0  ;;  %v6365_v11 = vadd.f32 %v6349_v44, %v6333_v59  ;;  %v6340_v27 = vmul.f32 1.0000001, %v7085_v24  ;;  %6112 = vmatpush1.bf16.msra.mxu1 %v13900_v50  ;;  %v13938_v63 = vld [vmem:[#allocation417_spill] sm:$0xff]  ;;  %v13939_v59 = vld [vmem:[#allocation419_spill] sm:$0xff] }
 0x8b2   :  { %v7087_v62 = vpop.eup %7086  ;;  %6241 = vmatpush1.bf16.msra.mxu0 %v13901_v26  ;;  %6113 = vmatprep.subr.bf16.mxu1 %v13405_v2  ;;  %v13903_v2 = vld [vmem:[#allocation501_spill] sm:$0xff]  ;;  %v13941_v44 = vld [vmem:[#allocation423_spill] sm:$0xff] }
 0x8b3   :  { %6412 = vst [vmem:[#allocation10] sm:$0xff] %v6959_v51  ;;  %v6960_v1 = vclamps-f32 %v6365_v11, 1.0  ;;  %v6372_v41 = vadd.f32 %v6356_v29, %v6340_v27  ;;  %v6341_v10 = vmul.f32 1.0000001, %v7087_v62  ;;  %6242 = vmatprep.subr.bf16.mxu0 %v13406_v16  ;;  %v13904_v16 = vld [vmem:[#allocation375_spill] sm:$0xff]  ;;  %v13944_v24 = vld [vmem:[#allocation429_spill] sm:$0xff] }
 0x8b4   :  { %v13943_v13 = vld [vmem:[#allocation427_spill] sm:$0xff]  ;;  %v13946_v11 = vld [vmem:[#allocation433_spill] sm:$0xff] }
 0x8b5   :  { %6413 = vst [vmem:[#allocation10 + $0x8] sm:$0xff] %v6960_v1  ;;  %v6967_v31 = vclamps-f32 %v6372_v41, 1.0  ;;  %v6373_v58 = vadd.f32 %v6357_v18, %v6341_v10  ;;  %6114 = vmatpush1.bf16.msra.mxu1 %v13407_v56  ;;  %v13902_v56 = vld [vmem:[#allocation373_spill] sm:$0xff]  ;;  %v13945_v51 = vld [vmem:[#allocation431_spill] sm:$0xff]  ;;  %v5834_v1 = vpop.f32.mrf.mxu0 }
 0x8b6   :  { %6243 = vmatpush1.bf16.msra.mxu0 %v13408_v7  ;;  %6115 = vmatprep.subr.bf16.mxu1 %v13409_v42  ;;  %v13905_v7 = vld [vmem:[#allocation503_spill] sm:$0xff]  ;;  %v13906_v42 = vld [vmem:[#allocation377_spill] sm:$0xff] }
 0x8b7   :  { %6420 = vst [vmem:[#allocation10 + $0x40] sm:$0xff] %v6967_v31  ;;  %v6968_v9 = vclamps-f32 %v6373_v58, 1.0  ;;  %6244 = vmatprep.subr.bf16.mxu0 %v13410_v19  ;;  %v13908_v19 = vld [vmem:[#allocation379_spill] sm:$0xff]  ;;  %v13948_v29 = vld [vmem:[#allocation437_spill] sm:$0xff]  ;;  %v5836_v18 = vpop.f32.mrf.mxu0 }
 0x8b8   :  { %v13947_v27 = vld [vmem:[#allocation435_spill] sm:$0xff]  ;;  %v13950_v62 = vld [vmem:[#allocation441_spill] sm:$0xff] }
 0x8b9   :  { %6421 = vst [vmem:[#allocation10 + $0x48] sm:$0xff] %v6968_v9  ;;  %6116 = vmatpush1.bf16.msra.mxu1 %v13411_v15  ;;  %v13909_v15 = vld [vmem:[#allocation507_spill] sm:$0xff]  ;;  %v13952_v41 = vld [vmem:[#allocation445_spill] sm:$0xff]  ;;  %v5838_v9 = vpop.f32.mrf.mxu0 }
 0x8ba   :  { %6245 = vmatpush1.bf16.msra.mxu0 %v13412_v46  ;;  %6117 = vmatprep.subr.bf16.mxu1 %v13413_v8  ;;  %v13910_v46 = vld [vmem:[#allocation381_spill] sm:$0xff]  ;;  %v13949_v50 = vld [vmem:[#allocation439_spill] sm:$0xff] }
 0x8bb   :  { %6246 = vmatprep.subr.bf16.mxu0 %v13414_v38  ;;  %v13911_v8 = vld [vmem:[#allocation509_spill] sm:$0xff]  ;;  %v13913_v38 = vld [vmem:[#allocation511_spill] sm:$0xff] }
 0x8bc   :  { %v13951_v26 = vld [vmem:[#allocation443_spill] sm:$0xff]  ;;  %v13954_v31 = vld [vmem:[#allocation449_spill] sm:$0xff] }
 0x8bd   :  { %6118 = vmatpush2.bf16.msra.mxu1 %v13415_v22  ;;  %v13914_v22 = vld [vmem:[#allocation385_spill] sm:$0xff]  ;;  %v13953_v10 = vld [vmem:[#allocation447_spill] sm:$0xff] }
 0x8be   :  { %6247 = vmatpush2.bf16.msra.mxu0 %v8873_v45  ;;  %6119 = vmatprep.subr.bf16.mxu1 %v13902_v56  ;;  %v13912_v45 = vld [vmem:[#allocation383_spill] sm:$0xff] }
 0x8bf   :  { %6248 = vmatprep.subr.bf16.mxu0 %v13903_v2  ;;  %v13955_v58 = vld [vmem:[#allocation451_spill] sm:$0xff]  ;;  %v13956_v2 = vld [vmem:[#allocation453_spill] sm:$0xff] }
 0x8c1   :  { %6120 = vmatpush2.bf16.msra.mxu1 %v13904_v16  ;;  %v13957_v16 = vld [vmem:[#allocation455_spill] sm:$0xff] }
 0x8c2   :  { %6249 = vmatpush2.bf16.msra.mxu0 %v13905_v7  ;;  %6121 = vmatprep.subr.bf16.mxu1 %v13906_v42  ;;  %v5614_v7 = vld [vmem:[#allocation7 + $0x10] sm:$0xff]  ;;  %v5840_v42 = vpop.f32.mrf.mxu0 }
 0x8c3   :  { %6250 = vmatprep.subr.bf16.mxu0 %v13907_v21 }
 0x8c5   :  { %6122 = vmatpush2.bf16.msra.mxu1 %v13908_v19  ;;  %v13958_v19 = vld [vmem:[#allocation457_spill] sm:$0xff] }
 0x8c6   :  { %6251 = vmatpush2.bf16.msra.mxu0 %v13909_v15  ;;  %6123 = vmatprep.subr.bf16.mxu1 %v13910_v46  ;;  %v5615_v15 = vld [vmem:[#allocation7 + $0x18] sm:$0xff]  ;;  %v5920_v46 = vpop.f32.mrf.mxu0 }
 0x8c7   :  { %6252 = vmatprep.subr.bf16.mxu0 %v13911_v8  ;;  %v5835_v8 = vadd.f32 %v5834_v1, %v5614_v7  ;;  %v13972_v1 = vld [vmem:[#allocation483_spill] sm:$0xff] }
 0x8c9   :  { %6124 = vmatpush2.bf16.msra.mxu1 %v13912_v45  ;;  %v13959_v45 = vld [vmem:[#allocation459_spill] sm:$0xff] }
 0x8ca   :  { %6253 = vmatpush2.bf16.msra.mxu0 %v13913_v38  ;;  %6125 = vmatprep.subr.bf16.mxu1 %v13914_v22  ;;  %v5622_v38 = vld [vmem:[#allocation7 + $0x50] sm:$0xff] }
 0x8cb   :  { %6254 = vmatprep.subr.bf16.mxu0 %v13915_v43  ;;  %v13960_v43 = vld [vmem:[#allocation461_spill] sm:$0xff] }
 0x8cd   :  { %6126 = vmatpush2.bf16.msra.mxu1 %v13916_v57  ;;  %v5837_v57 = vadd.f32 %v5836_v18, %v5615_v15 }
 0x8ce   :  { %6255 = vmatpush2.bf16.msra.mxu0 %v13917_v20  ;;  %6127 = vmatprep.subr.bf16.mxu1 %v13918_v23  ;;  %v5623_v23 = vld [vmem:[#allocation7 + $0x58] sm:$0xff] }
 0x8cf   :  { %6256 = vmatprep.subr.bf16.mxu0 %v13919_v55  ;;  %v5922_v55 = vpop.f32.mrf.mxu0 }
 0x8d1   :  { %6128 = vmatpush2.bf16.msra.mxu1 %v13920_v17  ;;  %v5839_v17 = vadd.f32 %v5838_v9, %v5622_v38 }
 0x8d2   :  { %6257 = vmatpush2.bf16.msra.mxu0 %v13921_v53  ;;  %6129 = vmatprep.subr.bf16.mxu1 %v13922_v6  ;;  %v13961_v6 = vld [vmem:[#allocation463_spill] sm:$0xff] }
 0x8d3   :  { %6258 = vmatprep.subr.bf16.mxu0 %v13923_v3 }
 0x8d5   :  { %6130 = vmatpush2.bf16.msra.mxu1 %v13924_v0  ;;  %v13962_v0 = vld [vmem:[#allocation465_spill] sm:$0xff] }
 0x8d6   :  { %6259 = vmatpush2.bf16.msra.mxu0 %v13925_v33  ;;  %6131 = vmatprep.subr.bf16.mxu1 %v13926_v37  ;;  %v5841_v33 = vadd.f32 %v5840_v42, %v5623_v23  ;;  %v13975_v42 = vld [vmem:[#allocation239_spill] sm:$0xff] }
 0x8d7   :  { %6260 = vmatprep.subr.bf16.mxu0 %v13927_v48  ;;  %v13979_v23 = vld [vmem:[#allocation491_spill] sm:$0xff] }
 0x8d9   :  { %6132 = vmatpush2.bf16.msra.mxu1 %v13928_v60  ;;  %v5924_v60 = vpop.f32.mrf.mxu0 }
 0x8da   :  { %6261 = vmatpush2.bf16.msra.mxu0 %v13929_v5  ;;  %6187 = vmatprep.subr.bf16.mxu1 %v13930_v30 }
 0x8dc   :  { %6134 = vmatmul.mubr.bf16.vlgmr.msra.gmra.mxu1 %v10564_v28  ;;  %v5877_v56 = vpop.f32.mrf.mxu1 }
 0x8dd   :  { %6263 = vmatmul.mubr.bf16.vlgmr.msra.gmra.mxu0 %v10459_v4  ;;  %6188 = vmatpush1.bf16.msra.mxu1 %v13931_v35  ;;  %v13940_v4 = vld [vmem:[#allocation421_spill] sm:$0xff]  ;;  %v5878_v20 = vadd.f32 %v5877_v56, %v5835_v8 }
 0x8de   :  { %6219 = vmatprep.mubr.bf16.mxu1 %v10359_v14  ;;  %6189 = vmatprep.subr.bf16.mxu1 %v13932_v61  ;;  %v13942_v14 = vld [vmem:[#allocation425_spill] sm:$0xff]  ;;  %v5879_v21 = vpop.f32.mrf.mxu1  ;;  %v13963_v61 = vld [vmem:[#allocation467_spill] sm:$0xff] }
 0x8df   :  { %v5880_v53 = vadd.f32 %v5879_v21, %v5837_v57  ;;  %v5921_v48 = vadd.f32 %v5920_v46, %v5878_v20  ;;  %v6358_v21 = vmul.f32 0.0, %v13975_v42  ;;  %v13977_v46 = vld [vmem:[#allocation489_spill] sm:$0xff] }
 0x8e0   :  { %v5881_v22 = vpop.f32.mrf.mxu1 }
 0x8e1   :  { %6190 = vmatpush1.bf16.msra.mxu1 %v13933_v54  ;;  %v5882_v37 = vadd.f32 %v5881_v22, %v5839_v17  ;;  %v5923_v54 = vadd.f32 %v5922_v55, %v5880_v53  ;;  %v13978_v22 = vld [vmem:[#allocation534_spill] sm:$0xff]  ;;  %v13980_v55 = vld [vmem:[#allocation493_spill] sm:$0xff]  ;;  %v13981_v53 = vld [vmem:[#allocation495_spill] sm:$0xff] }
 0x8e2   :  { %6191 = vmatprep.subr.bf16.mxu1 %v13934_v34  ;;  %v5883_v3 = vpop.f32.mrf.mxu1 }
 0x8e3   :  { %v5884_v30 = vadd.f32 %v5883_v3, %v5841_v33  ;;  %v13983_v3 = vld [vmem:[#allocation500_spill] sm:$0xff] }
 0x8e4   :  { %v13985_v33 = vld [vmem:[#allocation504_spill] sm:$0xff] }
 0x8e5   :  { %6192 = vmatpush1.bf16.msra.mxu1 %v13935_v40  ;;  %v13964_v40 = vld [vmem:[#allocation469_spill] sm:$0xff] }
 0x8e6   :  { %6193 = vmatprep.subr.bf16.mxu1 %v13936_v49 }
 0x8e9   :  { %6194 = vmatpush1.bf16.msra.mxu1 %v13937_v39  ;;  %v5925_v39 = vadd.f32 %v5924_v60, %v5882_v37  ;;  %v13986_v37 = vld [vmem:[#allocation506_spill] sm:$0xff] }
 0x8ea   :  { %6195 = vmatprep.subr.bf16.mxu1 %v13938_v63  ;;  %v5926_v63 = vpop.f32.mrf.mxu0  ;;  %v13988_v60 = vld [vmem:[#allocation510_spill] sm:$0xff] }
 0x8ed   :  { %6196 = vmatpush1.bf16.msra.mxu1 %v13939_v59 }
 0x8ee   :  { %6197 = vmatprep.subr.bf16.mxu1 %v13940_v4 }
 0x8f1   :  { %6198 = vmatpush1.bf16.msra.mxu1 %v13941_v44  ;;  %v13965_v44 = vld [vmem:[#allocation471_spill] sm:$0xff] }
 0x8f2   :  { %6199 = vmatprep.subr.bf16.mxu1 %v13942_v14 }
 0x8f5   :  { %6200 = vmatpush1.bf16.msra.mxu1 %v13943_v13  ;;  %v13966_v13 = vld [vmem:[#allocation473_spill] sm:$0xff] }
 0x8f6   :  { %6201 = vmatprep.subr.bf16.mxu1 %v13944_v24 }
 0x8f9   :  { %6202 = vmatpush1.bf16.msra.mxu1 %v13945_v51  ;;  %v13968_v51 = vld [vmem:[#allocation477_spill] sm:$0xff] }
 0x8fa   :  { %6203 = vmatprep.subr.bf16.mxu1 %v13946_v11  ;;  %v13969_v11 = vld [vmem:[#allocation479_spill] sm:$0xff] }
 0x8fd   :  { %6204 = vmatpush2.bf16.msra.mxu1 %v13947_v27  ;;  %v13970_v27 = vld [vmem:[#allocation481_spill] sm:$0xff] }
 0x8fe   :  { %6205 = vmatprep.subr.bf16.mxu1 %v13948_v29 }
 0x901   :  { %6206 = vmatpush2.bf16.msra.mxu1 %v13949_v50 }
 0x902   :  { %6207 = vmatprep.subr.bf16.mxu1 %v13950_v62  ;;  %v13971_v62 = vld [vmem:[#allocation531_spill] sm:$0xff] }
 0x905   :  { %6208 = vmatpush2.bf16.msra.mxu1 %v13951_v26  ;;  %v6350_v26 = vmul.f32 0.0, %v13971_v62  ;;  %v5625_v62 = vld [vmem:[#allocation7 + $0x68] sm:$0xff] }
 0x906   :  { %6209 = vmatprep.subr.bf16.mxu1 %v13952_v41 }
 0x909   :  { %6210 = vmatpush2.bf16.msra.mxu1 %v13953_v10  ;;  %v13973_v10 = vld [vmem:[#allocation485_spill] sm:$0xff] }
 0x90a   :  { %6211 = vmatprep.subr.bf16.mxu1 %v13954_v31 }
 0x90d   :  { %6212 = vmatpush2.bf16.msra.mxu1 %v13955_v58  ;;  %v13974_v58 = vld [vmem:[#allocation235_spill] sm:$0xff] }
 0x90e   :  { %6213 = vmatprep.subr.bf16.mxu1 %v13956_v2  ;;  %v6351_v9 = vmul.f32 0.0, %v13974_v58 }
 0x911   :  { %6214 = vmatpush2.bf16.msra.mxu1 %v13957_v16 }
 0x912   :  { %6215 = vmatprep.subr.bf16.mxu1 %v13958_v19  ;;  %v13976_v19 = vld [vmem:[#allocation487_spill] sm:$0xff] }
 0x915   :  { %6216 = vmatpush2.bf16.msra.mxu1 %v13959_v45 }
 0x916   :  { %6217 = vmatprep.subr.bf16.mxu1 %v13960_v43  ;;  %v6359_v43 = vmul.f32 0.0, %v13978_v22 }
 0x919   :  { %6218 = vmatpush2.bf16.msra.mxu1 %v13961_v6  ;;  %v13982_v6 = vld [vmem:[#allocation499_spill] sm:$0xff] }
 0x91a   :  { %6273 = vmatprep.subr.bf16.mxu1 %v13962_v0  ;;  %v13984_v0 = vld [vmem:[#allocation502_spill] sm:$0xff] }
 0x91c   :  { %v5963_v5 = vpop.f32.mrf.mxu1  ;;  %6220 = vmatmul.mubr.bf16.vlgmr.msra.gmra.mxu1 %v10353_v36  ;;  %v5927_v36 = vadd.f32 %v5926_v63, %v5884_v30  ;;  %v13990_v30 = vld [vmem:[#allocation514_spill] sm:$0xff]  ;;  %v6006_v63 = vpop.f32.mrf.mxu0 }
 0x91d   :  { %v5964_v35 = vadd.f32 %v5963_v5, %v5921_v48  ;;  %6274 = vmatpush1.bf16.msra.mxu1 %v13963_v61  ;;  %6305 = vmatprep.mubr.bf16.mxu1 %v10569_v12  ;;  %v13967_v12 = vld [vmem:[#allocation475_spill] sm:$0xff]  ;;  %v13987_v48 = vld [vmem:[#allocation508_spill] sm:$0xff]  ;;  %v13992_v61 = vld [vmem:[#allocation518_spill] sm:$0xff] }
 0x91e   :  { %v5965_v34 = vpop.f32.mrf.mxu1  ;;  %6275 = vmatprep.subr.bf16.mxu1 %v13964_v40  ;;  %v13989_v5 = vld [vmem:[#allocation512_spill] sm:$0xff] }
 0x91f   :  { %7088 = vtanh.f32 %v5964_v35  ;;  %v5966_v49 = vadd.f32 %v5965_v34, %v5923_v54  ;;  %v13991_v35 = vld [vmem:[#allocation516_spill] sm:$0xff]  ;;  %v13994_v34 = vld [vmem:[#allocation522_spill] sm:$0xff] }
 0x920   :  { %v5967_v59 = vpop.f32.mrf.mxu1  ;;  %v13993_v54 = vld [vmem:[#allocation520_spill] sm:$0xff] }
 0x921   :  { %7090 = vtanh.f32 %v5966_v49  ;;  %v5968_v4 = vadd.f32 %v5967_v59, %v5925_v39  ;;  %6276 = vmatpush1.bf16.msra.mxu1 %v13965_v44  ;;  %v13995_v40 = vld [vmem:[#allocation524_spill] sm:$0xff]  ;;  %v13996_v49 = vld [vmem:[#allocation526_spill] sm:$0xff]  ;;  %v6008_v59 = vpop.f32.mrf.mxu0 }
 0x922   :  { %v5969_v14 = vpop.f32.mrf.mxu1  ;;  %6277 = vmatprep.subr.bf16.mxu1 %v13966_v13  ;;  %v13997_v39 = vld [vmem:[#allocation528_spill] sm:$0xff] }
 0x923   :  { %7092 = vtanh.f32 %v5968_v4  ;;  %v5970_v24 = vadd.f32 %v5969_v14, %v5927_v36  ;;  %v6010_v4 = vpop.f32.mrf.mxu0  ;;  %v5616_v36 = vld [vmem:[#allocation7 + $0x20] sm:$0xff] }
 0x925   :  { %7094 = vtanh.f32 %v5970_v24  ;;  %6278 = vmatpush1.bf16.msra.mxu1 %v13967_v12  ;;  %v6012_v14 = vpop.f32.mrf.mxu0  ;;  %v5617_v24 = vld [vmem:[#allocation7 + $0x28] sm:$0xff] }
 0x926   :  { %6279 = vmatprep.subr.bf16.mxu1 %v13968_v51  ;;  %v6007_v51 = vadd.f32 %v6006_v63, %v5616_v36  ;;  %v5618_v36 = vld [vmem:[#allocation7 + $0x30] sm:$0xff] }
 0x927   :  { %v6092_v12 = vpop.f32.mrf.mxu0 }
 0x929   :  { %6280 = vmatpush1.bf16.msra.mxu1 %v13969_v11  ;;  %v5624_v11 = vld [vmem:[#allocation7 + $0x60] sm:$0xff] }
 0x92a   :  { %6281 = vmatprep.subr.bf16.mxu1 %v13970_v27 }
 0x92c   :  { %v7089_v29 = vpop.eup %7088 }
 0x92d   :  { %v6334_v50 = vmul.f32 1.0000001, %v7089_v29  ;;  %6282 = vmatpush1.bf16.msra.mxu1 %v13972_v1  ;;  %v6009_v29 = vadd.f32 %v6008_v59, %v5617_v24  ;;  %v6011_v1 = vadd.f32 %v6010_v4, %v5624_v11  ;;  %v5619_v24 = vld [vmem:[#allocation7 + $0x38] sm:$0xff]  ;;  %v5626_v11 = vld [vmem:[#allocation7 + $0x70] sm:$0xff] }
 0x92e   :  { %v7091_v41 = vpop.eup %7090  ;;  %6283 = vmatprep.subr.bf16.mxu1 %v13973_v10 }
 0x92f   :  { %v6366_v18 = vadd.f32 %v6350_v26, %v6334_v50  ;;  %v6335_v31 = vmul.f32 1.0000001, %v7091_v41  ;;  %v6094_v26 = vpop.f32.mrf.mxu0 }
 0x930   :  { %v7093_v56 = vpop.eup %7092 }
 0x931   :  { %v6961_v2 = vclamps-f32 %v6366_v18, 1.0  ;;  %v6367_v16 = vadd.f32 %v6351_v9, %v6335_v31  ;;  %v6342_v7 = vmul.f32 1.0000001, %v7093_v56  ;;  %6284 = vmatpush1.bf16.msra.mxu1 %v13976_v19  ;;  %v6096_v58 = vpop.f32.mrf.mxu0 }
 0x932   :  { %v7095_v15 = vpop.eup %7094  ;;  %6285 = vmatprep.subr.bf16.mxu1 %v13977_v46 }
 0x933   :  { %6414 = vst [vmem:[#allocation10 + $0x10] sm:$0xff] %v6961_v2  ;;  %v6962_v8 = vclamps-f32 %v6367_v16, 1.0  ;;  %v6374_v45 = vadd.f32 %v6358_v21, %v6342_v7  ;;  %v6343_v38 = vmul.f32 1.0000001, %v7095_v15  ;;  %v6098_v19 = vpop.f32.mrf.mxu0 }
 0x935   :  { %6415 = vst [vmem:[#allocation10 + $0x18] sm:$0xff] %v6962_v8  ;;  %v6969_v57 = vclamps-f32 %v6374_v45, 1.0  ;;  %v6375_v20 = vadd.f32 %v6359_v43, %v6343_v38  ;;  %6286 = vmatpush1.bf16.msra.mxu1 %v13979_v23 }
 0x936   :  { %6287 = vmatprep.subr.bf16.mxu1 %v13980_v55 }
 0x937   :  { %6422 = vst [vmem:[#allocation10 + $0x50] sm:$0xff] %v6969_v57  ;;  %v6970_v17 = vclamps-f32 %v6375_v20, 1.0  ;;  %v13998_v57 = vld [vmem:[#allocation233_spill] sm:$0xff] }
 0x938   :  { %v6352_v20 = vmul.f32 0.0, %v13998_v57  ;;  %v6354_v57 = vmul.f32 0.0, %v10552_v25 }
 0x939   :  { %6423 = vst [vmem:[#allocation10 + $0x58] sm:$0xff] %v6970_v17  ;;  %6288 = vmatpush1.bf16.msra.mxu1 %v13981_v53  ;;  %v13999_v53 = vld [vmem:[#allocation301_spill] sm:$0xff] }
 0x93a   :  { %6289 = vmatprep.subr.bf16.mxu1 %v13982_v6  ;;  %v6353_v6 = vmul.f32 0.0, %v13999_v53 }
 0x93d   :  { %6290 = vmatpush2.bf16.msra.mxu1 %v13983_v3 }
 0x93e   :  { %6291 = vmatprep.subr.bf16.mxu1 %v13984_v0 }
 0x941   :  { %6292 = vmatpush2.bf16.msra.mxu1 %v13985_v33 }
 0x942   :  { %6293 = vmatprep.subr.bf16.mxu1 %v13986_v37 }
 0x945   :  { %6294 = vmatpush2.bf16.msra.mxu1 %v13987_v48  ;;  %v14000_v48 = vld [vmem:[#allocation535_spill] sm:$0xff] }
 0x946   :  { %6295 = vmatprep.subr.bf16.mxu1 %v13988_v60  ;;  %v6360_v60 = vmul.f32 0.0, %v14000_v48 }
 0x949   :  { %6296 = vmatpush2.bf16.msra.mxu1 %v13989_v5 }
 0x94a   :  { %6297 = vmatprep.subr.bf16.mxu1 %v13990_v30 }
 0x94d   :  { %6298 = vmatpush2.bf16.msra.mxu1 %v13991_v35 }
 0x94e   :  { %6299 = vmatprep.subr.bf16.mxu1 %v13992_v61 }
 0x951   :  { %6300 = vmatpush2.bf16.msra.mxu1 %v13993_v54  ;;  %v14001_v54 = vld [vmem:[#allocation390_spill] sm:$0xff] }
 0x952   :  { %6301 = vmatprep.subr.bf16.mxu1 %v13994_v34  ;;  %v6361_v34 = vmul.f32 0.0, %v14001_v54 }
 0x955   :  { %6302 = vmatpush2.bf16.msra.mxu1 %v13995_v40 }
 0x956   :  { %6303 = vmatprep.subr.bf16.mxu1 %v13996_v49 }
 0x959   :  { %6304 = vmatpush2.bf16.msra.mxu1 %v13997_v39 }
 0x95c   :  { %6306 = vmatmul.mubr.bf16.vlgmr.msra.gmra.mxu1 %v10564_v28  ;;  %v6049_v44 = vpop.f32.mrf.mxu1  ;;  %v6013_v28 = vadd.f32 %v6012_v14, %v5625_v62  ;;  %v5627_v62 = vld [vmem:[#allocation7 + $0x78] sm:$0xff] }
 0x95d   :  { %v6050_v50 = vadd.f32 %v6049_v44, %v6007_v51  ;;  %v6178_v63 = vpop.f32.mrf.mxu0 }
 0x95e   :  { %v6051_v13 = vpop.f32.mrf.mxu1  ;;  %v6179_v51 = vadd.f32 %v6178_v63, %v5618_v36 }
 0x95f   :  { %v6052_v41 = vadd.f32 %v6051_v13, %v6009_v29  ;;  %v6093_v31 = vadd.f32 %v6092_v12, %v6050_v50  ;;  %v6180_v59 = vpop.f32.mrf.mxu0 }
 0x960   :  { %v6053_v27 = vpop.f32.mrf.mxu1  ;;  %v6181_v29 = vadd.f32 %v6180_v59, %v5619_v24 }
 0x961   :  { %v6054_v18 = vadd.f32 %v6053_v27, %v6011_v1  ;;  %v6095_v16 = vadd.f32 %v6094_v26, %v6052_v41  ;;  %v6182_v4 = vpop.f32.mrf.mxu0 }
 0x962   :  { %v6055_v10 = vpop.f32.mrf.mxu1  ;;  %v6183_v1 = vadd.f32 %v6182_v4, %v5626_v11 }
 0x963   :  { %v6056_v56 = vadd.f32 %v6055_v10, %v6013_v28  ;;  %v6097_v21 = vadd.f32 %v6096_v58, %v6054_v18  ;;  %v6184_v14 = vpop.f32.mrf.mxu0 }
 0x964   :  { %v6185_v28 = vadd.f32 %v6184_v14, %v5627_v62 }
 0x965   :  { %v6099_v8 = vadd.f32 %v6098_v19, %v6056_v56 }
 0x99c   :  { %v6135_v9 = vpop.f32.mrf.mxu1 }
 0x99d   :  { %v6136_v2 = vadd.f32 %v6135_v9, %v6093_v31  ;;  %v6264_v12 = vpop.f32.mrf.mxu0 }
 0x99e   :  { %v6137_v7 = vpop.f32.mrf.mxu1 }
 0x99f   :  { %7096 = vtanh.f32 %v6136_v2  ;;  %v6138_v42 = vadd.f32 %v6137_v7, %v6095_v16  ;;  %v6266_v26 = vpop.f32.mrf.mxu0 }
 0x9a0   :  { %v6139_v15 = vpop.f32.mrf.mxu1 }
 0x9a1   :  { %7098 = vtanh.f32 %v6138_v42  ;;  %v6140_v46 = vadd.f32 %v6139_v15, %v6097_v21  ;;  %v6268_v58 = vpop.f32.mrf.mxu0 }
 0x9a2   :  { %v6141_v45 = vpop.f32.mrf.mxu1 }
 0x9a3   :  { %7100 = vtanh.f32 %v6140_v46  ;;  %v6142_v38 = vadd.f32 %v6141_v45, %v6099_v8  ;;  %v6270_v19 = vpop.f32.mrf.mxu0 }
 0x9a5   :  { %7102 = vtanh.f32 %v6142_v38 }
 0x9ac   :  { %v7097_v22 = vpop.eup %7096 }
 0x9ad   :  { %v6336_v43 = vmul.f32 1.0000001, %v7097_v22 }
 0x9ae   :  { %v7099_v23 = vpop.eup %7098 }
 0x9af   :  { %v6368_v55 = vadd.f32 %v6352_v20, %v6336_v43  ;;  %v6337_v17 = vmul.f32 1.0000001, %v7099_v23 }
 0x9b0   :  { %v7101_v3 = vpop.eup %7100 }
 0x9b1   :  { %v6963_v0 = vclamps-f32 %v6368_v55, 1.0  ;;  %v6369_v33 = vadd.f32 %v6353_v6, %v6337_v17  ;;  %v6344_v37 = vmul.f32 1.0000001, %v7101_v3  ;;  %v6355_v17 = vmul.f32 0.0, %v10558_v32 }
 0x9b2   :  { %v7103_v5 = vpop.eup %7102 }
 0x9b3   :  { %6416 = vst [vmem:[#allocation10 + $0x20] sm:$0xff] %v6963_v0  ;;  %v6964_v30 = vclamps-f32 %v6369_v33, 1.0  ;;  %v6376_v35 = vadd.f32 %v6360_v60, %v6344_v37  ;;  %v6345_v61 = vmul.f32 1.0000001, %v7103_v5  ;;  %v6362_v33 = vmul.f32 0.0, %v10554_v47 }
 0x9b5   :  { %6417 = vst [vmem:[#allocation10 + $0x28] sm:$0xff] %v6964_v30  ;;  %v6971_v40 = vclamps-f32 %v6376_v35, 1.0  ;;  %v6377_v49 = vadd.f32 %v6361_v34, %v6345_v61  ;;  %v6363_v30 = vmul.f32 0.0, %v10560_v52 }
 0x9b7   :  { %6424 = vst [vmem:[#allocation10 + $0x60] sm:$0xff] %v6971_v40  ;;  %v6972_v39 = vclamps-f32 %v6377_v49, 1.0 }
 0x9b9   :  { %6425 = vst [vmem:[#allocation10 + $0x68] sm:$0xff] %v6972_v39 }
 0x9dc   :  { %v6221_v44 = vpop.f32.mrf.mxu1 }
 0x9dd   :  { %v6222_v50 = vadd.f32 %v6221_v44, %v6179_v51 }
 0x9de   :  { %v6223_v13 = vpop.f32.mrf.mxu1 }
 0x9df   :  { %v6224_v41 = vadd.f32 %v6223_v13, %v6181_v29  ;;  %v6265_v31 = vadd.f32 %v6264_v12, %v6222_v50 }
 0x9e0   :  { %v6225_v27 = vpop.f32.mrf.mxu1 }
 0x9e1   :  { %v6226_v18 = vadd.f32 %v6225_v27, %v6183_v1  ;;  %v6267_v16 = vadd.f32 %v6266_v26, %v6224_v41 }
 0x9e2   :  { %v6227_v10 = vpop.f32.mrf.mxu1 }
 0x9e3   :  { %v6228_v56 = vadd.f32 %v6227_v10, %v6185_v28  ;;  %v6269_v21 = vadd.f32 %v6268_v58, %v6226_v18 }
 0x9e5   :  { %v6271_v8 = vadd.f32 %v6270_v19, %v6228_v56 }
 0xa1c   :  { %v6307_v9 = vpop.f32.mrf.mxu1 }
 0xa1d   :  { %v6308_v2 = vadd.f32 %v6307_v9, %v6265_v31 }
 0xa1e   :  { %v6309_v7 = vpop.f32.mrf.mxu1 }
 0xa1f   :  { %7104 = vtanh.f32 %v6308_v2  ;;  %v6310_v42 = vadd.f32 %v6309_v7, %v6267_v16 }
 0xa20   :  { %v6311_v15 = vpop.f32.mrf.mxu1 }
 0xa21   :  { %7106 = vtanh.f32 %v6310_v42  ;;  %v6312_v46 = vadd.f32 %v6311_v15, %v6269_v21 }
 0xa22   :  { %v6313_v45 = vpop.f32.mrf.mxu1 }
 0xa23   :  { %7108 = vtanh.f32 %v6312_v46  ;;  %v6314_v38 = vadd.f32 %v6313_v45, %v6271_v8 }
 0xa25   :  { %7110 = vtanh.f32 %v6314_v38 }
 0xa2c   :  { %v7105_v22 = vpop.eup %7104 }
 0xa2d   :  { %v6338_v43 = vmul.f32 1.0000001, %v7105_v22 }
 0xa2e   :  { %v7107_v20 = vpop.eup %7106 }
 0xa2f   :  { %v6370_v23 = vadd.f32 %v6354_v57, %v6338_v43  ;;  %v6339_v55 = vmul.f32 1.0000001, %v7107_v20 }
 0xa30   :  { %v7109_v53 = vpop.eup %7108 }
 0xa31   :  { %v6965_v6 = vclamps-f32 %v6370_v23, 1.0  ;;  %v6371_v3 = vadd.f32 %v6355_v17, %v6339_v55  ;;  %v6346_v0 = vmul.f32 1.0000001, %v7109_v53 }
 0xa32   :  { %v7111_v37 = vpop.eup %7110 }
 0xa33   :  { %6418 = vst [vmem:[#allocation10 + $0x30] sm:$0xff] %v6965_v6  ;;  %v6966_v48 = vclamps-f32 %v6371_v3, 1.0  ;;  %v6378_v60 = vadd.f32 %v6362_v33, %v6346_v0  ;;  %v6347_v5 = vmul.f32 1.0000001, %v7111_v37 }
 0xa35   :  { %6419 = vst [vmem:[#allocation10 + $0x38] sm:$0xff] %v6966_v48  ;;  %v6973_v25 = vclamps-f32 %v6378_v60, 1.0  ;;  %v6379_v35 = vadd.f32 %v6363_v30, %v6347_v5 }
 0xa37   :  { %6426 = vst [vmem:[#allocation10 + $0x70] sm:$0xff] %v6973_v25  ;;  %v6974_v32 = vclamps-f32 %v6379_v35, 1.0 }
 0xa39   :  { %6427 = vst [vmem:[#allocation10 + $0x78] sm:$0xff] %v6974_v32 }
 0xa3a   :  { %7251 = shalt.err (!%p7248_p10)
}
 0xa3b   :  { %6439 = dma.vmem_to_hbm [thread:$0]  %s6434_s3, 2048, %s10939_s4, [#allocation4], %s7270_s20, %s7270_s20, %s7271_s21  }
 0xa3c   :  { %7266 = dma.done.wait [#allocation4], 2048  }
 0xa3d   :  { %7267 = vsyncadd [#allocation4], 4294965248 }
 0xa3e   :  { %6443 = vsyncpa [#allocation3], 1 }
 0xa3f   :  { %6444 = vsyncpa [#allocation6], 1 }
 0xa40   :  { %6445 = vsyncpa [#allocation9], 1 }
 0xa41   :  { %6446 = vsyncpa [#allocation4], 1 }

</bundles_post_ra>
